<compile_context>
chip_gen: v7x
topology: tpu7x:2x2x1
jax: 0.10.0
libtpu: 0.0.40
codegen_flags: <defaults>
</compile_context>

<pallas_src>
import numpy as np
import jax
import jax.numpy as jnp
from jax import lax
from jax.experimental import pallas as pl
from jax.experimental.pallas import tpu as pltpu

_EPS = 1e-5


# ----------------------------- layout helpers -----------------------------

def _upsample_matrix(hl, wl):
    """0/1 matrix (hl*(wl+2), (2hl+3)*(2wl+2)): nearest-2x upsample of the producer
    band layout directly into this stage's zero-padded slab layout."""
    H, W = 2 * hl, 2 * wl
    wlp, wp = wl + 2, W + 2
    mlow, r = hl * wlp, (H + 3) * wp
    i = np.arange(mlow)[:, None]
    yl, xl = i // wlp, i % wlp
    j = np.arange(r)[None, :]
    yp, xp = j // wp, j % wp
    src_ok = xl < wl
    dst_ok = (yp >= 1) & (yp <= H) & (xp >= 1) & (xp <= W)
    match = (yl == (yp - 1) // 2) & (xl == (xp - 1) // 2)
    return (src_ok & dst_ok & match).astype(np.float32)


def _band_mask(H, W):
    """(1, H*(W+2)) mask: 1 on real pixels, 0 on the 2 junk lanes per row."""
    wp = W + 2
    m = np.arange(H * wp)
    return ((m % wp) < W).astype(np.float32)[None, :]


def _fold_conv_weight(w):
    """(3,3,Cin,Cout) HWIO -> (9*Cout, Cin); rows [k*Cout:(k+1)*Cout] hold tap k."""
    cin, cout = w.shape[2], w.shape[3]
    return jnp.transpose(w.reshape(9, cin, cout), (0, 2, 1)).reshape(9 * cout, cin)


def _to_band(t):
    """NCHW -> (N, C, H*(W+2)) band layout (2 zero junk lanes per row), bf16."""
    t = t.astype(jnp.bfloat16)
    n, c, h, w = t.shape
    return jnp.pad(t, ((0, 0), (0, 0), (0, 0), (0, 2))).reshape(n, c, h * (w + 2))


def _to_slab(t):
    """NCHW -> (N, C, (H+3)*(W+2)) zero-padded flattened slab layout, bf16."""
    t = t.astype(jnp.bfloat16)
    n, c, h, w = t.shape
    return jnp.pad(t, ((0, 0), (0, 0), (1, 2), (1, 1))).reshape(n, c, (h + 3) * (w + 2))


# ----------------------------- fused stage kernel -----------------------------

def _make_stage_kernel(*, H, W, Cy, Cs, C1, C2, fuse_classifier):
    """Fused: upsample2x(y) ++ skip -> conv3x3+ReLU+BN -> conv3x3+ReLU+BN [-> 1x1 cls].

    One image per grid step.  Each conv is a single MXU dot of the folded weight
    (9*Cout, Cin) against a zero-padded slab (Cin, R); the 9 tap shifts are static
    lane-window slices of the f32 result.
    """
    Wp = W + 2
    Mr = H * Wp                 # output band length; index m = y*Wp + x
    R = (H + 3) * Wp            # padded slab length (1 top + 2 bottom pad rows)
    offs = tuple(ky * Wp + kx for ky in range(3) for kx in range(3))

    def shifted_tap_sum(p, cout):
        acc = p[0:cout, offs[0]:offs[0] + Mr]
        for k in range(1, 9):
            acc = acc + p[k * cout:(k + 1) * cout, offs[k]:offs[k] + Mr]
        return acc

    def kernel(*refs):
        if fuse_classifier:
            (y_ref, s_ref, u_ref, xm_ref,
             w1_ref, b1_ref, sc1_ref, sh1_ref,
             w2_ref, b2_ref, sc2_ref, sh2_ref,
             wc_ref, bc_ref, o_ref, cat_ref, mid_ref) = refs
        else:
            (y_ref, s_ref, u_ref, xm_ref,
             w1_ref, b1_ref, sc1_ref, sh1_ref,
             w2_ref, b2_ref, sc2_ref, sh2_ref,
             o_ref, cat_ref, mid_ref) = refs

        # --- nearest-2x upsample placed straight into the zero-padded slab via one
        # --- selection matmul; concat with the skip in a single VMEM scratch.
        up = jnp.dot(y_ref[...], u_ref[...], preferred_element_type=jnp.float32)
        cat_ref[0:Cy, :] = up.astype(jnp.bfloat16)
        cat_ref[Cy:Cy + Cs, :] = s_ref[...]

        # --- conv1: one (9*C1, Cy+Cs) @ (Cy+Cs, R) dot, bias+ReLU+BN in f32.
        p1 = jnp.dot(w1_ref[...], cat_ref[...], preferred_element_type=jnp.float32)
        h1 = shifted_tap_sum(p1, C1)
        h1 = jnp.maximum(h1 + b1_ref[...], 0.0) * sc1_ref[...] + sh1_ref[...]
        h1 = h1 * xm_ref[...]       # zero the 2 junk lanes per row -> valid conv pads

        # --- embed h1 in the zero-padded mid slab.  Only two tiny pad strips are
        # --- re-zeroed per step (no reliance on scratch persistence -> megacore-safe).
        mid_ref[:, 0:Wp + 1] = jnp.zeros((C1, Wp + 1), jnp.bfloat16)
        mid_ref[:, Wp + 1:Wp + 1 + Mr] = h1.astype(jnp.bfloat16)
        mid_ref[:, Wp + 1 + Mr:R] = jnp.zeros((C1, R - Mr - Wp - 1), jnp.bfloat16)

        # --- conv2 (+ optional fused 1x1 classifier). ---
        p2 = jnp.dot(w2_ref[...], mid_ref[...], preferred_element_type=jnp.float32)
        h2 = shifted_tap_sum(p2, C2)
        h2 = jnp.maximum(h2 + b2_ref[...], 0.0) * sc2_ref[...] + sh2_ref[...]

        if fuse_classifier:
            logits = jnp.dot(wc_ref[...], h2.astype(jnp.bfloat16),
                             preferred_element_type=jnp.float32) + bc_ref[...]
            o_ref[...] = logits
        else:
            o_ref[...] = h2.astype(jnp.bfloat16)   # junk lanes never read downstream

    return kernel


def _fused_stage(y_band, hw_low, skip_slab, block_params, classifier=None):
    """Run one fused decoder stage.

    y_band:    (N, Cy, Hl*(Wl+2)) bf16 band from the previous stage (or wrapper).
    skip_slab: (N, Cs, (H+3)*(W+2)) bf16 zero-padded slab with H = 2*Hl, W = 2*Wl.
    Returns a (N, Cout, H*(W+2)) band (bf16) or logits (f32) if classifier is fused.
    """
    hl, wl = hw_low
    p1, p2 = block_params
    N, Cy, Mlow = y_band.shape
    _, Cs, Rs = skip_slab.shape
    H, W = 2 * hl, 2 * wl
    Wp = W + 2
    Mr = H * Wp
    R = (H + 3) * Wp
    assert Mlow == hl * (wl + 2), (Mlow, hl, wl)
    assert Rs == R, (Rs, R)
    Ccat = Cy + Cs
    C1 = p1["w"].shape[-1]
    C2 = p2["w"].shape[-1]

    u_mat = jnp.asarray(_upsample_matrix(hl, wl), jnp.bfloat16)       # (Mlow, R)
    xmask = jnp.asarray(_band_mask(H, W), jnp.float32)                # (1, Mr)
    w1 = _fold_conv_weight(p1["w"]).astype(jnp.bfloat16)              # (9*C1, Ccat)
    w2 = _fold_conv_weight(p2["w"]).astype(jnp.bfloat16)              # (9*C2, C1)

    inputs = [
        y_band, skip_slab, u_mat, xmask,
        w1, p1["b"].reshape(C1, 1), p1["scale"].reshape(C1, 1), p1["shift"].reshape(C1, 1),
        w2, p2["b"].reshape(C2, 1), p2["scale"].reshape(C2, 1), p2["shift"].reshape(C2, 1),
    ]
    in_specs = [
        pl.BlockSpec((None, Cy, Mlow), lambda n: (n, 0, 0)),
        pl.BlockSpec((None, Cs, R), lambda n: (n, 0, 0)),
        pl.BlockSpec((Mlow, R), lambda n: (0, 0)),
        pl.BlockSpec((1, Mr), lambda n: (0, 0)),
        pl.BlockSpec((9 * C1, Ccat), lambda n: (0, 0)),
        pl.BlockSpec((C1, 1), lambda n: (0, 0)),
        pl.BlockSpec((C1, 1), lambda n: (0, 0)),
        pl.BlockSpec((C1, 1), lambda n: (0, 0)),
        pl.BlockSpec((9 * C2, C1), lambda n: (0, 0)),
        pl.BlockSpec((C2, 1), lambda n: (0, 0)),
        pl.BlockSpec((C2, 1), lambda n: (0, 0)),
        pl.BlockSpec((C2, 1), lambda n: (0, 0)),
    ]
    if classifier is not None:
        Co = classifier["w"].shape[-1]
        inputs += [classifier["w"].T.astype(jnp.bfloat16),            # (Co, C2)
                   classifier["b"].reshape(Co, 1).astype(jnp.float32)]
        in_specs += [pl.BlockSpec((Co, C2), lambda n: (0, 0)),
                     pl.BlockSpec((Co, 1), lambda n: (0, 0))]
        out_dtype, Cout = jnp.float32, Co
    else:
        out_dtype, Cout = jnp.bfloat16, C2

    # Matmul flops for the whole call (upsample + both convs [+ classifier]).
    flops = 2 * N * (Cy * Mlow * R + 9 * C1 * Ccat * R + 9 * C2 * C1 * R
                     + (Cout * C2 * Mr if classifier is not None else 0))
    bytes_accessed = (N * (Cy * Mlow + Cs * R) * 2
                      + N * Cout * Mr * (4 if classifier is not None else 2)
                      + (Mlow * R + 9 * C1 * Ccat + 9 * C2 * C1) * 2 + 4 * Mr)
    # Rough per-step VMEM need: double-buffered blocks + scratch + big f32 temporaries.
    vmem_est = (2 * 2 * (Cy * Mlow + Cs * R + Mlow * R) + 2 * (Ccat + C1) * R
                + 4 * R * (9 * C1 + 9 * C2 + Cy) + 4 * 4 * Mr * (C1 + C2))
    vmem_limit = int(min(max(4 * vmem_est, 32 * 1024 * 1024), 64 * 1024 * 1024))

    kernel = _make_stage_kernel(H=H, W=W, Cy=Cy, Cs=Cs, C1=C1, C2=C2,
                                fuse_classifier=classifier is not None)
    return pl.pallas_call(
        kernel,
        out_shape=jax.ShapeDtypeStruct((N, Cout, Mr), out_dtype),
        grid=(N,),
        in_specs=in_specs,
        out_specs=pl.BlockSpec((None, Cout, Mr), lambda n: (n, 0, 0)),
        scratch_shapes=[pltpu.VMEM((Ccat, R), jnp.bfloat16),   # concat slab
                        pltpu.VMEM((C1, R), jnp.bfloat16)],    # conv1->conv2 slab
        compiler_params=pltpu.CompilerParams(
            dimension_semantics=("parallel",),
            vmem_limit_bytes=vmem_limit),
        cost_estimate=pl.CostEstimate(flops=int(flops), transcendentals=0,
                                      bytes_accessed=int(bytes_accessed)),
    )(*inputs)


# ----------------------------- params & forward -----------------------------

def _init_conv_bn(key, cin, cout):
    kw, kb = jax.random.split(key)
    w = jax.random.normal(kw, (3, 3, cin, cout), jnp.float32) / jnp.sqrt(9.0 * cin)
    b = jax.random.normal(kb, (cout,), jnp.float32) * 0.01
    gamma = jnp.ones((cout,), jnp.float32)          # nn.BatchNorm2d default init
    beta = jnp.zeros((cout,), jnp.float32)
    running_mean = jnp.zeros((cout,), jnp.float32)
    running_var = jnp.ones((cout,), jnp.float32)
    scale = gamma / jnp.sqrt(running_var + _EPS)
    shift = beta - running_mean * scale
    return dict(w=w, b=b, scale=scale, shift=shift)


def init_decoder_params(key, out_channels, init_channels):
    ic = init_channels
    specs = {
        "decoder5": [(ic * 8, ic * 4), (ic * 4, ic * 4)],
        "decoder4": [(ic * 8, ic * 4), (ic * 4, ic * 4)],
        "decoder3": [(ic * 4 + ic * 2, ic * 2), (ic * 2, ic * 2)],
        "decoder2": [(ic * 2 + ic, ic), (ic, ic)],
        "decoder1": [(ic * 2, ic // 2), (ic // 2, ic // 2)],
    }
    params = {}
    for name, blocks in specs.items():
        blk_params = []
        for cin, cout in blocks:
            key, sub = jax.random.split(key)
            blk_params.append(_init_conv_bn(sub, cin, cout))
        params[name] = blk_params
    key, kw, kb = jax.random.split(key, 3)
    params["classifier"] = dict(
        w=jax.random.normal(kw, (ic // 2, out_channels), jnp.float32) / jnp.sqrt(ic / 2.0),
        b=jax.random.normal(kb, (out_channels,), jnp.float32) * 0.01,
    )
    return params


def unet_decoder_forward(params, x, *connected_features):
    """Inputs / output are NCHW (PyTorch convention); compute runs channels-first
    with the flattened (padded) spatial axis on lanes."""
    f1, f2, f3, f4, f5 = connected_features
    n, _, h, w = x.shape
    y = _to_band(x)
    y = _fused_stage(y, (h, w), _to_slab(f5), params["decoder5"])
    y = _fused_stage(y, (2 * h, 2 * w), _to_slab(f4), params["decoder4"])
    y = _fused_stage(y, (4 * h, 4 * w), _to_slab(f3), params["decoder3"])
    y = _fused_stage(y, (8 * h, 8 * w), _to_slab(f2), params["decoder2"])
    logits = _fused_stage(y, (16 * h, 16 * w), _to_slab(f1), params["decoder1"],
                          classifier=params["classifier"])
    H, W = 32 * h, 32 * w
    co = logits.shape[1]
    return logits.reshape(n, co, H, W + 2)[:, :, :, :W]


# ----------------------------- pure-JAX reference -----------------------------
# Mirrors the kernel's numerics: bf16 activations at stage boundaries, bf16 MXU
# operands, f32 accumulation, bias/ReLU/BN in f32.

def _ref_stage(y_nhwc, skip, block_params):
    up = jnp.repeat(jnp.repeat(y_nhwc, 2, axis=1), 2, axis=2)
    h = jnp.concatenate([up, skip], axis=-1)
    for p in block_params:
        h = lax.conv_general_dilated(
            h, p["w"].astype(jnp.bfloat16), (1, 1), "SAME",
            dimension_numbers=("NHWC", "HWIO", "NHWC"),
            preferred_element_type=jnp.float32)
        h = jnp.maximum(h + p["b"], 0.0) * p["scale"] + p["shift"]
        h = h.astype(jnp.bfloat16)
    return h


def unet_decoder_reference(params, x, *connected_features):
    to_nhwc = lambda t: jnp.transpose(t, (0, 2, 3, 1)).astype(jnp.bfloat16)
    y = to_nhwc(x)
    feats = [to_nhwc(f) for f in connected_features]
    y = _ref_stage(y, feats[4], params["decoder5"])
    y = _ref_stage(y, feats[3], params["decoder4"])
    y = _ref_stage(y, feats[2], params["decoder3"])
    y = _ref_stage(y, feats[1], params["decoder2"])
    y = _ref_stage(y, feats[0], params["decoder1"])
    logits = jnp.einsum("nhwc,co->nhwo", y,
                        params["classifier"]["w"].astype(jnp.bfloat16),
                        preferred_element_type=jnp.float32)
    logits = logits + params["classifier"]["b"]
    return jnp.transpose(logits, (0, 3, 1, 2))


# ----------------------------- main -----------------------------

if __name__ == "__main__":
    N, out_ch, init_ch, H, W = 2, 4, 8, 32, 32
    key = jax.random.PRNGKey(0)
    kp, kx, k1, k2, k3, k4, k5 = jax.random.split(key, 7)
    params = init_decoder_params(kp, out_ch, init_ch)

    # Inputs matching the decoder's forward signature (encoder outputs, NCHW):
    x = jax.random.normal(kx, (N, init_ch * 4, H // 32, W // 32), jnp.float32)
    f1 = jax.random.normal(k1, (N, init_ch, H, W), jnp.float32)
    f2 = jax.random.normal(k2, (N, init_ch, H // 2, W // 2), jnp.float32)
    f3 = jax.random.normal(k3, (N, init_ch * 2, H // 4, W // 4), jnp.float32)
    f4 = jax.random.normal(k4, (N, init_ch * 4, H // 8, W // 8), jnp.float32)
    f5 = jax.random.normal(k5, (N, init_ch * 4, H // 16, W // 16), jnp.float32)

    fwd = jax.jit(unet_decoder_forward)
    ref_fn = jax.jit(unet_decoder_reference)

    out = jax.block_until_ready(fwd(params, x, f1, f2, f3, f4, f5))
    assert out.shape == (N, out_ch, H, W), out.shape

    ref = jax.block_until_ready(ref_fn(params, x, f1, f2, f3, f4, f5))
    max_err = float(jnp.max(jnp.abs(out - ref)))
    assert jnp.allclose(out, ref, atol=5e-3, rtol=5e-3), max_err

    print("KERNEL_OK")
</pallas_src>

<mosaic_0001>
module attributes {stable_mosaic.version = 11 : i64} {
  func.func @kernel(%arg0: i32, %arg1: memref<1x32x3xbf16, #tpu.memory_space<vmem>>, %arg2: memref<1x32x20xbf16, #tpu.memory_space<vmem>>, %arg3: memref<3x20xbf16, #tpu.memory_space<vmem>>, %arg4: memref<1x8xf32, #tpu.memory_space<vmem>>, %arg5: memref<288x64xbf16, #tpu.memory_space<vmem>>, %arg6: memref<32x1xf32, #tpu.memory_space<vmem>>, %arg7: memref<32x1xf32, #tpu.memory_space<vmem>>, %arg8: memref<32x1xf32, #tpu.memory_space<vmem>>, %arg9: memref<288x32xbf16, #tpu.memory_space<vmem>>, %arg10: memref<32x1xf32, #tpu.memory_space<vmem>>, %arg11: memref<32x1xf32, #tpu.memory_space<vmem>>, %arg12: memref<32x1xf32, #tpu.memory_space<vmem>>, %arg13: memref<1x32x8xbf16, #tpu.memory_space<vmem>>, %arg14: memref<64x20xbf16, #tpu.memory_space<vmem>>, %arg15: memref<32x20xbf16, #tpu.memory_space<vmem>>) attributes {dimension_semantics = [#tpu.dimension_semantics<parallel>], iteration_bounds = array<i64: 2>, scalar_prefetch = 0 : i64, scratch_operands = 2 : i64, tpu.core_type = #tpu.core_type<tc>, window_params = [{transform_indices = @transform_0, window_bounds = array<i64: 1, 32, 3>}, {transform_indices = @transform_1, window_bounds = array<i64: 1, 32, 20>}, {pipeline_mode = #tpu.pipeline_mode<synchronous>, transform_indices = @transform_2, window_bounds = array<i64: 3, 20>}, {pipeline_mode = #tpu.pipeline_mode<synchronous>, transform_indices = @transform_3, window_bounds = array<i64: 1, 8>}, {pipeline_mode = #tpu.pipeline_mode<synchronous>, transform_indices = @transform_4, window_bounds = array<i64: 288, 64>}, {pipeline_mode = #tpu.pipeline_mode<synchronous>, transform_indices = @transform_5, window_bounds = array<i64: 32, 1>}, {pipeline_mode = #tpu.pipeline_mode<synchronous>, transform_indices = @transform_6, window_bounds = array<i64: 32, 1>}, {pipeline_mode = #tpu.pipeline_mode<synchronous>, transform_indices = @transform_7, window_bounds = array<i64: 32, 1>}, {pipeline_mode = #tpu.pipeline_mode<synchronous>, transform_indices = @transform_8, window_bounds = array<i64: 288, 32>}, {pipeline_mode = #tpu.pipeline_mode<synchronous>, transform_indices = @transform_9, window_bounds = array<i64: 32, 1>}, {pipeline_mode = #tpu.pipeline_mode<synchronous>, transform_indices = @transform_10, window_bounds = array<i64: 32, 1>}, {pipeline_mode = #tpu.pipeline_mode<synchronous>, transform_indices = @transform_11, window_bounds = array<i64: 32, 1>}, {transform_indices = @transform_12, window_bounds = array<i64: 1, 32, 8>}]} {
    %c0 = arith.constant 0 : index
    %c0_0 = arith.constant 0 : index
    %c0_1 = arith.constant 0 : index
    %0 = vector.load %arg1[%c0, %c0_0, %c0_1] : memref<1x32x3xbf16, #tpu.memory_space<vmem>>, vector<1x32x3xbf16>
    %1 = vector.shape_cast %0 : vector<1x32x3xbf16> to vector<32x3xbf16>
    %c0_2 = arith.constant 0 : index
    %c0_3 = arith.constant 0 : index
    %2 = vector.load %arg3[%c0_2, %c0_3] : memref<3x20xbf16, #tpu.memory_space<vmem>>, vector<3x20xbf16>
    %cst = arith.constant dense<0.000000e+00> : vector<32x20xf32>
    %3 = tpu.matmul %1, %2, %cst {dimension_numbers = #tpu.dot_dimension_numbers<[1], [0], [0], [1], [0, 0, 1, 1], [], []>} : vector<32x3xbf16>, vector<3x20xbf16>, vector<32x20xf32> -> vector<32x20xf32>
    %4 = arith.truncf %3 : vector<32x20xf32> to vector<32x20xbf16>
    %c0_4 = arith.constant 0 : index
    %c0_5 = arith.constant 0 : index
    %5 = vector.load %arg14[%c0_4, %c0_5] : memref<64x20xbf16, #tpu.memory_space<vmem>>, vector<32x20xbf16>
    tpu.vector_store %arg14[%c0_4, %c0_5], %4 {strides = array<i32>} : memref<64x20xbf16, #tpu.memory_space<vmem>>, vector<32x20xbf16>,
    %c0_6 = arith.constant 0 : index
    %c0_7 = arith.constant 0 : index
    %c0_8 = arith.constant 0 : index
    %6 = vector.load %arg2[%c0_6, %c0_7, %c0_8] : memref<1x32x20xbf16, #tpu.memory_space<vmem>>, vector<1x32x20xbf16>
    %7 = vector.shape_cast %6 : vector<1x32x20xbf16> to vector<32x20xbf16>
    %c32 = arith.constant 32 : index
    %c0_9 = arith.constant 0 : index
    %8 = vector.load %arg14[%c32, %c0_9] : memref<64x20xbf16, #tpu.memory_space<vmem>>, vector<32x20xbf16>
    tpu.vector_store %arg14[%c32, %c0_9], %7 {strides = array<i32>} : memref<64x20xbf16, #tpu.memory_space<vmem>>, vector<32x20xbf16>,
    %c0_10 = arith.constant 0 : index
    %c0_11 = arith.constant 0 : index
    %9 = vector.load %arg5[%c0_10, %c0_11] : memref<288x64xbf16, #tpu.memory_space<vmem>>, vector<288x64xbf16>
    %c0_12 = arith.constant 0 : index
    %c0_13 = arith.constant 0 : index
    %10 = vector.load %arg14[%c0_12, %c0_13] : memref<64x20xbf16, #tpu.memory_space<vmem>>, vector<64x20xbf16>
    %cst_14 = arith.constant dense<0.000000e+00> : vector<288x20xf32>
    %11 = tpu.matmul %9, %10, %cst_14 {dimension_numbers = #tpu.dot_dimension_numbers<[1], [0], [0], [1], [0, 0, 1, 1], [], []>} : vector<288x64xbf16>, vector<64x20xbf16>, vector<288x20xf32> -> vector<288x20xf32>
    %12 = vector.extract_strided_slice %11 {offsets = [0, 0], sizes = [32, 8], strides = [1, 1]} : vector<288x20xf32> to vector<32x8xf32>
    %13 = vector.extract_strided_slice %11 {offsets = [32, 1], sizes = [32, 8], strides = [1, 1]} : vector<288x20xf32> to vector<32x8xf32>
    %14 = arith.addf %12, %13 : vector<32x8xf32>
    %15 = vector.extract_strided_slice %11 {offsets = [64, 2], sizes = [32, 8], strides = [1, 1]} : vector<288x20xf32> to vector<32x8xf32>
    %16 = arith.addf %14, %15 : vector<32x8xf32>
    %17 = vector.extract_strided_slice %11 {offsets = [96, 4], sizes = [32, 8], strides = [1, 1]} : vector<288x20xf32> to vector<32x8xf32>
    %18 = arith.addf %16, %17 : vector<32x8xf32>
    %19 = vector.extract_strided_slice %11 {offsets = [128, 5], sizes = [32, 8], strides = [1, 1]} : vector<288x20xf32> to vector<32x8xf32>
    %20 = arith.addf %18, %19 : vector<32x8xf32>
    %21 = vector.extract_strided_slice %11 {offsets = [160, 6], sizes = [32, 8], strides = [1, 1]} : vector<288x20xf32> to vector<32x8xf32>
    %22 = arith.addf %20, %21 : vector<32x8xf32>
    %23 = vector.extract_strided_slice %11 {offsets = [192, 8], sizes = [32, 8], strides = [1, 1]} : vector<288x20xf32> to vector<32x8xf32>
    %24 = arith.addf %22, %23 : vector<32x8xf32>
    %25 = vector.extract_strided_slice %11 {offsets = [224, 9], sizes = [32, 8], strides = [1, 1]} : vector<288x20xf32> to vector<32x8xf32>
    %26 = arith.addf %24, %25 : vector<32x8xf32>
    %27 = vector.extract_strided_slice %11 {offsets = [256, 10], sizes = [32, 8], strides = [1, 1]} : vector<288x20xf32> to vector<32x8xf32>
    %28 = arith.addf %26, %27 : vector<32x8xf32>
    %c0_15 = arith.constant 0 : index
    %c0_16 = arith.constant 0 : index
    %29 = vector.load %arg6[%c0_15, %c0_16] : memref<32x1xf32, #tpu.memory_space<vmem>>, vector<32x1xf32>
    %30 = vector.broadcast %29 : vector<32x1xf32> to vector<32x8xf32>
    %31 = arith.addf %28, %30 : vector<32x8xf32>
    %cst_17 = arith.constant 0.000000e+00 : f32
    %32 = vector.broadcast %cst_17 : f32 to vector<32x8xf32>
    %33 = arith.maximumf %31, %32 : vector<32x8xf32>
    %c0_18 = arith.constant 0 : index
    %c0_19 = arith.constant 0 : index
    %34 = vector.load %arg7[%c0_18, %c0_19] : memref<32x1xf32, #tpu.memory_space<vmem>>, vector<32x1xf32>
    %35 = vector.broadcast %34 : vector<32x1xf32> to vector<32x8xf32>
    %36 = arith.mulf %33, %35 : vector<32x8xf32>
    %c0_20 = arith.constant 0 : index
    %c0_21 = arith.constant 0 : index
    %37 = vector.load %arg8[%c0_20, %c0_21] : memref<32x1xf32, #tpu.memory_space<vmem>>, vector<32x1xf32>
    %38 = vector.broadcast %37 : vector<32x1xf32> to vector<32x8xf32>
    %39 = arith.addf %36, %38 : vector<32x8xf32>
    %c0_22 = arith.constant 0 : index
    %c0_23 = arith.constant 0 : index
    %40 = vector.load %arg4[%c0_22, %c0_23] : memref<1x8xf32, #tpu.memory_space<vmem>>, vector<1x8xf32>
    %41 = vector.broadcast %40 : vector<1x8xf32> to vector<32x8xf32>
    %42 = arith.mulf %39, %41 : vector<32x8xf32>
    %cst_24 = arith.constant 0.000000e+00 : bf16
    %43 = vector.broadcast %cst_24 : bf16 to vector<32x5xbf16>
    %c0_25 = arith.constant 0 : index
    %c0_26 = arith.constant 0 : index
    %44 = vector.load %arg15[%c0_25, %c0_26] : memref<32x20xbf16, #tpu.memory_space<vmem>>, vector<32x5xbf16>
    tpu.vector_store %arg15[%c0_25, %c0_26], %43 {strides = array<i32>} : memref<32x20xbf16, #tpu.memory_space<vmem>>, vector<32x5xbf16>,
    %45 = arith.truncf %42 : vector<32x8xf32> to vector<32x8xbf16>
    %c0_27 = arith.constant 0 : index
    %c5 = arith.constant 5 : index
    %46 = vector.load %arg15[%c0_27, %c5] : memref<32x20xbf16, #tpu.memory_space<vmem>>, vector<32x8xbf16>
    tpu.vector_store %arg15[%c0_27, %c5], %45 {strides = array<i32>} : memref<32x20xbf16, #tpu.memory_space<vmem>>, vector<32x8xbf16>,
    %cst_28 = arith.constant 0.000000e+00 : bf16
    %47 = vector.broadcast %cst_28 : bf16 to vector<32x7xbf16>
    %c0_29 = arith.constant 0 : index
    %c13 = arith.constant 13 : index
    %48 = vector.load %arg15[%c0_29, %c13] : memref<32x20xbf16, #tpu.memory_space<vmem>>, vector<32x7xbf16>
    tpu.vector_store %arg15[%c0_29, %c13], %47 {strides = array<i32>} : memref<32x20xbf16, #tpu.memory_space<vmem>>, vector<32x7xbf16>,
    %c0_30 = arith.constant 0 : index
    %c0_31 = arith.constant 0 : index
    %49 = vector.load %arg9[%c0_30, %c0_31] : memref<288x32xbf16, #tpu.memory_space<vmem>>, vector<288x32xbf16>
    %c0_32 = arith.constant 0 : index
    %c0_33 = arith.constant 0 : index
    %50 = vector.load %arg15[%c0_32, %c0_33] : memref<32x20xbf16, #tpu.memory_space<vmem>>, vector<32x20xbf16>
    %cst_34 = arith.constant dense<0.000000e+00> : vector<288x20xf32>
    %51 = tpu.matmul %49, %50, %cst_34 {dimension_numbers = #tpu.dot_dimension_numbers<[1], [0], [0], [1], [0, 0, 1, 1], [], []>} : vector<288x32xbf16>, vector<32x20xbf16>, vector<288x20xf32> -> vector<288x20xf32>
    %52 = vector.extract_strided_slice %51 {offsets = [0, 0], sizes = [32, 8], strides = [1, 1]} : vector<288x20xf32> to vector<32x8xf32>
    %53 = vector.extract_strided_slice %51 {offsets = [32, 1], sizes = [32, 8], strides = [1, 1]} : vector<288x20xf32> to vector<32x8xf32>
    %54 = arith.addf %52, %53 : vector<32x8xf32>
    %55 = vector.extract_strided_slice %51 {offsets = [64, 2], sizes = [32, 8], strides = [1, 1]} : vector<288x20xf32> to vector<32x8xf32>
    %56 = arith.addf %54, %55 : vector<32x8xf32>
    %57 = vector.extract_strided_slice %51 {offsets = [96, 4], sizes = [32, 8], strides = [1, 1]} : vector<288x20xf32> to vector<32x8xf32>
    %58 = arith.addf %56, %57 : vector<32x8xf32>
    %59 = vector.extract_strided_slice %51 {offsets = [128, 5], sizes = [32, 8], strides = [1, 1]} : vector<288x20xf32> to vector<32x8xf32>
    %60 = arith.addf %58, %59 : vector<32x8xf32>
    %61 = vector.extract_strided_slice %51 {offsets = [160, 6], sizes = [32, 8], strides = [1, 1]} : vector<288x20xf32> to vector<32x8xf32>
    %62 = arith.addf %60, %61 : vector<32x8xf32>
    %63 = vector.extract_strided_slice %51 {offsets = [192, 8], sizes = [32, 8], strides = [1, 1]} : vector<288x20xf32> to vector<32x8xf32>
    %64 = arith.addf %62, %63 : vector<32x8xf32>
    %65 = vector.extract_strided_slice %51 {offsets = [224, 9], sizes = [32, 8], strides = [1, 1]} : vector<288x20xf32> to vector<32x8xf32>
    %66 = arith.addf %64, %65 : vector<32x8xf32>
    %67 = vector.extract_strided_slice %51 {offsets = [256, 10], sizes = [32, 8], strides = [1, 1]} : vector<288x20xf32> to vector<32x8xf32>
    %68 = arith.addf %66, %67 : vector<32x8xf32>
    %c0_35 = arith.constant 0 : index
    %c0_36 = arith.constant 0 : index
    %69 = vector.load %arg10[%c0_35, %c0_36] : memref<32x1xf32, #tpu.memory_space<vmem>>, vector<32x1xf32>
    %70 = vector.broadcast %69 : vector<32x1xf32> to vector<32x8xf32>
    %71 = arith.addf %68, %70 : vector<32x8xf32>
    %cst_37 = arith.constant 0.000000e+00 : f32
    %72 = vector.broadcast %cst_37 : f32 to vector<32x8xf32>
    %73 = arith.maximumf %71, %72 : vector<32x8xf32>
    %c0_38 = arith.constant 0 : index
    %c0_39 = arith.constant 0 : index
    %74 = vector.load %arg11[%c0_38, %c0_39] : memref<32x1xf32, #tpu.memory_space<vmem>>, vector<32x1xf32>
    %75 = vector.broadcast %74 : vector<32x1xf32> to vector<32x8xf32>
    %76 = arith.mulf %73, %75 : vector<32x8xf32>
    %c0_40 = arith.constant 0 : index
    %c0_41 = arith.constant 0 : index
    %77 = vector.load %arg12[%c0_40, %c0_41] : memref<32x1xf32, #tpu.memory_space<vmem>>, vector<32x1xf32>
    %78 = vector.broadcast %77 : vector<32x1xf32> to vector<32x8xf32>
    %79 = arith.addf %76, %78 : vector<32x8xf32>
    %80 = arith.truncf %79 : vector<32x8xf32> to vector<32x8xbf16>
    %c0_42 = arith.constant 0 : index
    %c0_43 = arith.constant 0 : index
    %c0_44 = arith.constant 0 : index
    %81 = vector.load %arg13[%c0_42, %c0_43, %c0_44] : memref<1x32x8xbf16, #tpu.memory_space<vmem>>, vector<1x32x8xbf16>
    %82 = vector.shape_cast %81 : vector<1x32x8xbf16> to vector<32x8xbf16>
    %83 = vector.shape_cast %80 : vector<32x8xbf16> to vector<1x32x8xbf16>
    tpu.vector_store %arg13[%c0_42, %c0_43, %c0_44], %83 {strides = array<i32>} : memref<1x32x8xbf16, #tpu.memory_space<vmem>>, vector<1x32x8xbf16>,
    return
  }
  func.func @transform_0(%arg0: i32) -> (i32, i32, i32) {
    %c0_i32 = arith.constant 0 : i32
    %c0_i32_0 = arith.constant 0 : i32
    %c0_i32_1 = arith.constant 0 : i32
    return %arg0, %c0_i32, %c0_i32_0 : i32, i32, i32
  }
  func.func @transform_1(%arg0: i32) -> (i32, i32, i32) {
    %c0_i32 = arith.constant 0 : i32
    %c0_i32_0 = arith.constant 0 : i32
    %c0_i32_1 = arith.constant 0 : i32
    return %arg0, %c0_i32, %c0_i32_0 : i32, i32, i32
  }
  func.func @transform_2(%arg0: i32) -> (i32, i32) {
    %c0_i32 = arith.constant 0 : i32
    %c0_i32_0 = arith.constant 0 : i32
    %c0_i32_1 = arith.constant 0 : i32
    return %c0_i32, %c0_i32_0 : i32, i32
  }
  func.func @transform_3(%arg0: i32) -> (i32, i32) {
    %c0_i32 = arith.constant 0 : i32
    %c0_i32_0 = arith.constant 0 : i32
    %c0_i32_1 = arith.constant 0 : i32
    return %c0_i32, %c0_i32_0 : i32, i32
  }
  func.func @transform_4(%arg0: i32) -> (i32, i32) {
    %c0_i32 = arith.constant 0 : i32
    %c0_i32_0 = arith.constant 0 : i32
    %c0_i32_1 = arith.constant 0 : i32
    return %c0_i32, %c0_i32_0 : i32, i32
  }
  func.func @transform_5(%arg0: i32) -> (i32, i32) {
    %c0_i32 = arith.constant 0 : i32
    %c0_i32_0 = arith.constant 0 : i32
    %c0_i32_1 = arith.constant 0 : i32
    return %c0_i32, %c0_i32_0 : i32, i32
  }
  func.func @transform_6(%arg0: i32) -> (i32, i32) {
    %c0_i32 = arith.constant 0 : i32
    %c0_i32_0 = arith.constant 0 : i32
    %c0_i32_1 = arith.constant 0 : i32
    return %c0_i32, %c0_i32_0 : i32, i32
  }
  func.func @transform_7(%arg0: i32) -> (i32, i32) {
    %c0_i32 = arith.constant 0 : i32
    %c0_i32_0 = arith.constant 0 : i32
    %c0_i32_1 = arith.constant 0 : i32
    return %c0_i32, %c0_i32_0 : i32, i32
  }
  func.func @transform_8(%arg0: i32) -> (i32, i32) {
    %c0_i32 = arith.constant 0 : i32
    %c0_i32_0 = arith.constant 0 : i32
    %c0_i32_1 = arith.constant 0 : i32
    return %c0_i32, %c0_i32_0 : i32, i32
  }
  func.func @transform_9(%arg0: i32) -> (i32, i32) {
    %c0_i32 = arith.constant 0 : i32
    %c0_i32_0 = arith.constant 0 : i32
    %c0_i32_1 = arith.constant 0 : i32
    return %c0_i32, %c0_i32_0 : i32, i32
  }
  func.func @transform_10(%arg0: i32) -> (i32, i32) {
    %c0_i32 = arith.constant 0 : i32
    %c0_i32_0 = arith.constant 0 : i32
    %c0_i32_1 = arith.constant 0 : i32
    return %c0_i32, %c0_i32_0 : i32, i32
  }
  func.func @transform_11(%arg0: i32) -> (i32, i32) {
    %c0_i32 = arith.constant 0 : i32
    %c0_i32_0 = arith.constant 0 : i32
    %c0_i32_1 = arith.constant 0 : i32
    return %c0_i32, %c0_i32_0 : i32, i32
  }
  func.func @transform_12(%arg0: i32) -> (i32, i32, i32) {
    %c0_i32 = arith.constant 0 : i32
    %c0_i32_0 = arith.constant 0 : i32
    %c0_i32_1 = arith.constant 0 : i32
    return %arg0, %c0_i32, %c0_i32_0 : i32, i32, i32
  }
}

module attributes {stable_mosaic.version = 11 : i64} {
  func.func @kernel(%arg0: i32, %arg1: memref<1x32x8xbf16, #tpu.memory_space<vmem>>, %arg2: memref<1x32x42xbf16, #tpu.memory_space<vmem>>, %arg3: memref<8x42xbf16, #tpu.memory_space<vmem>>, %arg4: memref<1x24xf32, #tpu.memory_space<vmem>>, %arg5: memref<288x64xbf16, #tpu.memory_space<vmem>>, %arg6: memref<32x1xf32, #tpu.memory_space<vmem>>, %arg7: memref<32x1xf32, #tpu.memory_space<vmem>>, %arg8: memref<32x1xf32, #tpu.memory_space<vmem>>, %arg9: memref<288x32xbf16, #tpu.memory_space<vmem>>, %arg10: memref<32x1xf32, #tpu.memory_space<vmem>>, %arg11: memref<32x1xf32, #tpu.memory_space<vmem>>, %arg12: memref<32x1xf32, #tpu.memory_space<vmem>>, %arg13: memref<1x32x24xbf16, #tpu.memory_space<vmem>>, %arg14: memref<64x42xbf16, #tpu.memory_space<vmem>>, %arg15: memref<32x42xbf16, #tpu.memory_space<vmem>>) attributes {dimension_semantics = [#tpu.dimension_semantics<parallel>], iteration_bounds = array<i64: 2>, scalar_prefetch = 0 : i64, scratch_operands = 2 : i64, tpu.core_type = #tpu.core_type<tc>, window_params = [{transform_indices = @transform_0, window_bounds = array<i64: 1, 32, 8>}, {transform_indices = @transform_1, window_bounds = array<i64: 1, 32, 42>}, {pipeline_mode = #tpu.pipeline_mode<synchronous>, transform_indices = @transform_2, window_bounds = array<i64: 8, 42>}, {pipeline_mode = #tpu.pipeline_mode<synchronous>, transform_indices = @transform_3, window_bounds = array<i64: 1, 24>}, {pipeline_mode = #tpu.pipeline_mode<synchronous>, transform_indices = @transform_4, window_bounds = array<i64: 288, 64>}, {pipeline_mode = #tpu.pipeline_mode<synchronous>, transform_indices = @transform_5, window_bounds = array<i64: 32, 1>}, {pipeline_mode = #tpu.pipeline_mode<synchronous>, transform_indices = @transform_6, window_bounds = array<i64: 32, 1>}, {pipeline_mode = #tpu.pipeline_mode<synchronous>, transform_indices = @transform_7, window_bounds = array<i64: 32, 1>}, {pipeline_mode = #tpu.pipeline_mode<synchronous>, transform_indices = @transform_8, window_bounds = array<i64: 288, 32>}, {pipeline_mode = #tpu.pipeline_mode<synchronous>, transform_indices = @transform_9, window_bounds = array<i64: 32, 1>}, {pipeline_mode = #tpu.pipeline_mode<synchronous>, transform_indices = @transform_10, window_bounds = array<i64: 32, 1>}, {pipeline_mode = #tpu.pipeline_mode<synchronous>, transform_indices = @transform_11, window_bounds = array<i64: 32, 1>}, {transform_indices = @transform_12, window_bounds = array<i64: 1, 32, 24>}]} {
    %c0 = arith.constant 0 : index
    %c0_0 = arith.constant 0 : index
    %c0_1 = arith.constant 0 : index
    %0 = vector.load %arg1[%c0, %c0_0, %c0_1] : memref<1x32x8xbf16, #tpu.memory_space<vmem>>, vector<1x32x8xbf16>
    %1 = vector.shape_cast %0 : vector<1x32x8xbf16> to vector<32x8xbf16>
    %c0_2 = arith.constant 0 : index
    %c0_3 = arith.constant 0 : index
    %2 = vector.load %arg3[%c0_2, %c0_3] : memref<8x42xbf16, #tpu.memory_space<vmem>>, vector<8x42xbf16>
    %cst = arith.constant dense<0.000000e+00> : vector<32x42xf32>
    %3 = tpu.matmul %1, %2, %cst {dimension_numbers = #tpu.dot_dimension_numbers<[1], [0], [0], [1], [0, 0, 1, 1], [], []>} : vector<32x8xbf16>, vector<8x42xbf16>, vector<32x42xf32> -> vector<32x42xf32>
    %4 = arith.truncf %3 : vector<32x42xf32> to vector<32x42xbf16>
    %c0_4 = arith.constant 0 : index
    %c0_5 = arith.constant 0 : index
    %5 = vector.load %arg14[%c0_4, %c0_5] : memref<64x42xbf16, #tpu.memory_space<vmem>>, vector<32x42xbf16>
    tpu.vector_store %arg14[%c0_4, %c0_5], %4 {strides = array<i32>} : memref<64x42xbf16, #tpu.memory_space<vmem>>, vector<32x42xbf16>,
    %c0_6 = arith.constant 0 : index
    %c0_7 = arith.constant 0 : index
    %c0_8 = arith.constant 0 : index
    %6 = vector.load %arg2[%c0_6, %c0_7, %c0_8] : memref<1x32x42xbf16, #tpu.memory_space<vmem>>, vector<1x32x42xbf16>
    %7 = vector.shape_cast %6 : vector<1x32x42xbf16> to vector<32x42xbf16>
    %c32 = arith.constant 32 : index
    %c0_9 = arith.constant 0 : index
    %8 = vector.load %arg14[%c32, %c0_9] : memref<64x42xbf16, #tpu.memory_space<vmem>>, vector<32x42xbf16>
    tpu.vector_store %arg14[%c32, %c0_9], %7 {strides = array<i32>} : memref<64x42xbf16, #tpu.memory_space<vmem>>, vector<32x42xbf16>,
    %c0_10 = arith.constant 0 : index
    %c0_11 = arith.constant 0 : index
    %9 = vector.load %arg5[%c0_10, %c0_11] : memref<288x64xbf16, #tpu.memory_space<vmem>>, vector<288x64xbf16>
    %c0_12 = arith.constant 0 : index
    %c0_13 = arith.constant 0 : index
    %10 = vector.load %arg14[%c0_12, %c0_13] : memref<64x42xbf16, #tpu.memory_space<vmem>>, vector<64x42xbf16>
    %cst_14 = arith.constant dense<0.000000e+00> : vector<288x42xf32>
    %11 = tpu.matmul %9, %10, %cst_14 {dimension_numbers = #tpu.dot_dimension_numbers<[1], [0], [0], [1], [0, 0, 1, 1], [], []>} : vector<288x64xbf16>, vector<64x42xbf16>, vector<288x42xf32> -> vector<288x42xf32>
    %12 = vector.extract_strided_slice %11 {offsets = [0, 0], sizes = [32, 24], strides = [1, 1]} : vector<288x42xf32> to vector<32x24xf32>
    %13 = vector.extract_strided_slice %11 {offsets = [32, 1], sizes = [32, 24], strides = [1, 1]} : vector<288x42xf32> to vector<32x24xf32>
    %14 = arith.addf %12, %13 : vector<32x24xf32>
    %15 = vector.extract_strided_slice %11 {offsets = [64, 2], sizes = [32, 24], strides = [1, 1]} : vector<288x42xf32> to vector<32x24xf32>
    %16 = arith.addf %14, %15 : vector<32x24xf32>
    %17 = vector.extract_strided_slice %11 {offsets = [96, 6], sizes = [32, 24], strides = [1, 1]} : vector<288x42xf32> to vector<32x24xf32>
    %18 = arith.addf %16, %17 : vector<32x24xf32>
    %19 = vector.extract_strided_slice %11 {offsets = [128, 7], sizes = [32, 24], strides = [1, 1]} : vector<288x42xf32> to vector<32x24xf32>
    %20 = arith.addf %18, %19 : vector<32x24xf32>
    %21 = vector.extract_strided_slice %11 {offsets = [160, 8], sizes = [32, 24], strides = [1, 1]} : vector<288x42xf32> to vector<32x24xf32>
    %22 = arith.addf %20, %21 : vector<32x24xf32>
    %23 = vector.extract_strided_slice %11 {offsets = [192, 12], sizes = [32, 24], strides = [1, 1]} : vector<288x42xf32> to vector<32x24xf32>
    %24 = arith.addf %22, %23 : vector<32x24xf32>
    %25 = vector.extract_strided_slice %11 {offsets = [224, 13], sizes = [32, 24], strides = [1, 1]} : vector<288x42xf32> to vector<32x24xf32>
    %26 = arith.addf %24, %25 : vector<32x24xf32>
    %27 = vector.extract_strided_slice %11 {offsets = [256, 14], sizes = [32, 24], strides = [1, 1]} : vector<288x42xf32> to vector<32x24xf32>
    %28 = arith.addf %26, %27 : vector<32x24xf32>
    %c0_15 = arith.constant 0 : index
    %c0_16 = arith.constant 0 : index
    %29 = vector.load %arg6[%c0_15, %c0_16] : memref<32x1xf32, #tpu.memory_space<vmem>>, vector<32x1xf32>
    %30 = vector.broadcast %29 : vector<32x1xf32> to vector<32x24xf32>
    %31 = arith.addf %28, %30 : vector<32x24xf32>
    %cst_17 = arith.constant 0.000000e+00 : f32
    %32 = vector.broadcast %cst_17 : f32 to vector<32x24xf32>
    %33 = arith.maximumf %31, %32 : vector<32x24xf32>
    %c0_18 = arith.constant 0 : index
    %c0_19 = arith.constant 0 : index
    %34 = vector.load %arg7[%c0_18, %c0_19] : memref<32x1xf32, #tpu.memory_space<vmem>>, vector<32x1xf32>
    %35 = vector.broadcast %34 : vector<32x1xf32> to vector<32x24xf32>
    %36 = arith.mulf %33, %35 : vector<32x24xf32>
    %c0_20 = arith.constant 0 : index
    %c0_21 = arith.constant 0 : index
    %37 = vector.load %arg8[%c0_20, %c0_21] : memref<32x1xf32, #tpu.memory_space<vmem>>, vector<32x1xf32>
    %38 = vector.broadcast %37 : vector<32x1xf32> to vector<32x24xf32>
    %39 = arith.addf %36, %38 : vector<32x24xf32>
    %c0_22 = arith.constant 0 : index
    %c0_23 = arith.constant 0 : index
    %40 = vector.load %arg4[%c0_22, %c0_23] : memref<1x24xf32, #tpu.memory_space<vmem>>, vector<1x24xf32>
    %41 = vector.broadcast %40 : vector<1x24xf32> to vector<32x24xf32>
    %42 = arith.mulf %39, %41 : vector<32x24xf32>
    %cst_24 = arith.constant 0.000000e+00 : bf16
    %43 = vector.broadcast %cst_24 : bf16 to vector<32x7xbf16>
    %c0_25 = arith.constant 0 : index
    %c0_26 = arith.constant 0 : index
    %44 = vector.load %arg15[%c0_25, %c0_26] : memref<32x42xbf16, #tpu.memory_space<vmem>>, vector<32x7xbf16>
    tpu.vector_store %arg15[%c0_25, %c0_26], %43 {strides = array<i32>} : memref<32x42xbf16, #tpu.memory_space<vmem>>, vector<32x7xbf16>,
    %45 = arith.truncf %42 : vector<32x24xf32> to vector<32x24xbf16>
    %c0_27 = arith.constant 0 : index
    %c7 = arith.constant 7 : index
    %46 = vector.load %arg15[%c0_27, %c7] : memref<32x42xbf16, #tpu.memory_space<vmem>>, vector<32x24xbf16>
    tpu.vector_store %arg15[%c0_27, %c7], %45 {strides = array<i32>} : memref<32x42xbf16, #tpu.memory_space<vmem>>, vector<32x24xbf16>,
    %cst_28 = arith.constant 0.000000e+00 : bf16
    %47 = vector.broadcast %cst_28 : bf16 to vector<32x11xbf16>
    %c0_29 = arith.constant 0 : index
    %c31 = arith.constant 31 : index
    %48 = vector.load %arg15[%c0_29, %c31] : memref<32x42xbf16, #tpu.memory_space<vmem>>, vector<32x11xbf16>
    tpu.vector_store %arg15[%c0_29, %c31], %47 {strides = array<i32>} : memref<32x42xbf16, #tpu.memory_space<vmem>>, vector<32x11xbf16>,
    %c0_30 = arith.constant 0 : index
    %c0_31 = arith.constant 0 : index
    %49 = vector.load %arg9[%c0_30, %c0_31] : memref<288x32xbf16, #tpu.memory_space<vmem>>, vector<288x32xbf16>
    %c0_32 = arith.constant 0 : index
    %c0_33 = arith.constant 0 : index
    %50 = vector.load %arg15[%c0_32, %c0_33] : memref<32x42xbf16, #tpu.memory_space<vmem>>, vector<32x42xbf16>
    %cst_34 = arith.constant dense<0.000000e+00> : vector<288x42xf32>
    %51 = tpu.matmul %49, %50, %cst_34 {dimension_numbers = #tpu.dot_dimension_numbers<[1], [0], [0], [1], [0, 0, 1, 1], [], []>} : vector<288x32xbf16>, vector<32x42xbf16>, vector<288x42xf32> -> vector<288x42xf32>
    %52 = vector.extract_strided_slice %51 {offsets = [0, 0], sizes = [32, 24], strides = [1, 1]} : vector<288x42xf32> to vector<32x24xf32>
    %53 = vector.extract_strided_slice %51 {offsets = [32, 1], sizes = [32, 24], strides = [1, 1]} : vector<288x42xf32> to vector<32x24xf32>
    %54 = arith.addf %52, %53 : vector<32x24xf32>
    %55 = vector.extract_strided_slice %51 {offsets = [64, 2], sizes = [32, 24], strides = [1, 1]} : vector<288x42xf32> to vector<32x24xf32>
    %56 = arith.addf %54, %55 : vector<32x24xf32>
    %57 = vector.extract_strided_slice %51 {offsets = [96, 6], sizes = [32, 24], strides = [1, 1]} : vector<288x42xf32> to vector<32x24xf32>
    %58 = arith.addf %56, %57 : vector<32x24xf32>
    %59 = vector.extract_strided_slice %51 {offsets = [128, 7], sizes = [32, 24], strides = [1, 1]} : vector<288x42xf32> to vector<32x24xf32>
    %60 = arith.addf %58, %59 : vector<32x24xf32>
    %61 = vector.extract_strided_slice %51 {offsets = [160, 8], sizes = [32, 24], strides = [1, 1]} : vector<288x42xf32> to vector<32x24xf32>
    %62 = arith.addf %60, %61 : vector<32x24xf32>
    %63 = vector.extract_strided_slice %51 {offsets = [192, 12], sizes = [32, 24], strides = [1, 1]} : vector<288x42xf32> to vector<32x24xf32>
    %64 = arith.addf %62, %63 : vector<32x24xf32>
    %65 = vector.extract_strided_slice %51 {offsets = [224, 13], sizes = [32, 24], strides = [1, 1]} : vector<288x42xf32> to vector<32x24xf32>
    %66 = arith.addf %64, %65 : vector<32x24xf32>
    %67 = vector.extract_strided_slice %51 {offsets = [256, 14], sizes = [32, 24], strides = [1, 1]} : vector<288x42xf32> to vector<32x24xf32>
    %68 = arith.addf %66, %67 : vector<32x24xf32>
    %c0_35 = arith.constant 0 : index
    %c0_36 = arith.constant 0 : index
    %69 = vector.load %arg10[%c0_35, %c0_36] : memref<32x1xf32, #tpu.memory_space<vmem>>, vector<32x1xf32>
    %70 = vector.broadcast %69 : vector<32x1xf32> to vector<32x24xf32>
    %71 = arith.addf %68, %70 : vector<32x24xf32>
    %cst_37 = arith.constant 0.000000e+00 : f32
    %72 = vector.broadcast %cst_37 : f32 to vector<32x24xf32>
    %73 = arith.maximumf %71, %72 : vector<32x24xf32>
    %c0_38 = arith.constant 0 : index
    %c0_39 = arith.constant 0 : index
    %74 = vector.load %arg11[%c0_38, %c0_39] : memref<32x1xf32, #tpu.memory_space<vmem>>, vector<32x1xf32>
    %75 = vector.broadcast %74 : vector<32x1xf32> to vector<32x24xf32>
    %76 = arith.mulf %73, %75 : vector<32x24xf32>
    %c0_40 = arith.constant 0 : index
    %c0_41 = arith.constant 0 : index
    %77 = vector.load %arg12[%c0_40, %c0_41] : memref<32x1xf32, #tpu.memory_space<vmem>>, vector<32x1xf32>
    %78 = vector.broadcast %77 : vector<32x1xf32> to vector<32x24xf32>
    %79 = arith.addf %76, %78 : vector<32x24xf32>
    %80 = arith.truncf %79 : vector<32x24xf32> to vector<32x24xbf16>
    %c0_42 = arith.constant 0 : index
    %c0_43 = arith.constant 0 : index
    %c0_44 = arith.constant 0 : index
    %81 = vector.load %arg13[%c0_42, %c0_43, %c0_44] : memref<1x32x24xbf16, #tpu.memory_space<vmem>>, vector<1x32x24xbf16>
    %82 = vector.shape_cast %81 : vector<1x32x24xbf16> to vector<32x24xbf16>
    %83 = vector.shape_cast %80 : vector<32x24xbf16> to vector<1x32x24xbf16>
    tpu.vector_store %arg13[%c0_42, %c0_43, %c0_44], %83 {strides = array<i32>} : memref<1x32x24xbf16, #tpu.memory_space<vmem>>, vector<1x32x24xbf16>,
    return
  }
  func.func @transform_0(%arg0: i32) -> (i32, i32, i32) {
    %c0_i32 = arith.constant 0 : i32
    %c0_i32_0 = arith.constant 0 : i32
    %c0_i32_1 = arith.constant 0 : i32
    return %arg0, %c0_i32, %c0_i32_0 : i32, i32, i32
  }
  func.func @transform_1(%arg0: i32) -> (i32, i32, i32) {
    %c0_i32 = arith.constant 0 : i32
    %c0_i32_0 = arith.constant 0 : i32
    %c0_i32_1 = arith.constant 0 : i32
    return %arg0, %c0_i32, %c0_i32_0 : i32, i32, i32
  }
  func.func @transform_2(%arg0: i32) -> (i32, i32) {
    %c0_i32 = arith.constant 0 : i32
    %c0_i32_0 = arith.constant 0 : i32
    %c0_i32_1 = arith.constant 0 : i32
    return %c0_i32, %c0_i32_0 : i32, i32
  }
  func.func @transform_3(%arg0: i32) -> (i32, i32) {
    %c0_i32 = arith.constant 0 : i32
    %c0_i32_0 = arith.constant 0 : i32
    %c0_i32_1 = arith.constant 0 : i32
    return %c0_i32, %c0_i32_0 : i32, i32
  }
  func.func @transform_4(%arg0: i32) -> (i32, i32) {
    %c0_i32 = arith.constant 0 : i32
    %c0_i32_0 = arith.constant 0 : i32
    %c0_i32_1 = arith.constant 0 : i32
    return %c0_i32, %c0_i32_0 : i32, i32
  }
  func.func @transform_5(%arg0: i32) -> (i32, i32) {
    %c0_i32 = arith.constant 0 : i32
    %c0_i32_0 = arith.constant 0 : i32
    %c0_i32_1 = arith.constant 0 : i32
    return %c0_i32, %c0_i32_0 : i32, i32
  }
  func.func @transform_6(%arg0: i32) -> (i32, i32) {
    %c0_i32 = arith.constant 0 : i32
    %c0_i32_0 = arith.constant 0 : i32
    %c0_i32_1 = arith.constant 0 : i32
    return %c0_i32, %c0_i32_0 : i32, i32
  }
  func.func @transform_7(%arg0: i32) -> (i32, i32) {
    %c0_i32 = arith.constant 0 : i32
    %c0_i32_0 = arith.constant 0 : i32
    %c0_i32_1 = arith.constant 0 : i32
    return %c0_i32, %c0_i32_0 : i32, i32
  }
  func.func @transform_8(%arg0: i32) -> (i32, i32) {
    %c0_i32 = arith.constant 0 : i32
    %c0_i32_0 = arith.constant 0 : i32
    %c0_i32_1 = arith.constant 0 : i32
    return %c0_i32, %c0_i32_0 : i32, i32
  }
  func.func @transform_9(%arg0: i32) -> (i32, i32) {
    %c0_i32 = arith.constant 0 : i32
    %c0_i32_0 = arith.constant 0 : i32
    %c0_i32_1 = arith.constant 0 : i32
    return %c0_i32, %c0_i32_0 : i32, i32
  }
  func.func @transform_10(%arg0: i32) -> (i32, i32) {
    %c0_i32 = arith.constant 0 : i32
    %c0_i32_0 = arith.constant 0 : i32
    %c0_i32_1 = arith.constant 0 : i32
    return %c0_i32, %c0_i32_0 : i32, i32
  }
  func.func @transform_11(%arg0: i32) -> (i32, i32) {
    %c0_i32 = arith.constant 0 : i32
    %c0_i32_0 = arith.constant 0 : i32
    %c0_i32_1 = arith.constant 0 : i32
    return %c0_i32, %c0_i32_0 : i32, i32
  }
  func.func @transform_12(%arg0: i32) -> (i32, i32, i32) {
    %c0_i32 = arith.constant 0 : i32
    %c0_i32_0 = arith.constant 0 : i32
    %c0_i32_1 = arith.constant 0 : i32
    return %arg0, %c0_i32, %c0_i32_0 : i32, i32, i32
  }
}

module attributes {stable_mosaic.version = 11 : i64} {
  func.func @kernel(%arg0: i32, %arg1: memref<1x32x24xbf16, #tpu.memory_space<vmem>>, %arg2: memref<1x16x110xbf16, #tpu.memory_space<vmem>>, %arg3: memref<24x110xbf16, #tpu.memory_space<vmem>>, %arg4: memref<1x80xf32, #tpu.memory_space<vmem>>, %arg5: memref<144x48xbf16, #tpu.memory_space<vmem>>, %arg6: memref<16x1xf32, #tpu.memory_space<vmem>>, %arg7: memref<16x1xf32, #tpu.memory_space<vmem>>, %arg8: memref<16x1xf32, #tpu.memory_space<vmem>>, %arg9: memref<144x16xbf16, #tpu.memory_space<vmem>>, %arg10: memref<16x1xf32, #tpu.memory_space<vmem>>, %arg11: memref<16x1xf32, #tpu.memory_space<vmem>>, %arg12: memref<16x1xf32, #tpu.memory_space<vmem>>, %arg13: memref<1x16x80xbf16, #tpu.memory_space<vmem>>, %arg14: memref<48x110xbf16, #tpu.memory_space<vmem>>, %arg15: memref<16x110xbf16, #tpu.memory_space<vmem>>) attributes {dimension_semantics = [#tpu.dimension_semantics<parallel>], iteration_bounds = array<i64: 2>, scalar_prefetch = 0 : i64, scratch_operands = 2 : i64, tpu.core_type = #tpu.core_type<tc>, window_params = [{transform_indices = @transform_0, window_bounds = array<i64: 1, 32, 24>}, {transform_indices = @transform_1, window_bounds = array<i64: 1, 16, 110>}, {pipeline_mode = #tpu.pipeline_mode<synchronous>, transform_indices = @transform_2, window_bounds = array<i64: 24, 110>}, {pipeline_mode = #tpu.pipeline_mode<synchronous>, transform_indices = @transform_3, window_bounds = array<i64: 1, 80>}, {pipeline_mode = #tpu.pipeline_mode<synchronous>, transform_indices = @transform_4, window_bounds = array<i64: 144, 48>}, {pipeline_mode = #tpu.pipeline_mode<synchronous>, transform_indices = @transform_5, window_bounds = array<i64: 16, 1>}, {pipeline_mode = #tpu.pipeline_mode<synchronous>, transform_indices = @transform_6, window_bounds = array<i64: 16, 1>}, {pipeline_mode = #tpu.pipeline_mode<synchronous>, transform_indices = @transform_7, window_bounds = array<i64: 16, 1>}, {pipeline_mode = #tpu.pipeline_mode<synchronous>, transform_indices = @transform_8, window_bounds = array<i64: 144, 16>}, {pipeline_mode = #tpu.pipeline_mode<synchronous>, transform_indices = @transform_9, window_bounds = array<i64: 16, 1>}, {pipeline_mode = #tpu.pipeline_mode<synchronous>, transform_indices = @transform_10, window_bounds = array<i64: 16, 1>}, {pipeline_mode = #tpu.pipeline_mode<synchronous>, transform_indices = @transform_11, window_bounds = array<i64: 16, 1>}, {transform_indices = @transform_12, window_bounds = array<i64: 1, 16, 80>}]} {
    %c0 = arith.constant 0 : index
    %c0_0 = arith.constant 0 : index
    %c0_1 = arith.constant 0 : index
    %0 = vector.load %arg1[%c0, %c0_0, %c0_1] : memref<1x32x24xbf16, #tpu.memory_space<vmem>>, vector<1x32x24xbf16>
    %1 = vector.shape_cast %0 : vector<1x32x24xbf16> to vector<32x24xbf16>
    %c0_2 = arith.constant 0 : index
    %c0_3 = arith.constant 0 : index
    %2 = vector.load %arg3[%c0_2, %c0_3] : memref<24x110xbf16, #tpu.memory_space<vmem>>, vector<24x110xbf16>
    %cst = arith.constant dense<0.000000e+00> : vector<32x110xf32>
    %3 = tpu.matmul %1, %2, %cst {dimension_numbers = #tpu.dot_dimension_numbers<[1], [0], [0], [1], [0, 0, 1, 1], [], []>} : vector<32x24xbf16>, vector<24x110xbf16>, vector<32x110xf32> -> vector<32x110xf32>
    %4 = arith.truncf %3 : vector<32x110xf32> to vector<32x110xbf16>
    %c0_4 = arith.constant 0 : index
    %c0_5 = arith.constant 0 : index
    %5 = vector.load %arg14[%c0_4, %c0_5] : memref<48x110xbf16, #tpu.memory_space<vmem>>, vector<32x110xbf16>
    tpu.vector_store %arg14[%c0_4, %c0_5], %4 {strides = array<i32>} : memref<48x110xbf16, #tpu.memory_space<vmem>>, vector<32x110xbf16>,
    %c0_6 = arith.constant 0 : index
    %c0_7 = arith.constant 0 : index
    %c0_8 = arith.constant 0 : index
    %6 = vector.load %arg2[%c0_6, %c0_7, %c0_8] : memref<1x16x110xbf16, #tpu.memory_space<vmem>>, vector<1x16x110xbf16>
    %7 = vector.shape_cast %6 : vector<1x16x110xbf16> to vector<16x110xbf16>
    %c32 = arith.constant 32 : index
    %c0_9 = arith.constant 0 : index
    %8 = vector.load %arg14[%c32, %c0_9] : memref<48x110xbf16, #tpu.memory_space<vmem>>, vector<16x110xbf16>
    tpu.vector_store %arg14[%c32, %c0_9], %7 {strides = array<i32>} : memref<48x110xbf16, #tpu.memory_space<vmem>>, vector<16x110xbf16>,
    %c0_10 = arith.constant 0 : index
    %c0_11 = arith.constant 0 : index
    %9 = vector.load %arg5[%c0_10, %c0_11] : memref<144x48xbf16, #tpu.memory_space<vmem>>, vector<144x48xbf16>
    %c0_12 = arith.constant 0 : index
    %c0_13 = arith.constant 0 : index
    %10 = vector.load %arg14[%c0_12, %c0_13] : memref<48x110xbf16, #tpu.memory_space<vmem>>, vector<48x110xbf16>
    %cst_14 = arith.constant dense<0.000000e+00> : vector<144x110xf32>
    %11 = tpu.matmul %9, %10, %cst_14 {dimension_numbers = #tpu.dot_dimension_numbers<[1], [0], [0], [1], [0, 0, 1, 1], [], []>} : vector<144x48xbf16>, vector<48x110xbf16>, vector<144x110xf32> -> vector<144x110xf32>
    %12 = vector.extract_strided_slice %11 {offsets = [0, 0], sizes = [16, 80], strides = [1, 1]} : vector<144x110xf32> to vector<16x80xf32>
    %13 = vector.extract_strided_slice %11 {offsets = [16, 1], sizes = [16, 80], strides = [1, 1]} : vector<144x110xf32> to vector<16x80xf32>
    %14 = arith.addf %12, %13 : vector<16x80xf32>
    %15 = vector.extract_strided_slice %11 {offsets = [32, 2], sizes = [16, 80], strides = [1, 1]} : vector<144x110xf32> to vector<16x80xf32>
    %16 = arith.addf %14, %15 : vector<16x80xf32>
    %17 = vector.extract_strided_slice %11 {offsets = [48, 10], sizes = [16, 80], strides = [1, 1]} : vector<144x110xf32> to vector<16x80xf32>
    %18 = arith.addf %16, %17 : vector<16x80xf32>
    %19 = vector.extract_strided_slice %11 {offsets = [64, 11], sizes = [16, 80], strides = [1, 1]} : vector<144x110xf32> to vector<16x80xf32>
    %20 = arith.addf %18, %19 : vector<16x80xf32>
    %21 = vector.extract_strided_slice %11 {offsets = [80, 12], sizes = [16, 80], strides = [1, 1]} : vector<144x110xf32> to vector<16x80xf32>
    %22 = arith.addf %20, %21 : vector<16x80xf32>
    %23 = vector.extract_strided_slice %11 {offsets = [96, 20], sizes = [16, 80], strides = [1, 1]} : vector<144x110xf32> to vector<16x80xf32>
    %24 = arith.addf %22, %23 : vector<16x80xf32>
    %25 = vector.extract_strided_slice %11 {offsets = [112, 21], sizes = [16, 80], strides = [1, 1]} : vector<144x110xf32> to vector<16x80xf32>
    %26 = arith.addf %24, %25 : vector<16x80xf32>
    %27 = vector.extract_strided_slice %11 {offsets = [128, 22], sizes = [16, 80], strides = [1, 1]} : vector<144x110xf32> to vector<16x80xf32>
    %28 = arith.addf %26, %27 : vector<16x80xf32>
    %c0_15 = arith.constant 0 : index
    %c0_16 = arith.constant 0 : index
    %29 = vector.load %arg6[%c0_15, %c0_16] : memref<16x1xf32, #tpu.memory_space<vmem>>, vector<16x1xf32>
    %30 = vector.broadcast %29 : vector<16x1xf32> to vector<16x80xf32>
    %31 = arith.addf %28, %30 : vector<16x80xf32>
    %cst_17 = arith.constant 0.000000e+00 : f32
    %32 = vector.broadcast %cst_17 : f32 to vector<16x80xf32>
    %33 = arith.maximumf %31, %32 : vector<16x80xf32>
    %c0_18 = arith.constant 0 : index
    %c0_19 = arith.constant 0 : index
    %34 = vector.load %arg7[%c0_18, %c0_19] : memref<16x1xf32, #tpu.memory_space<vmem>>, vector<16x1xf32>
    %35 = vector.broadcast %34 : vector<16x1xf32> to vector<16x80xf32>
    %36 = arith.mulf %33, %35 : vector<16x80xf32>
    %c0_20 = arith.constant 0 : index
    %c0_21 = arith.constant 0 : index
    %37 = vector.load %arg8[%c0_20, %c0_21] : memref<16x1xf32, #tpu.memory_space<vmem>>, vector<16x1xf32>
    %38 = vector.broadcast %37 : vector<16x1xf32> to vector<16x80xf32>
    %39 = arith.addf %36, %38 : vector<16x80xf32>
    %c0_22 = arith.constant 0 : index
    %c0_23 = arith.constant 0 : index
    %40 = vector.load %arg4[%c0_22, %c0_23] : memref<1x80xf32, #tpu.memory_space<vmem>>, vector<1x80xf32>
    %41 = vector.broadcast %40 : vector<1x80xf32> to vector<16x80xf32>
    %42 = arith.mulf %39, %41 : vector<16x80xf32>
    %cst_24 = arith.constant 0.000000e+00 : bf16
    %43 = vector.broadcast %cst_24 : bf16 to vector<16x11xbf16>
    %c0_25 = arith.constant 0 : index
    %c0_26 = arith.constant 0 : index
    %44 = vector.load %arg15[%c0_25, %c0_26] : memref<16x110xbf16, #tpu.memory_space<vmem>>, vector<16x11xbf16>
    tpu.vector_store %arg15[%c0_25, %c0_26], %43 {strides = array<i32>} : memref<16x110xbf16, #tpu.memory_space<vmem>>, vector<16x11xbf16>,
    %45 = arith.truncf %42 : vector<16x80xf32> to vector<16x80xbf16>
    %c0_27 = arith.constant 0 : index
    %c11 = arith.constant 11 : index
    %46 = vector.load %arg15[%c0_27, %c11] : memref<16x110xbf16, #tpu.memory_space<vmem>>, vector<16x80xbf16>
    tpu.vector_store %arg15[%c0_27, %c11], %45 {strides = array<i32>} : memref<16x110xbf16, #tpu.memory_space<vmem>>, vector<16x80xbf16>,
    %cst_28 = arith.constant 0.000000e+00 : bf16
    %47 = vector.broadcast %cst_28 : bf16 to vector<16x19xbf16>
    %c0_29 = arith.constant 0 : index
    %c91 = arith.constant 91 : index
    %48 = vector.load %arg15[%c0_29, %c91] : memref<16x110xbf16, #tpu.memory_space<vmem>>, vector<16x19xbf16>
    tpu.vector_store %arg15[%c0_29, %c91], %47 {strides = array<i32>} : memref<16x110xbf16, #tpu.memory_space<vmem>>, vector<16x19xbf16>,
    %c0_30 = arith.constant 0 : index
    %c0_31 = arith.constant 0 : index
    %49 = vector.load %arg9[%c0_30, %c0_31] : memref<144x16xbf16, #tpu.memory_space<vmem>>, vector<144x16xbf16>
    %c0_32 = arith.constant 0 : index
    %c0_33 = arith.constant 0 : index
    %50 = vector.load %arg15[%c0_32, %c0_33] : memref<16x110xbf16, #tpu.memory_space<vmem>>, vector<16x110xbf16>
    %cst_34 = arith.constant dense<0.000000e+00> : vector<144x110xf32>
    %51 = tpu.matmul %49, %50, %cst_34 {dimension_numbers = #tpu.dot_dimension_numbers<[1], [0], [0], [1], [0, 0, 1, 1], [], []>} : vector<144x16xbf16>, vector<16x110xbf16>, vector<144x110xf32> -> vector<144x110xf32>
    %52 = vector.extract_strided_slice %51 {offsets = [0, 0], sizes = [16, 80], strides = [1, 1]} : vector<144x110xf32> to vector<16x80xf32>
    %53 = vector.extract_strided_slice %51 {offsets = [16, 1], sizes = [16, 80], strides = [1, 1]} : vector<144x110xf32> to vector<16x80xf32>
    %54 = arith.addf %52, %53 : vector<16x80xf32>
    %55 = vector.extract_strided_slice %51 {offsets = [32, 2], sizes = [16, 80], strides = [1, 1]} : vector<144x110xf32> to vector<16x80xf32>
    %56 = arith.addf %54, %55 : vector<16x80xf32>
    %57 = vector.extract_strided_slice %51 {offsets = [48, 10], sizes = [16, 80], strides = [1, 1]} : vector<144x110xf32> to vector<16x80xf32>
    %58 = arith.addf %56, %57 : vector<16x80xf32>
    %59 = vector.extract_strided_slice %51 {offsets = [64, 11], sizes = [16, 80], strides = [1, 1]} : vector<144x110xf32> to vector<16x80xf32>
    %60 = arith.addf %58, %59 : vector<16x80xf32>
    %61 = vector.extract_strided_slice %51 {offsets = [80, 12], sizes = [16, 80], strides = [1, 1]} : vector<144x110xf32> to vector<16x80xf32>
    %62 = arith.addf %60, %61 : vector<16x80xf32>
    %63 = vector.extract_strided_slice %51 {offsets = [96, 20], sizes = [16, 80], strides = [1, 1]} : vector<144x110xf32> to vector<16x80xf32>
    %64 = arith.addf %62, %63 : vector<16x80xf32>
    %65 = vector.extract_strided_slice %51 {offsets = [112, 21], sizes = [16, 80], strides = [1, 1]} : vector<144x110xf32> to vector<16x80xf32>
    %66 = arith.addf %64, %65 : vector<16x80xf32>
    %67 = vector.extract_strided_slice %51 {offsets = [128, 22], sizes = [16, 80], strides = [1, 1]} : vector<144x110xf32> to vector<16x80xf32>
    %68 = arith.addf %66, %67 : vector<16x80xf32>
    %c0_35 = arith.constant 0 : index
    %c0_36 = arith.constant 0 : index
    %69 = vector.load %arg10[%c0_35, %c0_36] : memref<16x1xf32, #tpu.memory_space<vmem>>, vector<16x1xf32>
    %70 = vector.broadcast %69 : vector<16x1xf32> to vector<16x80xf32>
    %71 = arith.addf %68, %70 : vector<16x80xf32>
    %cst_37 = arith.constant 0.000000e+00 : f32
    %72 = vector.broadcast %cst_37 : f32 to vector<16x80xf32>
    %73 = arith.maximumf %71, %72 : vector<16x80xf32>
    %c0_38 = arith.constant 0 : index
    %c0_39 = arith.constant 0 : index
    %74 = vector.load %arg11[%c0_38, %c0_39] : memref<16x1xf32, #tpu.memory_space<vmem>>, vector<16x1xf32>
    %75 = vector.broadcast %74 : vector<16x1xf32> to vector<16x80xf32>
    %76 = arith.mulf %73, %75 : vector<16x80xf32>
    %c0_40 = arith.constant 0 : index
    %c0_41 = arith.constant 0 : index
    %77 = vector.load %arg12[%c0_40, %c0_41] : memref<16x1xf32, #tpu.memory_space<vmem>>, vector<16x1xf32>
    %78 = vector.broadcast %77 : vector<16x1xf32> to vector<16x80xf32>
    %79 = arith.addf %76, %78 : vector<16x80xf32>
    %80 = arith.truncf %79 : vector<16x80xf32> to vector<16x80xbf16>
    %c0_42 = arith.constant 0 : index
    %c0_43 = arith.constant 0 : index
    %c0_44 = arith.constant 0 : index
    %81 = vector.load %arg13[%c0_42, %c0_43, %c0_44] : memref<1x16x80xbf16, #tpu.memory_space<vmem>>, vector<1x16x80xbf16>
    %82 = vector.shape_cast %81 : vector<1x16x80xbf16> to vector<16x80xbf16>
    %83 = vector.shape_cast %80 : vector<16x80xbf16> to vector<1x16x80xbf16>
    tpu.vector_store %arg13[%c0_42, %c0_43, %c0_44], %83 {strides = array<i32>} : memref<1x16x80xbf16, #tpu.memory_space<vmem>>, vector<1x16x80xbf16>,
    return
  }
  func.func @transform_0(%arg0: i32) -> (i32, i32, i32) {
    %c0_i32 = arith.constant 0 : i32
    %c0_i32_0 = arith.constant 0 : i32
    %c0_i32_1 = arith.constant 0 : i32
    return %arg0, %c0_i32, %c0_i32_0 : i32, i32, i32
  }
  func.func @transform_1(%arg0: i32) -> (i32, i32, i32) {
    %c0_i32 = arith.constant 0 : i32
    %c0_i32_0 = arith.constant 0 : i32
    %c0_i32_1 = arith.constant 0 : i32
    return %arg0, %c0_i32, %c0_i32_0 : i32, i32, i32
  }
  func.func @transform_2(%arg0: i32) -> (i32, i32) {
    %c0_i32 = arith.constant 0 : i32
    %c0_i32_0 = arith.constant 0 : i32
    %c0_i32_1 = arith.constant 0 : i32
    return %c0_i32, %c0_i32_0 : i32, i32
  }
  func.func @transform_3(%arg0: i32) -> (i32, i32) {
    %c0_i32 = arith.constant 0 : i32
    %c0_i32_0 = arith.constant 0 : i32
    %c0_i32_1 = arith.constant 0 : i32
    return %c0_i32, %c0_i32_0 : i32, i32
  }
  func.func @transform_4(%arg0: i32) -> (i32, i32) {
    %c0_i32 = arith.constant 0 : i32
    %c0_i32_0 = arith.constant 0 : i32
    %c0_i32_1 = arith.constant 0 : i32
    return %c0_i32, %c0_i32_0 : i32, i32
  }
  func.func @transform_5(%arg0: i32) -> (i32, i32) {
    %c0_i32 = arith.constant 0 : i32
    %c0_i32_0 = arith.constant 0 : i32
    %c0_i32_1 = arith.constant 0 : i32
    return %c0_i32, %c0_i32_0 : i32, i32
  }
  func.func @transform_6(%arg0: i32) -> (i32, i32) {
    %c0_i32 = arith.constant 0 : i32
    %c0_i32_0 = arith.constant 0 : i32
    %c0_i32_1 = arith.constant 0 : i32
    return %c0_i32, %c0_i32_0 : i32, i32
  }
  func.func @transform_7(%arg0: i32) -> (i32, i32) {
    %c0_i32 = arith.constant 0 : i32
    %c0_i32_0 = arith.constant 0 : i32
    %c0_i32_1 = arith.constant 0 : i32
    return %c0_i32, %c0_i32_0 : i32, i32
  }
  func.func @transform_8(%arg0: i32) -> (i32, i32) {
    %c0_i32 = arith.constant 0 : i32
    %c0_i32_0 = arith.constant 0 : i32
    %c0_i32_1 = arith.constant 0 : i32
    return %c0_i32, %c0_i32_0 : i32, i32
  }
  func.func @transform_9(%arg0: i32) -> (i32, i32) {
    %c0_i32 = arith.constant 0 : i32
    %c0_i32_0 = arith.constant 0 : i32
    %c0_i32_1 = arith.constant 0 : i32
    return %c0_i32, %c0_i32_0 : i32, i32
  }
  func.func @transform_10(%arg0: i32) -> (i32, i32) {
    %c0_i32 = arith.constant 0 : i32
    %c0_i32_0 = arith.constant 0 : i32
    %c0_i32_1 = arith.constant 0 : i32
    return %c0_i32, %c0_i32_0 : i32, i32
  }
  func.func @transform_11(%arg0: i32) -> (i32, i32) {
    %c0_i32 = arith.constant 0 : i32
    %c0_i32_0 = arith.constant 0 : i32
    %c0_i32_1 = arith.constant 0 : i32
    return %c0_i32, %c0_i32_0 : i32, i32
  }
  func.func @transform_12(%arg0: i32) -> (i32, i32, i32) {
    %c0_i32 = arith.constant 0 : i32
    %c0_i32_0 = arith.constant 0 : i32
    %c0_i32_1 = arith.constant 0 : i32
    return %arg0, %c0_i32, %c0_i32_0 : i32, i32, i32
  }
}

module attributes {stable_mosaic.version = 11 : i64} {
  func.func @kernel(%arg0: i32, %arg1: memref<1x16x80xbf16, #tpu.memory_space<vmem>>, %arg2: memref<1x8x342xbf16, #tpu.memory_space<vmem>>, %arg3: memref<80x342xbf16, #tpu.memory_space<vmem>>, %arg4: memref<1x288xf32, #tpu.memory_space<vmem>>, %arg5: memref<72x24xbf16, #tpu.memory_space<vmem>>, %arg6: memref<8x1xf32, #tpu.memory_space<vmem>>, %arg7: memref<8x1xf32, #tpu.memory_space<vmem>>, %arg8: memref<8x1xf32, #tpu.memory_space<vmem>>, %arg9: memref<72x8xbf16, #tpu.memory_space<vmem>>, %arg10: memref<8x1xf32, #tpu.memory_space<vmem>>, %arg11: memref<8x1xf32, #tpu.memory_space<vmem>>, %arg12: memref<8x1xf32, #tpu.memory_space<vmem>>, %arg13: memref<1x8x288xbf16, #tpu.memory_space<vmem>>, %arg14: memref<24x342xbf16, #tpu.memory_space<vmem>>, %arg15: memref<8x342xbf16, #tpu.memory_space<vmem>>) attributes {dimension_semantics = [#tpu.dimension_semantics<parallel>], iteration_bounds = array<i64: 2>, scalar_prefetch = 0 : i64, scratch_operands = 2 : i64, tpu.core_type = #tpu.core_type<tc>, window_params = [{transform_indices = @transform_0, window_bounds = array<i64: 1, 16, 80>}, {transform_indices = @transform_1, window_bounds = array<i64: 1, 8, 342>}, {pipeline_mode = #tpu.pipeline_mode<synchronous>, transform_indices = @transform_2, window_bounds = array<i64: 80, 342>}, {pipeline_mode = #tpu.pipeline_mode<synchronous>, transform_indices = @transform_3, window_bounds = array<i64: 1, 288>}, {pipeline_mode = #tpu.pipeline_mode<synchronous>, transform_indices = @transform_4, window_bounds = array<i64: 72, 24>}, {pipeline_mode = #tpu.pipeline_mode<synchronous>, transform_indices = @transform_5, window_bounds = array<i64: 8, 1>}, {pipeline_mode = #tpu.pipeline_mode<synchronous>, transform_indices = @transform_6, window_bounds = array<i64: 8, 1>}, {pipeline_mode = #tpu.pipeline_mode<synchronous>, transform_indices = @transform_7, window_bounds = array<i64: 8, 1>}, {pipeline_mode = #tpu.pipeline_mode<synchronous>, transform_indices = @transform_8, window_bounds = array<i64: 72, 8>}, {pipeline_mode = #tpu.pipeline_mode<synchronous>, transform_indices = @transform_9, window_bounds = array<i64: 8, 1>}, {pipeline_mode = #tpu.pipeline_mode<synchronous>, transform_indices = @transform_10, window_bounds = array<i64: 8, 1>}, {pipeline_mode = #tpu.pipeline_mode<synchronous>, transform_indices = @transform_11, window_bounds = array<i64: 8, 1>}, {transform_indices = @transform_12, window_bounds = array<i64: 1, 8, 288>}]} {
    %c0 = arith.constant 0 : index
    %c0_0 = arith.constant 0 : index
    %c0_1 = arith.constant 0 : index
    %0 = vector.load %arg1[%c0, %c0_0, %c0_1] : memref<1x16x80xbf16, #tpu.memory_space<vmem>>, vector<1x16x80xbf16>
    %1 = vector.shape_cast %0 : vector<1x16x80xbf16> to vector<16x80xbf16>
    %c0_2 = arith.constant 0 : index
    %c0_3 = arith.constant 0 : index
    %2 = vector.load %arg3[%c0_2, %c0_3] : memref<80x342xbf16, #tpu.memory_space<vmem>>, vector<80x342xbf16>
    %cst = arith.constant dense<0.000000e+00> : vector<16x342xf32>
    %3 = tpu.matmul %1, %2, %cst {dimension_numbers = #tpu.dot_dimension_numbers<[1], [0], [0], [1], [0, 0, 1, 1], [], []>} : vector<16x80xbf16>, vector<80x342xbf16>, vector<16x342xf32> -> vector<16x342xf32>
    %4 = arith.truncf %3 : vector<16x342xf32> to vector<16x342xbf16>
    %c0_4 = arith.constant 0 : index
    %c0_5 = arith.constant 0 : index
    %5 = vector.load %arg14[%c0_4, %c0_5] : memref<24x342xbf16, #tpu.memory_space<vmem>>, vector<16x342xbf16>
    tpu.vector_store %arg14[%c0_4, %c0_5], %4 {strides = array<i32>} : memref<24x342xbf16, #tpu.memory_space<vmem>>, vector<16x342xbf16>,
    %c0_6 = arith.constant 0 : index
    %c0_7 = arith.constant 0 : index
    %c0_8 = arith.constant 0 : index
    %6 = vector.load %arg2[%c0_6, %c0_7, %c0_8] : memref<1x8x342xbf16, #tpu.memory_space<vmem>>, vector<1x8x342xbf16>
    %7 = vector.shape_cast %6 : vector<1x8x342xbf16> to vector<8x342xbf16>
    %c16 = arith.constant 16 : index
    %c0_9 = arith.constant 0 : index
    %8 = vector.load %arg14[%c16, %c0_9] : memref<24x342xbf16, #tpu.memory_space<vmem>>, vector<8x342xbf16>
    tpu.vector_store %arg14[%c16, %c0_9], %7 {strides = array<i32>} : memref<24x342xbf16, #tpu.memory_space<vmem>>, vector<8x342xbf16>,
    %c0_10 = arith.constant 0 : index
    %c0_11 = arith.constant 0 : index
    %9 = vector.load %arg5[%c0_10, %c0_11] : memref<72x24xbf16, #tpu.memory_space<vmem>>, vector<72x24xbf16>
    %c0_12 = arith.constant 0 : index
    %c0_13 = arith.constant 0 : index
    %10 = vector.load %arg14[%c0_12, %c0_13] : memref<24x342xbf16, #tpu.memory_space<vmem>>, vector<24x342xbf16>
    %cst_14 = arith.constant dense<0.000000e+00> : vector<72x342xf32>
    %11 = tpu.matmul %9, %10, %cst_14 {dimension_numbers = #tpu.dot_dimension_numbers<[1], [0], [0], [1], [0, 0, 1, 1], [], []>} : vector<72x24xbf16>, vector<24x342xbf16>, vector<72x342xf32> -> vector<72x342xf32>
    %12 = vector.extract_strided_slice %11 {offsets = [0, 0], sizes = [8, 288], strides = [1, 1]} : vector<72x342xf32> to vector<8x288xf32>
    %13 = vector.extract_strided_slice %11 {offsets = [8, 1], sizes = [8, 288], strides = [1, 1]} : vector<72x342xf32> to vector<8x288xf32>
    %14 = arith.addf %12, %13 : vector<8x288xf32>
    %15 = vector.extract_strided_slice %11 {offsets = [16, 2], sizes = [8, 288], strides = [1, 1]} : vector<72x342xf32> to vector<8x288xf32>
    %16 = arith.addf %14, %15 : vector<8x288xf32>
    %17 = vector.extract_strided_slice %11 {offsets = [24, 18], sizes = [8, 288], strides = [1, 1]} : vector<72x342xf32> to vector<8x288xf32>
    %18 = arith.addf %16, %17 : vector<8x288xf32>
    %19 = vector.extract_strided_slice %11 {offsets = [32, 19], sizes = [8, 288], strides = [1, 1]} : vector<72x342xf32> to vector<8x288xf32>
    %20 = arith.addf %18, %19 : vector<8x288xf32>
    %21 = vector.extract_strided_slice %11 {offsets = [40, 20], sizes = [8, 288], strides = [1, 1]} : vector<72x342xf32> to vector<8x288xf32>
    %22 = arith.addf %20, %21 : vector<8x288xf32>
    %23 = vector.extract_strided_slice %11 {offsets = [48, 36], sizes = [8, 288], strides = [1, 1]} : vector<72x342xf32> to vector<8x288xf32>
    %24 = arith.addf %22, %23 : vector<8x288xf32>
    %25 = vector.extract_strided_slice %11 {offsets = [56, 37], sizes = [8, 288], strides = [1, 1]} : vector<72x342xf32> to vector<8x288xf32>
    %26 = arith.addf %24, %25 : vector<8x288xf32>
    %27 = vector.extract_strided_slice %11 {offsets = [64, 38], sizes = [8, 288], strides = [1, 1]} : vector<72x342xf32> to vector<8x288xf32>
    %28 = arith.addf %26, %27 : vector<8x288xf32>
    %c0_15 = arith.constant 0 : index
    %c0_16 = arith.constant 0 : index
    %29 = vector.load %arg6[%c0_15, %c0_16] : memref<8x1xf32, #tpu.memory_space<vmem>>, vector<8x1xf32>
    %30 = vector.broadcast %29 : vector<8x1xf32> to vector<8x288xf32>
    %31 = arith.addf %28, %30 : vector<8x288xf32>
    %cst_17 = arith.constant 0.000000e+00 : f32
    %32 = vector.broadcast %cst_17 : f32 to vector<8x288xf32>
    %33 = arith.maximumf %31, %32 : vector<8x288xf32>
    %c0_18 = arith.constant 0 : index
    %c0_19 = arith.constant 0 : index
    %34 = vector.load %arg7[%c0_18, %c0_19] : memref<8x1xf32, #tpu.memory_space<vmem>>, vector<8x1xf32>
    %35 = vector.broadcast %34 : vector<8x1xf32> to vector<8x288xf32>
    %36 = arith.mulf %33, %35 : vector<8x288xf32>
    %c0_20 = arith.constant 0 : index
    %c0_21 = arith.constant 0 : index
    %37 = vector.load %arg8[%c0_20, %c0_21] : memref<8x1xf32, #tpu.memory_space<vmem>>, vector<8x1xf32>
    %38 = vector.broadcast %37 : vector<8x1xf32> to vector<8x288xf32>
    %39 = arith.addf %36, %38 : vector<8x288xf32>
    %c0_22 = arith.constant 0 : index
    %c0_23 = arith.constant 0 : index
    %40 = vector.load %arg4[%c0_22, %c0_23] : memref<1x288xf32, #tpu.memory_space<vmem>>, vector<1x288xf32>
    %41 = vector.broadcast %40 : vector<1x288xf32> to vector<8x288xf32>
    %42 = arith.mulf %39, %41 : vector<8x288xf32>
    %cst_24 = arith.constant 0.000000e+00 : bf16
    %43 = vector.broadcast %cst_24 : bf16 to vector<8x19xbf16>
    %c0_25 = arith.constant 0 : index
    %c0_26 = arith.constant 0 : index
    %44 = vector.load %arg15[%c0_25, %c0_26] : memref<8x342xbf16, #tpu.memory_space<vmem>>, vector<8x19xbf16>
    tpu.vector_store %arg15[%c0_25, %c0_26], %43 {strides = array<i32>} : memref<8x342xbf16, #tpu.memory_space<vmem>>, vector<8x19xbf16>,
    %45 = arith.truncf %42 : vector<8x288xf32> to vector<8x288xbf16>
    %c0_27 = arith.constant 0 : index
    %c19 = arith.constant 19 : index
    %46 = vector.load %arg15[%c0_27, %c19] : memref<8x342xbf16, #tpu.memory_space<vmem>>, vector<8x288xbf16>
    tpu.vector_store %arg15[%c0_27, %c19], %45 {strides = array<i32>} : memref<8x342xbf16, #tpu.memory_space<vmem>>, vector<8x288xbf16>,
    %cst_28 = arith.constant 0.000000e+00 : bf16
    %47 = vector.broadcast %cst_28 : bf16 to vector<8x35xbf16>
    %c0_29 = arith.constant 0 : index
    %c307 = arith.constant 307 : index
    %48 = vector.load %arg15[%c0_29, %c307] : memref<8x342xbf16, #tpu.memory_space<vmem>>, vector<8x35xbf16>
    tpu.vector_store %arg15[%c0_29, %c307], %47 {strides = array<i32>} : memref<8x342xbf16, #tpu.memory_space<vmem>>, vector<8x35xbf16>,
    %c0_30 = arith.constant 0 : index
    %c0_31 = arith.constant 0 : index
    %49 = vector.load %arg9[%c0_30, %c0_31] : memref<72x8xbf16, #tpu.memory_space<vmem>>, vector<72x8xbf16>
    %c0_32 = arith.constant 0 : index
    %c0_33 = arith.constant 0 : index
    %50 = vector.load %arg15[%c0_32, %c0_33] : memref<8x342xbf16, #tpu.memory_space<vmem>>, vector<8x342xbf16>
    %cst_34 = arith.constant dense<0.000000e+00> : vector<72x342xf32>
    %51 = tpu.matmul %49, %50, %cst_34 {dimension_numbers = #tpu.dot_dimension_numbers<[1], [0], [0], [1], [0, 0, 1, 1], [], []>} : vector<72x8xbf16>, vector<8x342xbf16>, vector<72x342xf32> -> vector<72x342xf32>
    %52 = vector.extract_strided_slice %51 {offsets = [0, 0], sizes = [8, 288], strides = [1, 1]} : vector<72x342xf32> to vector<8x288xf32>
    %53 = vector.extract_strided_slice %51 {offsets = [8, 1], sizes = [8, 288], strides = [1, 1]} : vector<72x342xf32> to vector<8x288xf32>
    %54 = arith.addf %52, %53 : vector<8x288xf32>
    %55 = vector.extract_strided_slice %51 {offsets = [16, 2], sizes = [8, 288], strides = [1, 1]} : vector<72x342xf32> to vector<8x288xf32>
    %56 = arith.addf %54, %55 : vector<8x288xf32>
    %57 = vector.extract_strided_slice %51 {offsets = [24, 18], sizes = [8, 288], strides = [1, 1]} : vector<72x342xf32> to vector<8x288xf32>
    %58 = arith.addf %56, %57 : vector<8x288xf32>
    %59 = vector.extract_strided_slice %51 {offsets = [32, 19], sizes = [8, 288], strides = [1, 1]} : vector<72x342xf32> to vector<8x288xf32>
    %60 = arith.addf %58, %59 : vector<8x288xf32>
    %61 = vector.extract_strided_slice %51 {offsets = [40, 20], sizes = [8, 288], strides = [1, 1]} : vector<72x342xf32> to vector<8x288xf32>
    %62 = arith.addf %60, %61 : vector<8x288xf32>
    %63 = vector.extract_strided_slice %51 {offsets = [48, 36], sizes = [8, 288], strides = [1, 1]} : vector<72x342xf32> to vector<8x288xf32>
    %64 = arith.addf %62, %63 : vector<8x288xf32>
    %65 = vector.extract_strided_slice %51 {offsets = [56, 37], sizes = [8, 288], strides = [1, 1]} : vector<72x342xf32> to vector<8x288xf32>
    %66 = arith.addf %64, %65 : vector<8x288xf32>
    %67 = vector.extract_strided_slice %51 {offsets = [64, 38], sizes = [8, 288], strides = [1, 1]} : vector<72x342xf32> to vector<8x288xf32>
    %68 = arith.addf %66, %67 : vector<8x288xf32>
    %c0_35 = arith.constant 0 : index
    %c0_36 = arith.constant 0 : index
    %69 = vector.load %arg10[%c0_35, %c0_36] : memref<8x1xf32, #tpu.memory_space<vmem>>, vector<8x1xf32>
    %70 = vector.broadcast %69 : vector<8x1xf32> to vector<8x288xf32>
    %71 = arith.addf %68, %70 : vector<8x288xf32>
    %cst_37 = arith.constant 0.000000e+00 : f32
    %72 = vector.broadcast %cst_37 : f32 to vector<8x288xf32>
    %73 = arith.maximumf %71, %72 : vector<8x288xf32>
    %c0_38 = arith.constant 0 : index
    %c0_39 = arith.constant 0 : index
    %74 = vector.load %arg11[%c0_38, %c0_39] : memref<8x1xf32, #tpu.memory_space<vmem>>, vector<8x1xf32>
    %75 = vector.broadcast %74 : vector<8x1xf32> to vector<8x288xf32>
    %76 = arith.mulf %73, %75 : vector<8x288xf32>
    %c0_40 = arith.constant 0 : index
    %c0_41 = arith.constant 0 : index
    %77 = vector.load %arg12[%c0_40, %c0_41] : memref<8x1xf32, #tpu.memory_space<vmem>>, vector<8x1xf32>
    %78 = vector.broadcast %77 : vector<8x1xf32> to vector<8x288xf32>
    %79 = arith.addf %76, %78 : vector<8x288xf32>
    %80 = arith.truncf %79 : vector<8x288xf32> to vector<8x288xbf16>
    %c0_42 = arith.constant 0 : index
    %c0_43 = arith.constant 0 : index
    %c0_44 = arith.constant 0 : index
    %81 = vector.load %arg13[%c0_42, %c0_43, %c0_44] : memref<1x8x288xbf16, #tpu.memory_space<vmem>>, vector<1x8x288xbf16>
    %82 = vector.shape_cast %81 : vector<1x8x288xbf16> to vector<8x288xbf16>
    %83 = vector.shape_cast %80 : vector<8x288xbf16> to vector<1x8x288xbf16>
    tpu.vector_store %arg13[%c0_42, %c0_43, %c0_44], %83 {strides = array<i32>} : memref<1x8x288xbf16, #tpu.memory_space<vmem>>, vector<1x8x288xbf16>,
    return
  }
  func.func @transform_0(%arg0: i32) -> (i32, i32, i32) {
    %c0_i32 = arith.constant 0 : i32
    %c0_i32_0 = arith.constant 0 : i32
    %c0_i32_1 = arith.constant 0 : i32
    return %arg0, %c0_i32, %c0_i32_0 : i32, i32, i32
  }
  func.func @transform_1(%arg0: i32) -> (i32, i32, i32) {
    %c0_i32 = arith.constant 0 : i32
    %c0_i32_0 = arith.constant 0 : i32
    %c0_i32_1 = arith.constant 0 : i32
    return %arg0, %c0_i32, %c0_i32_0 : i32, i32, i32
  }
  func.func @transform_2(%arg0: i32) -> (i32, i32) {
    %c0_i32 = arith.constant 0 : i32
    %c0_i32_0 = arith.constant 0 : i32
    %c0_i32_1 = arith.constant 0 : i32
    return %c0_i32, %c0_i32_0 : i32, i32
  }
  func.func @transform_3(%arg0: i32) -> (i32, i32) {
    %c0_i32 = arith.constant 0 : i32
    %c0_i32_0 = arith.constant 0 : i32
    %c0_i32_1 = arith.constant 0 : i32
    return %c0_i32, %c0_i32_0 : i32, i32
  }
  func.func @transform_4(%arg0: i32) -> (i32, i32) {
    %c0_i32 = arith.constant 0 : i32
    %c0_i32_0 = arith.constant 0 : i32
    %c0_i32_1 = arith.constant 0 : i32
    return %c0_i32, %c0_i32_0 : i32, i32
  }
  func.func @transform_5(%arg0: i32) -> (i32, i32) {
    %c0_i32 = arith.constant 0 : i32
    %c0_i32_0 = arith.constant 0 : i32
    %c0_i32_1 = arith.constant 0 : i32
    return %c0_i32, %c0_i32_0 : i32, i32
  }
  func.func @transform_6(%arg0: i32) -> (i32, i32) {
    %c0_i32 = arith.constant 0 : i32
    %c0_i32_0 = arith.constant 0 : i32
    %c0_i32_1 = arith.constant 0 : i32
    return %c0_i32, %c0_i32_0 : i32, i32
  }
  func.func @transform_7(%arg0: i32) -> (i32, i32) {
    %c0_i32 = arith.constant 0 : i32
    %c0_i32_0 = arith.constant 0 : i32
    %c0_i32_1 = arith.constant 0 : i32
    return %c0_i32, %c0_i32_0 : i32, i32
  }
  func.func @transform_8(%arg0: i32) -> (i32, i32) {
    %c0_i32 = arith.constant 0 : i32
    %c0_i32_0 = arith.constant 0 : i32
    %c0_i32_1 = arith.constant 0 : i32
    return %c0_i32, %c0_i32_0 : i32, i32
  }
  func.func @transform_9(%arg0: i32) -> (i32, i32) {
    %c0_i32 = arith.constant 0 : i32
    %c0_i32_0 = arith.constant 0 : i32
    %c0_i32_1 = arith.constant 0 : i32
    return %c0_i32, %c0_i32_0 : i32, i32
  }
  func.func @transform_10(%arg0: i32) -> (i32, i32) {
    %c0_i32 = arith.constant 0 : i32
    %c0_i32_0 = arith.constant 0 : i32
    %c0_i32_1 = arith.constant 0 : i32
    return %c0_i32, %c0_i32_0 : i32, i32
  }
  func.func @transform_11(%arg0: i32) -> (i32, i32) {
    %c0_i32 = arith.constant 0 : i32
    %c0_i32_0 = arith.constant 0 : i32
    %c0_i32_1 = arith.constant 0 : i32
    return %c0_i32, %c0_i32_0 : i32, i32
  }
  func.func @transform_12(%arg0: i32) -> (i32, i32, i32) {
    %c0_i32 = arith.constant 0 : i32
    %c0_i32_0 = arith.constant 0 : i32
    %c0_i32_1 = arith.constant 0 : i32
    return %arg0, %c0_i32, %c0_i32_0 : i32, i32, i32
  }
}

module attributes {stable_mosaic.version = 11 : i64} {
  func.func @kernel(%arg0: i32, %arg1: memref<1x8x288xbf16, #tpu.memory_space<vmem>>, %arg2: memref<1x8x1190xbf16, #tpu.memory_space<vmem>>, %arg3: memref<288x1190xbf16, #tpu.memory_space<vmem>>, %arg4: memref<1x1088xf32, #tpu.memory_space<vmem>>, %arg5: memref<36x16xbf16, #tpu.memory_space<vmem>>, %arg6: memref<4x1xf32, #tpu.memory_space<vmem>>, %arg7: memref<4x1xf32, #tpu.memory_space<vmem>>, %arg8: memref<4x1xf32, #tpu.memory_space<vmem>>, %arg9: memref<36x4xbf16, #tpu.memory_space<vmem>>, %arg10: memref<4x1xf32, #tpu.memory_space<vmem>>, %arg11: memref<4x1xf32, #tpu.memory_space<vmem>>, %arg12: memref<4x1xf32, #tpu.memory_space<vmem>>, %arg13: memref<4x4xbf16, #tpu.memory_space<vmem>>, %arg14: memref<4x1xf32, #tpu.memory_space<vmem>>, %arg15: memref<1x4x1088xf32, #tpu.memory_space<vmem>>, %arg16: memref<16x1190xbf16, #tpu.memory_space<vmem>>, %arg17: memref<4x1190xbf16, #tpu.memory_space<vmem>>) attributes {dimension_semantics = [#tpu.dimension_semantics<parallel>], iteration_bounds = array<i64: 2>, scalar_prefetch = 0 : i64, scratch_operands = 2 : i64, tpu.core_type = #tpu.core_type<tc>, window_params = [{transform_indices = @transform_0, window_bounds = array<i64: 1, 8, 288>}, {transform_indices = @transform_1, window_bounds = array<i64: 1, 8, 1190>}, {pipeline_mode = #tpu.pipeline_mode<synchronous>, transform_indices = @transform_2, window_bounds = array<i64: 288, 1190>}, {pipeline_mode = #tpu.pipeline_mode<synchronous>, transform_indices = @transform_3, window_bounds = array<i64: 1, 1088>}, {pipeline_mode = #tpu.pipeline_mode<synchronous>, transform_indices = @transform_4, window_bounds = array<i64: 36, 16>}, {pipeline_mode = #tpu.pipeline_mode<synchronous>, transform_indices = @transform_5, window_bounds = array<i64: 4, 1>}, {pipeline_mode = #tpu.pipeline_mode<synchronous>, transform_indices = @transform_6, window_bounds = array<i64: 4, 1>}, {pipeline_mode = #tpu.pipeline_mode<synchronous>, transform_indices = @transform_7, window_bounds = array<i64: 4, 1>}, {pipeline_mode = #tpu.pipeline_mode<synchronous>, transform_indices = @transform_8, window_bounds = array<i64: 36, 4>}, {pipeline_mode = #tpu.pipeline_mode<synchronous>, transform_indices = @transform_9, window_bounds = array<i64: 4, 1>}, {pipeline_mode = #tpu.pipeline_mode<synchronous>, transform_indices = @transform_10, window_bounds = array<i64: 4, 1>}, {pipeline_mode = #tpu.pipeline_mode<synchronous>, transform_indices = @transform_11, window_bounds = array<i64: 4, 1>}, {pipeline_mode = #tpu.pipeline_mode<synchronous>, transform_indices = @transform_12, window_bounds = array<i64: 4, 4>}, {pipeline_mode = #tpu.pipeline_mode<synchronous>, transform_indices = @transform_13, window_bounds = array<i64: 4, 1>}, {transform_indices = @transform_14, window_bounds = array<i64: 1, 4, 1088>}]} {
    %c0 = arith.constant 0 : index
    %c0_0 = arith.constant 0 : index
    %c0_1 = arith.constant 0 : index
    %0 = vector.load %arg1[%c0, %c0_0, %c0_1] : memref<1x8x288xbf16, #tpu.memory_space<vmem>>, vector<1x8x288xbf16>
    %1 = vector.shape_cast %0 : vector<1x8x288xbf16> to vector<8x288xbf16>
    %c0_2 = arith.constant 0 : index
    %c0_3 = arith.constant 0 : index
    %2 = vector.load %arg3[%c0_2, %c0_3] : memref<288x1190xbf16, #tpu.memory_space<vmem>>, vector<288x1190xbf16>
    %cst = arith.constant dense<0.000000e+00> : vector<8x1190xf32>
    %3 = tpu.matmul %1, %2, %cst {dimension_numbers = #tpu.dot_dimension_numbers<[1], [0], [0], [1], [0, 0, 1, 1], [], []>} : vector<8x288xbf16>, vector<288x1190xbf16>, vector<8x1190xf32> -> vector<8x1190xf32>
    %4 = arith.truncf %3 : vector<8x1190xf32> to vector<8x1190xbf16>
    %c0_4 = arith.constant 0 : index
    %c0_5 = arith.constant 0 : index
    %5 = vector.load %arg16[%c0_4, %c0_5] : memref<16x1190xbf16, #tpu.memory_space<vmem>>, vector<8x1190xbf16>
    tpu.vector_store %arg16[%c0_4, %c0_5], %4 {strides = array<i32>} : memref<16x1190xbf16, #tpu.memory_space<vmem>>, vector<8x1190xbf16>,
    %c0_6 = arith.constant 0 : index
    %c0_7 = arith.constant 0 : index
    %c0_8 = arith.constant 0 : index
    %6 = vector.load %arg2[%c0_6, %c0_7, %c0_8] : memref<1x8x1190xbf16, #tpu.memory_space<vmem>>, vector<1x8x1190xbf16>
    %7 = vector.shape_cast %6 : vector<1x8x1190xbf16> to vector<8x1190xbf16>
    %c8 = arith.constant 8 : index
    %c0_9 = arith.constant 0 : index
    %8 = vector.load %arg16[%c8, %c0_9] : memref<16x1190xbf16, #tpu.memory_space<vmem>>, vector<8x1190xbf16>
    tpu.vector_store %arg16[%c8, %c0_9], %7 {strides = array<i32>} : memref<16x1190xbf16, #tpu.memory_space<vmem>>, vector<8x1190xbf16>,
    %c0_10 = arith.constant 0 : index
    %c0_11 = arith.constant 0 : index
    %9 = vector.load %arg5[%c0_10, %c0_11] : memref<36x16xbf16, #tpu.memory_space<vmem>>, vector<36x16xbf16>
    %c0_12 = arith.constant 0 : index
    %c0_13 = arith.constant 0 : index
    %10 = vector.load %arg16[%c0_12, %c0_13] : memref<16x1190xbf16, #tpu.memory_space<vmem>>, vector<16x1190xbf16>
    %cst_14 = arith.constant dense<0.000000e+00> : vector<36x1190xf32>
    %11 = tpu.matmul %9, %10, %cst_14 {dimension_numbers = #tpu.dot_dimension_numbers<[1], [0], [0], [1], [0, 0, 1, 1], [], []>} : vector<36x16xbf16>, vector<16x1190xbf16>, vector<36x1190xf32> -> vector<36x1190xf32>
    %12 = vector.extract_strided_slice %11 {offsets = [0, 0], sizes = [4, 1088], strides = [1, 1]} : vector<36x1190xf32> to vector<4x1088xf32>
    %13 = vector.extract_strided_slice %11 {offsets = [4, 1], sizes = [4, 1088], strides = [1, 1]} : vector<36x1190xf32> to vector<4x1088xf32>
    %14 = arith.addf %12, %13 : vector<4x1088xf32>
    %15 = vector.extract_strided_slice %11 {offsets = [8, 2], sizes = [4, 1088], strides = [1, 1]} : vector<36x1190xf32> to vector<4x1088xf32>
    %16 = arith.addf %14, %15 : vector<4x1088xf32>
    %17 = vector.extract_strided_slice %11 {offsets = [12, 34], sizes = [4, 1088], strides = [1, 1]} : vector<36x1190xf32> to vector<4x1088xf32>
    %18 = arith.addf %16, %17 : vector<4x1088xf32>
    %19 = vector.extract_strided_slice %11 {offsets = [16, 35], sizes = [4, 1088], strides = [1, 1]} : vector<36x1190xf32> to vector<4x1088xf32>
    %20 = arith.addf %18, %19 : vector<4x1088xf32>
    %21 = vector.extract_strided_slice %11 {offsets = [20, 36], sizes = [4, 1088], strides = [1, 1]} : vector<36x1190xf32> to vector<4x1088xf32>
    %22 = arith.addf %20, %21 : vector<4x1088xf32>
    %23 = vector.extract_strided_slice %11 {offsets = [24, 68], sizes = [4, 1088], strides = [1, 1]} : vector<36x1190xf32> to vector<4x1088xf32>
    %24 = arith.addf %22, %23 : vector<4x1088xf32>
    %25 = vector.extract_strided_slice %11 {offsets = [28, 69], sizes = [4, 1088], strides = [1, 1]} : vector<36x1190xf32> to vector<4x1088xf32>
    %26 = arith.addf %24, %25 : vector<4x1088xf32>
    %27 = vector.extract_strided_slice %11 {offsets = [32, 70], sizes = [4, 1088], strides = [1, 1]} : vector<36x1190xf32> to vector<4x1088xf32>
    %28 = arith.addf %26, %27 : vector<4x1088xf32>
    %c0_15 = arith.constant 0 : index
    %c0_16 = arith.constant 0 : index
    %29 = vector.load %arg6[%c0_15, %c0_16] : memref<4x1xf32, #tpu.memory_space<vmem>>, vector<4x1xf32>
    %30 = vector.broadcast %29 : vector<4x1xf32> to vector<4x1088xf32>
    %31 = arith.addf %28, %30 : vector<4x1088xf32>
    %cst_17 = arith.constant 0.000000e+00 : f32
    %32 = vector.broadcast %cst_17 : f32 to vector<4x1088xf32>
    %33 = arith.maximumf %31, %32 : vector<4x1088xf32>
    %c0_18 = arith.constant 0 : index
    %c0_19 = arith.constant 0 : index
    %34 = vector.load %arg7[%c0_18, %c0_19] : memref<4x1xf32, #tpu.memory_space<vmem>>, vector<4x1xf32>
    %35 = vector.broadcast %34 : vector<4x1xf32> to vector<4x1088xf32>
    %36 = arith.mulf %33, %35 : vector<4x1088xf32>
    %c0_20 = arith.constant 0 : index
    %c0_21 = arith.constant 0 : index
    %37 = vector.load %arg8[%c0_20, %c0_21] : memref<4x1xf32, #tpu.memory_space<vmem>>, vector<4x1xf32>
    %38 = vector.broadcast %37 : vector<4x1xf32> to vector<4x1088xf32>
    %39 = arith.addf %36, %38 : vector<4x1088xf32>
    %c0_22 = arith.constant 0 : index
    %c0_23 = arith.constant 0 : index
    %40 = vector.load %arg4[%c0_22, %c0_23] : memref<1x1088xf32, #tpu.memory_space<vmem>>, vector<1x1088xf32>
    %41 = vector.broadcast %40 : vector<1x1088xf32> to vector<4x1088xf32>
    %42 = arith.mulf %39, %41 : vector<4x1088xf32>
    %cst_24 = arith.constant 0.000000e+00 : bf16
    %43 = vector.broadcast %cst_24 : bf16 to vector<4x35xbf16>
    %c0_25 = arith.constant 0 : index
    %c0_26 = arith.constant 0 : index
    %44 = vector.load %arg17[%c0_25, %c0_26] : memref<4x1190xbf16, #tpu.memory_space<vmem>>, vector<4x35xbf16>
    tpu.vector_store %arg17[%c0_25, %c0_26], %43 {strides = array<i32>} : memref<4x1190xbf16, #tpu.memory_space<vmem>>, vector<4x35xbf16>,
    %45 = arith.truncf %42 : vector<4x1088xf32> to vector<4x1088xbf16>
    %c0_27 = arith.constant 0 : index
    %c35 = arith.constant 35 : index
    %46 = vector.load %arg17[%c0_27, %c35] : memref<4x1190xbf16, #tpu.memory_space<vmem>>, vector<4x1088xbf16>
    tpu.vector_store %arg17[%c0_27, %c35], %45 {strides = array<i32>} : memref<4x1190xbf16, #tpu.memory_space<vmem>>, vector<4x1088xbf16>,
    %cst_28 = arith.constant 0.000000e+00 : bf16
    %47 = vector.broadcast %cst_28 : bf16 to vector<4x67xbf16>
    %c0_29 = arith.constant 0 : index
    %c1123 = arith.constant 1123 : index
    %48 = vector.load %arg17[%c0_29, %c1123] : memref<4x1190xbf16, #tpu.memory_space<vmem>>, vector<4x67xbf16>
    tpu.vector_store %arg17[%c0_29, %c1123], %47 {strides = array<i32>} : memref<4x1190xbf16, #tpu.memory_space<vmem>>, vector<4x67xbf16>,
    %c0_30 = arith.constant 0 : index
    %c0_31 = arith.constant 0 : index
    %49 = vector.load %arg9[%c0_30, %c0_31] : memref<36x4xbf16, #tpu.memory_space<vmem>>, vector<36x4xbf16>
    %c0_32 = arith.constant 0 : index
    %c0_33 = arith.constant 0 : index
    %50 = vector.load %arg17[%c0_32, %c0_33] : memref<4x1190xbf16, #tpu.memory_space<vmem>>, vector<4x1190xbf16>
    %cst_34 = arith.constant dense<0.000000e+00> : vector<36x1190xf32>
    %51 = tpu.matmul %49, %50, %cst_34 {dimension_numbers = #tpu.dot_dimension_numbers<[1], [0], [0], [1], [0, 0, 1, 1], [], []>} : vector<36x4xbf16>, vector<4x1190xbf16>, vector<36x1190xf32> -> vector<36x1190xf32>
    %52 = vector.extract_strided_slice %51 {offsets = [0, 0], sizes = [4, 1088], strides = [1, 1]} : vector<36x1190xf32> to vector<4x1088xf32>
    %53 = vector.extract_strided_slice %51 {offsets = [4, 1], sizes = [4, 1088], strides = [1, 1]} : vector<36x1190xf32> to vector<4x1088xf32>
    %54 = arith.addf %52, %53 : vector<4x1088xf32>
    %55 = vector.extract_strided_slice %51 {offsets = [8, 2], sizes = [4, 1088], strides = [1, 1]} : vector<36x1190xf32> to vector<4x1088xf32>
    %56 = arith.addf %54, %55 : vector<4x1088xf32>
    %57 = vector.extract_strided_slice %51 {offsets = [12, 34], sizes = [4, 1088], strides = [1, 1]} : vector<36x1190xf32> to vector<4x1088xf32>
    %58 = arith.addf %56, %57 : vector<4x1088xf32>
    %59 = vector.extract_strided_slice %51 {offsets = [16, 35], sizes = [4, 1088], strides = [1, 1]} : vector<36x1190xf32> to vector<4x1088xf32>
    %60 = arith.addf %58, %59 : vector<4x1088xf32>
    %61 = vector.extract_strided_slice %51 {offsets = [20, 36], sizes = [4, 1088], strides = [1, 1]} : vector<36x1190xf32> to vector<4x1088xf32>
    %62 = arith.addf %60, %61 : vector<4x1088xf32>
    %63 = vector.extract_strided_slice %51 {offsets = [24, 68], sizes = [4, 1088], strides = [1, 1]} : vector<36x1190xf32> to vector<4x1088xf32>
    %64 = arith.addf %62, %63 : vector<4x1088xf32>
    %65 = vector.extract_strided_slice %51 {offsets = [28, 69], sizes = [4, 1088], strides = [1, 1]} : vector<36x1190xf32> to vector<4x1088xf32>
    %66 = arith.addf %64, %65 : vector<4x1088xf32>
    %67 = vector.extract_strided_slice %51 {offsets = [32, 70], sizes = [4, 1088], strides = [1, 1]} : vector<36x1190xf32> to vector<4x1088xf32>
    %68 = arith.addf %66, %67 : vector<4x1088xf32>
    %c0_35 = arith.constant 0 : index
    %c0_36 = arith.constant 0 : index
    %69 = vector.load %arg10[%c0_35, %c0_36] : memref<4x1xf32, #tpu.memory_space<vmem>>, vector<4x1xf32>
    %70 = vector.broadcast %69 : vector<4x1xf32> to vector<4x1088xf32>
    %71 = arith.addf %68, %70 : vector<4x1088xf32>
    %cst_37 = arith.constant 0.000000e+00 : f32
    %72 = vector.broadcast %cst_37 : f32 to vector<4x1088xf32>
    %73 = arith.maximumf %71, %72 : vector<4x1088xf32>
    %c0_38 = arith.constant 0 : index
    %c0_39 = arith.constant 0 : index
    %74 = vector.load %arg11[%c0_38, %c0_39] : memref<4x1xf32, #tpu.memory_space<vmem>>, vector<4x1xf32>
    %75 = vector.broadcast %74 : vector<4x1xf32> to vector<4x1088xf32>
    %76 = arith.mulf %73, %75 : vector<4x1088xf32>
    %c0_40 = arith.constant 0 : index
    %c0_41 = arith.constant 0 : index
    %77 = vector.load %arg12[%c0_40, %c0_41] : memref<4x1xf32, #tpu.memory_space<vmem>>, vector<4x1xf32>
    %78 = vector.broadcast %77 : vector<4x1xf32> to vector<4x1088xf32>
    %79 = arith.addf %76, %78 : vector<4x1088xf32>
    %c0_42 = arith.constant 0 : index
    %c0_43 = arith.constant 0 : index
    %80 = vector.load %arg13[%c0_42, %c0_43] : memref<4x4xbf16, #tpu.memory_space<vmem>>, vector<4x4xbf16>
    %81 = arith.truncf %79 : vector<4x1088xf32> to vector<4x1088xbf16>
    %cst_44 = arith.constant dense<0.000000e+00> : vector<4x1088xf32>
    %82 = tpu.matmul %80, %81, %cst_44 {dimension_numbers = #tpu.dot_dimension_numbers<[1], [0], [0], [1], [0, 0, 1, 1], [], []>} : vector<4x4xbf16>, vector<4x1088xbf16>, vector<4x1088xf32> -> vector<4x1088xf32>
    %c0_45 = arith.constant 0 : index
    %c0_46 = arith.constant 0 : index
    %83 = vector.load %arg14[%c0_45, %c0_46] : memref<4x1xf32, #tpu.memory_space<vmem>>, vector<4x1xf32>
    %84 = vector.broadcast %83 : vector<4x1xf32> to vector<4x1088xf32>
    %85 = arith.addf %82, %84 : vector<4x1088xf32>
    %c0_47 = arith.constant 0 : index
    %c0_48 = arith.constant 0 : index
    %c0_49 = arith.constant 0 : index
    %86 = vector.load %arg15[%c0_47, %c0_48, %c0_49] : memref<1x4x1088xf32, #tpu.memory_space<vmem>>, vector<1x4x1088xf32>
    %87 = vector.shape_cast %86 : vector<1x4x1088xf32> to vector<4x1088xf32>
    %88 = vector.shape_cast %85 : vector<4x1088xf32> to vector<1x4x1088xf32>
    tpu.vector_store %arg15[%c0_47, %c0_48, %c0_49], %88 {strides = array<i32>} : memref<1x4x1088xf32, #tpu.memory_space<vmem>>, vector<1x4x1088xf32>,
    return
  }
  func.func @transform_0(%arg0: i32) -> (i32, i32, i32) {
    %c0_i32 = arith.constant 0 : i32
    %c0_i32_0 = arith.constant 0 : i32
    %c0_i32_1 = arith.constant 0 : i32
    return %arg0, %c0_i32, %c0_i32_0 : i32, i32, i32
  }
  func.func @transform_1(%arg0: i32) -> (i32, i32, i32) {
    %c0_i32 = arith.constant 0 : i32
    %c0_i32_0 = arith.constant 0 : i32
    %c0_i32_1 = arith.constant 0 : i32
    return %arg0, %c0_i32, %c0_i32_0 : i32, i32, i32
  }
  func.func @transform_2(%arg0: i32) -> (i32, i32) {
    %c0_i32 = arith.constant 0 : i32
    %c0_i32_0 = arith.constant 0 : i32
    %c0_i32_1 = arith.constant 0 : i32
    return %c0_i32, %c0_i32_0 : i32, i32
  }
  func.func @transform_3(%arg0: i32) -> (i32, i32) {
    %c0_i32 = arith.constant 0 : i32
    %c0_i32_0 = arith.constant 0 : i32
    %c0_i32_1 = arith.constant 0 : i32
    return %c0_i32, %c0_i32_0 : i32, i32
  }
  func.func @transform_4(%arg0: i32) -> (i32, i32) {
    %c0_i32 = arith.constant 0 : i32
    %c0_i32_0 = arith.constant 0 : i32
    %c0_i32_1 = arith.constant 0 : i32
    return %c0_i32, %c0_i32_0 : i32, i32
  }
  func.func @transform_5(%arg0: i32) -> (i32, i32) {
    %c0_i32 = arith.constant 0 : i32
    %c0_i32_0 = arith.constant 0 : i32
    %c0_i32_1 = arith.constant 0 : i32
    return %c0_i32, %c0_i32_0 : i32, i32
  }
  func.func @transform_6(%arg0: i32) -> (i32, i32) {
    %c0_i32 = arith.constant 0 : i32
    %c0_i32_0 = arith.constant 0 : i32
    %c0_i32_1 = arith.constant 0 : i32
    return %c0_i32, %c0_i32_0 : i32, i32
  }
  func.func @transform_7(%arg0: i32) -> (i32, i32) {
    %c0_i32 = arith.constant 0 : i32
    %c0_i32_0 = arith.constant 0 : i32
    %c0_i32_1 = arith.constant 0 : i32
    return %c0_i32, %c0_i32_0 : i32, i32
  }
  func.func @transform_8(%arg0: i32) -> (i32, i32) {
    %c0_i32 = arith.constant 0 : i32
    %c0_i32_0 = arith.constant 0 : i32
    %c0_i32_1 = arith.constant 0 : i32
    return %c0_i32, %c0_i32_0 : i32, i32
  }
  func.func @transform_9(%arg0: i32) -> (i32, i32) {
    %c0_i32 = arith.constant 0 : i32
    %c0_i32_0 = arith.constant 0 : i32
    %c0_i32_1 = arith.constant 0 : i32
    return %c0_i32, %c0_i32_0 : i32, i32
  }
  func.func @transform_10(%arg0: i32) -> (i32, i32) {
    %c0_i32 = arith.constant 0 : i32
    %c0_i32_0 = arith.constant 0 : i32
    %c0_i32_1 = arith.constant 0 : i32
    return %c0_i32, %c0_i32_0 : i32, i32
  }
  func.func @transform_11(%arg0: i32) -> (i32, i32) {
    %c0_i32 = arith.constant 0 : i32
    %c0_i32_0 = arith.constant 0 : i32
    %c0_i32_1 = arith.constant 0 : i32
    return %c0_i32, %c0_i32_0 : i32, i32
  }
  func.func @transform_12(%arg0: i32) -> (i32, i32) {
    %c0_i32 = arith.constant 0 : i32
    %c0_i32_0 = arith.constant 0 : i32
    %c0_i32_1 = arith.constant 0 : i32
    return %c0_i32, %c0_i32_0 : i32, i32
  }
  func.func @transform_13(%arg0: i32) -> (i32, i32) {
    %c0_i32 = arith.constant 0 : i32
    %c0_i32_0 = arith.constant 0 : i32
    %c0_i32_1 = arith.constant 0 : i32
    return %c0_i32, %c0_i32_0 : i32, i32
  }
  func.func @transform_14(%arg0: i32) -> (i32, i32, i32) {
    %c0_i32 = arith.constant 0 : i32
    %c0_i32_0 = arith.constant 0 : i32
    %c0_i32_1 = arith.constant 0 : i32
    return %arg0, %c0_i32, %c0_i32_0 : i32, i32, i32
  }
}

</mosaic_0001>

<bundles_post_ra>
// kernel: unet_decoder_forward.7
= control target key start
LH: loop header
LB: loop body
LE: loop exit
PB: predicated region body
PF: predicated region fallthrough
CT: control target
= control target key end

     0   :  { %s1586_s21 = smov 0   ;;  %s1822_s0 = inlined_call_operand.vmem [shape: bf16[2,32,24], index: 0, kind: input, shape index: {}]   ;;  %s1823_s1 = inlined_call_operand.vmem [shape: bf16[2,16,110], index: 1, kind: input, shape index: {}]   ;;  %s1824_s2 = inlined_call_operand.vmem [shape: bf16[24,110], index: 2, kind: input, shape index: {}]   ;;  %s1825_s3 = inlined_call_operand.vmem [shape: f32[1,80], index: 3, kind: input, shape index: {}]   ;;  %s1826_s4 = inlined_call_operand.vmem [shape: bf16[144,48], index: 4, kind: input, shape index: {}]   ;;  %s1827_s5 = inlined_call_operand.vmem [shape: f32[16,1], index: 5, kind: input, shape index: {}]   ;;  %s1828_s6 = inlined_call_operand.vmem [shape: f32[16,1], index: 6, kind: input, shape index: {}]   ;;  %s1829_s7 = inlined_call_operand.vmem [shape: f32[16,1], index: 7, kind: input, shape index: {}]   ;;  %s1830_s8 = inlined_call_operand.vmem [shape: bf16[144,16], index: 8, kind: input, shape index: {}]   ;;  %s1831_s9 = inlined_call_operand.vmem [shape: f32[16,1], index: 9, kind: input, shape index: {}]   ;;  %s1832_s10 = inlined_call_operand.vmem [shape: f32[16,1], index: 10, kind: input, shape index: {}]   ;;  %s1833_s11 = inlined_call_operand.vmem [shape: f32[16,1], index: 11, kind: input, shape index: {}]   ;;  %s1834_s12 = inlined_call_operand.vmem [shape: bf16[2,16,80], index: 12, kind: output, shape index: {}]  }
   0x1 LB: > { %s1277_s22 = sadd.s32 4294967295, %s1507_s21   ;;  %p1281_p0 = scmp.ge.s32.totalorder %s1507_s21, 1  ;;  %s1507_s21 = sphi %s1586_s21, %s22_s21  }
   0x2   : > { %p372_p1 = scmp.lt.s32.totalorder %s1507_s21, 3 }
   0x4   : > { %p373_p2 = pnand %p1281_p0, %p372_p1 }
   0x5   : > { %v1478_v0 = vld [vmem:[%s1824_s2] sm:$0xff] (!%p373_p2)   ;;  %vm468_vm0 = vcmask (!%p373_p2), 1043456   ;;  %v1479_v1 = vld [vmem:[%s1824_s2 + $0x8] ss:$0 sps:$4 sm:$0xff] (!%p373_p2)   ;;  %p419_p3 = scmp.lt.s32.totalorder (!%p373_p2), %s1277_s22, 1  ;;  %vm461_vm1 = vcmask (!%p373_p2), 195584  }
   0x6   : > { %376 = sbr.rel (%p373_p2) target bundleno = 1212 (0x4bc), region = 68  ;;  %1367 = vmatprep.subr.bf16.mxu0 (!%p373_p2), %v1478_v0  ;;  %v470_v2 = vsel (!%p373_p2), %vm468_vm0, %v1479_v1, 0  ;;  %vm523_vm2 = vcmask (!%p373_p2), 900096   ;;  %v1509_v6 = vmov (!%p373_p2), 0.0   ;;  %vm1510_vm3 = vmmov (!%p373_p2), 0   ;;  %v814_v7 = vld [vmem:[%s1827_s5] sm:$0xff] (!%p373_p2) }
   0x7   : > { %1368 = vmatpush3.bf16.msra.mxu0 (!%p373_p2), %v1478_v0  ;;  %1375 = vmatprep.subr.bf16.mxu1 (!%p373_p2), %v1509_v6  ;;  %v815_v8 = vld [vmem:[%s1827_s5 + $0x8] sm:$0xff] (!%p373_p2)  ;;  %v1511_v9 = vmov (!%p373_p2), 0   ;;  %v830_v11 = vld [vmem:[%s1828_s6] sm:$0xff] (!%p373_p2)  ;;  %vm601_vm4 = vcmask (!%p373_p2), 392192   ;;  %v1485_v23 = vld [vmem:[%s1826_s4 + $0x10] sm:$0xff] (!%p373_p2)   ;;  %s1513_s14 = smov (!%p373_p2), 126  }
   0x8   : > { %1455 = vmatprep.subr.msk.bf16.mxu0 (!%p373_p2), %vm468_vm0, %v1479_v1  ;;  %1381 = vmatprep.mubr.msk.bf16.mxu1 (!%p373_p2), %vm1510_vm3, %v1509_v6  ;;  %v831_v10 = vld [vmem:[%s1828_s6 + $0x8] sm:$0xff] (!%p373_p2)  ;;  %v1483_v21 = vld [vmem:[%s1826_s4] sm:$0xff] (!%p373_p2)   ;;  %v1486_v24 = vld [vmem:[%s1826_s4 + $0x18] sm:$0xff] (!%p373_p2)   ;;  %s1514_s15 = smov (!%p373_p2), 118   ;;  %s1516_s17 = smov (!%p373_p2), 116   ;;  %vm867_vm5 = vcmask (!%p373_p2), 89088  }
   0x9   : > { %1476 = vset.pattern.permute.xlu0 (!%p373_p2), %v1511_v9  ;;  %1477 = vset.pattern.permute.xlu1 (!%p373_p2), %v1511_v9  ;;  %v1484_v22 = vld [vmem:[%s1826_s4 + $0x8] sm:$0xff] (!%p373_p2)   ;;  %v1487_v25 = vld [vmem:[%s1826_s4 + $0x20] sm:$0xff] (!%p373_p2)   ;;  %v1489_v27 = vld [vmem:[%s1826_s4 + $0x30] sm:$0xff] (!%p373_p2)   ;;  %s1517_s18 = smov (!%p373_p2), 108   ;;  %s1518_s19 = smov (!%p373_p2), 107   ;;  %868 = vst.msk [vmem:[#allocation3] sm:$0xff] (!%p373_p2), %vm867_vm5, %v1511_v9 }
   0xa   : > { %818 = vperm.xlu0 (!%p373_p2), %1476, %v814_v7   ;;  %823 = vperm.xlu1 (!%p373_p2), %1477, %v815_v8   ;;  %v1488_v26 = vld [vmem:[%s1826_s4 + $0x28] sm:$0xff] (!%p373_p2)   ;;  %v1490_v28 = vld [vmem:[%s1826_s4 + $0x38] sm:$0xff] (!%p373_p2)   ;;  %v1491_v29 = vld [vmem:[%s1826_s4 + $0x40] sm:$0xff] (!%p373_p2)   ;;  %s1519_s20 = smov (!%p373_p2), 106   ;;  %s1520_s24 = smov (!%p373_p2), 11   ;;  %vm874_vm6 = vcmask (!%p373_p2), 744536  }
   0xb   : > { %1370 = vmatpush3.bf16.msra.mxu0 (!%p373_p2), %v470_v2  ;;  %v844_v1 = vld [vmem:[%s1829_s7] sm:$0xff] (!%p373_p2)  ;;  %vm876_vm7 = vcmask (!%p373_p2), 900824   ;;  %vm942_vm8 = vcmask (!%p373_p2), 130048   ;;  %vm1207_vm9 = vcmask (!%p373_p2), 650240  }
   0xc   : > { %1417 = vmatprep.subr.bf16.mxu0 (!%p373_p2), %v1509_v6 }
   0xd   : > { %s1838_s22 = smov (!%p419_p3, %s1277_s22), 1 }
   0xe   : > { %s1336_s27 = sshll.u32 %s1838_s22, 4  ;;  %s1835_s13 = sshll.u32 %s1838_s22, 3  ;;  %839 = vperm.xlu0 %1476, %v831_v10   ;;  %834 = vperm.xlu1 %1477, %v830_v11  }
   0xf   : > { %s423_s30 = scalar_lea.vmem %s1822_s0, %s1336_s27  ;;  %s428_s16 = scalar_lea.vmem %s1823_s1, %s1835_s13 }
  0x10   : > { %v1480_v3 = vld [vmem:[%s423_s30] sm:$0xff]   ;;  %v1481_v4 = vld [vmem:[%s423_s30 + $0x8] sm:$0xff]   ;;  %s1512_s30 = smov 127  }
  0x11   : > { %1371 = vmatprep.mubr.msk.bf16.mxu0 %vm461_vm1, %v1480_v3  ;;  %v1482_v5 = vld [vmem:[%s428_s16] sm:$0xff]   ;;  %s1515_s16 = smov 117   ;;  %v845_v3 = vld [vmem:[%s1829_s7 + $0x8] sm:$0xff] }
  0x12   : > { %1372 = vmatmul.mubr.msk.bf16.vlgmr.msra.gmra.mrb[0].mxu0 %vm461_vm1, %v1481_v4  ;;  %534 = vst.msk [vmem:[#allocation2 + $0x10] sm:$0xff] %vm523_vm2, %v1482_v5  ;;  %v1155_v4 = vld [vmem:[%s1831_s9] sm:$0xff] }
  0x13   : > { %1419 = vmatprep.mubr.msk.bf16.mxu0 %vm1510_vm3, %v1509_v6  ;;  %v1171_v5 = vld [vmem:[%s1832_s10] sm:$0xff] }
  0x19   : > { %v555_v20 = vld [vmem:[#allocation2 + $0x10] sm:$0xff] }
  0x89   : > { %v824_v7 = vpop.permute.xlu1 %823  ;;  %v819_v8 = vpop.permute.xlu0 %818 }
  0x8d   : > { %v835_v10 = vpop.permute.xlu1 %834  ;;  %v840_v11 = vpop.permute.xlu0 %839 }
  0xe5   : > { %v1373_v12 = vpop.f32.mrb[0].mxu0 }
  0xe6   : > { %v506_v13 = vpop.f32.mrb[1].mxu0 }
  0xe7   : > { %v1374_v14 = vpop.f32.mrb[2].mxu0 }
  0xe8   : > { %v522_v15 = vpack.c.bf16 %v1374_v14, %v1373_v12  ;;  %v509_v16 = vpop.f32.mrb[3].mxu0 }
  0xe9   : > { %v521_v17 = vpack.c.bf16 %v509_v16, %v506_v13 }
  0xea   : > { %525 = vst.msk [vmem:[#allocation2 + $0x8] sm:$0xff] %vm523_vm2, %v522_v15 }
  0xeb   : > { %524 = vst.msk [vmem:[#allocation2] sm:$0xff] %vm523_vm2, %v521_v17 }
  0xf1   : > { %v554_v19 = vld [vmem:[#allocation2 + $0x8] sm:$0xff] }
  0xf2   : > { %v553_v18 = vld [vmem:[#allocation2] sm:$0xff] }
  0xf3   : > { %1376 = vmatpush3.bf16.msra.mxu1 %v553_v18 }
  0xf4   : > { %1377 = vmatprep.subr.bf16.mxu1 %v1509_v6 }
  0xf7   : > { %1378 = vmatpush3.bf16.msra.mxu1 %v554_v19 }
  0xf8   : > { %1379 = vmatprep.subr.bf16.mxu1 %v1509_v6 }
  0xfb   : > { %1380 = vmatpush3.bf16.msra.mxu1 %v555_v20 }
  0xfe   : > { %1382 = vmatmul.mubr.msk.bf16.vlgmr.msra.gmra.mrb[0].mxu1 %vm601_vm4, %v1483_v21 }
  0xff   : > { %1385 = vmatprep.mubr.msk.bf16.mxu1 %vm1510_vm3, %v1509_v6 }
 0x106   : > { %1386 = vmatmul.mubr.msk.bf16.gmra.mrb[4].mxu1 %vm601_vm4, %v1484_v22 }
 0x107   : > { %1389 = vmatprep.mubr.msk.bf16.mxu1 %vm1510_vm3, %v1509_v6 }
 0x10e   : > { %1390 = vmatmul.mubr.msk.bf16.gmra.mrb[8].mxu1 %vm601_vm4, %v1485_v23 }
 0x10f   : > { %1393 = vmatprep.mubr.msk.bf16.mxu1 %vm1510_vm3, %v1509_v6 }
 0x116   : > { %1394 = vmatmul.mubr.msk.bf16.gmra.mrb[12].mxu1 %vm601_vm4, %v1486_v24 }
 0x117   : > { %1397 = vmatprep.mubr.msk.bf16.mxu1 %vm1510_vm3, %v1509_v6 }
 0x11e   : > { %1398 = vmatmul.mubr.msk.bf16.gmra.mrb[16].mxu1 %vm601_vm4, %v1487_v25 }
 0x11f   : > { %1401 = vmatprep.mubr.msk.bf16.mxu1 %vm1510_vm3, %v1509_v6 }
 0x126   : > { %1402 = vmatmul.mubr.msk.bf16.gmra.mrb[20].mxu1 %vm601_vm4, %v1488_v26 }
 0x127   : > { %1405 = vmatprep.mubr.msk.bf16.mxu1 %vm1510_vm3, %v1509_v6 }
 0x12e   : > { %1406 = vmatmul.mubr.msk.bf16.gmra.mrb[24].mxu1 %vm601_vm4, %v1489_v27 }
 0x12f   : > { %1409 = vmatprep.mubr.msk.bf16.mxu1 %vm1510_vm3, %v1509_v6 }
 0x136   : > { %1410 = vmatmul.mubr.msk.bf16.gmra.mrb[28].mxu1 %vm601_vm4, %v1490_v28 }
 0x137   : > { %1413 = vmatprep.mubr.msk.bf16.mxu1 %vm1510_vm3, %v1509_v6 }
 0x13e   : > { %1414 = vmatmul.mubr.msk.bf16.gmra.mrb[32].mxu1 %vm601_vm4, %v1491_v29 }
 0x1d1   : > { %v1689_v30 = vpop.f32.mrb[0].mxu1 }
 0x1d2   : > { %v1383_v31 = vpop.f32.mrb[1].mxu1 }
 0x1d3   : > { %v1691_v32 = vpop.f32.mrb[2].mxu1 }
 0x1d4   : > { %v1384_v33 = vpop.f32.mrb[3].mxu1 }
 0x1d9   : > { %v671_v34 = vpop.f32.mrb[4].mxu1 }
 0x1da   : > { %736 = vrot.lane.b32.xlu0 %v671_v34, %s1512_s30  ;;  %v1387_v35 = vpop.f32.mrb[5].mxu1 }
 0x1db   : > { %v674_v36 = vpop.f32.mrb[6].mxu1 }
 0x1dc   : > { %v1388_v37 = vpop.f32.mrb[7].mxu1 }
 0x1de   : > { %738 = vrot.lane.b32.xlu0 %v674_v36, %s1512_s30 }
 0x1e1   : > { %v679_v38 = vpop.f32.mrb[8].mxu1 }
 0x1e2   : > { %746 = vrot.lane.b32.xlu1 %v679_v38, %s1513_s14  ;;  %v1391_v39 = vpop.f32.mrb[9].mxu1 }
 0x1e3   : > { %v682_v40 = vpop.f32.mrb[10].mxu1 }
 0x1e4   : > { %v1392_v41 = vpop.f32.mrb[11].mxu1 }
 0x1e6   : > { %748 = vrot.lane.b32.xlu1 %v682_v40, %s1513_s14 }
 0x1e9   : > { %v687_v42 = vpop.f32.mrb[12].mxu1 }
 0x1ea   : > { %756 = vrot.lane.b32.xlu0 %v687_v42, %s1514_s15  ;;  %v1395_v43 = vpop.f32.mrb[13].mxu1 }
 0x1eb   : > { %v690_v44 = vpop.f32.mrb[14].mxu1 }
 0x1ec   : > { %758 = vrot.lane.b32.xlu1 %v690_v44, %s1514_s15  ;;  %v1396_v45 = vpop.f32.mrb[15].mxu1 }
 0x1f1   : > { %v695_v46 = vpop.f32.mrb[16].mxu1 }
 0x1f2   : > { %766 = vrot.lane.b32.xlu0 %v695_v46, %s1515_s16  ;;  %v1399_v47 = vpop.f32.mrb[17].mxu1 }
 0x1f3   : > { %v698_v48 = vpop.f32.mrb[18].mxu1 }
 0x1f4   : > { %768 = vrot.lane.b32.xlu1 %v698_v48, %s1515_s16  ;;  %v1400_v49 = vpop.f32.mrb[19].mxu1 }
 0x1f9   : > { %v703_v50 = vpop.f32.mrb[20].mxu1 }
 0x1fa   : > { %776 = vrot.lane.b32.xlu0 %v703_v50, %s1516_s17  ;;  %v1403_v51 = vpop.f32.mrb[21].mxu1 }
 0x1fb   : > { %v706_v52 = vpop.f32.mrb[22].mxu1 }
 0x1fc   : > { %778 = vrot.lane.b32.xlu1 %v706_v52, %s1516_s17  ;;  %v1404_v53 = vpop.f32.mrb[23].mxu1  ;;  %v1313_v52 = vld [vmem:[%s1825_s3] ss:$0 sm:$0xff] }
 0x201   : > { %v711_v54 = vpop.f32.mrb[24].mxu1 }
 0x202   : > { %786 = vrot.lane.b32.xlu1 %v711_v54, %s1517_s18  ;;  %v1407_v55 = vpop.f32.mrb[25].mxu1 }
 0x203   : > { %v714_v56 = vpop.f32.mrb[26].mxu1 }
 0x204   : > { %788 = vrot.lane.b32.xlu0 %v714_v56, %s1517_s18  ;;  %v1408_v57 = vpop.f32.mrb[27].mxu1 }
 0x209   : > { %v719_v58 = vpop.f32.mrb[28].mxu1 }
 0x20a   : > { %796 = vrot.lane.b32.xlu1 %v719_v58, %s1518_s19  ;;  %v1411_v59 = vpop.f32.mrb[29].mxu1  ;;  %v1156_v58 = vld [vmem:[%s1831_s9 + $0x8] sm:$0xff] }
 0x20b   : > { %v722_v60 = vpop.f32.mrb[30].mxu1  ;;  %v1172_v59 = vld [vmem:[%s1832_s10 + $0x8] sm:$0xff] }
 0x20c   : > { %798 = vrot.lane.b32.xlu0 %v722_v60, %s1518_s19  ;;  %v1412_v61 = vpop.f32.mrb[31].mxu1 }
 0x211   : > { %v727_v62 = vpop.f32.mrb[32].mxu1 }
 0x212   : > { %806 = vrot.lane.b32.xlu1 %v727_v62, %s1519_s20  ;;  %v1415_v63 = vpop.f32.mrb[33].mxu1  ;;  %v1492_v62 = vld [vmem:[%s1830_s8] sm:$0xff]  }
 0x213   : > { %v730_v0 = vpop.f32.mrb[34].mxu1  ;;  %v1493_v63 = vld [vmem:[%s1830_s8 + $0x8] sm:$0xff]  }
 0x214   : > { %808 = vrot.lane.b32.xlu0 %v730_v0, %s1519_s20  ;;  %v1416_v2 = vpop.f32.mrb[35].mxu1  ;;  %v1495_v0 = vld [vmem:[%s1830_s8 + $0x18] sm:$0xff]  }
 0x215   : > { %v1497_v2 = vld [vmem:[%s1830_s8 + $0x28] sm:$0xff]  }
 0x216   : > { %848 = vperm.xlu1 %1477, %v844_v1   ;;  %v1496_v1 = vld [vmem:[%s1830_s8 + $0x20] sm:$0xff]  }
 0x218   : > { %853 = vperm.xlu0 %1476, %v845_v3   ;;  %v1498_v3 = vld [vmem:[%s1830_s8 + $0x30] sm:$0xff]  }
 0x21c   : > { %1159 = vperm.xlu0 %1476, %v1155_v4   ;;  %v1499_v4 = vld [vmem:[%s1830_s8 + $0x38] sm:$0xff]  }
 0x220   : > { %1175 = vperm.xlu0 %1476, %v1171_v5   ;;  %v1500_v5 = vld [vmem:[%s1830_s8 + $0x40] sm:$0xff]  }
 0x24c   : > { %v737_v13 = vpop.permute.xlu0 %736 }
 0x24d   : > { %v742_v21 = vadd.f32 %v737_v13, %v1689_v30 }
 0x250   : > { %v739_v15 = vpop.permute.xlu0 %738 }
 0x251   : > { %v743_v23 = vadd.f32 %v739_v15, %v1691_v32 }
 0x254   : > { %v747_v12 = vpop.permute.xlu1 %746 }
 0x255   : > { %v752_v24 = vadd.f32 %v747_v12, %v742_v21 }
 0x258   : > { %v749_v14 = vpop.permute.xlu1 %748 }
 0x259   : > { %v753_v26 = vadd.f32 %v749_v14, %v743_v23 }
 0x25c   : > { %v757_v17 = vpop.permute.xlu0 %756 }
 0x25d   : > { %v762_v27 = vadd.f32 %v757_v17, %v752_v24 }
 0x25e   : > { %v759_v16 = vpop.permute.xlu1 %758 }
 0x25f   : > { %v763_v29 = vadd.f32 %v759_v16, %v753_v26 }
 0x264   : > { %v767_v19 = vpop.permute.xlu0 %766 }
 0x265   : > { %v772_v31 = vadd.f32 %v767_v19, %v762_v27 }
 0x266   : > { %v769_v18 = vpop.permute.xlu1 %768 }
 0x267   : > { %v773_v34 = vadd.f32 %v769_v18, %v763_v29 }
 0x26c   : > { %v777_v22 = vpop.permute.xlu0 %776 }
 0x26d   : > { %v782_v35 = vadd.f32 %v777_v22, %v772_v31 }
 0x26e   : > { %v779_v20 = vpop.permute.xlu1 %778 }
 0x26f   : > { %v783_v37 = vadd.f32 %v779_v20, %v773_v34 }
 0x274   : > { %v787_v25 = vpop.permute.xlu1 %786 }
 0x275   : > { %v792_v38 = vadd.f32 %v787_v25, %v782_v35 }
 0x276   : > { %v789_v28 = vpop.permute.xlu0 %788 }
 0x277   : > { %v793_v40 = vadd.f32 %v789_v28, %v783_v37 }
 0x27c   : > { %v797_v33 = vpop.permute.xlu1 %796 }
 0x27d   : > { %v802_v41 = vadd.f32 %v797_v33, %v792_v38 }
 0x27e   : > { %v799_v36 = vpop.permute.xlu0 %798 }
 0x27f   : > { %v803_v42 = vadd.f32 %v799_v36, %v793_v40 }
 0x284   : > { %v807_v39 = vpop.permute.xlu1 %806 }
 0x285   : > { %v812_v43 = vadd.f32 %v807_v39, %v802_v41 }
 0x286   : > { %v809_v30 = vpop.permute.xlu0 %808 }
 0x287   : > { %v813_v32 = vadd.f32 %v809_v30, %v803_v42  ;;  %v826_v44 = vadd.f32 %v819_v8, %v812_v43  ;;  %v1185_v43 = vld [vmem:[%s1833_s11] sm:$0xff] }
 0x289   : > { %v827_v45 = vadd.f32 %v824_v7, %v813_v32  ;;  %v828_v46 = vmax.f32 %v826_v44, 0.0  ;;  %v1186_v44 = vld [vmem:[%s1833_s11 + $0x8] sm:$0xff] }
 0x28b   : > { %v829_v47 = vmax.f32 %v827_v45, 0.0  ;;  %v842_v48 = vmul.f32 %v835_v10, %v828_v46 }
 0x28d   : > { %v843_v51 = vmul.f32 %v840_v11, %v829_v47 }
 0x295   : > { %v849_v49 = vpop.permute.xlu1 %848 }
 0x296   : > { %v856_v50 = vadd.f32 %v849_v49, %v842_v48 }
 0x297   : > { %v854_v53 = vpop.permute.xlu0 %853 }
 0x298   : > { %v857_v54 = vadd.f32 %v854_v53, %v843_v51  ;;  %v865_v55 = vmul.f32 %v1313_v52, %v856_v50 }
 0x29a   : > { %v866_v56 = vmul.f32 %v1313_v52, %v857_v54 }
 0x29b   : > { %v1160_v45 = vpop.permute.xlu0 %1159 }
 0x29c   : > { %v869_v57 = vpack.c.bf16 %v866_v56, %v865_v55 }
 0x29e   : > { %871 = vrot.lane.b32.xlu1 %v869_v57, %s1520_s24 }
 0x29f   : > { %v1176_v47 = vpop.permute.xlu0 %1175 }
 0x2a2   : > { %1164 = vperm.xlu1 %1477, %v1156_v58  }
 0x2a6   : > { %1180 = vperm.xlu1 %1477, %v1172_v59  }
 0x310   : > { %v872_v60 = vpop.permute.xlu1 %871 }
 0x311   : > { %875 = vst.msk [vmem:[#allocation3] sm:$0xff] %vm874_vm6, %v872_v60 }
 0x312   : > { %877 = vst.msk [vmem:[#allocation3] sm:$0xff] %vm876_vm7, %v1511_v9  ;;  %v1494_v9 = vld [vmem:[%s1830_s8 + $0x10] sm:$0xff]  }
 0x319   : > { %v896_v61 = vld [vmem:[#allocation3] sm:$0xff] }
 0x31a   : > { %1418 = vmatpush3.bf16.msra.mxu0 %v896_v61 }
 0x31d   : > { %1420 = vmatmul.mubr.msk.bf16.vlgmr.msra.gmra.mrb[4].mxu0 %vm942_vm8, %v1492_v62 }
 0x31e   : > { %1423 = vmatprep.mubr.msk.bf16.mxu0 %vm1510_vm3, %v1509_v6 }
 0x321   : > { %v1165_v46 = vpop.permute.xlu1 %1164 }
 0x325   : > { %1424 = vmatmul.mubr.msk.bf16.gmra.mrb[8].mxu0 %vm942_vm8, %v1493_v63  ;;  %v1181_v48 = vpop.permute.xlu1 %1180 }
 0x326   : > { %1427 = vmatprep.mubr.msk.bf16.mxu0 %vm1510_vm3, %v1509_v6 }
 0x32d   : > { %1428 = vmatmul.mubr.msk.bf16.gmra.mrb[12].mxu0 %vm942_vm8, %v1494_v9 }
 0x32e   : > { %1431 = vmatprep.mubr.msk.bf16.mxu0 %vm1510_vm3, %v1509_v6 }
 0x335   : > { %1432 = vmatmul.mubr.msk.bf16.gmra.mrb[16].mxu0 %vm942_vm8, %v1495_v0 }
 0x336   : > { %1435 = vmatprep.mubr.msk.bf16.mxu0 %vm1510_vm3, %v1509_v6 }
 0x33d   : > { %1436 = vmatmul.mubr.msk.bf16.gmra.mrb[20].mxu0 %vm942_vm8, %v1496_v1 }
 0x33e   : > { %1439 = vmatprep.mubr.msk.bf16.mxu0 %vm1510_vm3, %v1509_v6 }
 0x345   : > { %1440 = vmatmul.mubr.msk.bf16.gmra.mrb[24].mxu0 %vm942_vm8, %v1497_v2 }
 0x346   : > { %1443 = vmatprep.mubr.msk.bf16.mxu0 %vm1510_vm3, %v1509_v6 }
 0x34d   : > { %1444 = vmatmul.mubr.msk.bf16.gmra.mrb[28].mxu0 %vm942_vm8, %v1498_v3 }
 0x34e   : > { %1447 = vmatprep.mubr.msk.bf16.mxu0 %vm1510_vm3, %v1509_v6 }
 0x355   : > { %1448 = vmatmul.mubr.msk.bf16.gmra.mrb[32].mxu0 %vm942_vm8, %v1499_v4 }
 0x356   : > { %1451 = vmatprep.mubr.msk.bf16.mxu0 %vm1510_vm3, %v1509_v6 }
 0x35d   : > { %1452 = vmatmul.mubr.msk.bf16.gmra.mrb[36].mxu0 %vm942_vm8, %v1500_v5 }
 0x3f0   : > { %v1786_v7 = vpop.f32.mrb[4].mxu0 }
 0x3f1   : > { %v1421_v8 = vpop.f32.mrb[5].mxu0 }
 0x3f2   : > { %v1788_v10 = vpop.f32.mrb[6].mxu0 }
 0x3f3   : > { %v1422_v11 = vpop.f32.mrb[7].mxu0 }
 0x3f8   : > { %v1012_v12 = vpop.f32.mrb[8].mxu0 }
 0x3f9   : > { %1077 = vrot.lane.b32.xlu0 %v1012_v12, %s1512_s30  ;;  %v1425_v13 = vpop.f32.mrb[9].mxu0 }
 0x3fa   : > { %v1015_v14 = vpop.f32.mrb[10].mxu0 }
 0x3fb   : > { %1079 = vrot.lane.b32.xlu1 %v1015_v14, %s1512_s30  ;;  %v1426_v6 = vpop.f32.mrb[11].mxu0 }
 0x400   : > { %v1020_v15 = vpop.f32.mrb[12].mxu0 }
 0x401   : > { %1087 = vrot.lane.b32.xlu0 %v1020_v15, %s1513_s14  ;;  %v1429_v16 = vpop.f32.mrb[13].mxu0 }
 0x402   : > { %v1023_v17 = vpop.f32.mrb[14].mxu0 }
 0x403   : > { %1089 = vrot.lane.b32.xlu1 %v1023_v17, %s1513_s14  ;;  %v1430_v18 = vpop.f32.mrb[15].mxu0 }
 0x408   : > { %v1028_v19 = vpop.f32.mrb[16].mxu0 }
 0x409   : > { %1097 = vrot.lane.b32.xlu0 %v1028_v19, %s1514_s15  ;;  %v1433_v20 = vpop.f32.mrb[17].mxu0 }
 0x40a   : > { %v1031_v21 = vpop.f32.mrb[18].mxu0 }
 0x40b   : > { %1099 = vrot.lane.b32.xlu1 %v1031_v21, %s1514_s15  ;;  %v1434_v22 = vpop.f32.mrb[19].mxu0 }
 0x410   : > { %v1036_v23 = vpop.f32.mrb[20].mxu0 }
 0x411   : > { %1107 = vrot.lane.b32.xlu0 %v1036_v23, %s1515_s16  ;;  %v1437_v24 = vpop.f32.mrb[21].mxu0 }
 0x412   : > { %v1039_v25 = vpop.f32.mrb[22].mxu0 }
 0x413   : > { %1109 = vrot.lane.b32.xlu1 %v1039_v25, %s1515_s16  ;;  %v1438_v26 = vpop.f32.mrb[23].mxu0 }
 0x418   : > { %v1044_v27 = vpop.f32.mrb[24].mxu0 }
 0x419   : > { %1117 = vrot.lane.b32.xlu0 %v1044_v27, %s1516_s17  ;;  %v1441_v28 = vpop.f32.mrb[25].mxu0 }
 0x41a   : > { %v1047_v29 = vpop.f32.mrb[26].mxu0 }
 0x41b   : > { %1119 = vrot.lane.b32.xlu1 %v1047_v29, %s1516_s17  ;;  %v1442_v31 = vpop.f32.mrb[27].mxu0  ;;  %s1836_s17 = sshll.u32 %s1838_s22, 3 }
 0x420   : > { %v1052_v33 = vpop.f32.mrb[28].mxu0 }
 0x421   : > { %1127 = vrot.lane.b32.xlu0 %v1052_v33, %s1517_s18  ;;  %v1445_v34 = vpop.f32.mrb[29].mxu0 }
 0x422   : > { %v1055_v35 = vpop.f32.mrb[30].mxu0 }
 0x423   : > { %1129 = vrot.lane.b32.xlu1 %v1055_v35, %s1517_s18  ;;  %v1446_v36 = vpop.f32.mrb[31].mxu0 }
 0x428   : > { %v1060_v37 = vpop.f32.mrb[32].mxu0 }
 0x429   : > { %1137 = vrot.lane.b32.xlu0 %v1060_v37, %s1518_s19  ;;  %v1449_v38 = vpop.f32.mrb[33].mxu0 }
 0x42a   : > { %v1063_v39 = vpop.f32.mrb[34].mxu0 }
 0x42b   : > { %1139 = vrot.lane.b32.xlu1 %v1063_v39, %s1518_s19  ;;  %v1450_v40 = vpop.f32.mrb[35].mxu0 }
 0x430   : > { %v1068_v41 = vpop.f32.mrb[36].mxu0 }
 0x431   : > { %1147 = vrot.lane.b32.xlu0 %v1068_v41, %s1519_s20  ;;  %v1453_v30 = vpop.f32.mrb[37].mxu0 }
 0x432   : > { %v1071_v42 = vpop.f32.mrb[38].mxu0 }
 0x433   : > { %1149 = vrot.lane.b32.xlu1 %v1071_v42, %s1519_s20  ;;  %v1454_v32 = vpop.f32.mrb[39].mxu0  ;;  %s433_s20 = scalar_lea.vmem %s1834_s12, %s1836_s17 }
 0x435   : > { %1189 = vperm.xlu0 %1476, %v1185_v43  }
 0x437   : > { %1194 = vperm.xlu1 %1477, %v1186_v44  }
 0x46b   : > { %v1078_v49 = vpop.permute.xlu0 %1077 }
 0x46c   : > { %v1083_v58 = vadd.f32 %v1078_v49, %v1786_v7 }
 0x46d   : > { %v1080_v50 = vpop.permute.xlu1 %1079 }
 0x46e   : > { %v1084_v60 = vadd.f32 %v1080_v50, %v1788_v10 }
 0x473   : > { %v1088_v51 = vpop.permute.xlu0 %1087 }
 0x474   : > { %v1093_v61 = vadd.f32 %v1088_v51, %v1083_v58 }
 0x475   : > { %v1090_v52 = vpop.permute.xlu1 %1089 }
 0x476   : > { %v1094_v63 = vadd.f32 %v1090_v52, %v1084_v60 }
 0x47b   : > { %v1098_v53 = vpop.permute.xlu0 %1097 }
 0x47c   : > { %v1103_v9 = vadd.f32 %v1098_v53, %v1093_v61 }
 0x47d   : > { %v1100_v54 = vpop.permute.xlu1 %1099 }
 0x47e   : > { %v1104_v1 = vadd.f32 %v1100_v54, %v1094_v63 }
 0x483   : > { %v1108_v55 = vpop.permute.xlu0 %1107 }
 0x484   : > { %v1113_v2 = vadd.f32 %v1108_v55, %v1103_v9 }
 0x485   : > { %v1110_v56 = vpop.permute.xlu1 %1109 }
 0x486   : > { %v1114_v4 = vadd.f32 %v1110_v56, %v1104_v1 }
 0x48b   : > { %v1118_v57 = vpop.permute.xlu0 %1117 }
 0x48c   : > { %v1123_v5 = vadd.f32 %v1118_v57, %v1113_v2 }
 0x48d   : > { %v1120_v59 = vpop.permute.xlu1 %1119 }
 0x48e   : > { %v1124_v11 = vadd.f32 %v1120_v59, %v1114_v4 }
 0x493   : > { %v1128_v62 = vpop.permute.xlu0 %1127 }
 0x494   : > { %v1133_v12 = vadd.f32 %v1128_v62, %v1123_v5 }
 0x495   : > { %v1130_v0 = vpop.permute.xlu1 %1129 }
 0x496   : > { %v1134_v14 = vadd.f32 %v1130_v0, %v1124_v11 }
 0x49b   : > { %v1138_v3 = vpop.permute.xlu0 %1137 }
 0x49c   : > { %v1143_v7 = vadd.f32 %v1138_v3, %v1133_v12 }
 0x49d   : > { %v1140_v8 = vpop.permute.xlu1 %1139 }
 0x49e   : > { %v1144_v15 = vadd.f32 %v1140_v8, %v1134_v14 }
 0x4a3   : > { %v1148_v13 = vpop.permute.xlu0 %1147 }
 0x4a4   : > { %v1153_v10 = vadd.f32 %v1148_v13, %v1143_v7 }
 0x4a5   : > { %v1150_v6 = vpop.permute.xlu1 %1149 }
 0x4a6   : > { %v1154_v16 = vadd.f32 %v1150_v6, %v1144_v15  ;;  %v1167_v17 = vadd.f32 %v1160_v45, %v1153_v10 }
 0x4a8   : > { %v1168_v18 = vadd.f32 %v1165_v46, %v1154_v16  ;;  %v1169_v19 = vmax.f32 %v1167_v17, 0.0 }
 0x4aa   : > { %v1170_v20 = vmax.f32 %v1168_v18, 0.0  ;;  %v1183_v21 = vmul.f32 %v1176_v47, %v1169_v19 }
 0x4ac   : > { %v1184_v24 = vmul.f32 %v1181_v48, %v1170_v20 }
 0x4b4   : > { %v1190_v22 = vpop.permute.xlu0 %1189 }
 0x4b5   : > { %v1197_v23 = vadd.f32 %v1190_v22, %v1183_v21 }
 0x4b6   : > { %v1195_v25 = vpop.permute.xlu1 %1194 }
 0x4b7   : > { %v1339_v26 = vpack.c.bf16 %v1197_v23, %v1197_v23  ;;  %v1198_v27 = vadd.f32 %v1195_v25, %v1184_v24 }
 0x4b9   : > { %1208 = vst.msk [vmem:[%s433_s20] sm:$0xf] %vm1207_vm9, %v1339_v26  ;;  %v1340_v28 = vpack.c.bf16 %v1198_v27, %v1198_v27 }
 0x4bb   : > { %1209 = vst.msk [vmem:[%s433_s20 + $0x4] sm:$0xf] %vm1207_vm9, %v1340_v28 }
 0x4bc PF: > { %s22_s21 = sadd.s32 1, %s1507_s21  }
 0x4bd   : > { %p19_p4 = scmp.ge.s32.totalorder %s22_s21, 4  }
 0x4bf   :  { %21 = sbr.rel (!%p19_p4) target bundleno = 1 (0x1), region = 101 }

// kernel: unet_decoder_forward.6
= control target key start
LH: loop header
LB: loop body
LE: loop exit
PB: predicated region body
PF: predicated region fallthrough
CT: control target
= control target key end

     0   :  { %s2251_s21 = smov 0   ;;  %s2660_s0 = inlined_call_operand.vmem [shape: bf16[2,32,8], index: 0, kind: input, shape index: {}]   ;;  %s2661_s1 = inlined_call_operand.vmem [shape: bf16[2,32,42], index: 1, kind: input, shape index: {}]   ;;  %s2662_s2 = inlined_call_operand.vmem [shape: bf16[8,42], index: 2, kind: input, shape index: {}]   ;;  %s2663_s3 = inlined_call_operand.vmem [shape: f32[1,24], index: 3, kind: input, shape index: {}]   ;;  %s2664_s4 = inlined_call_operand.vmem [shape: bf16[288,64], index: 4, kind: input, shape index: {}]   ;;  %s2665_s5 = inlined_call_operand.vmem [shape: f32[32,1], index: 5, kind: input, shape index: {}]   ;;  %s2666_s6 = inlined_call_operand.vmem [shape: f32[32,1], index: 6, kind: input, shape index: {}]   ;;  %s2667_s7 = inlined_call_operand.vmem [shape: f32[32,1], index: 7, kind: input, shape index: {}]   ;;  %s2668_s8 = inlined_call_operand.vmem [shape: bf16[288,32], index: 8, kind: input, shape index: {}]   ;;  %s2669_s9 = inlined_call_operand.vmem [shape: f32[32,1], index: 9, kind: input, shape index: {}]   ;;  %s2670_s10 = inlined_call_operand.vmem [shape: f32[32,1], index: 10, kind: input, shape index: {}]   ;;  %s2671_s11 = inlined_call_operand.vmem [shape: f32[32,1], index: 11, kind: input, shape index: {}]   ;;  %s2672_s12 = inlined_call_operand.vmem [shape: bf16[2,32,24], index: 12, kind: output, shape index: {}]  }
   0x1 LB: > { %s1869_s22 = sadd.s32 4294967295, %s2174_s21   ;;  %p1873_p0 = scmp.ge.s32.totalorder %s2174_s21, 1  ;;  %s2174_s21 = sphi %s2251_s21, %s22_s21  }
   0x2   : > { %p372_p1 = scmp.lt.s32.totalorder %s2174_s21, 3 }
   0x4   : > { %p373_p2 = pnand %p1873_p0, %p372_p1 }
   0x5   : > { %v439_v0 = vld [vmem:[%s2662_s2] sm:$0xf] (!%p373_p2)  ;;  %vm457_vm0 = vcmask (!%p373_p2), 1043456   ;;  %p419_p3 = scmp.lt.s32.totalorder (!%p373_p2), %s1869_s22, 1  ;;  %vm450_vm1 = vcmask (!%p373_p2), 64512   ;;  %vm512_vm2 = vcmask (!%p373_p2), 343040  }
   0x6   : > { %376 = sbr.rel (%p373_p2) target bundleno = 1229 (0x4cd), region = 68  ;;  %2107 = vmatprep.subr.msk.bf16.mxu0 (!%p373_p2), %vm457_vm0, %v439_v0  ;;  %v459_v1 = vsel (!%p373_p2), %vm457_vm0, %v439_v0, 0  ;;  %v2132_v6 = vld [vmem:[%s2664_s4] sm:$0xff] (!%p373_p2)   ;;  %vm663_vm3 = vcmask (!%p373_p2), 523264   ;;  %v1056_v7 = vld [vmem:[%s2665_s5 + $0x8] sm:$0xff] (!%p373_p2)  ;;  %v2176_v9 = vmov (!%p373_p2), 0  }
   0x7   : > { %2018 = vmatpush3.bf16.msra.mxu0 (!%p373_p2), %v459_v1  ;;  %2031 = vmatprep.mubr.msk.bf16.mxu1 (!%p373_p2), %vm663_vm3, %v2132_v6  ;;  %v1055_v8 = vld [vmem:[%s2665_s5] sm:$0xff] (!%p373_p2)  ;;  %v1057_v10 = vld [vmem:[%s2665_s5 + $0x10] sm:$0xff] (!%p373_p2)  ;;  %v1058_v11 = vld [vmem:[%s2665_s5 + $0x18] sm:$0xff] (!%p373_p2)  ;;  %s2177_s23 = smov (!%p373_p2), 127   ;;  %s2178_s24 = smov (!%p373_p2), 126   ;;  %vm1154_vm4 = vcmask (!%p373_p2), 56320  }
   0x8   : > { %2127 = vset.pattern.permute.xlu1 (!%p373_p2), %v2176_v9  ;;  %2126 = vset.pattern.permute.xlu0 (!%p373_p2), %v2176_v9  ;;  %v1087_v12 = vld [vmem:[%s2666_s6] sm:$0xff] (!%p373_p2)  ;;  %v1088_v13 = vld [vmem:[%s2666_s6 + $0x8] sm:$0xff] (!%p373_p2)  ;;  %v1089_v16 = vld [vmem:[%s2666_s6 + $0x10] sm:$0xff] (!%p373_p2)  ;;  %s2179_s26 = smov (!%p373_p2), 122   ;;  %s2180_s27 = smov (!%p373_p2), 121   ;;  %1155 = vst.msk [vmem:[#allocation3] sm:$0xff] (!%p373_p2), %vm1154_vm4, %v2176_v9 }
   0x9   : > { %1066 = vperm.xlu1 (!%p373_p2), %2127, %v1056_v7   ;;  %1061 = vperm.xlu0 (!%p373_p2), %2126, %v1055_v8   ;;  %v1115_v14 = vld [vmem:[%s2667_s7] sm:$0xff] (!%p373_p2)  ;;  %v1116_v15 = vld [vmem:[%s2667_s7 + $0x8] sm:$0xff] (!%p373_p2)  ;;  %v1090_v17 = vld [vmem:[%s2666_s6 + $0x18] sm:$0xff] (!%p373_p2)  ;;  %s2182_s29 = smov (!%p373_p2), 116   ;;  %s2675_s30 = smov (!%p373_p2), 115   ;;  %1156 = vst.msk [vmem:[#allocation3 + $0x8] sm:$0xff] (!%p373_p2), %vm1154_vm4, %v2176_v9 }
   0xa   : > { %v2133_v28 = vld [vmem:[%s2664_s4 + $0x8] sm:$0xff] (!%p373_p2)   ;;  %v2134_v29 = vld [vmem:[%s2664_s4 + $0x10] sm:$0xff] (!%p373_p2)   ;;  %v2135_v30 = vld [vmem:[%s2664_s4 + $0x18] sm:$0xff] (!%p373_p2)   ;;  %s2185_s20 = smov (!%p373_p2), 7   ;;  %vm1301_vm5 = vcmask (!%p373_p2), 261120   ;;  %vm1167_vm6 = vcmask (!%p373_p2), 252984  }
   0xb   : > { %v2136_v31 = vld [vmem:[%s2664_s4 + $0x20] sm:$0xff] (!%p373_p2)   ;;  %v2137_v32 = vld [vmem:[%s2664_s4 + $0x28] sm:$0xff] (!%p373_p2)   ;;  %v2138_v33 = vld [vmem:[%s2664_s4 + $0x30] sm:$0xff] (!%p373_p2)   ;;  %vm1170_vm7 = vcmask (!%p373_p2), 343288   ;;  %vm1797_vm8 = vcmask (!%p373_p2), 191488  }
   0xc   : > { %v2139_v34 = vld [vmem:[%s2664_s4 + $0x38] sm:$0xff] (!%p373_p2)   ;;  %v2140_v35 = vld [vmem:[%s2664_s4 + $0x40] sm:$0xff] (!%p373_p2)   ;;  %v2141_v36 = vld [vmem:[%s2664_s4 + $0x48] sm:$0xff] (!%p373_p2)  }
   0xd   : > { %s2680_s22 = smov (!%p419_p3, %s1869_s22), 1  ;;  %1071 = vperm.xlu1 %2127, %v1057_v10   ;;  %1076 = vperm.xlu0 %2126, %v1058_v11   ;;  %v2142_v37 = vld [vmem:[%s2664_s4 + $0x50] sm:$0xff]   ;;  %v2143_v38 = vld [vmem:[%s2664_s4 + $0x58] sm:$0xff]   ;;  %v2144_v39 = vld [vmem:[%s2664_s4 + $0x60] sm:$0xff]  }
   0xe   : > { %s2262_s25 = sshll.u32 %s2680_s22, 4  ;;  %v2145_v40 = vld [vmem:[%s2664_s4 + $0x68] sm:$0xff]   ;;  %v2146_v41 = vld [vmem:[%s2664_s4 + $0x70] sm:$0xff]   ;;  %v2147_v42 = vld [vmem:[%s2664_s4 + $0x78] sm:$0xff]  }
   0xf   : > { %s423_s28 = scalar_lea.vmem %s2660_s0, %s2262_s25  ;;  %s428_s13 = scalar_lea.vmem %s2661_s1, %s2262_s25  ;;  %v2148_v43 = vld [vmem:[%s2664_s4 + $0x80] sm:$0xff]   ;;  %v2149_v44 = vld [vmem:[%s2664_s4 + $0x88] sm:$0xff]  }
  0x10   : > { %v2128_v2 = vld [vmem:[%s423_s28] sm:$0xff]   ;;  %v2129_v3 = vld [vmem:[%s423_s28 + $0x8] sm:$0xff]   ;;  %s2181_s28 = smov 120   ;;  %s433_s14 = scalar_lea.vmem %s2672_s12, %s2262_s25 }
  0x11   : > { %2019 = vmatprep.mubr.msk.bf16.mxu0 %vm450_vm1, %v2128_v2  ;;  %v2130_v4 = vld [vmem:[%s428_s13] sm:$0xff]   ;;  %v2131_v5 = vld [vmem:[%s428_s13 + $0x8] sm:$0xff]   ;;  %1093 = vperm.xlu1 %2127, %v1087_v12   ;;  %s2673_s13 = smov 114  }
  0x12   : > { %2020 = vmatmul.mubr.msk.bf16.vlgmr.msra.gmra.mrb[0].mxu0 %vm450_vm1, %v2129_v3  ;;  %531 = vst.msk [vmem:[#allocation2 + $0x10] sm:$0xff] %vm512_vm2, %v2130_v4  ;;  %532 = vst.msk [vmem:[#allocation2 + $0x18] sm:$0xff] %vm512_vm2, %v2131_v5  ;;  %1098 = vperm.xlu0 %2126, %v1088_v13  }
  0x15   : > { %1121 = vperm.xlu1 %2127, %v1115_v14  }
  0x16   : > { %1126 = vperm.xlu0 %2126, %v1116_v15  }
  0x19   : > { %1103 = vperm.xlu1 %2127, %v1089_v16   ;;  %v571_v26 = vld [vmem:[#allocation2 + $0x10] sm:$0xff]  ;;  %v572_v27 = vld [vmem:[#allocation2 + $0x18] sm:$0xff] }
  0x1a   : > { %1108 = vperm.xlu0 %2126, %v1090_v17  }
  0xe5   : > { %v2021_v18 = vpop.f32.mrb[0].mxu0 }
  0xe6   : > { %v495_v19 = vpop.f32.mrb[1].mxu0 }
  0xe7   : > { %v2022_v20 = vpop.f32.mrb[2].mxu0 }
  0xe8   : > { %v511_v21 = vpack.c.bf16 %v2022_v20, %v2021_v18  ;;  %v498_v22 = vpop.f32.mrb[3].mxu0  ;;  %v1118_v18 = vld [vmem:[%s2667_s7 + $0x18] sm:$0xff]  ;;  %v2426_v20 = vpop.permute.xlu0 %1061 }
  0xe9   : > { %v510_v23 = vpack.c.bf16 %v498_v22, %v495_v19  ;;  %v1117_v19 = vld [vmem:[%s2667_s7 + $0x10] sm:$0xff] }
  0xea   : > { %514 = vst.msk [vmem:[#allocation2 + $0x8] sm:$0xff] %vm512_vm2, %v511_v21  ;;  %v2428_v21 = vpop.permute.xlu1 %1066 }
  0xeb   : > { %513 = vst.msk [vmem:[#allocation2] sm:$0xff] %vm512_vm2, %v510_v23 }
  0xec   : > { %v2430_v22 = vpop.permute.xlu0 %1076 }
  0xee   : > { %v2434_v23 = vpop.permute.xlu1 %1071 }
  0xf1   : > { %v570_v25 = vld [vmem:[#allocation2 + $0x8] sm:$0xff] }
  0xf2   : > { %v569_v24 = vld [vmem:[#allocation2] sm:$0xff] }
  0xf3   : > { %2023 = vmatprep.subr.bf16.mxu1 %v569_v24 }
  0xf4   : > { %2024 = vmatpush3.bf16.msra.mxu1 %v569_v24  ;;  %v2436_v24 = vpop.permute.xlu0 %1098 }
  0xf5   : > { %2025 = vmatprep.subr.bf16.mxu1 %v570_v25 }
  0xf8   : > { %2026 = vmatpush3.bf16.msra.mxu1 %v570_v25  ;;  %v2438_v25 = vpop.permute.xlu1 %1093 }
  0xf9   : > { %2027 = vmatprep.subr.bf16.mxu1 %v571_v26 }
  0xfc   : > { %2028 = vmatpush3.bf16.msra.mxu1 %v571_v26  ;;  %v2440_v26 = vpop.permute.xlu0 %1126 }
  0xfd   : > { %2029 = vmatprep.subr.bf16.mxu1 %v572_v27 }
 0x100   : > { %2030 = vmatpush3.bf16.msra.mxu1 %v572_v27  ;;  %v2442_v27 = vpop.permute.xlu1 %1121 }
 0x103   : > { %2032 = vmatmul.mubr.msk.bf16.vlgmr.msra.gmra.mrb[0].mxu1 %vm663_vm3, %v2133_v28  ;;  %v2444_v28 = vpop.permute.xlu0 %1108 }
 0x104   : > { %2035 = vmatprep.mubr.msk.bf16.mxu1 %vm663_vm3, %v2134_v29 }
 0x10b   : > { %2036 = vmatmul.mubr.msk.bf16.gmra.mrb[4].mxu1 %vm663_vm3, %v2135_v30  ;;  %v2446_v30 = vpop.permute.xlu1 %1103 }
 0x10c   : > { %2039 = vmatprep.mubr.msk.bf16.mxu1 %vm663_vm3, %v2136_v31 }
 0x113   : > { %2040 = vmatmul.mubr.msk.bf16.gmra.mrb[8].mxu1 %vm663_vm3, %v2137_v32 }
 0x114   : > { %2043 = vmatprep.mubr.msk.bf16.mxu1 %vm663_vm3, %v2138_v33 }
 0x11b   : > { %2044 = vmatmul.mubr.msk.bf16.gmra.mrb[12].mxu1 %vm663_vm3, %v2139_v34 }
 0x11c   : > { %2047 = vmatprep.mubr.msk.bf16.mxu1 %vm663_vm3, %v2140_v35 }
 0x123   : > { %2048 = vmatmul.mubr.msk.bf16.gmra.mrb[16].mxu1 %vm663_vm3, %v2141_v36 }
 0x124   : > { %2051 = vmatprep.mubr.msk.bf16.mxu1 %vm663_vm3, %v2142_v37 }
 0x12b   : > { %2052 = vmatmul.mubr.msk.bf16.gmra.mrb[20].mxu1 %vm663_vm3, %v2143_v38 }
 0x12c   : > { %2055 = vmatprep.mubr.msk.bf16.mxu1 %vm663_vm3, %v2144_v39 }
 0x133   : > { %2056 = vmatmul.mubr.msk.bf16.gmra.mrb[24].mxu1 %vm663_vm3, %v2145_v40 }
 0x134   : > { %2059 = vmatprep.mubr.msk.bf16.mxu1 %vm663_vm3, %v2146_v41 }
 0x13b   : > { %2060 = vmatmul.mubr.msk.bf16.gmra.mrb[28].mxu1 %vm663_vm3, %v2147_v42 }
 0x13c   : > { %2063 = vmatprep.mubr.msk.bf16.mxu1 %vm663_vm3, %v2148_v43 }
 0x143   : > { %2064 = vmatmul.mubr.msk.bf16.gmra.mrb[32].mxu1 %vm663_vm3, %v2149_v44 }
 0x1d6   : > { %v2380_v45 = vpop.f32.mrb[0].mxu1 }
 0x1d7   : > { %v2382_v46 = vpop.f32.mrb[1].mxu1 }
 0x1d8   : > { %v2384_v47 = vpop.f32.mrb[2].mxu1 }
 0x1d9   : > { %v2386_v48 = vpop.f32.mrb[3].mxu1 }
 0x1de   : > { %v2037_v49 = vpop.f32.mrb[4].mxu1 }
 0x1df   : > { %903 = vrot.lane.b32.xlu0 %v2037_v49, %s2177_s23  ;;  %v768_v50 = vpop.f32.mrb[5].mxu1 }
 0x1e0   : > { %v2038_v51 = vpop.f32.mrb[6].mxu1 }
 0x1e1   : > { %905 = vrot.lane.b32.xlu1 %v2038_v51, %s2177_s23  ;;  %v771_v52 = vpop.f32.mrb[7].mxu1 }
 0x1e3   : > { %899 = vrot.lane.b32.xlu0 %v768_v50, %s2177_s23 }
 0x1e6   : > { %v2041_v53 = vpop.f32.mrb[8].mxu1 }
 0x1e7   : > { %901 = vrot.lane.b32.xlu0 %v771_v52, %s2177_s23  ;;  %v784_v54 = vpop.f32.mrb[9].mxu1 }
 0x1e8   : > { %919 = vrot.lane.b32.xlu1 %v784_v54, %s2178_s24  ;;  %v2042_v55 = vpop.f32.mrb[10].mxu1 }
 0x1e9   : > { %v787_v56 = vpop.f32.mrb[11].mxu1 }
 0x1eb   : > { %923 = vrot.lane.b32.xlu0 %v2041_v53, %s2178_s24 }
 0x1ec   : > { %925 = vrot.lane.b32.xlu1 %v2042_v55, %s2178_s24 }
 0x1ee   : > { %v2045_v57 = vpop.f32.mrb[12].mxu1 }
 0x1ef   : > { %943 = vrot.lane.b32.xlu0 %v2045_v57, %s2179_s26  ;;  %v800_v58 = vpop.f32.mrb[13].mxu1 }
 0x1f0   : > { %921 = vrot.lane.b32.xlu1 %v787_v56, %s2178_s24  ;;  %v2046_v59 = vpop.f32.mrb[14].mxu1 }
 0x1f1   : > { %v803_v60 = vpop.f32.mrb[15].mxu1 }
 0x1f3   : > { %939 = vrot.lane.b32.xlu0 %v800_v58, %s2179_s26 }
 0x1f4   : > { %945 = vrot.lane.b32.xlu1 %v2046_v59, %s2179_s26 }
 0x1f6   : > { %v2049_v61 = vpop.f32.mrb[16].mxu1 }
 0x1f7   : > { %v816_v62 = vpop.f32.mrb[17].mxu1 }
 0x1f8   : > { %941 = vrot.lane.b32.xlu1 %v803_v60, %s2179_s26  ;;  %959 = vrot.lane.b32.xlu0 %v816_v62, %s2180_s27  ;;  %v2050_v63 = vpop.f32.mrb[18].mxu1 }
 0x1f9   : > { %v819_v0 = vpop.f32.mrb[19].mxu1 }
 0x1fc   : > { %963 = vrot.lane.b32.xlu1 %v2049_v61, %s2180_s27  ;;  %965 = vrot.lane.b32.xlu0 %v2050_v63, %s2180_s27 }
 0x1fe   : > { %v2053_v1 = vpop.f32.mrb[20].mxu1 }
 0x1ff   : > { %v832_v2 = vpop.f32.mrb[21].mxu1 }
 0x200   : > { %961 = vrot.lane.b32.xlu1 %v819_v0, %s2180_s27  ;;  %979 = vrot.lane.b32.xlu0 %v832_v2, %s2181_s28  ;;  %v2054_v3 = vpop.f32.mrb[22].mxu1 }
 0x201   : > { %v835_v4 = vpop.f32.mrb[23].mxu1 }
 0x204   : > { %983 = vrot.lane.b32.xlu1 %v2053_v1, %s2181_s28  ;;  %985 = vrot.lane.b32.xlu0 %v2054_v3, %s2181_s28 }
 0x206   : > { %v2057_v5 = vpop.f32.mrb[24].mxu1 }
 0x207   : > { %v848_v6 = vpop.f32.mrb[25].mxu1 }
 0x208   : > { %981 = vrot.lane.b32.xlu1 %v835_v4, %s2181_s28  ;;  %v2058_v7 = vpop.f32.mrb[26].mxu1 }
 0x209   : > { %1005 = vrot.lane.b32.xlu0 %v2058_v7, %s2182_s29  ;;  %v851_v8 = vpop.f32.mrb[27].mxu1 }
 0x20c   : > { %1003 = vrot.lane.b32.xlu1 %v2057_v5, %s2182_s29 }
 0x20d   : > { %1001 = vrot.lane.b32.xlu0 %v851_v8, %s2182_s29 }
 0x20e   : > { %v2061_v10 = vpop.f32.mrb[28].mxu1 }
 0x20f   : > { %v864_v11 = vpop.f32.mrb[29].mxu1 }
 0x210   : > { %999 = vrot.lane.b32.xlu1 %v848_v6, %s2182_s29  ;;  %v2062_v12 = vpop.f32.mrb[30].mxu1 }
 0x211   : > { %1025 = vrot.lane.b32.xlu0 %v2062_v12, %s2675_s30  ;;  %v867_v13 = vpop.f32.mrb[31].mxu1 }
 0x214   : > { %1023 = vrot.lane.b32.xlu1 %v2061_v10, %s2675_s30 }
 0x215   : > { %1021 = vrot.lane.b32.xlu0 %v867_v13, %s2675_s30 }
 0x216   : > { %v2065_v14 = vpop.f32.mrb[32].mxu1 }
 0x217   : > { %v880_v15 = vpop.f32.mrb[33].mxu1 }
 0x218   : > { %1019 = vrot.lane.b32.xlu1 %v864_v11, %s2675_s30  ;;  %v2066_v16 = vpop.f32.mrb[34].mxu1 }
 0x219   : > { %v883_v17 = vpop.f32.mrb[35].mxu1 }
 0x21a   : > { %1041 = vrot.lane.b32.xlu0 %v883_v17, %s2673_s13 }
 0x21c   : > { %1039 = vrot.lane.b32.xlu1 %v880_v15, %s2673_s13 }
 0x21e   : > { %1045 = vrot.lane.b32.xlu0 %v2066_v16, %s2673_s13 }
 0x220   : > { %1043 = vrot.lane.b32.xlu1 %v2065_v14, %s2673_s13 }
 0x222   : > { %1136 = vperm.xlu0 %2126, %v1118_v18  }
 0x224   : > { %1131 = vperm.xlu1 %2127, %v1117_v19  }
 0x251   : > { %v904_v29 = vpop.permute.xlu0 %903 }
 0x252   : > { %v913_v7 = vadd.f32 %v2380_v45, %v904_v29 }
 0x253   : > { %v906_v32 = vpop.permute.xlu1 %905 }
 0x254   : > { %v914_v2 = vadd.f32 %v2384_v47, %v906_v32 }
 0x255   : > { %v900_v31 = vpop.permute.xlu0 %899 }
 0x256   : > { %v911_v58 = vadd.f32 %v900_v31, %v2382_v46 }
 0x259   : > { %v902_v33 = vpop.permute.xlu0 %901 }
 0x25a   : > { %v920_v34 = vpop.permute.xlu1 %919  ;;  %v912_v56 = vadd.f32 %v902_v33, %v2386_v48 }
 0x25b   : > { %v931_v61 = vadd.f32 %v920_v34, %v911_v58 }
 0x25d   : > { %v924_v35 = vpop.permute.xlu0 %923 }
 0x25e   : > { %v926_v36 = vpop.permute.xlu1 %925  ;;  %v933_v11 = vadd.f32 %v924_v35, %v913_v7 }
 0x25f   : > { %v934_v8 = vadd.f32 %v926_v36, %v914_v2  ;;  %v1753_v2 = vld [vmem:[%s2671_s11] sm:$0xff] }
 0x261   : > { %v944_v37 = vpop.permute.xlu0 %943 }
 0x262   : > { %v922_v38 = vpop.permute.xlu1 %921  ;;  %v953_v15 = vadd.f32 %v944_v37, %v933_v11  ;;  %v2151_v11 = vld [vmem:[%s2668_s8 + $0x8] sm:$0xff]  }
 0x263   : > { %v932_v59 = vadd.f32 %v922_v38, %v912_v56 }
 0x265   : > { %v940_v39 = vpop.permute.xlu0 %939 }
 0x266   : > { %v946_v40 = vpop.permute.xlu1 %945  ;;  %v951_v0 = vadd.f32 %v940_v39, %v931_v61 }
 0x267   : > { %v954_v46 = vadd.f32 %v946_v40, %v934_v8 }
 0x26a   : > { %v942_v41 = vpop.permute.xlu1 %941  ;;  %v960_v42 = vpop.permute.xlu0 %959 }
 0x26b   : > { %v952_v62 = vadd.f32 %v942_v41, %v932_v59  ;;  %v971_v4 = vadd.f32 %v960_v42, %v951_v0 }
 0x26e   : > { %v964_v43 = vpop.permute.xlu1 %963  ;;  %v966_v44 = vpop.permute.xlu0 %965 }
 0x26f   : > { %v974_v16 = vadd.f32 %v966_v44, %v954_v46  ;;  %v973_v47 = vadd.f32 %v964_v43, %v953_v15  ;;  %v2152_v46 = vld [vmem:[%s2668_s8 + $0x10] sm:$0xff]   ;;  %v2157_v15 = vld [vmem:[%s2668_s8 + $0x38] sm:$0xff]  }
 0x272   : > { %v962_v49 = vpop.permute.xlu1 %961  ;;  %v980_v50 = vpop.permute.xlu0 %979 }
 0x273   : > { %v972_v1 = vadd.f32 %v962_v49, %v952_v62  ;;  %v991_v48 = vadd.f32 %v980_v50, %v971_v4  ;;  %v1726_v4 = vld [vmem:[%s2670_s10 + $0x8] sm:$0xff] }
 0x276   : > { %v984_v51 = vpop.permute.xlu1 %983  ;;  %v986_v52 = vpop.permute.xlu0 %985 }
 0x277   : > { %v994_v31 = vadd.f32 %v986_v52, %v974_v16  ;;  %v993_v45 = vadd.f32 %v984_v51, %v973_v47  ;;  %v1922_v51 = vld [vmem:[%s2663_s3] ss:$0 sm:$0xff] }
 0x278   : > { %v2158_v16 = vld [vmem:[%s2668_s8 + $0x40] sm:$0xff]  }
 0x279   : > { %v2162_v47 = vld [vmem:[%s2668_s8 + $0x60] sm:$0xff]  }
 0x27a   : > { %v982_v53 = vpop.permute.xlu1 %981 }
 0x27b   : > { %v1006_v54 = vpop.permute.xlu0 %1005  ;;  %v992_v5 = vadd.f32 %v982_v53, %v972_v1  ;;  %v1694_v1 = vld [vmem:[%s2669_s9 + $0x8] sm:$0xff] }
 0x27c   : > { %v1014_v29 = vadd.f32 %v1006_v54, %v994_v31  ;;  %v2163_v31 = vld [vmem:[%s2668_s8 + $0x68] sm:$0xff]  }
 0x27e   : > { %v1004_v55 = vpop.permute.xlu1 %1003 }
 0x27f   : > { %v1002_v57 = vpop.permute.xlu0 %1001  ;;  %v1013_v39 = vadd.f32 %v1004_v55, %v993_v45  ;;  %v2167_v45 = vld [vmem:[%s2668_s8 + $0x88] sm:$0xff]  }
 0x280   : > { %v1012_v10 = vadd.f32 %v1002_v57, %v992_v5  ;;  %v1728_v5 = vld [vmem:[%s2670_s10 + $0x18] sm:$0xff] }
 0x282   : > { %v1000_v60 = vpop.permute.xlu1 %999 }
 0x283   : > { %v1026_v63 = vpop.permute.xlu0 %1025  ;;  %v1011_v13 = vadd.f32 %v1000_v60, %v991_v48 }
 0x284   : > { %v1034_v40 = vadd.f32 %v1026_v63, %v1014_v29  ;;  %v1725_v63 = vld [vmem:[%s2670_s10] sm:$0xff] }
 0x286   : > { %v1024_v3 = vpop.permute.xlu1 %1023 }
 0x287   : > { %v1022_v6 = vpop.permute.xlu0 %1021  ;;  %v1033_v44 = vadd.f32 %v1024_v3, %v1013_v39  ;;  %v1696_v3 = vld [vmem:[%s2669_s9 + $0x18] sm:$0xff] }
 0x288   : > { %v1032_v14 = vadd.f32 %v1022_v6, %v1012_v10  ;;  %v1754_v6 = vld [vmem:[%s2671_s11 + $0x8] sm:$0xff] }
 0x28a   : > { %v1020_v12 = vpop.permute.xlu1 %1019 }
 0x28b   : > { %v1031_v18 = vadd.f32 %v1020_v12, %v1011_v13  ;;  %v2153_v12 = vld [vmem:[%s2668_s8 + $0x18] sm:$0xff]   ;;  %v2155_v13 = vld [vmem:[%s2668_s8 + $0x28] sm:$0xff]  }
 0x28c   : > { %v1042_v17 = vpop.permute.xlu0 %1041 }
 0x28d   : > { %v1052_v19 = vadd.f32 %v1042_v17, %v1032_v14  ;;  %v2156_v14 = vld [vmem:[%s2668_s8 + $0x30] sm:$0xff]   ;;  %v2159_v17 = vld [vmem:[%s2668_s8 + $0x48] sm:$0xff]  }
 0x28e   : > { %v1040_v32 = vpop.permute.xlu1 %1039 }
 0x28f   : > { %v1080_v33 = vadd.f32 %v2428_v21, %v1052_v19  ;;  %v1051_v34 = vadd.f32 %v1040_v32, %v1031_v18  ;;  %v2160_v18 = vld [vmem:[%s2668_s8 + $0x50] sm:$0xff]   ;;  %v2161_v19 = vld [vmem:[%s2668_s8 + $0x58] sm:$0xff]  }
 0x290   : > { %v1046_v38 = vpop.permute.xlu0 %1045  ;;  %v2164_v32 = vld [vmem:[%s2668_s8 + $0x70] sm:$0xff]  }
 0x291   : > { %v1084_v36 = vmax.f32 %v1080_v33, 0.0  ;;  %v1079_v35 = vadd.f32 %v2426_v20, %v1051_v34  ;;  %v1054_v49 = vadd.f32 %v1046_v38, %v1034_v40  ;;  %v2165_v33 = vld [vmem:[%s2668_s8 + $0x78] sm:$0xff]   ;;  %v2166_v34 = vld [vmem:[%s2668_s8 + $0x80] sm:$0xff]  }
 0x292   : > { %v1044_v42 = vpop.permute.xlu1 %1043 }
 0x293   : > { %v1112_v37 = vmul.f32 %v2436_v24, %v1084_v36  ;;  %v1083_v41 = vmax.f32 %v1079_v35, 0.0  ;;  %v1053_v21 = vadd.f32 %v1044_v42, %v1033_v44  ;;  %v1082_v52 = vadd.f32 %v2430_v22, %v1054_v49 }
 0x295   : > { %v1140_v43 = vadd.f32 %v2440_v26, %v1112_v37  ;;  %v1111_v50 = vmul.f32 %v2438_v25, %v1083_v41  ;;  %v1081_v24 = vadd.f32 %v2434_v23, %v1053_v21  ;;  %v1086_v56 = vmax.f32 %v1082_v52, 0.0  ;;  %v1693_v25 = vld [vmem:[%s2669_s9] sm:$0xff]  ;;  %v1695_v23 = vld [vmem:[%s2669_s9 + $0x10] sm:$0xff] }
 0x297   : > { %v1139_v20 = vadd.f32 %v2442_v27, %v1111_v50  ;;  %v1151_v54 = vmul.f32 %v1922_v51, %v1140_v43  ;;  %v1085_v26 = vmax.f32 %v1081_v24, 0.0  ;;  %v1114_v57 = vmul.f32 %v2444_v28, %v1086_v56  ;;  %v2150_v28 = vld [vmem:[%s2668_s8] sm:$0xff]  }
 0x298   : > { %2071 = vmatprep.mubr.msk.bf16.mxu0 %vm1301_vm5, %v2150_v28 }
 0x299   : > { %v1150_v53 = vmul.f32 %v1922_v51, %v1139_v20  ;;  %v1113_v22 = vmul.f32 %v2446_v30, %v1085_v26  ;;  %v1727_v30 = vld [vmem:[%s2670_s10 + $0x10] sm:$0xff] }
 0x29b   : > { %v1157_v55 = vpack.c.bf16 %v1151_v54, %v1150_v53 }
 0x29d   : > { %1161 = vrot.lane.b32.xlu1 %v1157_v55, %s2185_s20 }
 0x2a1   : > { %1699 = vperm.xlu1 %2127, %v1693_v25   ;;  %v1137_v58 = vpop.permute.xlu0 %1136 }
 0x2a2   : > { %v1142_v27 = vadd.f32 %v1137_v58, %v1114_v57 }
 0x2a3   : > { %v1132_v59 = vpop.permute.xlu1 %1131 }
 0x2a4   : > { %v1141_v60 = vadd.f32 %v1132_v59, %v1113_v22  ;;  %v1153_v61 = vmul.f32 %v1922_v51, %v1142_v27 }
 0x2a5   : > { %1709 = vperm.xlu1 %2127, %v1695_v23  }
 0x2a6   : > { %v1152_v62 = vmul.f32 %v1922_v51, %v1141_v60 }
 0x2a8   : > { %v1158_v0 = vpack.c.bf16 %v1153_v61, %v1152_v62 }
 0x2a9   : > { %1731 = vperm.xlu1 %2127, %v1725_v63  }
 0x2aa   : > { %1163 = vrot.lane.b32.xlu0 %v1158_v0, %s2185_s20 }
 0x2ad   : > { %1741 = vperm.xlu1 %2127, %v1727_v30   ;;  %v1755_v30 = vld [vmem:[%s2671_s11 + $0x10] sm:$0xff] }
 0x2ae   : > { %1704 = vperm.xlu0 %2126, %v1694_v1   ;;  %v1756_v1 = vld [vmem:[%s2671_s11 + $0x18] sm:$0xff] }
 0x2b1   : > { %1759 = vperm.xlu1 %2127, %v1753_v2  }
 0x2b2   : > { %1714 = vperm.xlu0 %2126, %v1696_v3  }
 0x2b6   : > { %1736 = vperm.xlu0 %2126, %v1726_v4  }
 0x2ba   : > { %1746 = vperm.xlu0 %2126, %v1728_v5  }
 0x2be   : > { %1764 = vperm.xlu0 %2126, %v1754_v6  }
 0x30f   : > { %v1162_v7 = vpop.permute.xlu1 %1161 }
 0x310   : > { %1168 = vst.msk [vmem:[#allocation3] sm:$0xff] %vm1167_vm6, %v1162_v7 }
 0x311   : > { %1171 = vst.msk [vmem:[#allocation3] sm:$0xff] %vm1170_vm7, %v2176_v9 }
 0x318   : > { %v1209_v8 = vld [vmem:[#allocation3] sm:$0xff] }
 0x319   : > { %2067 = vmatprep.subr.bf16.mxu0 %v1209_v8 }
 0x31a   : > { %2068 = vmatpush3.bf16.msra.mxu0 %v1209_v8 }
 0x31c   : > { %v1164_v48 = vpop.permute.xlu0 %1163 }
 0x31d   : > { %1169 = vst.msk [vmem:[#allocation3 + $0x8] sm:$0xff] %vm1167_vm6, %v1164_v48 }
 0x31e   : > { %1172 = vst.msk [vmem:[#allocation3 + $0x8] sm:$0xff] %vm1170_vm7, %v2176_v9  ;;  %v2154_v9 = vld [vmem:[%s2668_s8 + $0x20] sm:$0xff]  }
 0x320   : > { %v2615_v2 = vpop.permute.xlu1 %1699 }
 0x324   : > { %v2619_v4 = vpop.permute.xlu1 %1709 }
 0x325   : > { %v1210_v10 = vld [vmem:[#allocation3 + $0x8] sm:$0xff] }
 0x326   : > { %2069 = vmatprep.subr.bf16.mxu0 %v1210_v10 }
 0x327   : > { %2070 = vmatpush3.bf16.msra.mxu0 %v1210_v10 }
 0x328   : > { %v2623_v6 = vpop.permute.xlu1 %1731 }
 0x32a   : > { %2072 = vmatmul.mubr.msk.bf16.vlgmr.msra.gmra.mrb[4].mxu0 %vm1301_vm5, %v2151_v11 }
 0x32b   : > { %2075 = vmatprep.mubr.msk.bf16.mxu0 %vm1301_vm5, %v2152_v46 }
 0x32c   : > { %v2627_v8 = vpop.permute.xlu1 %1741 }
 0x32d   : > { %v2617_v3 = vpop.permute.xlu0 %1704 }
 0x330   : > { %v2631_v10 = vpop.permute.xlu1 %1759 }
 0x331   : > { %v2621_v5 = vpop.permute.xlu0 %1714 }
 0x332   : > { %2076 = vmatmul.mubr.msk.bf16.gmra.mrb[8].mxu0 %vm1301_vm5, %v2153_v12 }
 0x333   : > { %2079 = vmatprep.mubr.msk.bf16.mxu0 %vm1301_vm5, %v2154_v9 }
 0x335   : > { %v2625_v7 = vpop.permute.xlu0 %1736 }
 0x339   : > { %v2629_v48 = vpop.permute.xlu0 %1746 }
 0x33a   : > { %2080 = vmatmul.mubr.msk.bf16.gmra.mrb[12].mxu0 %vm1301_vm5, %v2155_v13 }
 0x33b   : > { %2083 = vmatprep.mubr.msk.bf16.mxu0 %vm1301_vm5, %v2156_v14 }
 0x33d   : > { %v2633_v11 = vpop.permute.xlu0 %1764 }
 0x342   : > { %2084 = vmatmul.mubr.msk.bf16.gmra.mrb[16].mxu0 %vm1301_vm5, %v2157_v15 }
 0x343   : > { %2087 = vmatprep.mubr.msk.bf16.mxu0 %vm1301_vm5, %v2158_v16 }
 0x34a   : > { %2088 = vmatmul.mubr.msk.bf16.gmra.mrb[20].mxu0 %vm1301_vm5, %v2159_v17 }
 0x34b   : > { %2091 = vmatprep.mubr.msk.bf16.mxu0 %vm1301_vm5, %v2160_v18 }
 0x352   : > { %2092 = vmatmul.mubr.msk.bf16.gmra.mrb[24].mxu0 %vm1301_vm5, %v2161_v19 }
 0x353   : > { %2095 = vmatprep.mubr.msk.bf16.mxu0 %vm1301_vm5, %v2162_v47 }
 0x35a   : > { %2096 = vmatmul.mubr.msk.bf16.gmra.mrb[28].mxu0 %vm1301_vm5, %v2163_v31 }
 0x35b   : > { %2099 = vmatprep.mubr.msk.bf16.mxu0 %vm1301_vm5, %v2164_v32 }
 0x362   : > { %2100 = vmatmul.mubr.msk.bf16.gmra.mrb[32].mxu0 %vm1301_vm5, %v2165_v33 }
 0x363   : > { %2103 = vmatprep.mubr.msk.bf16.mxu0 %vm1301_vm5, %v2166_v34 }
 0x36a   : > { %2104 = vmatmul.mubr.msk.bf16.gmra.mrb[36].mxu0 %vm1301_vm5, %v2167_v45 }
 0x3fd   : > { %v2569_v29 = vpop.f32.mrb[4].mxu0 }
 0x3fe   : > { %v2571_v36 = vpop.f32.mrb[5].mxu0 }
 0x3ff   : > { %v2573_v35 = vpop.f32.mrb[6].mxu0 }
 0x400   : > { %v2575_v38 = vpop.f32.mrb[7].mxu0 }
 0x405   : > { %v2077_v39 = vpop.f32.mrb[8].mxu0 }
 0x406   : > { %1541 = vrot.lane.b32.xlu1 %v2077_v39, %s2177_s23  ;;  %v1406_v40 = vpop.f32.mrb[9].mxu0 }
 0x407   : > { %v2078_v37 = vpop.f32.mrb[10].mxu0 }
 0x408   : > { %1543 = vrot.lane.b32.xlu0 %v2078_v37, %s2177_s23  ;;  %v1409_v41 = vpop.f32.mrb[11].mxu0 }
 0x40a   : > { %1537 = vrot.lane.b32.xlu1 %v1406_v40, %s2177_s23 }
 0x40c   : > { %1539 = vrot.lane.b32.xlu0 %v1409_v41, %s2177_s23  ;;  %s2677_s23 = smov 115  }
 0x40d   : > { %v2081_v42 = vpop.f32.mrb[12].mxu0 }
 0x40e   : > { %1561 = vrot.lane.b32.xlu1 %v2081_v42, %s2178_s24  ;;  %v1422_v44 = vpop.f32.mrb[13].mxu0 }
 0x40f   : > { %v2082_v49 = vpop.f32.mrb[14].mxu0 }
 0x410   : > { %1563 = vrot.lane.b32.xlu0 %v2082_v49, %s2178_s24  ;;  %v1425_v43 = vpop.f32.mrb[15].mxu0 }
 0x412   : > { %1557 = vrot.lane.b32.xlu1 %v1422_v44, %s2178_s24 }
 0x414   : > { %1559 = vrot.lane.b32.xlu0 %v1425_v43, %s2178_s24  ;;  %s2678_s24 = smov 114  }
 0x415   : > { %v2085_v50 = vpop.f32.mrb[16].mxu0 }
 0x416   : > { %1581 = vrot.lane.b32.xlu1 %v2085_v50, %s2179_s26  ;;  %v1438_v21 = vpop.f32.mrb[17].mxu0 }
 0x417   : > { %v2086_v51 = vpop.f32.mrb[18].mxu0 }
 0x418   : > { %1583 = vrot.lane.b32.xlu0 %v2086_v51, %s2179_s26  ;;  %v1441_v20 = vpop.f32.mrb[19].mxu0 }
 0x41a   : > { %1577 = vrot.lane.b32.xlu1 %v1438_v21, %s2179_s26 }
 0x41c   : > { %1579 = vrot.lane.b32.xlu0 %v1441_v20, %s2179_s26 }
 0x41d   : > { %v2089_v52 = vpop.f32.mrb[20].mxu0 }
 0x41e   : > { %1601 = vrot.lane.b32.xlu1 %v2089_v52, %s2180_s27  ;;  %v1454_v53 = vpop.f32.mrb[21].mxu0 }
 0x41f   : > { %v2090_v54 = vpop.f32.mrb[22].mxu0 }
 0x420   : > { %1603 = vrot.lane.b32.xlu0 %v2090_v54, %s2180_s27  ;;  %v1457_v24 = vpop.f32.mrb[23].mxu0 }
 0x422   : > { %1597 = vrot.lane.b32.xlu1 %v1454_v53, %s2180_s27 }
 0x424   : > { %1599 = vrot.lane.b32.xlu0 %v1457_v24, %s2180_s27 }
 0x425   : > { %v2093_v55 = vpop.f32.mrb[24].mxu0 }
 0x426   : > { %1621 = vrot.lane.b32.xlu1 %v2093_v55, %s2181_s28  ;;  %v1470_v56 = vpop.f32.mrb[25].mxu0 }
 0x427   : > { %v2094_v26 = vpop.f32.mrb[26].mxu0 }
 0x428   : > { %1623 = vrot.lane.b32.xlu0 %v2094_v26, %s2181_s28  ;;  %v1473_v25 = vpop.f32.mrb[27].mxu0 }
 0x42a   : > { %1617 = vrot.lane.b32.xlu1 %v1470_v56, %s2181_s28 }
 0x42c   : > { %1619 = vrot.lane.b32.xlu0 %v1473_v25, %s2181_s28 }
 0x42d   : > { %v2097_v57 = vpop.f32.mrb[28].mxu0 }
 0x42e   : > { %1641 = vrot.lane.b32.xlu1 %v2097_v57, %s2182_s29  ;;  %v1486_v58 = vpop.f32.mrb[29].mxu0 }
 0x42f   : > { %v2098_v27 = vpop.f32.mrb[30].mxu0 }
 0x430   : > { %1643 = vrot.lane.b32.xlu0 %v2098_v27, %s2182_s29  ;;  %v1489_v22 = vpop.f32.mrb[31].mxu0 }
 0x432   : > { %1637 = vrot.lane.b32.xlu1 %v1486_v58, %s2182_s29 }
 0x434   : > { %1639 = vrot.lane.b32.xlu0 %v1489_v22, %s2182_s29 }
 0x435   : > { %v2101_v23 = vpop.f32.mrb[32].mxu0 }
 0x436   : > { %1661 = vrot.lane.b32.xlu1 %v2101_v23, %s2677_s23  ;;  %v1502_v59 = vpop.f32.mrb[33].mxu0 }
 0x437   : > { %v2102_v60 = vpop.f32.mrb[34].mxu0 }
 0x438   : > { %1663 = vrot.lane.b32.xlu0 %v2102_v60, %s2677_s23  ;;  %v1505_v61 = vpop.f32.mrb[35].mxu0 }
 0x43a   : > { %1657 = vrot.lane.b32.xlu1 %v1502_v59, %s2677_s23 }
 0x43c   : > { %1659 = vrot.lane.b32.xlu0 %v1505_v61, %s2677_s23 }
 0x43d   : > { %v2105_v62 = vpop.f32.mrb[36].mxu0 }
 0x43e   : > { %1681 = vrot.lane.b32.xlu1 %v2105_v62, %s2678_s24  ;;  %v1518_v63 = vpop.f32.mrb[37].mxu0 }
 0x43f   : > { %v2106_v28 = vpop.f32.mrb[38].mxu0 }
 0x440   : > { %1683 = vrot.lane.b32.xlu0 %v2106_v28, %s2678_s24  ;;  %v1521_v0 = vpop.f32.mrb[39].mxu0 }
 0x442   : > { %1677 = vrot.lane.b32.xlu1 %v1518_v63, %s2678_s24 }
 0x444   : > { %1679 = vrot.lane.b32.xlu0 %v1521_v0, %s2678_s24 }
 0x446   : > { %1769 = vperm.xlu1 %2127, %v1755_v30  }
 0x448   : > { %1774 = vperm.xlu0 %2126, %v1756_v1  }
 0x478   : > { %v1542_v46 = vpop.permute.xlu1 %1541 }
 0x479   : > { %v1551_v52 = vadd.f32 %v2569_v29, %v1542_v46 }
 0x47a   : > { %v1544_v12 = vpop.permute.xlu0 %1543 }
 0x47b   : > { %v1552_v55 = vadd.f32 %v2573_v35, %v1544_v12 }
 0x47c   : > { %v1538_v9 = vpop.permute.xlu1 %1537 }
 0x47d   : > { %v1549_v50 = vadd.f32 %v1538_v9, %v2571_v36 }
 0x47e   : > { %v1540_v13 = vpop.permute.xlu0 %1539 }
 0x47f   : > { %v1550_v51 = vadd.f32 %v1540_v13, %v2575_v38 }
 0x480   : > { %v1562_v14 = vpop.permute.xlu1 %1561 }
 0x481   : > { %v1571_v56 = vadd.f32 %v1562_v14, %v1551_v52 }
 0x482   : > { %v1564_v15 = vpop.permute.xlu0 %1563 }
 0x483   : > { %v1572_v58 = vadd.f32 %v1564_v15, %v1552_v55 }
 0x484   : > { %v1558_v16 = vpop.permute.xlu1 %1557 }
 0x485   : > { %v1569_v20 = vadd.f32 %v1558_v16, %v1549_v50 }
 0x486   : > { %v1560_v17 = vpop.permute.xlu0 %1559 }
 0x487   : > { %v1570_v54 = vadd.f32 %v1560_v17, %v1550_v51 }
 0x488   : > { %v1582_v18 = vpop.permute.xlu1 %1581 }
 0x489   : > { %v1591_v27 = vadd.f32 %v1582_v18, %v1571_v56 }
 0x48a   : > { %v1584_v19 = vpop.permute.xlu0 %1583 }
 0x48b   : > { %v1592_v59 = vadd.f32 %v1584_v19, %v1572_v58 }
 0x48c   : > { %v1578_v47 = vpop.permute.xlu1 %1577 }
 0x48d   : > { %v1589_v24 = vadd.f32 %v1578_v47, %v1569_v20 }
 0x48e   : > { %v1580_v31 = vpop.permute.xlu0 %1579 }
 0x48f   : > { %v1590_v25 = vadd.f32 %v1580_v31, %v1570_v54 }
 0x490   : > { %v1602_v32 = vpop.permute.xlu1 %1601 }
 0x491   : > { %v1611_v60 = vadd.f32 %v1602_v32, %v1591_v27 }
 0x492   : > { %v1604_v33 = vpop.permute.xlu0 %1603 }
 0x493   : > { %v1612_v29 = vadd.f32 %v1604_v33, %v1592_v59 }
 0x494   : > { %v1598_v34 = vpop.permute.xlu1 %1597 }
 0x495   : > { %v1609_v57 = vadd.f32 %v1598_v34, %v1589_v24 }
 0x496   : > { %v1600_v45 = vpop.permute.xlu0 %1599 }
 0x497   : > { %v1610_v23 = vadd.f32 %v1600_v45, %v1590_v25 }
 0x498   : > { %v1622_v39 = vpop.permute.xlu1 %1621 }
 0x499   : > { %v1631_v63 = vadd.f32 %v1622_v39, %v1611_v60 }
 0x49a   : > { %v1624_v40 = vpop.permute.xlu0 %1623 }
 0x49b   : > { %v1632_v35 = vadd.f32 %v1624_v40, %v1612_v29 }
 0x49c   : > { %v1618_v37 = vpop.permute.xlu1 %1617 }
 0x49d   : > { %v1629_v36 = vadd.f32 %v1618_v37, %v1609_v57 }
 0x49e   : > { %v1620_v41 = vpop.permute.xlu0 %1619 }
 0x49f   : > { %v1630_v61 = vadd.f32 %v1620_v41, %v1610_v23 }
 0x4a0   : > { %v1642_v42 = vpop.permute.xlu1 %1641 }
 0x4a1   : > { %v1651_v1 = vadd.f32 %v1642_v42, %v1631_v63 }
 0x4a2   : > { %v1644_v44 = vpop.permute.xlu0 %1643 }
 0x4a3   : > { %v1652_v13 = vadd.f32 %v1644_v44, %v1632_v35 }
 0x4a4   : > { %v1638_v49 = vpop.permute.xlu1 %1637 }
 0x4a5   : > { %v1649_v62 = vadd.f32 %v1638_v49, %v1629_v36 }
 0x4a6   : > { %v1640_v43 = vpop.permute.xlu0 %1639 }
 0x4a7   : > { %v1650_v0 = vadd.f32 %v1640_v43, %v1630_v61 }
 0x4a8   : > { %v1662_v21 = vpop.permute.xlu1 %1661 }
 0x4a9   : > { %v1671_v14 = vadd.f32 %v1662_v21, %v1651_v1 }
 0x4aa   : > { %v1664_v53 = vpop.permute.xlu0 %1663 }
 0x4ab   : > { %v1672_v18 = vadd.f32 %v1664_v53, %v1652_v13 }
 0x4ac   : > { %v1658_v26 = vpop.permute.xlu1 %1657 }
 0x4ad   : > { %v1669_v30 = vadd.f32 %v1658_v26, %v1649_v62 }
 0x4ae   : > { %v1660_v22 = vpop.permute.xlu0 %1659 }
 0x4af   : > { %v1670_v12 = vadd.f32 %v1660_v22, %v1650_v0 }
 0x4b0   : > { %v1682_v38 = vpop.permute.xlu1 %1681 }
 0x4b1   : > { %v1691_v19 = vadd.f32 %v1682_v38, %v1671_v14 }
 0x4b2   : > { %v1684_v28 = vpop.permute.xlu0 %1683 }
 0x4b3   : > { %v1692_v32 = vadd.f32 %v1684_v28, %v1672_v18  ;;  %v1719_v45 = vadd.f32 %v2619_v4, %v1691_v19 }
 0x4b4   : > { %v1678_v46 = vpop.permute.xlu1 %1677 }
 0x4b5   : > { %v1689_v9 = vadd.f32 %v1678_v46, %v1669_v30  ;;  %v1720_v37 = vadd.f32 %v2621_v5, %v1692_v32  ;;  %v1723_v41 = vmax.f32 %v1719_v45, 0.0 }
 0x4b6   : > { %v1680_v15 = vpop.permute.xlu0 %1679 }
 0x4b7   : > { %v1717_v16 = vadd.f32 %v2615_v2, %v1689_v9  ;;  %v1690_v17 = vadd.f32 %v1680_v15, %v1670_v12  ;;  %v1751_v4 = vmul.f32 %v2627_v8, %v1723_v41 }
 0x4b9   : > { %v1721_v47 = vmax.f32 %v1717_v16, 0.0  ;;  %v1718_v31 = vadd.f32 %v2617_v3, %v1690_v17 }
 0x4bb   : > { %v1749_v33 = vmul.f32 %v2623_v6, %v1721_v47  ;;  %v1722_v34 = vmax.f32 %v1718_v31, 0.0  ;;  %v1724_v6 = vmax.f32 %v1720_v37, 0.0 }
 0x4bd   : > { %v1777_v39 = vadd.f32 %v2631_v10, %v1749_v33  ;;  %v1750_v40 = vmul.f32 %v2625_v7, %v1722_v34  ;;  %v1752_v5 = vmul.f32 %v2629_v48, %v1724_v6 }
 0x4bf   : > { %v1968_v2 = vpack.c.bf16 %v1777_v39, %v1777_v39  ;;  %v1778_v3 = vadd.f32 %v2633_v11, %v1750_v40 }
 0x4c1   : > { %v1969_v42 = vpack.c.bf16 %v1778_v3, %v1778_v3  ;;  %1798 = vst.msk [vmem:[%s433_s14] sm:$0xf] %vm1797_vm8, %v1968_v2 }
 0x4c3   : > { %1799 = vst.msk [vmem:[%s433_s14 + $0x4] sm:$0xf] %vm1797_vm8, %v1969_v42 }
 0x4c5   : > { %v1770_v7 = vpop.permute.xlu1 %1769 }
 0x4c6   : > { %v1779_v10 = vadd.f32 %v1770_v7, %v1751_v4 }
 0x4c7   : > { %v1775_v44 = vpop.permute.xlu0 %1774 }
 0x4c8   : > { %v1970_v49 = vpack.c.bf16 %v1779_v10, %v1779_v10  ;;  %v1780_v43 = vadd.f32 %v1775_v44, %v1752_v5 }
 0x4ca   : > { %1800 = vst.msk [vmem:[%s433_s14 + $0x8] sm:$0xf] %vm1797_vm8, %v1970_v49  ;;  %v1971_v50 = vpack.c.bf16 %v1780_v43, %v1780_v43 }
 0x4cc   : > { %1801 = vst.msk [vmem:[%s433_s14 + $0xc] sm:$0xf] %vm1797_vm8, %v1971_v50 }
 0x4cd PF: > { %s22_s21 = sadd.s32 1, %s2174_s21  }
 0x4ce   : > { %p19_p4 = scmp.ge.s32.totalorder %s22_s21, 4  }
 0x4d0   :  { %21 = sbr.rel (!%p19_p4) target bundleno = 1 (0x1), region = 101 }

// kernel: unet_decoder_forward.5
= control target key start
LH: loop header
LB: loop body
LE: loop exit
PB: predicated region body
PF: predicated region fallthrough
CT: control target
= control target key end

     0   :  { %s2255_s21 = smov 0   ;;  %s2664_s0 = inlined_call_operand.vmem [shape: bf16[2,32,3], index: 0, kind: input, shape index: {}]   ;;  %s2665_s1 = inlined_call_operand.vmem [shape: bf16[2,32,20], index: 1, kind: input, shape index: {}]   ;;  %s2666_s2 = inlined_call_operand.vmem [shape: bf16[3,20], index: 2, kind: input, shape index: {}]   ;;  %s2667_s3 = inlined_call_operand.vmem [shape: f32[1,8], index: 3, kind: input, shape index: {}]   ;;  %s2668_s4 = inlined_call_operand.vmem [shape: bf16[288,64], index: 4, kind: input, shape index: {}]   ;;  %s2669_s5 = inlined_call_operand.vmem [shape: f32[32,1], index: 5, kind: input, shape index: {}]   ;;  %s2670_s6 = inlined_call_operand.vmem [shape: f32[32,1], index: 6, kind: input, shape index: {}]   ;;  %s2671_s7 = inlined_call_operand.vmem [shape: f32[32,1], index: 7, kind: input, shape index: {}]   ;;  %s2672_s8 = inlined_call_operand.vmem [shape: bf16[288,32], index: 8, kind: input, shape index: {}]   ;;  %s2673_s9 = inlined_call_operand.vmem [shape: f32[32,1], index: 9, kind: input, shape index: {}]   ;;  %s2674_s10 = inlined_call_operand.vmem [shape: f32[32,1], index: 10, kind: input, shape index: {}]   ;;  %s2675_s11 = inlined_call_operand.vmem [shape: f32[32,1], index: 11, kind: input, shape index: {}]   ;;  %s2676_s12 = inlined_call_operand.vmem [shape: bf16[2,32,8], index: 12, kind: output, shape index: {}]  }
   0x1 LB: > { %s1872_s22 = sadd.s32 4294967295, %s2177_s21   ;;  %p1876_p0 = scmp.ge.s32.totalorder %s2177_s21, 1  ;;  %s2177_s21 = sphi %s2255_s21, %s22_s21  }
   0x2   : > { %p372_p1 = scmp.lt.s32.totalorder %s2177_s21, 3 }
   0x4   : > { %p373_p2 = pnand %p1876_p0, %p372_p1 }
   0x5   : > { %v439_v0 = vld [vmem:[%s2666_s2] sm:$0x3] (!%p373_p2)  ;;  %vm457_vm0 = vcmask (!%p373_p2), 1040384   ;;  %vm458_vm1 = vcmask (!%p373_p2), 1041408   ;;  %p419_p3 = scmp.lt.s32.totalorder (!%p373_p2), %s1872_s22, 1  ;;  %v2179_v1 = vmov (!%p373_p2), 65535  }
   0x6   : > { %376 = sbr.rel (%p373_p2) target bundleno = 1229 (0x4cd), region = 68  ;;  %v459_v2 = vsel (!%p373_p2), %vm457_vm0, 4294967295, %v2179_v1  ;;  %vm450_vm2 = vcmask (!%p373_p2), 23552   ;;  %vm515_vm3 = vcmask (!%p373_p2), 162816   ;;  %v2135_v9 = vld [vmem:[%s2668_s4] sm:$0xff] (!%p373_p2)   ;;  %vm666_vm4 = vcmask (!%p373_p2), 523264  }
   0x7   : > { %v460_v3 = vsel (!%p373_p2), %vm458_vm1, %v459_v2, 0  ;;  %2034 = vmatprep.mubr.msk.bf16.mxu1 (!%p373_p2), %vm666_vm4, %v2135_v9  ;;  %v1059_v10 = vld [vmem:[%s2669_s5 + $0x8] sm:$0xff] (!%p373_p2)  ;;  %v1058_v11 = vld [vmem:[%s2669_s5] sm:$0xff] (!%p373_p2)  ;;  %v2180_v12 = vmov (!%p373_p2), 0   ;;  %v1060_v13 = vld [vmem:[%s2669_s5 + $0x10] sm:$0xff] (!%p373_p2)  ;;  %s2181_s23 = smov (!%p373_p2), 127  }
   0x8   : > { %v462_v4 = vand.u32 (!%p373_p2), %v460_v3, %v439_v0  ;;  %2130 = vset.pattern.permute.xlu1 (!%p373_p2), %v2180_v12  ;;  %2129 = vset.pattern.permute.xlu0 (!%p373_p2), %v2180_v12  ;;  %v1061_v14 = vld [vmem:[%s2669_s5 + $0x18] sm:$0xff] (!%p373_p2)  ;;  %v1090_v15 = vld [vmem:[%s2670_s6] sm:$0xff] (!%p373_p2)  ;;  %v1091_v16 = vld [vmem:[%s2670_s6 + $0x8] sm:$0xff] (!%p373_p2)  ;;  %s2182_s24 = smov (!%p373_p2), 126   ;;  %s2183_s26 = smov (!%p373_p2), 124   ;;  %vm1157_vm5 = vcmask (!%p373_p2), 39936  }
   0x9   : > { %1069 = vperm.xlu1 (!%p373_p2), %2130, %v1059_v10   ;;  %1064 = vperm.xlu0 (!%p373_p2), %2129, %v1058_v11   ;;  %v1118_v17 = vld [vmem:[%s2671_s7] sm:$0xff] (!%p373_p2)  ;;  %v1119_v18 = vld [vmem:[%s2671_s7 + $0x8] sm:$0xff] (!%p373_p2)  ;;  %v1092_v19 = vld [vmem:[%s2670_s6 + $0x10] sm:$0xff] (!%p373_p2)  ;;  %s2184_s27 = smov (!%p373_p2), 123   ;;  %s2186_s29 = smov (!%p373_p2), 120   ;;  %1158 = vst.msk [vmem:[#allocation3] sm:$0xff] (!%p373_p2), %vm1157_vm5, %v2180_v12 }
   0xa   : > { %2020 = vmatprep.subr.bf16.mxu0 (!%p373_p2), %v462_v4  ;;  %v1093_v20 = vld [vmem:[%s2670_s6 + $0x18] sm:$0xff] (!%p373_p2)  ;;  %v2136_v31 = vld [vmem:[%s2668_s4 + $0x8] sm:$0xff] (!%p373_p2)   ;;  %v2137_v32 = vld [vmem:[%s2668_s4 + $0x10] sm:$0xff] (!%p373_p2)   ;;  %s2679_s30 = smov (!%p373_p2), 119   ;;  %1159 = vst.msk [vmem:[#allocation3 + $0x8] sm:$0xff] (!%p373_p2), %vm1157_vm5, %v2180_v12  ;;  %s2189_s20 = smov (!%p373_p2), 5  }
   0xb   : > { %2021 = vmatpush3.bf16.msra.mxu0 (!%p373_p2), %v462_v4  ;;  %v2138_v33 = vld [vmem:[%s2668_s4 + $0x18] sm:$0xff] (!%p373_p2)   ;;  %v2139_v34 = vld [vmem:[%s2668_s4 + $0x20] sm:$0xff] (!%p373_p2)   ;;  %v2140_v35 = vld [vmem:[%s2668_s4 + $0x28] sm:$0xff] (!%p373_p2)   ;;  %vm1304_vm6 = vcmask (!%p373_p2), 261120   ;;  %vm1170_vm7 = vcmask (!%p373_p2), 105512   ;;  %vm1173_vm8 = vcmask (!%p373_p2), 162920  }
   0xc   : > { %v2141_v36 = vld [vmem:[%s2668_s4 + $0x30] sm:$0xff] (!%p373_p2)   ;;  %v2142_v37 = vld [vmem:[%s2668_s4 + $0x38] sm:$0xff] (!%p373_p2)   ;;  %v2143_v38 = vld [vmem:[%s2668_s4 + $0x40] sm:$0xff] (!%p373_p2)   ;;  %vm1800_vm9 = vcmask (!%p373_p2), 60416  }
   0xd   : > { %s2684_s22 = smov (!%p419_p3, %s1872_s22), 1  ;;  %1074 = vperm.xlu1 %2130, %v1060_v13   ;;  %1079 = vperm.xlu0 %2129, %v1061_v14   ;;  %v2144_v39 = vld [vmem:[%s2668_s4 + $0x48] sm:$0xff]   ;;  %v2145_v40 = vld [vmem:[%s2668_s4 + $0x50] sm:$0xff]   ;;  %v2146_v41 = vld [vmem:[%s2668_s4 + $0x58] sm:$0xff]  }
   0xe   : > { %s2266_s25 = sshll.u32 %s2684_s22, 4  ;;  %v2147_v42 = vld [vmem:[%s2668_s4 + $0x60] sm:$0xff]   ;;  %v2148_v43 = vld [vmem:[%s2668_s4 + $0x68] sm:$0xff]   ;;  %v2149_v44 = vld [vmem:[%s2668_s4 + $0x70] sm:$0xff]  }
   0xf   : > { %s423_s28 = scalar_lea.vmem %s2664_s0, %s2266_s25  ;;  %s428_s13 = scalar_lea.vmem %s2665_s1, %s2266_s25  ;;  %v2150_v45 = vld [vmem:[%s2668_s4 + $0x78] sm:$0xff]   ;;  %v2151_v46 = vld [vmem:[%s2668_s4 + $0x80] sm:$0xff]   ;;  %v2152_v47 = vld [vmem:[%s2668_s4 + $0x88] sm:$0xff]  }
  0x10   : > { %v2131_v5 = vld [vmem:[%s423_s28] sm:$0xff]   ;;  %v2132_v6 = vld [vmem:[%s423_s28 + $0x8] sm:$0xff]   ;;  %s2185_s28 = smov 122   ;;  %s433_s14 = scalar_lea.vmem %s2676_s12, %s2266_s25 }
  0x11   : > { %2022 = vmatprep.mubr.msk.bf16.mxu0 %vm450_vm2, %v2131_v5  ;;  %v2133_v7 = vld [vmem:[%s428_s13] sm:$0xff]   ;;  %v2134_v8 = vld [vmem:[%s428_s13 + $0x8] sm:$0xff]   ;;  %1096 = vperm.xlu1 %2130, %v1090_v15   ;;  %s2677_s13 = smov 118  }
  0x12   : > { %2023 = vmatmul.mubr.msk.bf16.vlgmr.msra.gmra.mrb[0].mxu0 %vm450_vm2, %v2132_v6  ;;  %534 = vst.msk [vmem:[#allocation2 + $0x10] sm:$0xff] %vm515_vm3, %v2133_v7  ;;  %535 = vst.msk [vmem:[#allocation2 + $0x18] sm:$0xff] %vm515_vm3, %v2134_v8  ;;  %1101 = vperm.xlu0 %2129, %v1091_v16  }
  0x15   : > { %1124 = vperm.xlu1 %2130, %v1118_v17  }
  0x16   : > { %1129 = vperm.xlu0 %2129, %v1119_v18  }
  0x19   : > { %1106 = vperm.xlu1 %2130, %v1092_v19   ;;  %v574_v29 = vld [vmem:[#allocation2 + $0x10] sm:$0xff]  ;;  %v575_v30 = vld [vmem:[#allocation2 + $0x18] sm:$0xff] }
  0x1a   : > { %1111 = vperm.xlu0 %2129, %v1093_v20  }
  0xe5   : > { %v2024_v21 = vpop.f32.mrb[0].mxu0 }
  0xe6   : > { %v498_v22 = vpop.f32.mrb[1].mxu0 }
  0xe7   : > { %v2025_v23 = vpop.f32.mrb[2].mxu0 }
  0xe8   : > { %v514_v24 = vpack.c.bf16 %v2025_v23, %v2024_v21  ;;  %v501_v25 = vpop.f32.mrb[3].mxu0  ;;  %v1121_v21 = vld [vmem:[%s2671_s7 + $0x18] sm:$0xff]  ;;  %v2430_v23 = vpop.permute.xlu0 %1064 }
  0xe9   : > { %v513_v26 = vpack.c.bf16 %v501_v25, %v498_v22  ;;  %v1120_v22 = vld [vmem:[%s2671_s7 + $0x10] sm:$0xff] }
  0xea   : > { %517 = vst.msk [vmem:[#allocation2 + $0x8] sm:$0xff] %vm515_vm3, %v514_v24  ;;  %v2432_v24 = vpop.permute.xlu1 %1069 }
  0xeb   : > { %516 = vst.msk [vmem:[#allocation2] sm:$0xff] %vm515_vm3, %v513_v26 }
  0xec   : > { %v2434_v25 = vpop.permute.xlu0 %1079 }
  0xee   : > { %v2438_v26 = vpop.permute.xlu1 %1074 }
  0xf1   : > { %v573_v28 = vld [vmem:[#allocation2 + $0x8] sm:$0xff] }
  0xf2   : > { %v572_v27 = vld [vmem:[#allocation2] sm:$0xff] }
  0xf3   : > { %2026 = vmatprep.subr.bf16.mxu1 %v572_v27 }
  0xf4   : > { %2027 = vmatpush3.bf16.msra.mxu1 %v572_v27  ;;  %v2440_v27 = vpop.permute.xlu0 %1101 }
  0xf5   : > { %2028 = vmatprep.subr.bf16.mxu1 %v573_v28 }
  0xf8   : > { %2029 = vmatpush3.bf16.msra.mxu1 %v573_v28  ;;  %v2442_v28 = vpop.permute.xlu1 %1096 }
  0xf9   : > { %2030 = vmatprep.subr.bf16.mxu1 %v574_v29 }
  0xfc   : > { %2031 = vmatpush3.bf16.msra.mxu1 %v574_v29  ;;  %v2444_v29 = vpop.permute.xlu0 %1129 }
  0xfd   : > { %2032 = vmatprep.subr.bf16.mxu1 %v575_v30 }
 0x100   : > { %2033 = vmatpush3.bf16.msra.mxu1 %v575_v30  ;;  %v2446_v30 = vpop.permute.xlu1 %1124 }
 0x103   : > { %2035 = vmatmul.mubr.msk.bf16.vlgmr.msra.gmra.mrb[0].mxu1 %vm666_vm4, %v2136_v31  ;;  %v2448_v31 = vpop.permute.xlu0 %1111 }
 0x104   : > { %2038 = vmatprep.mubr.msk.bf16.mxu1 %vm666_vm4, %v2137_v32 }
 0x10b   : > { %2039 = vmatmul.mubr.msk.bf16.gmra.mrb[4].mxu1 %vm666_vm4, %v2138_v33  ;;  %v2450_v33 = vpop.permute.xlu1 %1106 }
 0x10c   : > { %2042 = vmatprep.mubr.msk.bf16.mxu1 %vm666_vm4, %v2139_v34 }
 0x113   : > { %2043 = vmatmul.mubr.msk.bf16.gmra.mrb[8].mxu1 %vm666_vm4, %v2140_v35 }
 0x114   : > { %2046 = vmatprep.mubr.msk.bf16.mxu1 %vm666_vm4, %v2141_v36 }
 0x11b   : > { %2047 = vmatmul.mubr.msk.bf16.gmra.mrb[12].mxu1 %vm666_vm4, %v2142_v37 }
 0x11c   : > { %2050 = vmatprep.mubr.msk.bf16.mxu1 %vm666_vm4, %v2143_v38 }
 0x123   : > { %2051 = vmatmul.mubr.msk.bf16.gmra.mrb[16].mxu1 %vm666_vm4, %v2144_v39 }
 0x124   : > { %2054 = vmatprep.mubr.msk.bf16.mxu1 %vm666_vm4, %v2145_v40 }
 0x12b   : > { %2055 = vmatmul.mubr.msk.bf16.gmra.mrb[20].mxu1 %vm666_vm4, %v2146_v41 }
 0x12c   : > { %2058 = vmatprep.mubr.msk.bf16.mxu1 %vm666_vm4, %v2147_v42 }
 0x133   : > { %2059 = vmatmul.mubr.msk.bf16.gmra.mrb[24].mxu1 %vm666_vm4, %v2148_v43 }
 0x134   : > { %2062 = vmatprep.mubr.msk.bf16.mxu1 %vm666_vm4, %v2149_v44 }
 0x13b   : > { %2063 = vmatmul.mubr.msk.bf16.gmra.mrb[28].mxu1 %vm666_vm4, %v2150_v45 }
 0x13c   : > { %2066 = vmatprep.mubr.msk.bf16.mxu1 %vm666_vm4, %v2151_v46 }
 0x143   : > { %2067 = vmatmul.mubr.msk.bf16.gmra.mrb[32].mxu1 %vm666_vm4, %v2152_v47 }
 0x1d6   : > { %v2384_v48 = vpop.f32.mrb[0].mxu1 }
 0x1d7   : > { %v2386_v49 = vpop.f32.mrb[1].mxu1 }
 0x1d8   : > { %v2388_v50 = vpop.f32.mrb[2].mxu1 }
 0x1d9   : > { %v2390_v51 = vpop.f32.mrb[3].mxu1 }
 0x1de   : > { %v2040_v52 = vpop.f32.mrb[4].mxu1 }
 0x1df   : > { %906 = vrot.lane.b32.xlu0 %v2040_v52, %s2181_s23  ;;  %v771_v53 = vpop.f32.mrb[5].mxu1 }
 0x1e0   : > { %v2041_v54 = vpop.f32.mrb[6].mxu1 }
 0x1e1   : > { %908 = vrot.lane.b32.xlu1 %v2041_v54, %s2181_s23  ;;  %v774_v55 = vpop.f32.mrb[7].mxu1 }
 0x1e3   : > { %902 = vrot.lane.b32.xlu0 %v771_v53, %s2181_s23 }
 0x1e6   : > { %v2044_v56 = vpop.f32.mrb[8].mxu1 }
 0x1e7   : > { %904 = vrot.lane.b32.xlu0 %v774_v55, %s2181_s23  ;;  %v787_v57 = vpop.f32.mrb[9].mxu1 }
 0x1e8   : > { %922 = vrot.lane.b32.xlu1 %v787_v57, %s2182_s24  ;;  %v2045_v58 = vpop.f32.mrb[10].mxu1 }
 0x1e9   : > { %v790_v59 = vpop.f32.mrb[11].mxu1 }
 0x1eb   : > { %926 = vrot.lane.b32.xlu0 %v2044_v56, %s2182_s24 }
 0x1ec   : > { %928 = vrot.lane.b32.xlu1 %v2045_v58, %s2182_s24 }
 0x1ee   : > { %v2048_v60 = vpop.f32.mrb[12].mxu1 }
 0x1ef   : > { %946 = vrot.lane.b32.xlu0 %v2048_v60, %s2183_s26  ;;  %v803_v61 = vpop.f32.mrb[13].mxu1 }
 0x1f0   : > { %924 = vrot.lane.b32.xlu1 %v790_v59, %s2182_s24  ;;  %v2049_v62 = vpop.f32.mrb[14].mxu1 }
 0x1f1   : > { %v806_v63 = vpop.f32.mrb[15].mxu1 }
 0x1f3   : > { %942 = vrot.lane.b32.xlu0 %v803_v61, %s2183_s26 }
 0x1f4   : > { %948 = vrot.lane.b32.xlu1 %v2049_v62, %s2183_s26 }
 0x1f6   : > { %v2052_v0 = vpop.f32.mrb[16].mxu1 }
 0x1f7   : > { %v819_v1 = vpop.f32.mrb[17].mxu1 }
 0x1f8   : > { %944 = vrot.lane.b32.xlu1 %v806_v63, %s2183_s26  ;;  %962 = vrot.lane.b32.xlu0 %v819_v1, %s2184_s27  ;;  %v2053_v2 = vpop.f32.mrb[18].mxu1 }
 0x1f9   : > { %v822_v3 = vpop.f32.mrb[19].mxu1 }
 0x1fc   : > { %966 = vrot.lane.b32.xlu1 %v2052_v0, %s2184_s27  ;;  %968 = vrot.lane.b32.xlu0 %v2053_v2, %s2184_s27 }
 0x1fe   : > { %v2056_v4 = vpop.f32.mrb[20].mxu1 }
 0x1ff   : > { %v835_v5 = vpop.f32.mrb[21].mxu1 }
 0x200   : > { %964 = vrot.lane.b32.xlu1 %v822_v3, %s2184_s27  ;;  %982 = vrot.lane.b32.xlu0 %v835_v5, %s2185_s28  ;;  %v2057_v6 = vpop.f32.mrb[22].mxu1 }
 0x201   : > { %v838_v7 = vpop.f32.mrb[23].mxu1 }
 0x204   : > { %986 = vrot.lane.b32.xlu1 %v2056_v4, %s2185_s28  ;;  %988 = vrot.lane.b32.xlu0 %v2057_v6, %s2185_s28 }
 0x206   : > { %v2060_v8 = vpop.f32.mrb[24].mxu1 }
 0x207   : > { %v851_v9 = vpop.f32.mrb[25].mxu1 }
 0x208   : > { %984 = vrot.lane.b32.xlu1 %v838_v7, %s2185_s28  ;;  %v2061_v10 = vpop.f32.mrb[26].mxu1 }
 0x209   : > { %1008 = vrot.lane.b32.xlu0 %v2061_v10, %s2186_s29  ;;  %v854_v11 = vpop.f32.mrb[27].mxu1 }
 0x20c   : > { %1006 = vrot.lane.b32.xlu1 %v2060_v8, %s2186_s29 }
 0x20d   : > { %1004 = vrot.lane.b32.xlu0 %v854_v11, %s2186_s29 }
 0x20e   : > { %v2064_v13 = vpop.f32.mrb[28].mxu1 }
 0x20f   : > { %v867_v14 = vpop.f32.mrb[29].mxu1 }
 0x210   : > { %1002 = vrot.lane.b32.xlu1 %v851_v9, %s2186_s29  ;;  %v2065_v15 = vpop.f32.mrb[30].mxu1 }
 0x211   : > { %1028 = vrot.lane.b32.xlu0 %v2065_v15, %s2679_s30  ;;  %v870_v16 = vpop.f32.mrb[31].mxu1 }
 0x214   : > { %1026 = vrot.lane.b32.xlu1 %v2064_v13, %s2679_s30 }
 0x215   : > { %1024 = vrot.lane.b32.xlu0 %v870_v16, %s2679_s30 }
 0x216   : > { %v2068_v17 = vpop.f32.mrb[32].mxu1 }
 0x217   : > { %v883_v18 = vpop.f32.mrb[33].mxu1 }
 0x218   : > { %1022 = vrot.lane.b32.xlu1 %v867_v14, %s2679_s30  ;;  %v2069_v19 = vpop.f32.mrb[34].mxu1 }
 0x219   : > { %v886_v20 = vpop.f32.mrb[35].mxu1 }
 0x21a   : > { %1044 = vrot.lane.b32.xlu0 %v886_v20, %s2677_s13 }
 0x21c   : > { %1042 = vrot.lane.b32.xlu1 %v883_v18, %s2677_s13 }
 0x21e   : > { %1048 = vrot.lane.b32.xlu0 %v2069_v19, %s2677_s13 }
 0x220   : > { %1046 = vrot.lane.b32.xlu1 %v2068_v17, %s2677_s13 }
 0x222   : > { %1139 = vperm.xlu0 %2129, %v1121_v21  }
 0x224   : > { %1134 = vperm.xlu1 %2130, %v1120_v22  }
 0x251   : > { %v907_v32 = vpop.permute.xlu0 %906 }
 0x252   : > { %v916_v10 = vadd.f32 %v2384_v48, %v907_v32 }
 0x253   : > { %v909_v35 = vpop.permute.xlu1 %908 }
 0x254   : > { %v917_v5 = vadd.f32 %v2388_v50, %v909_v35 }
 0x255   : > { %v903_v34 = vpop.permute.xlu0 %902 }
 0x256   : > { %v914_v61 = vadd.f32 %v903_v34, %v2386_v49 }
 0x259   : > { %v905_v36 = vpop.permute.xlu0 %904 }
 0x25a   : > { %v923_v37 = vpop.permute.xlu1 %922  ;;  %v915_v59 = vadd.f32 %v905_v36, %v2390_v51 }
 0x25b   : > { %v934_v0 = vadd.f32 %v923_v37, %v914_v61 }
 0x25d   : > { %v927_v38 = vpop.permute.xlu0 %926 }
 0x25e   : > { %v929_v39 = vpop.permute.xlu1 %928  ;;  %v936_v14 = vadd.f32 %v927_v38, %v916_v10 }
 0x25f   : > { %v937_v11 = vadd.f32 %v929_v39, %v917_v5  ;;  %v1756_v5 = vld [vmem:[%s2675_s11] sm:$0xff] }
 0x261   : > { %v947_v40 = vpop.permute.xlu0 %946 }
 0x262   : > { %v925_v41 = vpop.permute.xlu1 %924  ;;  %v956_v18 = vadd.f32 %v947_v40, %v936_v14  ;;  %v2154_v14 = vld [vmem:[%s2672_s8 + $0x8] sm:$0xff]  }
 0x263   : > { %v935_v62 = vadd.f32 %v925_v41, %v915_v59 }
 0x265   : > { %v943_v42 = vpop.permute.xlu0 %942 }
 0x266   : > { %v949_v43 = vpop.permute.xlu1 %948  ;;  %v954_v3 = vadd.f32 %v943_v42, %v934_v0 }
 0x267   : > { %v957_v49 = vadd.f32 %v949_v43, %v937_v11 }
 0x26a   : > { %v945_v44 = vpop.permute.xlu1 %944  ;;  %v963_v45 = vpop.permute.xlu0 %962 }
 0x26b   : > { %v955_v1 = vadd.f32 %v945_v44, %v935_v62  ;;  %v974_v7 = vadd.f32 %v963_v45, %v954_v3 }
 0x26e   : > { %v967_v46 = vpop.permute.xlu1 %966  ;;  %v969_v47 = vpop.permute.xlu0 %968 }
 0x26f   : > { %v977_v19 = vadd.f32 %v969_v47, %v957_v49  ;;  %v976_v50 = vadd.f32 %v967_v46, %v956_v18  ;;  %v2155_v49 = vld [vmem:[%s2672_s8 + $0x10] sm:$0xff]   ;;  %v2160_v18 = vld [vmem:[%s2672_s8 + $0x38] sm:$0xff]  }
 0x272   : > { %v965_v52 = vpop.permute.xlu1 %964  ;;  %v983_v53 = vpop.permute.xlu0 %982 }
 0x273   : > { %v975_v4 = vadd.f32 %v965_v52, %v955_v1  ;;  %v994_v51 = vadd.f32 %v983_v53, %v974_v7  ;;  %v1729_v7 = vld [vmem:[%s2674_s10 + $0x8] sm:$0xff] }
 0x276   : > { %v987_v54 = vpop.permute.xlu1 %986  ;;  %v989_v55 = vpop.permute.xlu0 %988 }
 0x277   : > { %v997_v34 = vadd.f32 %v989_v55, %v977_v19  ;;  %v996_v48 = vadd.f32 %v987_v54, %v976_v50  ;;  %v1925_v54 = vld [vmem:[%s2667_s3] ss:$0 sm:$0xff] }
 0x278   : > { %v2161_v19 = vld [vmem:[%s2672_s8 + $0x40] sm:$0xff]  }
 0x279   : > { %v2165_v50 = vld [vmem:[%s2672_s8 + $0x60] sm:$0xff]  }
 0x27a   : > { %v985_v56 = vpop.permute.xlu1 %984 }
 0x27b   : > { %v1009_v57 = vpop.permute.xlu0 %1008  ;;  %v995_v8 = vadd.f32 %v985_v56, %v975_v4  ;;  %v1697_v4 = vld [vmem:[%s2673_s9 + $0x8] sm:$0xff] }
 0x27c   : > { %v1017_v32 = vadd.f32 %v1009_v57, %v997_v34  ;;  %v2166_v34 = vld [vmem:[%s2672_s8 + $0x68] sm:$0xff]  }
 0x27e   : > { %v1007_v58 = vpop.permute.xlu1 %1006 }
 0x27f   : > { %v1005_v60 = vpop.permute.xlu0 %1004  ;;  %v1016_v42 = vadd.f32 %v1007_v58, %v996_v48  ;;  %v2170_v48 = vld [vmem:[%s2672_s8 + $0x88] sm:$0xff]  }
 0x280   : > { %v1015_v13 = vadd.f32 %v1005_v60, %v995_v8  ;;  %v1731_v8 = vld [vmem:[%s2674_s10 + $0x18] sm:$0xff] }
 0x282   : > { %v1003_v63 = vpop.permute.xlu1 %1002 }
 0x283   : > { %v1029_v2 = vpop.permute.xlu0 %1028  ;;  %v1014_v16 = vadd.f32 %v1003_v63, %v994_v51 }
 0x284   : > { %v1037_v43 = vadd.f32 %v1029_v2, %v1017_v32  ;;  %v1728_v2 = vld [vmem:[%s2674_s10] sm:$0xff] }
 0x286   : > { %v1027_v6 = vpop.permute.xlu1 %1026 }
 0x287   : > { %v1025_v9 = vpop.permute.xlu0 %1024  ;;  %v1036_v47 = vadd.f32 %v1027_v6, %v1016_v42  ;;  %v1699_v6 = vld [vmem:[%s2673_s9 + $0x18] sm:$0xff] }
 0x288   : > { %v1035_v17 = vadd.f32 %v1025_v9, %v1015_v13  ;;  %v1757_v9 = vld [vmem:[%s2675_s11 + $0x8] sm:$0xff] }
 0x28a   : > { %v1023_v15 = vpop.permute.xlu1 %1022 }
 0x28b   : > { %v1034_v21 = vadd.f32 %v1023_v15, %v1014_v16  ;;  %v2156_v15 = vld [vmem:[%s2672_s8 + $0x18] sm:$0xff]   ;;  %v2158_v16 = vld [vmem:[%s2672_s8 + $0x28] sm:$0xff]  }
 0x28c   : > { %v1045_v20 = vpop.permute.xlu0 %1044 }
 0x28d   : > { %v1055_v22 = vadd.f32 %v1045_v20, %v1035_v17  ;;  %v2159_v17 = vld [vmem:[%s2672_s8 + $0x30] sm:$0xff]   ;;  %v2162_v20 = vld [vmem:[%s2672_s8 + $0x48] sm:$0xff]  }
 0x28e   : > { %v1043_v35 = vpop.permute.xlu1 %1042 }
 0x28f   : > { %v1083_v36 = vadd.f32 %v2432_v24, %v1055_v22  ;;  %v1054_v37 = vadd.f32 %v1043_v35, %v1034_v21  ;;  %v2163_v21 = vld [vmem:[%s2672_s8 + $0x50] sm:$0xff]   ;;  %v2164_v22 = vld [vmem:[%s2672_s8 + $0x58] sm:$0xff]  }
 0x290   : > { %v1049_v41 = vpop.permute.xlu0 %1048  ;;  %v2167_v35 = vld [vmem:[%s2672_s8 + $0x70] sm:$0xff]  }
 0x291   : > { %v1087_v39 = vmax.f32 %v1083_v36, 0.0  ;;  %v1082_v38 = vadd.f32 %v2430_v23, %v1054_v37  ;;  %v1057_v52 = vadd.f32 %v1049_v41, %v1037_v43  ;;  %v2168_v36 = vld [vmem:[%s2672_s8 + $0x78] sm:$0xff]   ;;  %v2169_v37 = vld [vmem:[%s2672_s8 + $0x80] sm:$0xff]  }
 0x292   : > { %v1047_v45 = vpop.permute.xlu1 %1046 }
 0x293   : > { %v1115_v40 = vmul.f32 %v2440_v27, %v1087_v39  ;;  %v1086_v44 = vmax.f32 %v1082_v38, 0.0  ;;  %v1056_v24 = vadd.f32 %v1047_v45, %v1036_v47  ;;  %v1085_v55 = vadd.f32 %v2434_v25, %v1057_v52 }
 0x295   : > { %v1143_v46 = vadd.f32 %v2444_v29, %v1115_v40  ;;  %v1114_v53 = vmul.f32 %v2442_v28, %v1086_v44  ;;  %v1084_v27 = vadd.f32 %v2438_v26, %v1056_v24  ;;  %v1089_v59 = vmax.f32 %v1085_v55, 0.0  ;;  %v1696_v28 = vld [vmem:[%s2673_s9] sm:$0xff]  ;;  %v1698_v26 = vld [vmem:[%s2673_s9 + $0x10] sm:$0xff] }
 0x297   : > { %v1142_v23 = vadd.f32 %v2446_v30, %v1114_v53  ;;  %v1154_v57 = vmul.f32 %v1925_v54, %v1143_v46  ;;  %v1088_v29 = vmax.f32 %v1084_v27, 0.0  ;;  %v1117_v60 = vmul.f32 %v2448_v31, %v1089_v59  ;;  %v2153_v31 = vld [vmem:[%s2672_s8] sm:$0xff]  }
 0x298   : > { %2074 = vmatprep.mubr.msk.bf16.mxu0 %vm1304_vm6, %v2153_v31 }
 0x299   : > { %v1153_v56 = vmul.f32 %v1925_v54, %v1142_v23  ;;  %v1116_v25 = vmul.f32 %v2450_v33, %v1088_v29  ;;  %v1730_v33 = vld [vmem:[%s2674_s10 + $0x10] sm:$0xff] }
 0x29b   : > { %v1160_v58 = vpack.c.bf16 %v1154_v57, %v1153_v56 }
 0x29d   : > { %1164 = vrot.lane.b32.xlu1 %v1160_v58, %s2189_s20 }
 0x2a1   : > { %1702 = vperm.xlu1 %2130, %v1696_v28   ;;  %v1140_v61 = vpop.permute.xlu0 %1139 }
 0x2a2   : > { %v1145_v30 = vadd.f32 %v1140_v61, %v1117_v60 }
 0x2a3   : > { %v1135_v62 = vpop.permute.xlu1 %1134 }
 0x2a4   : > { %v1144_v63 = vadd.f32 %v1135_v62, %v1116_v25  ;;  %v1156_v0 = vmul.f32 %v1925_v54, %v1145_v30 }
 0x2a5   : > { %1712 = vperm.xlu1 %2130, %v1698_v26  }
 0x2a6   : > { %v1155_v1 = vmul.f32 %v1925_v54, %v1144_v63 }
 0x2a8   : > { %v1161_v3 = vpack.c.bf16 %v1156_v0, %v1155_v1 }
 0x2a9   : > { %1734 = vperm.xlu1 %2130, %v1728_v2  }
 0x2aa   : > { %1166 = vrot.lane.b32.xlu0 %v1161_v3, %s2189_s20 }
 0x2ad   : > { %1744 = vperm.xlu1 %2130, %v1730_v33   ;;  %v1758_v33 = vld [vmem:[%s2675_s11 + $0x10] sm:$0xff] }
 0x2ae   : > { %1707 = vperm.xlu0 %2129, %v1697_v4   ;;  %v1759_v4 = vld [vmem:[%s2675_s11 + $0x18] sm:$0xff] }
 0x2b1   : > { %1762 = vperm.xlu1 %2130, %v1756_v5  }
 0x2b2   : > { %1717 = vperm.xlu0 %2129, %v1699_v6  }
 0x2b6   : > { %1739 = vperm.xlu0 %2129, %v1729_v7  }
 0x2ba   : > { %1749 = vperm.xlu0 %2129, %v1731_v8  }
 0x2be   : > { %1767 = vperm.xlu0 %2129, %v1757_v9  }
 0x30f   : > { %v1165_v10 = vpop.permute.xlu1 %1164 }
 0x310   : > { %1171 = vst.msk [vmem:[#allocation3] sm:$0xff] %vm1170_vm7, %v1165_v10 }
 0x311   : > { %1174 = vst.msk [vmem:[#allocation3] sm:$0xff] %vm1173_vm8, %v2180_v12 }
 0x318   : > { %v1212_v11 = vld [vmem:[#allocation3] sm:$0xff] }
 0x319   : > { %2070 = vmatprep.subr.bf16.mxu0 %v1212_v11 }
 0x31a   : > { %2071 = vmatpush3.bf16.msra.mxu0 %v1212_v11 }
 0x31c   : > { %v1167_v51 = vpop.permute.xlu0 %1166 }
 0x31d   : > { %1172 = vst.msk [vmem:[#allocation3 + $0x8] sm:$0xff] %vm1170_vm7, %v1167_v51 }
 0x31e   : > { %1175 = vst.msk [vmem:[#allocation3 + $0x8] sm:$0xff] %vm1173_vm8, %v2180_v12  ;;  %v2157_v12 = vld [vmem:[%s2672_s8 + $0x20] sm:$0xff]  }
 0x320   : > { %v2619_v5 = vpop.permute.xlu1 %1702 }
 0x324   : > { %v2623_v7 = vpop.permute.xlu1 %1712 }
 0x325   : > { %v1213_v13 = vld [vmem:[#allocation3 + $0x8] sm:$0xff] }
 0x326   : > { %2072 = vmatprep.subr.bf16.mxu0 %v1213_v13 }
 0x327   : > { %2073 = vmatpush3.bf16.msra.mxu0 %v1213_v13 }
 0x328   : > { %v2627_v9 = vpop.permute.xlu1 %1734 }
 0x32a   : > { %2075 = vmatmul.mubr.msk.bf16.vlgmr.msra.gmra.mrb[4].mxu0 %vm1304_vm6, %v2154_v14 }
 0x32b   : > { %2078 = vmatprep.mubr.msk.bf16.mxu0 %vm1304_vm6, %v2155_v49 }
 0x32c   : > { %v2631_v11 = vpop.permute.xlu1 %1744 }
 0x32d   : > { %v2621_v6 = vpop.permute.xlu0 %1707 }
 0x330   : > { %v2635_v13 = vpop.permute.xlu1 %1762 }
 0x331   : > { %v2625_v8 = vpop.permute.xlu0 %1717 }
 0x332   : > { %2079 = vmatmul.mubr.msk.bf16.gmra.mrb[8].mxu0 %vm1304_vm6, %v2156_v15 }
 0x333   : > { %2082 = vmatprep.mubr.msk.bf16.mxu0 %vm1304_vm6, %v2157_v12 }
 0x335   : > { %v2629_v10 = vpop.permute.xlu0 %1739 }
 0x339   : > { %v2633_v51 = vpop.permute.xlu0 %1749 }
 0x33a   : > { %2083 = vmatmul.mubr.msk.bf16.gmra.mrb[12].mxu0 %vm1304_vm6, %v2158_v16 }
 0x33b   : > { %2086 = vmatprep.mubr.msk.bf16.mxu0 %vm1304_vm6, %v2159_v17 }
 0x33d   : > { %v2637_v14 = vpop.permute.xlu0 %1767 }
 0x342   : > { %2087 = vmatmul.mubr.msk.bf16.gmra.mrb[16].mxu0 %vm1304_vm6, %v2160_v18 }
 0x343   : > { %2090 = vmatprep.mubr.msk.bf16.mxu0 %vm1304_vm6, %v2161_v19 }
 0x34a   : > { %2091 = vmatmul.mubr.msk.bf16.gmra.mrb[20].mxu0 %vm1304_vm6, %v2162_v20 }
 0x34b   : > { %2094 = vmatprep.mubr.msk.bf16.mxu0 %vm1304_vm6, %v2163_v21 }
 0x352   : > { %2095 = vmatmul.mubr.msk.bf16.gmra.mrb[24].mxu0 %vm1304_vm6, %v2164_v22 }
 0x353   : > { %2098 = vmatprep.mubr.msk.bf16.mxu0 %vm1304_vm6, %v2165_v50 }
 0x35a   : > { %2099 = vmatmul.mubr.msk.bf16.gmra.mrb[28].mxu0 %vm1304_vm6, %v2166_v34 }
 0x35b   : > { %2102 = vmatprep.mubr.msk.bf16.mxu0 %vm1304_vm6, %v2167_v35 }
 0x362   : > { %2103 = vmatmul.mubr.msk.bf16.gmra.mrb[32].mxu0 %vm1304_vm6, %v2168_v36 }
 0x363   : > { %2106 = vmatprep.mubr.msk.bf16.mxu0 %vm1304_vm6, %v2169_v37 }
 0x36a   : > { %2107 = vmatmul.mubr.msk.bf16.gmra.mrb[36].mxu0 %vm1304_vm6, %v2170_v48 }
 0x3fd   : > { %v2573_v32 = vpop.f32.mrb[4].mxu0 }
 0x3fe   : > { %v2575_v39 = vpop.f32.mrb[5].mxu0 }
 0x3ff   : > { %v2577_v38 = vpop.f32.mrb[6].mxu0 }
 0x400   : > { %v2579_v41 = vpop.f32.mrb[7].mxu0 }
 0x405   : > { %v2080_v42 = vpop.f32.mrb[8].mxu0 }
 0x406   : > { %1544 = vrot.lane.b32.xlu1 %v2080_v42, %s2181_s23  ;;  %v1409_v43 = vpop.f32.mrb[9].mxu0 }
 0x407   : > { %v2081_v40 = vpop.f32.mrb[10].mxu0 }
 0x408   : > { %1546 = vrot.lane.b32.xlu0 %v2081_v40, %s2181_s23  ;;  %v1412_v44 = vpop.f32.mrb[11].mxu0 }
 0x40a   : > { %1540 = vrot.lane.b32.xlu1 %v1409_v43, %s2181_s23 }
 0x40c   : > { %1542 = vrot.lane.b32.xlu0 %v1412_v44, %s2181_s23  ;;  %s2681_s23 = smov 119  }
 0x40d   : > { %v2084_v45 = vpop.f32.mrb[12].mxu0 }
 0x40e   : > { %1564 = vrot.lane.b32.xlu1 %v2084_v45, %s2182_s24  ;;  %v1425_v47 = vpop.f32.mrb[13].mxu0 }
 0x40f   : > { %v2085_v52 = vpop.f32.mrb[14].mxu0 }
 0x410   : > { %1566 = vrot.lane.b32.xlu0 %v2085_v52, %s2182_s24  ;;  %v1428_v46 = vpop.f32.mrb[15].mxu0 }
 0x412   : > { %1560 = vrot.lane.b32.xlu1 %v1425_v47, %s2182_s24 }
 0x414   : > { %1562 = vrot.lane.b32.xlu0 %v1428_v46, %s2182_s24  ;;  %s2682_s24 = smov 118  }
 0x415   : > { %v2088_v53 = vpop.f32.mrb[16].mxu0 }
 0x416   : > { %1584 = vrot.lane.b32.xlu1 %v2088_v53, %s2183_s26  ;;  %v1441_v24 = vpop.f32.mrb[17].mxu0 }
 0x417   : > { %v2089_v54 = vpop.f32.mrb[18].mxu0 }
 0x418   : > { %1586 = vrot.lane.b32.xlu0 %v2089_v54, %s2183_s26  ;;  %v1444_v23 = vpop.f32.mrb[19].mxu0 }
 0x41a   : > { %1580 = vrot.lane.b32.xlu1 %v1441_v24, %s2183_s26 }
 0x41c   : > { %1582 = vrot.lane.b32.xlu0 %v1444_v23, %s2183_s26 }
 0x41d   : > { %v2092_v55 = vpop.f32.mrb[20].mxu0 }
 0x41e   : > { %1604 = vrot.lane.b32.xlu1 %v2092_v55, %s2184_s27  ;;  %v1457_v56 = vpop.f32.mrb[21].mxu0 }
 0x41f   : > { %v2093_v57 = vpop.f32.mrb[22].mxu0 }
 0x420   : > { %1606 = vrot.lane.b32.xlu0 %v2093_v57, %s2184_s27  ;;  %v1460_v27 = vpop.f32.mrb[23].mxu0 }
 0x422   : > { %1600 = vrot.lane.b32.xlu1 %v1457_v56, %s2184_s27 }
 0x424   : > { %1602 = vrot.lane.b32.xlu0 %v1460_v27, %s2184_s27 }
 0x425   : > { %v2096_v58 = vpop.f32.mrb[24].mxu0 }
 0x426   : > { %1624 = vrot.lane.b32.xlu1 %v2096_v58, %s2185_s28  ;;  %v1473_v59 = vpop.f32.mrb[25].mxu0 }
 0x427   : > { %v2097_v29 = vpop.f32.mrb[26].mxu0 }
 0x428   : > { %1626 = vrot.lane.b32.xlu0 %v2097_v29, %s2185_s28  ;;  %v1476_v28 = vpop.f32.mrb[27].mxu0 }
 0x42a   : > { %1620 = vrot.lane.b32.xlu1 %v1473_v59, %s2185_s28 }
 0x42c   : > { %1622 = vrot.lane.b32.xlu0 %v1476_v28, %s2185_s28 }
 0x42d   : > { %v2100_v60 = vpop.f32.mrb[28].mxu0 }
 0x42e   : > { %1644 = vrot.lane.b32.xlu1 %v2100_v60, %s2186_s29  ;;  %v1489_v61 = vpop.f32.mrb[29].mxu0 }
 0x42f   : > { %v2101_v30 = vpop.f32.mrb[30].mxu0 }
 0x430   : > { %1646 = vrot.lane.b32.xlu0 %v2101_v30, %s2186_s29  ;;  %v1492_v25 = vpop.f32.mrb[31].mxu0 }
 0x432   : > { %1640 = vrot.lane.b32.xlu1 %v1489_v61, %s2186_s29 }
 0x434   : > { %1642 = vrot.lane.b32.xlu0 %v1492_v25, %s2186_s29 }
 0x435   : > { %v2104_v26 = vpop.f32.mrb[32].mxu0 }
 0x436   : > { %1664 = vrot.lane.b32.xlu1 %v2104_v26, %s2681_s23  ;;  %v1505_v62 = vpop.f32.mrb[33].mxu0 }
 0x437   : > { %v2105_v63 = vpop.f32.mrb[34].mxu0 }
 0x438   : > { %1666 = vrot.lane.b32.xlu0 %v2105_v63, %s2681_s23  ;;  %v1508_v0 = vpop.f32.mrb[35].mxu0 }
 0x43a   : > { %1660 = vrot.lane.b32.xlu1 %v1505_v62, %s2681_s23 }
 0x43c   : > { %1662 = vrot.lane.b32.xlu0 %v1508_v0, %s2681_s23 }
 0x43d   : > { %v2108_v1 = vpop.f32.mrb[36].mxu0 }
 0x43e   : > { %1684 = vrot.lane.b32.xlu1 %v2108_v1, %s2682_s24  ;;  %v1521_v2 = vpop.f32.mrb[37].mxu0 }
 0x43f   : > { %v2109_v31 = vpop.f32.mrb[38].mxu0 }
 0x440   : > { %1686 = vrot.lane.b32.xlu0 %v2109_v31, %s2682_s24  ;;  %v1524_v3 = vpop.f32.mrb[39].mxu0 }
 0x442   : > { %1680 = vrot.lane.b32.xlu1 %v1521_v2, %s2682_s24 }
 0x444   : > { %1682 = vrot.lane.b32.xlu0 %v1524_v3, %s2682_s24 }
 0x446   : > { %1772 = vperm.xlu1 %2130, %v1758_v33  }
 0x448   : > { %1777 = vperm.xlu0 %2129, %v1759_v4  }
 0x478   : > { %v1545_v49 = vpop.permute.xlu1 %1544 }
 0x479   : > { %v1554_v55 = vadd.f32 %v2573_v32, %v1545_v49 }
 0x47a   : > { %v1547_v15 = vpop.permute.xlu0 %1546 }
 0x47b   : > { %v1555_v58 = vadd.f32 %v2577_v38, %v1547_v15 }
 0x47c   : > { %v1541_v12 = vpop.permute.xlu1 %1540 }
 0x47d   : > { %v1552_v53 = vadd.f32 %v1541_v12, %v2575_v39 }
 0x47e   : > { %v1543_v16 = vpop.permute.xlu0 %1542 }
 0x47f   : > { %v1553_v54 = vadd.f32 %v1543_v16, %v2579_v41 }
 0x480   : > { %v1565_v17 = vpop.permute.xlu1 %1564 }
 0x481   : > { %v1574_v59 = vadd.f32 %v1565_v17, %v1554_v55 }
 0x482   : > { %v1567_v18 = vpop.permute.xlu0 %1566 }
 0x483   : > { %v1575_v61 = vadd.f32 %v1567_v18, %v1555_v58 }
 0x484   : > { %v1561_v19 = vpop.permute.xlu1 %1560 }
 0x485   : > { %v1572_v23 = vadd.f32 %v1561_v19, %v1552_v53 }
 0x486   : > { %v1563_v20 = vpop.permute.xlu0 %1562 }
 0x487   : > { %v1573_v57 = vadd.f32 %v1563_v20, %v1553_v54 }
 0x488   : > { %v1585_v21 = vpop.permute.xlu1 %1584 }
 0x489   : > { %v1594_v30 = vadd.f32 %v1585_v21, %v1574_v59 }
 0x48a   : > { %v1587_v22 = vpop.permute.xlu0 %1586 }
 0x48b   : > { %v1595_v62 = vadd.f32 %v1587_v22, %v1575_v61 }
 0x48c   : > { %v1581_v50 = vpop.permute.xlu1 %1580 }
 0x48d   : > { %v1592_v27 = vadd.f32 %v1581_v50, %v1572_v23 }
 0x48e   : > { %v1583_v34 = vpop.permute.xlu0 %1582 }
 0x48f   : > { %v1593_v28 = vadd.f32 %v1583_v34, %v1573_v57 }
 0x490   : > { %v1605_v35 = vpop.permute.xlu1 %1604 }
 0x491   : > { %v1614_v63 = vadd.f32 %v1605_v35, %v1594_v30 }
 0x492   : > { %v1607_v36 = vpop.permute.xlu0 %1606 }
 0x493   : > { %v1615_v32 = vadd.f32 %v1607_v36, %v1595_v62 }
 0x494   : > { %v1601_v37 = vpop.permute.xlu1 %1600 }
 0x495   : > { %v1612_v60 = vadd.f32 %v1601_v37, %v1592_v27 }
 0x496   : > { %v1603_v48 = vpop.permute.xlu0 %1602 }
 0x497   : > { %v1613_v26 = vadd.f32 %v1603_v48, %v1593_v28 }
 0x498   : > { %v1625_v42 = vpop.permute.xlu1 %1624 }
 0x499   : > { %v1634_v2 = vadd.f32 %v1625_v42, %v1614_v63 }
 0x49a   : > { %v1627_v43 = vpop.permute.xlu0 %1626 }
 0x49b   : > { %v1635_v38 = vadd.f32 %v1627_v43, %v1615_v32 }
 0x49c   : > { %v1621_v40 = vpop.permute.xlu1 %1620 }
 0x49d   : > { %v1632_v39 = vadd.f32 %v1621_v40, %v1612_v60 }
 0x49e   : > { %v1623_v44 = vpop.permute.xlu0 %1622 }
 0x49f   : > { %v1633_v0 = vadd.f32 %v1623_v44, %v1613_v26 }
 0x4a0   : > { %v1645_v45 = vpop.permute.xlu1 %1644 }
 0x4a1   : > { %v1654_v4 = vadd.f32 %v1645_v45, %v1634_v2 }
 0x4a2   : > { %v1647_v47 = vpop.permute.xlu0 %1646 }
 0x4a3   : > { %v1655_v16 = vadd.f32 %v1647_v47, %v1635_v38 }
 0x4a4   : > { %v1641_v52 = vpop.permute.xlu1 %1640 }
 0x4a5   : > { %v1652_v1 = vadd.f32 %v1641_v52, %v1632_v39 }
 0x4a6   : > { %v1643_v46 = vpop.permute.xlu0 %1642 }
 0x4a7   : > { %v1653_v3 = vadd.f32 %v1643_v46, %v1633_v0 }
 0x4a8   : > { %v1665_v24 = vpop.permute.xlu1 %1664 }
 0x4a9   : > { %v1674_v17 = vadd.f32 %v1665_v24, %v1654_v4 }
 0x4aa   : > { %v1667_v56 = vpop.permute.xlu0 %1666 }
 0x4ab   : > { %v1675_v21 = vadd.f32 %v1667_v56, %v1655_v16 }
 0x4ac   : > { %v1661_v29 = vpop.permute.xlu1 %1660 }
 0x4ad   : > { %v1672_v33 = vadd.f32 %v1661_v29, %v1652_v1 }
 0x4ae   : > { %v1663_v25 = vpop.permute.xlu0 %1662 }
 0x4af   : > { %v1673_v15 = vadd.f32 %v1663_v25, %v1653_v3 }
 0x4b0   : > { %v1685_v41 = vpop.permute.xlu1 %1684 }
 0x4b1   : > { %v1694_v22 = vadd.f32 %v1685_v41, %v1674_v17 }
 0x4b2   : > { %v1687_v31 = vpop.permute.xlu0 %1686 }
 0x4b3   : > { %v1695_v35 = vadd.f32 %v1687_v31, %v1675_v21  ;;  %v1722_v48 = vadd.f32 %v2623_v7, %v1694_v22 }
 0x4b4   : > { %v1681_v49 = vpop.permute.xlu1 %1680 }
 0x4b5   : > { %v1692_v12 = vadd.f32 %v1681_v49, %v1672_v33  ;;  %v1723_v40 = vadd.f32 %v2625_v8, %v1695_v35  ;;  %v1726_v44 = vmax.f32 %v1722_v48, 0.0 }
 0x4b6   : > { %v1683_v18 = vpop.permute.xlu0 %1682 }
 0x4b7   : > { %v1720_v19 = vadd.f32 %v2619_v5, %v1692_v12  ;;  %v1693_v20 = vadd.f32 %v1683_v18, %v1673_v15  ;;  %v1754_v7 = vmul.f32 %v2631_v11, %v1726_v44 }
 0x4b9   : > { %v1724_v50 = vmax.f32 %v1720_v19, 0.0  ;;  %v1721_v34 = vadd.f32 %v2621_v6, %v1693_v20 }
 0x4bb   : > { %v1752_v36 = vmul.f32 %v2627_v9, %v1724_v50  ;;  %v1725_v37 = vmax.f32 %v1721_v34, 0.0  ;;  %v1727_v9 = vmax.f32 %v1723_v40, 0.0 }
 0x4bd   : > { %v1780_v42 = vadd.f32 %v2635_v13, %v1752_v36  ;;  %v1753_v43 = vmul.f32 %v2629_v10, %v1725_v37  ;;  %v1755_v8 = vmul.f32 %v2633_v51, %v1727_v9 }
 0x4bf   : > { %v1971_v5 = vpack.c.bf16 %v1780_v42, %v1780_v42  ;;  %v1781_v6 = vadd.f32 %v2637_v14, %v1753_v43 }
 0x4c1   : > { %v1972_v45 = vpack.c.bf16 %v1781_v6, %v1781_v6  ;;  %1801 = vst.msk [vmem:[%s433_s14] sm:$0xf] %vm1800_vm9, %v1971_v5 }
 0x4c3   : > { %1802 = vst.msk [vmem:[%s433_s14 + $0x4] sm:$0xf] %vm1800_vm9, %v1972_v45 }
 0x4c5   : > { %v1773_v10 = vpop.permute.xlu1 %1772 }
 0x4c6   : > { %v1782_v13 = vadd.f32 %v1773_v10, %v1754_v7 }
 0x4c7   : > { %v1778_v47 = vpop.permute.xlu0 %1777 }
 0x4c8   : > { %v1973_v52 = vpack.c.bf16 %v1782_v13, %v1782_v13  ;;  %v1783_v46 = vadd.f32 %v1778_v47, %v1755_v8 }
 0x4ca   : > { %1803 = vst.msk [vmem:[%s433_s14 + $0x8] sm:$0xf] %vm1800_vm9, %v1973_v52  ;;  %v1974_v53 = vpack.c.bf16 %v1783_v46, %v1783_v46 }
 0x4cc   : > { %1804 = vst.msk [vmem:[%s433_s14 + $0xc] sm:$0xf] %vm1800_vm9, %v1974_v53 }
 0x4cd PF: > { %s22_s21 = sadd.s32 1, %s2177_s21  }
 0x4ce   : > { %p19_p4 = scmp.ge.s32.totalorder %s22_s21, 4  }
 0x4d0   :  { %21 = sbr.rel (!%p19_p4) target bundleno = 1 (0x1), region = 101 }

// kernel: unet_decoder_forward.8
= control target key start
LH: loop header
LB: loop body
LE: loop exit
PB: predicated region body
PF: predicated region fallthrough
CT: control target
= control target key end

     0   :  { %s1906_s21 = smov 0   ;;  %s2212_s0 = inlined_call_operand.vmem [shape: bf16[2,16,80], index: 0, kind: input, shape index: {}]   ;;  %s2213_s1 = inlined_call_operand.vmem [shape: bf16[2,8,342], index: 1, kind: input, shape index: {}]   ;;  %s2214_s2 = inlined_call_operand.vmem [shape: bf16[80,342], index: 2, kind: input, shape index: {}]   ;;  %s2215_s3 = inlined_call_operand.vmem [shape: f32[1,288], index: 3, kind: input, shape index: {}]   ;;  %s2216_s4 = inlined_call_operand.vmem [shape: bf16[72,24], index: 4, kind: input, shape index: {}]   ;;  %s2217_s5 = inlined_call_operand.vmem [shape: f32[8,1], index: 5, kind: input, shape index: {}]   ;;  %s2218_s6 = inlined_call_operand.vmem [shape: f32[8,1], index: 6, kind: input, shape index: {}]   ;;  %s2219_s7 = inlined_call_operand.vmem [shape: f32[8,1], index: 7, kind: input, shape index: {}]   ;;  %s2220_s8 = inlined_call_operand.vmem [shape: bf16[72,8], index: 8, kind: input, shape index: {}]   ;;  %s2221_s9 = inlined_call_operand.vmem [shape: f32[8,1], index: 9, kind: input, shape index: {}]   ;;  %s2222_s10 = inlined_call_operand.vmem [shape: f32[8,1], index: 10, kind: input, shape index: {}]   ;;  %s2223_s11 = inlined_call_operand.vmem [shape: f32[8,1], index: 11, kind: input, shape index: {}]   ;;  %s2224_s12 = inlined_call_operand.vmem [shape: bf16[2,8,288], index: 12, kind: output, shape index: {}]  }
   0x1 LB: > { %s1594_s22 = sadd.s32 4294967295, %s1827_s21   ;;  %p1598_p0 = scmp.ge.s32.totalorder %s1827_s21, 1  ;;  %s1827_s21 = sphi %s1906_s21, %s22_s21  }
   0x2   : > { %p372_p1 = scmp.lt.s32.totalorder %s1827_s21, 3 }
   0x4   : > { %p373_p2 = pnand %p1598_p0, %p372_p1 }
   0x5   : > { %v1783_v0 = vld [vmem:[%s2214_s2 + $0x4] ss:$12 sps:$4 sm:$0xff] (!%p373_p2)   ;;  %v1829_v1 = vmov (!%p373_p2), 0.0   ;;  %v1785_v2 = vld [vmem:[%s2214_s2 + $0x8] ss:$12 sps:$4 sm:$0xff] (!%p373_p2)   ;;  %vm1830_vm0 = vmmov (!%p373_p2), 0  }
   0x6   : > { %376 = sbr.rel (%p373_p2) target bundleno = 1190 (0x4a6), region = 68  ;;  %1700 = vmatprep.subr.bf16.mxu1 (!%p373_p2), %v1829_v1  ;;  %1710 = vmatprep.mubr.msk.bf16.mxu1 (!%p373_p2), %vm1830_vm0, %v1829_v1  ;;  %v1786_v3 = vld [vmem:[%s2214_s2] ss:$12 sps:$4 sm:$0xff] (!%p373_p2)   ;;  %p419_p3 = scmp.lt.s32.totalorder (!%p373_p2), %s1594_s22, 1  ;;  %v1787_v4 = vld [vmem:[%s2214_s2 + $0x1c] ss:$12 sps:$4 sm:$0xff] (!%p373_p2)  }
   0x7   : > { %546 = vmatprep.subr.bf16.mxu0 (!%p373_p2), %v1783_v0  ;;  %1701 = vmatpush3.bf16.msra.mxu1 (!%p373_p2), %v1785_v2  ;;  %v1831_v5 = vmov (!%p373_p2), 0   ;;  %v1789_v6 = vld [vmem:[%s2214_s2 + $0x20] ss:$12 sps:$4 sm:$0xff] (!%p373_p2)   ;;  %v1790_v7 = vld [vmem:[%s2214_s2 + $0x18] ss:$12 sps:$4 sm:$0xff] (!%p373_p2)   ;;  %vm542_vm1 = vcmask (!%p373_p2), 654336  }
   0x8   : > { %578 = vmatprep.mubr.bf16.mxu0 (!%p373_p2), %v1831_v5  ;;  %547 = vmatpush1.bf16.msra.mxu0 (!%p373_p2), %v1786_v3  ;;  %v1791_v8 = vld [vmem:[%s2214_s2 + $0x34] ss:$12 sps:$4 sm:$0xff] (!%p373_p2)   ;;  %v1793_v9 = vld [vmem:[%s2214_s2 + $0x38] ss:$12 sps:$4 sm:$0xff] (!%p373_p2)   ;;  %v1794_v10 = vld [vmem:[%s2214_s2 + $0x30] ss:$12 sps:$4 sm:$0xff] (!%p373_p2)  }
   0x9   : > { %1702 = vmatprep.subr.bf16.mxu1 (!%p373_p2), %v1829_v1  ;;  %548 = vmatprep.subr.bf16.mxu0 (!%p373_p2), %v1787_v4  ;;  %v1795_v11 = vld [vmem:[%s2214_s2 + $0x4c] ss:$12 sps:$4 sm:$0xff] (!%p373_p2)   ;;  %v1797_v12 = vld [vmem:[%s2214_s2 + $0x50] ss:$12 sps:$4 sm:$0xff] (!%p373_p2)   ;;  %v1798_v13 = vld [vmem:[%s2214_s2 + $0x48] ss:$12 sps:$4 sm:$0xff] (!%p373_p2)  }
   0xa   : > { %1781 = vset.pattern.permute.xlu0 (!%p373_p2), %v1831_v5  ;;  %1782 = vset.pattern.permute.xlu1 (!%p373_p2), %v1831_v5  ;;  %v1799_v14 = vld [vmem:[%s2214_s2 + $0x64] ss:$12 sps:$4 sm:$0xff] (!%p373_p2)   ;;  %v1801_v15 = vld [vmem:[%s2214_s2 + $0x68] ss:$12 sps:$4 sm:$0xff] (!%p373_p2)   ;;  %v1802_v16 = vld [vmem:[%s2214_s2 + $0x60] ss:$12 sps:$4 sm:$0xff] (!%p373_p2)  }
   0xb   : > { %1703 = vmatpush3.bf16.msra.mxu1 (!%p373_p2), %v1789_v6  ;;  %vm651_vm2 = vcmask (!%p373_p2), 699392   ;;  %v1044_v20 = vld [vmem:[%s2217_s5] sm:$0xff] (!%p373_p2)  ;;  %vm737_vm3 = vcmask (!%p373_p2), 1043456   ;;  %vm721_vm4 = vcmask (!%p373_p2), 195584   ;;  %v1807_v40 = vld [vmem:[%s2216_s4 + $0x8] sm:$0xff] (!%p373_p2)   ;;  %v1808_v41 = vld [vmem:[%s2216_s4 + $0x10] sm:$0xff] (!%p373_p2)  }
   0xc   : > { %549 = vmatpush1.bf16.msra.mxu0 (!%p373_p2), %v1790_v7  ;;  %1704 = vmatprep.subr.bf16.mxu1 (!%p373_p2), %v1829_v1  ;;  %v1806_v38 = vld [vmem:[%s2216_s4] sm:$0xff] (!%p373_p2)   ;;  %v1809_v42 = vld [vmem:[%s2216_s4 + $0x18] sm:$0xff] (!%p373_p2)   ;;  %s1832_s26 = smov (!%p373_p2), 127   ;;  %s1833_s27 = smov (!%p373_p2), 126   ;;  %vm909_vm5 = vcmask (!%p373_p2), 1039360   ;;  %vm927_vm6 = vcmask (!%p373_p2), 1031168  }
   0xd   : > { %s2226_s22 = smov (!%p419_p3, %s1594_s22), 1  ;;  %550 = vmatprep.subr.bf16.mxu0 %v1791_v8  ;;  %1047 = vperm.xlu0 %1781, %v1044_v20   ;;  %v1810_v43 = vld [vmem:[%s2216_s4 + $0x20] ss:$0 sps:$4 sm:$0xff]   ;;  %s1835_s29 = smov 109   ;;  %vm945_vm7 = vcmask 900096   ;;  %vm963_vm8 = vcmask 891904  }
   0xe   : > { %s1672_s23 = sshll.u32 %s2226_s22, 3  ;;  %s1760_s25 = smul.u32 12, %s2226_s22  ;;  %vm981_vm9 = vcmask 883712   ;;  %vm999_vm10 = vcmask 752640   ;;  %vm1017_vm11 = vcmask 744448   ;;  %vm1035_vm12 = vcmask 736256  }
   0xf   : > { %s423_s30 = scalar_lea.vmem %s2212_s0, %s1672_s23  ;;  %1705 = vmatpush3.bf16.msra.mxu1 %v1793_v9  ;;  %s1837_s13 = smov 92   ;;  %vm1094_vm13 = vcmask 150528   ;;  %vm1117_vm14 = vcmask 1043608   ;;  %vm1118_vm15 = vcmask 1047556  }
  0x10   : > { %551 = vmatpush1.bf16.msra.mxu0 %v1794_v10  ;;  %1706 = vmatprep.subr.bf16.mxu1 %v1829_v1  ;;  %v1803_v17 = vld [vmem:[%s423_s30] sm:$0xff]   ;;  %s428_s28 = scalar_lea.vmem %s2213_s1, %s1760_s25  ;;  %s1836_s30 = smov 108   ;;  %1095 = vst.msk [vmem:[#allocation3] sm:$0xf] %vm1094_vm13, %v1831_v5  ;;  %vm1123_vm13 = vcmask 699800  }
  0x11   : > { %552 = vmatprep.subr.bf16.mxu0 %v1795_v11  ;;  %v655_v18 = vld [vmem:[%s428_s28] sm:$0xff]  ;;  %v656_v19 = vld [vmem:[%s428_s28 + $0x8] sm:$0xf]  ;;  %s1834_s28 = smov 110   ;;  %s1838_s14 = smov 91  }
  0x12   : > { %658 = vst.msk [vmem:[#allocation2 + $0x20] sm:$0xf] %vm651_vm2, %v656_v19  ;;  %v1634_v33 = vcombine.high %v655_v18, %v655_v18  ;;  %v1633_v34 = vcombine.low %v655_v18, %v655_v18  ;;  %s1839_s15 = smov 90   ;;  %s1840_s24 = smov 19  }
  0x13   : > { %1707 = vmatpush3.bf16.msra.mxu1 %v1797_v12 }
  0x14   : > { %553 = vmatpush1.bf16.msra.mxu0 %v1798_v13  ;;  %1708 = vmatprep.subr.bf16.mxu1 %v1829_v1  ;;  %v739_v36 = vsel %vm737_vm3, %v1633_v34, 0 }
  0x15   : > { %554 = vmatprep.subr.bf16.mxu0 %v1799_v14 }
  0x17   : > { %1709 = vmatpush3.bf16.msra.mxu1 %v1801_v15 }
  0x18   : > { %555 = vmatpush1.bf16.msra.mxu0 %v1802_v16  ;;  %1714 = vmatprep.subr.bf16.mxu1 %v1829_v1 }
  0x19   : > { %v1805_v35 = vld [vmem:[#allocation2 + $0x20] ss:$0 sps:$4 sm:$0xff]  }
  0x1a   : > { %1711 = vmatmul.mubr.msk.bf16.vlgmr.msra.gmra.mrb[0].mxu1 %vm542_vm1, %v1803_v17  ;;  %v745_v39 = vsel %vm737_vm3, %v1805_v35, 0 }
  0x1b   : > { %1619 = vmatmul.mubr.msk.bf16.vlgmr.msra.gmra.mrb[0].mxu0 %vm542_vm1, %v1803_v17  ;;  %1718 = vmatprep.mubr.msk.bf16.mxu1 %vm1830_vm0, %v1829_v1  ;;  %vm1112_vm1 = vcmask 154624  }
  0x1c   : > { %779 = vmatprep.mubr.bf16.mxu0 %v1831_v5 }
  0xed   : > { %v623_v21 = vpop.f32.mrb[0].mxu1 }
  0xee   : > { %v1674_v22 = vpack.c.bf16 %v623_v21, %v623_v21  ;;  %v580_v23 = vpop.f32.mrb[0].mxu0  ;;  %v1712_v24 = vpop.f32.mrb[1].mxu1 }
  0xef   : > { %v582_v25 = vpop.f32.mrb[1].mxu0  ;;  %v626_v26 = vpop.f32.mrb[2].mxu1 }
  0xf0   : > { %652 = vst.msk [vmem:[#allocation2 + $0x8] sm:$0xf] %vm651_vm2, %v1674_v22  ;;  %v1676_v27 = vpack.c.bf16 %v626_v26, %v626_v26  ;;  %v584_v28 = vpop.f32.mrb[2].mxu0  ;;  %v1713_v29 = vpop.f32.mrb[3].mxu1  ;;  %v1056_v22 = vld [vmem:[%s2218_s6] sm:$0xff] }
  0xf1   : > { %v586_v30 = vpop.f32.mrb[3].mxu0  ;;  %v1819_v31 = vpack.c.bf16 %v584_v28, %v580_v23  ;;  %v1065_v23 = vld [vmem:[%s2219_s7] sm:$0xff]  ;;  %v2072_v24 = vpop.permute.xlu0 %1047 }
  0xf2   : > { %654 = vst.msk [vmem:[#allocation2 + $0x14] sm:$0xf] %vm651_vm2, %v1676_v27  ;;  %v1820_v32 = vpack.c.bf16 %v586_v30, %v582_v25  ;;  %vm1119_vm2 = vmor %vm1118_vm15, %vm1117_vm14  ;;  %vm1167_vm14 = vcmask 64512  }
  0xf4   : > { %747 = vmatprep.subr.bf16.mxu0 %v1820_v32 }
  0xf5   : > { %748 = vmatpush1.bf16.msra.mxu0 %v1819_v31 }
  0xf6   : > { %1636 = vmatprep.subr.msk.bf16.mxu0 %vm737_vm3, %v1634_v33 }
  0xf9   : > { %v1804_v37 = vld [vmem:[#allocation2 + $0x8] ss:$12 sps:$4 sm:$0xff]   ;;  %750 = vmatpush1.bf16.msra.mxu0 %v739_v36 }
  0xfa   : > { %1715 = vmatpush3.bf16.msra.mxu1 %v1804_v37 }
  0xfb   : > { %1716 = vmatprep.subr.bf16.mxu1 %v1829_v1 }
  0xfc   : > { %1637 = vmatmul.mubr.msk.bf16.vlgmr.msra.gmra.mrb[4].mxu0 %vm721_vm4, %v1806_v38 }
  0xfd   : > { %789 = vmatprep.mubr.bf16.mxu0 %v1831_v5 }
  0xfe   : > { %1717 = vmatpush3.bf16.msra.mxu1 %v745_v39 }
  0xff   : > { %1738 = vmatprep.subr.bf16.mxu1 %v1829_v1 }
 0x101   : > { %1719 = vmatmul.mubr.msk.bf16.vlgmr.msra.gmra.mrb[4].mxu1 %vm721_vm4, %v1806_v38 }
 0x102   : > { %1722 = vmatprep.mubr.msk.bf16.mxu1 %vm1830_vm0, %v1829_v1 }
 0x104   : > { %1638 = vmatmul.mubr.msk.bf16.gmra.mrb[8].mxu0 %vm721_vm4, %v1807_v40 }
 0x105   : > { %799 = vmatprep.mubr.bf16.mxu0 %v1831_v5 }
 0x109   : > { %1723 = vmatmul.mubr.msk.bf16.gmra.mrb[8].mxu1 %vm721_vm4, %v1807_v40 }
 0x10a   : > { %1726 = vmatprep.mubr.msk.bf16.mxu1 %vm1830_vm0, %v1829_v1 }
 0x10c   : > { %1639 = vmatmul.mubr.msk.bf16.gmra.mrb[12].mxu0 %vm721_vm4, %v1808_v41 }
 0x10d   : > { %809 = vmatprep.mubr.bf16.mxu0 %v1831_v5 }
 0x111   : > { %1727 = vmatmul.mubr.msk.bf16.gmra.mrb[12].mxu1 %vm721_vm4, %v1808_v41 }
 0x112   : > { %1730 = vmatprep.mubr.msk.bf16.mxu1 %vm1830_vm0, %v1829_v1 }
 0x114   : > { %1640 = vmatmul.mubr.msk.bf16.gmra.mrb[16].mxu0 %vm721_vm4, %v1809_v42 }
 0x115   : > { %819 = vmatprep.mubr.bf16.mxu0 %v1831_v5 }
 0x119   : > { %1731 = vmatmul.mubr.msk.bf16.gmra.mrb[16].mxu1 %vm721_vm4, %v1809_v42 }
 0x11a   : > { %1734 = vmatprep.mubr.msk.bf16.mxu1 %vm1830_vm0, %v1829_v1 }
 0x11c   : > { %1641 = vmatmul.mubr.msk.bf16.gmra.mrb[20].mxu0 %vm721_vm4, %v1810_v43 }
 0x11d   : > { %1224 = vmatprep.mubr.bf16.mxu0 %v1831_v5 }
 0x121   : > { %1735 = vmatmul.mubr.msk.bf16.gmra.mrb[20].mxu1 %vm721_vm4, %v1810_v43  ;;  %vm1121_vm4 = vcmask 412672  }
 0x122   : > { %1740 = vmatprep.mubr.msk.bf16.mxu1 %vm1830_vm0, %v1829_v1 }
 0x1cf   : > { %v2036_v44 = vpop.f32.mrb[4].mxu0 }
 0x1d0   : > { %v2038_v45 = vpop.f32.mrb[5].mxu0 }
 0x1d1   : > { %v785_v46 = vpop.f32.mrb[6].mxu0 }
 0x1d2   : > { %903 = vrot.lane.b32.xlu0 %v785_v46, %s1832_s26  ;;  %v787_v47 = vpop.f32.mrb[7].mxu0 }
 0x1d4   : > { %v2041_v48 = vpop.f32.mrb[4].mxu1 }
 0x1d5   : > { %v1720_v49 = vpop.f32.mrb[5].mxu1 }
 0x1d6   : > { %v865_v50 = vpop.f32.mrb[6].mxu1  ;;  %905 = vrot.lane.b32.xlu0 %v787_v47, %s1832_s26 }
 0x1d7   : > { %907 = vrot.lane.b32.xlu1 %v865_v50, %s1832_s26  ;;  %v1721_v51 = vpop.f32.mrb[7].mxu1  ;;  %v791_v52 = vpop.f32.mrb[8].mxu0 }
 0x1d8   : > { %v793_v53 = vpop.f32.mrb[9].mxu0 }
 0x1d9   : > { %v795_v54 = vpop.f32.mrb[10].mxu0 }
 0x1da   : > { %v797_v55 = vpop.f32.mrb[11].mxu0 }
 0x1dc   : > { %v870_v56 = vpop.f32.mrb[8].mxu1 }
 0x1dd   : > { %925 = vrot.lane.b32.xlu1 %v870_v56, %s1833_s27  ;;  %v1724_v57 = vpop.f32.mrb[9].mxu1 }
 0x1de   : > { %v873_v58 = vpop.f32.mrb[10].mxu1 }
 0x1df   : > { %v1725_v59 = vpop.f32.mrb[11].mxu1  ;;  %943 = vrot.lane.b32.xlu0 %v873_v58, %s1834_s28  ;;  %v801_v60 = vpop.f32.mrb[12].mxu0 }
 0x1e0   : > { %v803_v61 = vpop.f32.mrb[13].mxu0 }
 0x1e1   : > { %921 = vrot.lane.b32.xlu1 %v791_v52, %s1833_s27  ;;  %v805_v62 = vpop.f32.mrb[14].mxu0 }
 0x1e2   : > { %v807_v63 = vpop.f32.mrb[15].mxu0 }
 0x1e3   : > { %923 = vrot.lane.b32.xlu0 %v793_v53, %s1833_s27 }
 0x1e4   : > { %v878_v0 = vpop.f32.mrb[12].mxu1 }
 0x1e5   : > { %941 = vrot.lane.b32.xlu1 %v797_v55, %s1834_s28  ;;  %v1728_v2 = vpop.f32.mrb[13].mxu1 }
 0x1e6   : > { %v881_v3 = vpop.f32.mrb[14].mxu1 }
 0x1e7   : > { %v1729_v4 = vpop.f32.mrb[15].mxu1  ;;  %939 = vrot.lane.b32.xlu0 %v795_v54, %s1834_s28  ;;  %v811_v6 = vpop.f32.mrb[16].mxu0 }
 0x1e8   : > { %v813_v7 = vpop.f32.mrb[17].mxu0 }
 0x1e9   : > { %961 = vrot.lane.b32.xlu1 %v878_v0, %s1835_s29  ;;  %v815_v8 = vpop.f32.mrb[18].mxu0 }
 0x1ea   : > { %v817_v9 = vpop.f32.mrb[19].mxu0 }
 0x1eb   : > { %979 = vrot.lane.b32.xlu0 %v881_v3, %s1836_s30 }
 0x1ec   : > { %v886_v10 = vpop.f32.mrb[16].mxu1 }
 0x1ed   : > { %957 = vrot.lane.b32.xlu1 %v801_v60, %s1835_s29  ;;  %v1732_v11 = vpop.f32.mrb[17].mxu1 }
 0x1ee   : > { %v889_v12 = vpop.f32.mrb[18].mxu1 }
 0x1ef   : > { %959 = vrot.lane.b32.xlu0 %v803_v61, %s1835_s29  ;;  %v1733_v13 = vpop.f32.mrb[19].mxu1  ;;  %v821_v14 = vpop.f32.mrb[20].mxu0 }
 0x1f0   : > { %v823_v15 = vpop.f32.mrb[21].mxu0 }
 0x1f1   : > { %977 = vrot.lane.b32.xlu1 %v807_v63, %s1836_s30  ;;  %v825_v16 = vpop.f32.mrb[22].mxu0 }
 0x1f2   : > { %v826_v17 = vpop.f32.mrb[23].mxu0 }
 0x1f3   : > { %975 = vrot.lane.b32.xlu0 %v805_v62, %s1836_s30 }
 0x1f4   : > { %v894_v18 = vpop.f32.mrb[20].mxu1 }
 0x1f5   : > { %997 = vrot.lane.b32.xlu1 %v886_v10, %s1837_s13  ;;  %v1736_v19 = vpop.f32.mrb[21].mxu1 }
 0x1f6   : > { %v897_v20 = vpop.f32.mrb[22].mxu1 }
 0x1f7   : > { %1015 = vrot.lane.b32.xlu0 %v889_v12, %s1838_s14  ;;  %v1737_v21 = vpop.f32.mrb[23].mxu1 }
 0x1f9   : > { %993 = vrot.lane.b32.xlu1 %v811_v6, %s1837_s13 }
 0x1fb   : > { %995 = vrot.lane.b32.xlu0 %v813_v7, %s1837_s13 }
 0x1fd   : > { %1011 = vrot.lane.b32.xlu1 %v815_v8, %s1838_s14 }
 0x1ff   : > { %1031 = vrot.lane.b32.xlu0 %v823_v15, %s1839_s15 }
 0x201   : > { %1013 = vrot.lane.b32.xlu1 %v817_v9, %s1838_s14 }
 0x203   : > { %1059 = vperm.xlu0 %1781, %v1056_v22   ;;  %v1076_v22 = vlaneseq }
 0x205   : > { %1033 = vrot.lane.b32.xlu1 %v894_v18, %s1839_s15 }
 0x209   : > { %1029 = vrot.lane.b32.xlu1 %v821_v14, %s1839_s15 }
 0x20d   : > { %1068 = vperm.xlu1 %1782, %v1065_v23  }
 0x244   : > { %v904_v25 = vpop.permute.xlu0 %903 }
 0x248   : > { %v906_v27 = vpop.permute.xlu0 %905 }
 0x249   : > { %v908_v26 = vpop.permute.xlu1 %907  ;;  %v910_v46 = vsel %vm909_vm5, %v904_v25, %v906_v27 }
 0x24a   : > { %v911_v42 = vsel %vm909_vm5, %v906_v27, %v908_v26  ;;  %v917_v43 = vadd.f32 %v908_v26, %v2041_v48  ;;  %v915_v54 = vadd.f32 %v910_v46, %v2036_v44 }
 0x24b   : > { %v916_v50 = vadd.f32 %v911_v42, %v2038_v45 }
 0x24f   : > { %v926_v28 = vpop.permute.xlu1 %925 }
 0x250   : > { %v935_v49 = vadd.f32 %v926_v28, %v917_v43 }
 0x251   : > { %v944_v29 = vpop.permute.xlu0 %943 }
 0x252   : > { %v953_v57 = vadd.f32 %v944_v29, %v935_v49 }
 0x253   : > { %v922_v30 = vpop.permute.xlu1 %921 }
 0x255   : > { %v924_v31 = vpop.permute.xlu0 %923 }
 0x256   : > { %v929_v47 = vsel %vm927_vm6, %v924_v31, %v926_v28  ;;  %v928_v53 = vsel %vm927_vm6, %v922_v30, %v924_v31 }
 0x257   : > { %v942_v32 = vpop.permute.xlu1 %941  ;;  %v934_v55 = vadd.f32 %v929_v47, %v916_v50  ;;  %v933_v58 = vadd.f32 %v928_v53, %v915_v54 }
 0x258   : > { %v947_v56 = vsel %vm945_vm7, %v942_v32, %v944_v29  ;;  %v1077_v29 = vshrl.u32 %v1076_v22, 7 }
 0x259   : > { %v940_v33 = vpop.permute.xlu0 %939  ;;  %v952_v63 = vadd.f32 %v947_v56, %v934_v55 }
 0x25a   : > { %v946_v48 = vsel %vm945_vm7, %v940_v33, %v942_v32  ;;  %v1078_v33 = vsub.s32 0, %v1077_v29 }
 0x25b   : > { %v962_v34 = vpop.permute.xlu1 %961  ;;  %v951_v62 = vadd.f32 %v946_v48, %v933_v58 }
 0x25c   : > { %v971_v61 = vadd.f32 %v962_v34, %v953_v57  ;;  %v1481_v57 = vld [vmem:[%s2221_s9] sm:$0xff] }
 0x25d   : > { %v980_v35 = vpop.permute.xlu0 %979 }
 0x25e   : > { %v989_v8 = vadd.f32 %v980_v35, %v971_v61 }
 0x25f   : > { %v958_v36 = vpop.permute.xlu1 %957 }
 0x261   : > { %v960_v38 = vpop.permute.xlu0 %959 }
 0x262   : > { %v964_v60 = vsel %vm963_vm8, %v958_v36, %v960_v38  ;;  %v965_v45 = vsel %vm963_vm8, %v960_v38, %v962_v34  ;;  %v1082_v34 = vsub.s32 1, %v1077_v29  ;;  %v1074_v36 = vld [vmem:[%s2215_s3] sm:$0x7] }
 0x263   : > { %v978_v37 = vpop.permute.xlu1 %977  ;;  %v969_v2 = vadd.f32 %v964_v60, %v951_v62  ;;  %v970_v3 = vadd.f32 %v965_v45, %v952_v63 }
 0x264   : > { %v983_v6 = vsel %vm981_vm9, %v978_v37, %v980_v35  ;;  %v1083_v42 = vrot.slane %v1074_v36, %v1082_v34 }
 0x265   : > { %v976_v40 = vpop.permute.xlu0 %975  ;;  %v988_v13 = vadd.f32 %v983_v6, %v970_v3  ;;  %v1813_v3 = vld [vmem:[%s2220_s8] sm:$0xff]   ;;  %v1815_v6 = vld [vmem:[%s2220_s8 + $0x8] sm:$0xff]  }
 0x266   : > { %v982_v44 = vsel %vm981_vm9, %v976_v40, %v978_v37  ;;  %v1086_v37 = vsub.s32 2, %v1077_v29 }
 0x267   : > { %v998_v39 = vpop.permute.xlu1 %997  ;;  %v987_v9 = vadd.f32 %v982_v44, %v969_v2 }
 0x268   : > { %v1007_v12 = vadd.f32 %v998_v39, %v989_v8  ;;  %v1817_v8 = vld [vmem:[%s2220_s8 + $0x18] sm:$0xff]  }
 0x269   : > { %v1016_v51 = vpop.permute.xlu0 %1015 }
 0x26a   : > { %v1025_v23 = vadd.f32 %v1016_v51, %v1007_v12 }
 0x26b   : > { %v994_v41 = vpop.permute.xlu1 %993 }
 0x26d   : > { %v996_v0 = vpop.permute.xlu0 %995 }
 0x26e   : > { %v1000_v7 = vsel %vm999_vm10, %v994_v41, %v996_v0  ;;  %v1001_v10 = vsel %vm999_vm10, %v996_v0, %v998_v39  ;;  %v1079_v41 = vrot.slane %v1074_v36, %v1078_v33 }
 0x26f   : > { %v1012_v52 = vpop.permute.xlu1 %1011  ;;  %v1005_v14 = vadd.f32 %v1000_v7, %v987_v9  ;;  %v1006_v19 = vadd.f32 %v1001_v10, %v988_v13  ;;  %v1816_v7 = vld [vmem:[%s2220_s8 + $0x10] sm:$0xff]   ;;  %v1818_v9 = vld [vmem:[%s2220_s8 + $0x20] ss:$0 sps:$4 sm:$0xff]  }
 0x271   : > { %v1032_v15 = vpop.permute.xlu0 %1031 }
 0x273   : > { %v1014_v59 = vpop.permute.xlu1 %1013 }
 0x274   : > { %v1018_v11 = vsel %vm1017_vm11, %v1012_v52, %v1014_v59  ;;  %v1019_v17 = vsel %vm1017_vm11, %v1014_v59, %v1016_v51 }
 0x275   : > { %v1023_v20 = vadd.f32 %v1018_v11, %v1005_v14  ;;  %v1024_v25 = vadd.f32 %v1019_v17, %v1006_v19 }
 0x277   : > { %v1034_v4 = vpop.permute.xlu1 %1033 }
 0x278   : > { %v1037_v21 = vsel %vm1035_vm12, %v1032_v15, %v1034_v4  ;;  %v1043_v27 = vadd.f32 %v1034_v4, %v1025_v23 }
 0x279   : > { %v1042_v28 = vadd.f32 %v1037_v21, %v1024_v25 }
 0x27a   : > { %v1052_v31 = vadd.f32 %v2072_v24, %v1043_v27 }
 0x27b   : > { %v1030_v16 = vpop.permute.xlu1 %1029  ;;  %v1051_v32 = vadd.f32 %v2072_v24, %v1042_v28 }
 0x27c   : > { %v1036_v18 = vsel %vm1035_vm12, %v1030_v16, %v1032_v15  ;;  %v1055_v39 = vmax.f32 %v1052_v31, 0.0 }
 0x27d   : > { %v1041_v26 = vadd.f32 %v1036_v18, %v1023_v20  ;;  %v1054_v40 = vmax.f32 %v1051_v32, 0.0 }
 0x27f   : > { %v1050_v30 = vadd.f32 %v2072_v24, %v1041_v26  ;;  %v1087_v24 = vrot.slane %v1074_v36, %v1086_v37 }
 0x281   : > { %v1053_v35 = vmax.f32 %v1050_v30, 0.0 }
 0x282   : > { %v1060_v38 = vpop.permute.xlu0 %1059 }
 0x283   : > { %v1062_v43 = vmul.f32 %v1060_v38, %v1053_v35  ;;  %v1063_v46 = vmul.f32 %v1060_v38, %v1054_v40  ;;  %v1064_v47 = vmul.f32 %v1060_v38, %v1055_v39 }
 0x28c   : > { %v1069_v49 = vpop.permute.xlu1 %1068 }
 0x28d   : > { %v1071_v50 = vadd.f32 %v1069_v49, %v1062_v43  ;;  %v1072_v51 = vadd.f32 %v1069_v49, %v1063_v46  ;;  %v1073_v52 = vadd.f32 %v1069_v49, %v1064_v47 }
 0x28f   : > { %v1091_v53 = vmul.f32 %v1079_v41, %v1071_v50  ;;  %v1092_v54 = vmul.f32 %v1083_v42, %v1072_v51  ;;  %v1093_v55 = vmul.f32 %v1087_v24, %v1073_v52  ;;  %v1502_v51 = vld [vmem:[%s2223_s11] sm:$0xff] }
 0x290   : > { %v1493_v52 = vld [vmem:[%s2222_s10] sm:$0xff] }
 0x291   : > { %v1678_v56 = vpack.c.bf16 %v1093_v55, %v1093_v55  ;;  %v1677_v48 = vpack.c.bf16 %v1092_v54, %v1091_v53 }
 0x293   : > { %1109 = vrot.lane.b32.xlu1 %v1678_v56, %s1840_s24  ;;  %1107 = vrot.lane.b32.xlu0 %v1677_v48, %s1840_s24 }
 0x297   : > { %1484 = vperm.xlu0 %1781, %v1481_v57  }
 0x305   : > { %v1108_v58 = vpop.permute.xlu0 %1107  ;;  %v1110_v60 = vpop.permute.xlu1 %1109 }
 0x306   : > { %v1111_v59 = vrot.slane %v1108_v58, 4 }
 0x308   : > { %v1113_v45 = vsel %vm1112_vm1, %v1111_v59, %v1108_v58  ;;  %v1114_v61 = vsel %vm1112_vm1, %v1111_v59, %v1110_v60 }
 0x309   : > { %1120 = vst.msk [vmem:[#allocation3] sm:$0xff] %vm1119_vm2, %v1113_v45 }
 0x30a   : > { %1122 = vst.msk [vmem:[#allocation3 + $0x8] sm:$0xf] %vm1121_vm4, %v1114_v61 }
 0x30b   : > { %1124 = vst.msk [vmem:[#allocation3 + $0x8] sm:$0xf] %vm1123_vm13, %v1831_v5 }
 0x310   : > { %v1134_v62 = vld [vmem:[#allocation3] sm:$0xff] }
 0x311   : > { %v1655_v63 = vcombine.high %v1134_v62, %v1134_v62  ;;  %v1654_v0 = vcombine.low %v1134_v62, %v1134_v62 }
 0x312   : > { %v1814_v44 = vld [vmem:[#allocation3 + $0x8] ss:$0 sps:$4 sm:$0xff]  }
 0x313   : > { %1657 = vmatprep.subr.msk.bf16.mxu0 %vm737_vm3, %v1655_v63  ;;  %v1184_v2 = vsel %vm737_vm3, %v1654_v0, 0  ;;  %v1190_v4 = vsel %vm737_vm3, %v1814_v44, 0 }
 0x314   : > { %1193 = vmatpush1.bf16.msra.mxu0 %v1184_v2  ;;  %1739 = vmatpush3.bf16.msra.mxu1 %v1190_v4 }
 0x316   : > { %v2180_v53 = vpop.permute.xlu0 %1484 }
 0x317   : > { %1658 = vmatmul.mubr.msk.bf16.vlgmr.msra.gmra.mrb[24].mxu0 %vm1167_vm14, %v1813_v3  ;;  %1741 = vmatmul.mubr.msk.bf16.vlgmr.msra.gmra.mrb[24].mxu1 %vm1167_vm14, %v1813_v3 }
 0x318   : > { %1234 = vmatprep.mubr.bf16.mxu0 %v1831_v5  ;;  %1744 = vmatprep.mubr.msk.bf16.mxu1 %vm1830_vm0, %v1829_v1 }
 0x31f   : > { %1659 = vmatmul.mubr.msk.bf16.gmra.mrb[28].mxu0 %vm1167_vm14, %v1815_v6  ;;  %1745 = vmatmul.mubr.msk.bf16.gmra.mrb[28].mxu1 %vm1167_vm14, %v1815_v6 }
 0x320   : > { %1244 = vmatprep.mubr.bf16.mxu0 %v1831_v5  ;;  %1748 = vmatprep.mubr.msk.bf16.mxu1 %vm1830_vm0, %v1829_v1 }
 0x327   : > { %1660 = vmatmul.mubr.msk.bf16.gmra.mrb[32].mxu0 %vm1167_vm14, %v1816_v7  ;;  %1749 = vmatmul.mubr.msk.bf16.gmra.mrb[32].mxu1 %vm1167_vm14, %v1816_v7 }
 0x328   : > { %1254 = vmatprep.mubr.bf16.mxu0 %v1831_v5  ;;  %1752 = vmatprep.mubr.msk.bf16.mxu1 %vm1830_vm0, %v1829_v1 }
 0x32f   : > { %1661 = vmatmul.mubr.msk.bf16.gmra.mrb[36].mxu0 %vm1167_vm14, %v1817_v8  ;;  %1753 = vmatmul.mubr.msk.bf16.gmra.mrb[36].mxu1 %vm1167_vm14, %v1817_v8 }
 0x330   : > { %1264 = vmatprep.mubr.bf16.mxu0 %v1831_v5  ;;  %1756 = vmatprep.mubr.msk.bf16.mxu1 %vm1830_vm0, %v1829_v1  ;;  %vm1525_vm0 = vcmask 257024  }
 0x337   : > { %1662 = vmatmul.mubr.msk.bf16.gmra.mrb[40].mxu0 %vm1167_vm14, %v1818_v9  ;;  %1757 = vmatmul.mubr.msk.bf16.gmra.mrb[40].mxu1 %vm1167_vm14, %v1818_v9 }
 0x3ea   : > { %v2144_v10 = vpop.f32.mrb[24].mxu0  ;;  %v2146_v11 = vpop.f32.mrb[24].mxu1 }
 0x3eb   : > { %v2148_v12 = vpop.f32.mrb[25].mxu0  ;;  %v1742_v13 = vpop.f32.mrb[25].mxu1 }
 0x3ec   : > { %v1230_v14 = vpop.f32.mrb[26].mxu0  ;;  %v1310_v5 = vpop.f32.mrb[26].mxu1 }
 0x3ed   : > { %1348 = vrot.lane.b32.xlu0 %v1230_v14, %s1832_s26  ;;  %v1232_v1 = vpop.f32.mrb[27].mxu0  ;;  %v1743_v15 = vpop.f32.mrb[27].mxu1 }
 0x3ee   : > { %1350 = vrot.lane.b32.xlu1 %v1232_v1, %s1832_s26 }
 0x3f1   : > { %1352 = vrot.lane.b32.xlu0 %v1310_v5, %s1832_s26 }
 0x3f2   : > { %v1236_v16 = vpop.f32.mrb[28].mxu0  ;;  %v1315_v17 = vpop.f32.mrb[28].mxu1 }
 0x3f3   : > { %1365 = vrot.lane.b32.xlu1 %v1236_v16, %s1833_s27  ;;  %v1238_v18 = vpop.f32.mrb[29].mxu0  ;;  %v1746_v19 = vpop.f32.mrb[29].mxu1 }
 0x3f4   : > { %v1240_v20 = vpop.f32.mrb[30].mxu0  ;;  %v1318_v21 = vpop.f32.mrb[30].mxu1 }
 0x3f5   : > { %1367 = vrot.lane.b32.xlu0 %v1238_v18, %s1833_s27  ;;  %v1242_v22 = vpop.f32.mrb[31].mxu0  ;;  %v1747_v23 = vpop.f32.mrb[31].mxu1 }
 0x3f7   : > { %1369 = vrot.lane.b32.xlu1 %v1315_v17, %s1833_s27 }
 0x3f9   : > { %1382 = vrot.lane.b32.xlu0 %v1240_v20, %s1834_s28 }
 0x3fa   : > { %v1246_v25 = vpop.f32.mrb[32].mxu0  ;;  %v1323_v26 = vpop.f32.mrb[32].mxu1 }
 0x3fb   : > { %1384 = vrot.lane.b32.xlu1 %v1242_v22, %s1834_s28  ;;  %v1248_v27 = vpop.f32.mrb[33].mxu0  ;;  %v1750_v28 = vpop.f32.mrb[33].mxu1 }
 0x3fc   : > { %v1250_v29 = vpop.f32.mrb[34].mxu0  ;;  %v1326_v30 = vpop.f32.mrb[34].mxu1 }
 0x3fd   : > { %1386 = vrot.lane.b32.xlu0 %v1318_v21, %s1834_s28  ;;  %v1252_v31 = vpop.f32.mrb[35].mxu0  ;;  %v1751_v32 = vpop.f32.mrb[35].mxu1 }
 0x3ff   : > { %1399 = vrot.lane.b32.xlu1 %v1246_v25, %s1835_s29 }
 0x401   : > { %1401 = vrot.lane.b32.xlu0 %v1248_v27, %s1835_s29 }
 0x402   : > { %v1256_v33 = vpop.f32.mrb[36].mxu0  ;;  %v1331_v34 = vpop.f32.mrb[36].mxu1 }
 0x403   : > { %1403 = vrot.lane.b32.xlu1 %v1323_v26, %s1835_s29  ;;  %v1258_v35 = vpop.f32.mrb[37].mxu0  ;;  %v1754_v36 = vpop.f32.mrb[37].mxu1 }
 0x404   : > { %v1260_v37 = vpop.f32.mrb[38].mxu0  ;;  %v1334_v38 = vpop.f32.mrb[38].mxu1 }
 0x405   : > { %1416 = vrot.lane.b32.xlu0 %v1250_v29, %s1836_s30  ;;  %v1262_v39 = vpop.f32.mrb[39].mxu0  ;;  %v1755_v40 = vpop.f32.mrb[39].mxu1 }
 0x407   : > { %1418 = vrot.lane.b32.xlu1 %v1252_v31, %s1836_s30 }
 0x409   : > { %1420 = vrot.lane.b32.xlu0 %v1326_v30, %s1836_s30 }
 0x40a   : > { %v1266_v41 = vpop.f32.mrb[40].mxu0  ;;  %v1339_v42 = vpop.f32.mrb[40].mxu1 }
 0x40b   : > { %1433 = vrot.lane.b32.xlu1 %v1256_v33, %s1837_s13  ;;  %v1268_v43 = vpop.f32.mrb[41].mxu0  ;;  %v1758_v46 = vpop.f32.mrb[41].mxu1 }
 0x40c   : > { %v1270_v47 = vpop.f32.mrb[42].mxu0  ;;  %v1342_v24 = vpop.f32.mrb[42].mxu1 }
 0x40d   : > { %1435 = vrot.lane.b32.xlu0 %v1258_v35, %s1837_s13  ;;  %v1271_v49 = vpop.f32.mrb[43].mxu0  ;;  %v1759_v50 = vpop.f32.mrb[43].mxu1 }
 0x40f   : > { %1437 = vrot.lane.b32.xlu1 %v1331_v34, %s1837_s13 }
 0x411   : > { %1452 = vrot.lane.b32.xlu0 %v1262_v39, %s1838_s14 }
 0x413   : > { %1450 = vrot.lane.b32.xlu1 %v1260_v37, %s1838_s14 }
 0x415   : > { %1467 = vrot.lane.b32.xlu0 %v1266_v41, %s1839_s15 }
 0x417   : > { %1454 = vrot.lane.b32.xlu1 %v1334_v38, %s1838_s14  ;;  %s433_s14 = scalar_lea.vmem %s2224_s12, %s1760_s25 }
 0x419   : > { %1471 = vrot.lane.b32.xlu0 %v1339_v42, %s1839_s15 }
 0x41b   : > { %1469 = vrot.lane.b32.xlu1 %v1268_v43, %s1839_s15 }
 0x41d   : > { %1505 = vperm.xlu0 %1781, %v1502_v51  }
 0x41f   : > { %1496 = vperm.xlu1 %1782, %v1493_v52  }
 0x45f   : > { %v1349_v54 = vpop.permute.xlu0 %1348 }
 0x460   : > { %v1351_v55 = vpop.permute.xlu1 %1350 }
 0x461   : > { %v1354_v7 = vsel %vm909_vm5, %v1349_v54, %v1351_v55 }
 0x462   : > { %v1359_v15 = vadd.f32 %v1354_v7, %v2144_v10 }
 0x463   : > { %v1353_v56 = vpop.permute.xlu0 %1352 }
 0x464   : > { %v1355_v8 = vsel %vm909_vm5, %v1351_v55, %v1353_v56  ;;  %v1361_v9 = vadd.f32 %v1353_v56, %v2146_v11 }
 0x465   : > { %v1366_v48 = vpop.permute.xlu1 %1365  ;;  %v1360_v16 = vadd.f32 %v1355_v8, %v2148_v12 }
 0x467   : > { %v1368_v57 = vpop.permute.xlu0 %1367 }
 0x468   : > { %v1371_v5 = vsel %vm927_vm6, %v1366_v48, %v1368_v57 }
 0x469   : > { %v1370_v58 = vpop.permute.xlu1 %1369  ;;  %v1376_v20 = vadd.f32 %v1371_v5, %v1359_v15 }
 0x46a   : > { %v1372_v1 = vsel %vm927_vm6, %v1368_v57, %v1370_v58  ;;  %v1378_v17 = vadd.f32 %v1370_v58, %v1361_v9 }
 0x46b   : > { %v1383_v59 = vpop.permute.xlu0 %1382  ;;  %v1377_v21 = vadd.f32 %v1372_v1, %v1360_v16 }
 0x46d   : > { %v1385_v60 = vpop.permute.xlu1 %1384 }
 0x46e   : > { %v1388_v18 = vsel %vm945_vm7, %v1383_v59, %v1385_v60 }
 0x46f   : > { %v1387_v45 = vpop.permute.xlu0 %1386  ;;  %v1393_v26 = vadd.f32 %v1388_v18, %v1376_v20 }
 0x470   : > { %v1389_v19 = vsel %vm945_vm7, %v1385_v60, %v1387_v45  ;;  %v1395_v22 = vadd.f32 %v1387_v45, %v1378_v17 }
 0x471   : > { %v1400_v61 = vpop.permute.xlu1 %1399  ;;  %v1394_v27 = vadd.f32 %v1389_v19, %v1377_v21 }
 0x473   : > { %v1402_v62 = vpop.permute.xlu0 %1401 }
 0x474   : > { %v1405_v11 = vsel %vm963_vm8, %v1400_v61, %v1402_v62 }
 0x475   : > { %v1404_v63 = vpop.permute.xlu1 %1403  ;;  %v1410_v30 = vadd.f32 %v1405_v11, %v1393_v26 }
 0x476   : > { %v1406_v25 = vsel %vm963_vm8, %v1402_v62, %v1404_v63  ;;  %v1412_v28 = vadd.f32 %v1404_v63, %v1395_v22 }
 0x477   : > { %v1417_v0 = vpop.permute.xlu0 %1416  ;;  %v1411_v31 = vadd.f32 %v1406_v25, %v1394_v27 }
 0x479   : > { %v1419_v44 = vpop.permute.xlu1 %1418 }
 0x47a   : > { %v1422_v10 = vsel %vm981_vm9, %v1417_v0, %v1419_v44 }
 0x47b   : > { %v1421_v2 = vpop.permute.xlu0 %1420  ;;  %v1427_v35 = vadd.f32 %v1422_v10, %v1410_v30 }
 0x47c   : > { %v1423_v12 = vsel %vm981_vm9, %v1419_v44, %v1421_v2  ;;  %v1429_v32 = vadd.f32 %v1421_v2, %v1412_v28 }
 0x47d   : > { %v1434_v3 = vpop.permute.xlu1 %1433  ;;  %v1428_v36 = vadd.f32 %v1423_v12, %v1411_v31 }
 0x47f   : > { %v1436_v4 = vpop.permute.xlu0 %1435 }
 0x480   : > { %v1439_v33 = vsel %vm999_vm10, %v1434_v3, %v1436_v4 }
 0x481   : > { %v1438_v6 = vpop.permute.xlu1 %1437  ;;  %v1444_v41 = vadd.f32 %v1439_v33, %v1427_v35 }
 0x482   : > { %v1440_v34 = vsel %vm999_vm10, %v1436_v4, %v1438_v6  ;;  %v1446_v37 = vadd.f32 %v1438_v6, %v1429_v32 }
 0x483   : > { %v1453_v13 = vpop.permute.xlu0 %1452  ;;  %v1445_v42 = vadd.f32 %v1440_v34, %v1428_v36 }
 0x485   : > { %v1451_v14 = vpop.permute.xlu1 %1450 }
 0x486   : > { %v1456_v39 = vsel %vm1017_vm11, %v1451_v14, %v1453_v13 }
 0x487   : > { %v1468_v29 = vpop.permute.xlu0 %1467  ;;  %v1461_v49 = vadd.f32 %v1456_v39, %v1444_v41 }
 0x489   : > { %v1455_v23 = vpop.permute.xlu1 %1454 }
 0x48a   : > { %v1457_v40 = vsel %vm1017_vm11, %v1453_v13, %v1455_v23  ;;  %v1463_v43 = vadd.f32 %v1455_v23, %v1446_v37 }
 0x48b   : > { %v1472_v46 = vpop.permute.xlu0 %1471  ;;  %v1462_v50 = vadd.f32 %v1457_v40, %v1445_v42 }
 0x48c   : > { %v1480_v51 = vadd.f32 %v1472_v46, %v1463_v43 }
 0x48d   : > { %v1470_v38 = vpop.permute.xlu1 %1469 }
 0x48e   : > { %v1473_v47 = vsel %vm1035_vm12, %v1468_v29, %v1470_v38  ;;  %v1474_v24 = vsel %vm1035_vm12, %v1470_v38, %v1472_v46  ;;  %v1489_v55 = vadd.f32 %v2180_v53, %v1480_v51 }
 0x48f   : > { %v1478_v52 = vadd.f32 %v1473_v47, %v1461_v49  ;;  %v1479_v54 = vadd.f32 %v1474_v24, %v1462_v50 }
 0x490   : > { %v1492_v59 = vmax.f32 %v1489_v55, 0.0 }
 0x491   : > { %v1487_v56 = vadd.f32 %v2180_v53, %v1478_v52  ;;  %v1488_v48 = vadd.f32 %v2180_v53, %v1479_v54 }
 0x493   : > { %v1490_v57 = vmax.f32 %v1487_v56, 0.0  ;;  %v1491_v58 = vmax.f32 %v1488_v48, 0.0 }
 0x49c   : > { %v1506_v63 = vpop.permute.xlu0 %1505 }
 0x49e   : > { %v1497_v60 = vpop.permute.xlu1 %1496 }
 0x49f   : > { %v1499_v45 = vmul.f32 %v1497_v60, %v1490_v57  ;;  %v1500_v61 = vmul.f32 %v1497_v60, %v1491_v58  ;;  %v1501_v62 = vmul.f32 %v1497_v60, %v1492_v59 }
 0x4a1   : > { %v1508_v0 = vadd.f32 %v1506_v63, %v1499_v45  ;;  %v1509_v44 = vadd.f32 %v1506_v63, %v1500_v61  ;;  %v1510_v2 = vadd.f32 %v1506_v63, %v1501_v62 }
 0x4a3   : > { %v1679_v3 = vpack.c.bf16 %v1509_v44, %v1508_v0  ;;  %v1680_v4 = vpack.c.bf16 %v1510_v2, %v1510_v2 }
 0x4a5   : > { %1524 = vst [vmem:[%s433_s14] sm:$0xff] %v1679_v3  ;;  %1526 = vst.msk [vmem:[%s433_s14 + $0x8] sm:$0xf] %vm1525_vm0, %v1680_v4 }
 0x4a6 PF: > { %s22_s21 = sadd.s32 1, %s1827_s21  }
 0x4a7   : > { %p19_p4 = scmp.ge.s32.totalorder %s22_s21, 4  }
 0x4a9   :  { %21 = sbr.rel (!%p19_p4) target bundleno = 1 (0x1), region = 101 }

// kernel: unet_decoder_forward.9
= control target key start
LH: loop header
LB: loop body
LE: loop exit
PB: predicated region body
PF: predicated region fallthrough
CT: control target
= control target key end

     0   :  { %s5015_s29 = smov 0   ;;  %s6630_s0 = inlined_call_operand.vmem [shape: bf16[2,8,288], index: 0, kind: input, shape index: {}]   ;;  %s6631_s1 = inlined_call_operand.vmem [shape: bf16[2,8,1190], index: 1, kind: input, shape index: {}]   ;;  %s6632_s2 = inlined_call_operand.vmem [shape: bf16[288,1190], index: 2, kind: input, shape index: {}]   ;;  %s6633_s3 = inlined_call_operand.vmem [shape: f32[1,1088], index: 3, kind: input, shape index: {}]   ;;  %s6634_s4 = inlined_call_operand.vmem [shape: bf16[36,16], index: 4, kind: input, shape index: {}]   ;;  %s6635_s5 = inlined_call_operand.vmem [shape: f32[4,1], index: 5, kind: input, shape index: {}]   ;;  %s6636_s6 = inlined_call_operand.vmem [shape: f32[4,1], index: 6, kind: input, shape index: {}]   ;;  %s6637_s7 = inlined_call_operand.vmem [shape: f32[4,1], index: 7, kind: input, shape index: {}]   ;;  %s6638_s8 = inlined_call_operand.vmem [shape: bf16[36,4], index: 8, kind: input, shape index: {}]   ;;  %s6639_s9 = inlined_call_operand.vmem [shape: f32[4,1], index: 9, kind: input, shape index: {}]   ;;  %s6640_s10 = inlined_call_operand.vmem [shape: f32[4,1], index: 10, kind: input, shape index: {}]   ;;  %s6641_s11 = inlined_call_operand.vmem [shape: f32[4,1], index: 11, kind: input, shape index: {}]   ;;  %s6642_s12 = inlined_call_operand.vmem [shape: bf16[4,4], index: 12, kind: input, shape index: {}]   ;;  %s6643_s13 = inlined_call_operand.vmem [shape: f32[4,1], index: 13, kind: input, shape index: {}]   ;;  %s6644_s14 = inlined_call_operand.vmem [shape: f32[2,4,1088], index: 14, kind: output, shape index: {}]  }
   0x1 LB: > { %s4312_s30 = sadd.s32 4294967295, %s4925_s29   ;;  %p4316_p0 = scmp.ge.s32.totalorder %s4925_s29, 1  ;;  %s4925_s29 = sphi %s5015_s29, %s24_s29  }
   0x2   : > { %p422_p1 = scmp.lt.s32.totalorder %s4925_s29, 3 }
   0x4   : > { %p423_p2 = pnand %p4316_p0, %p422_p1 }
   0x5   : > { %v4630_v0 = vld [vmem:[%s6632_s2 + $0x4] ss:$40 sps:$4 sm:$0xff] (!%p423_p2)   ;;  %v4634_v2 = vld [vmem:[%s6632_s2] ss:$40 sps:$4 sm:$0xff] (!%p423_p2)   ;;  %v4927_v4 = vmov (!%p423_p2), 0   ;;  %p473_p3 = scmp.lt.s32.totalorder (!%p423_p2), %s4312_s30, 1 }
   0x6   : > { %426 = sbr.rel (%p423_p2) target bundleno = 1627 (0x65b), region = 76  ;;  %v4632_v1 = vld [vmem:[%s6632_s2 + $0xc] ss:$40 sps:$4 sm:$0xff] (!%p423_p2)   ;;  %1585 = vmatprep.subr.bf16.mxu0 (!%p423_p2), %v4630_v0  ;;  %v4635_v3 = vld [vmem:[%s6632_s2 + $0x8] ss:$40 sps:$4 sm:$0xff] (!%p423_p2)   ;;  %4628 = vset.pattern.permute.xlu0 (!%p423_p2), %v4927_v4  ;;  %vm2065_vm0 = vcmask (!%p423_p2), 310276  }
   0x7   : > { %1667 = vmatprep.subr.bf16.mxu1 (!%p423_p2), %v4632_v1  ;;  %v4636_v5 = vld [vmem:[%s6632_s2 + $0x54] ss:$40 sps:$4 sm:$0xff] (!%p423_p2)   ;;  %4629 = vset.pattern.permute.xlu1 (!%p423_p2), %v4927_v4  ;;  %v4640_v7 = vld [vmem:[%s6632_s2 + $0x50] ss:$40 sps:$4 sm:$0xff] (!%p423_p2)   ;;  %v4642_v9 = vld [vmem:[%s6632_s2 + $0xa4] ss:$40 sps:$4 sm:$0xff] (!%p423_p2)  }
   0x8   : > { %1586 = vmatpush1.bf16.msra.mxu0 (!%p423_p2), %v4634_v2  ;;  %1668 = vmatpush1.bf16.msra.mxu1 (!%p423_p2), %v4635_v3  ;;  %v4638_v6 = vld [vmem:[%s6632_s2 + $0x5c] ss:$40 sps:$4 sm:$0xff] (!%p423_p2)   ;;  %v4641_v8 = vld [vmem:[%s6632_s2 + $0x58] ss:$40 sps:$4 sm:$0xff] (!%p423_p2)   ;;  %v4644_v10 = vld [vmem:[%s6632_s2 + $0xac] ss:$40 sps:$4 sm:$0xff] (!%p423_p2)  }
   0x9   : > { %1587 = vmatprep.subr.bf16.mxu0 (!%p423_p2), %v4636_v5  ;;  %1669 = vmatprep.subr.bf16.mxu1 (!%p423_p2), %v4638_v6  ;;  %v4646_v11 = vld [vmem:[%s6632_s2 + $0xa0] ss:$40 sps:$4 sm:$0xff] (!%p423_p2)   ;;  %v4648_v13 = vld [vmem:[%s6632_s2 + $0xf4] ss:$40 sps:$4 sm:$0xff] (!%p423_p2)   ;;  %v4652_v15 = vld [vmem:[%s6632_s2 + $0xf0] ss:$40 sps:$4 sm:$0xff] (!%p423_p2)  }
   0xa   : > { %v4647_v12 = vld [vmem:[%s6632_s2 + $0xa8] ss:$40 sps:$4 sm:$0xff] (!%p423_p2)   ;;  %v4650_v14 = vld [vmem:[%s6632_s2 + $0xfc] ss:$40 sps:$4 sm:$0xff] (!%p423_p2)   ;;  %v4653_v16 = vld [vmem:[%s6632_s2 + $0xf8] ss:$40 sps:$4 sm:$0xff] (!%p423_p2)  }
   0xb   : > { %v4654_v17 = vld [vmem:[%s6632_s2 + $0x144] ss:$40 sps:$4 sm:$0xff] (!%p423_p2)   ;;  %v4658_v19 = vld [vmem:[%s6632_s2 + $0x140] ss:$40 sps:$4 sm:$0xff] (!%p423_p2)   ;;  %v4660_v21 = vld [vmem:[%s6632_s2 + $0x194] ss:$40 sps:$4 sm:$0xff] (!%p423_p2)  }
   0xc   : > { %1588 = vmatpush1.bf16.msra.mxu0 (!%p423_p2), %v4640_v7  ;;  %1670 = vmatpush1.bf16.msra.mxu1 (!%p423_p2), %v4641_v8  ;;  %v4656_v18 = vld [vmem:[%s6632_s2 + $0x14c] ss:$40 sps:$4 sm:$0xff] (!%p423_p2)   ;;  %v4659_v20 = vld [vmem:[%s6632_s2 + $0x148] ss:$40 sps:$4 sm:$0xff] (!%p423_p2)   ;;  %v4662_v22 = vld [vmem:[%s6632_s2 + $0x19c] ss:$40 sps:$4 sm:$0xff] (!%p423_p2)  }
   0xd   : > { %1589 = vmatprep.subr.bf16.mxu0 %v4642_v9  ;;  %1671 = vmatprep.subr.bf16.mxu1 %v4644_v10  ;;  %v4664_v23 = vld [vmem:[%s6632_s2 + $0x190] ss:$40 sps:$4 sm:$0xff]   ;;  %v4666_v25 = vld [vmem:[%s6632_s2 + $0x1e4] ss:$40 sps:$4 sm:$0xff]   ;;  %v4670_v27 = vld [vmem:[%s6632_s2 + $0x1e0] ss:$40 sps:$4 sm:$0xff]  }
   0xe   : > { %v4665_v24 = vld [vmem:[%s6632_s2 + $0x198] ss:$40 sps:$4 sm:$0xff]   ;;  %v4668_v26 = vld [vmem:[%s6632_s2 + $0x1ec] ss:$40 sps:$4 sm:$0xff]   ;;  %v4671_v28 = vld [vmem:[%s6632_s2 + $0x1e8] ss:$40 sps:$4 sm:$0xff]  }
   0xf   : > { %v4672_v29 = vld [vmem:[%s6632_s2 + $0x234] ss:$40 sps:$4 sm:$0xff]   ;;  %v4676_v31 = vld [vmem:[%s6632_s2 + $0x230] ss:$40 sps:$4 sm:$0xff]   ;;  %v4678_v33 = vld [vmem:[%s6632_s2 + $0x284] ss:$40 sps:$4 sm:$0xff]  }
  0x10   : > { %1590 = vmatpush1.bf16.msra.mxu0 %v4646_v11  ;;  %1672 = vmatpush1.bf16.msra.mxu1 %v4647_v12  ;;  %v4674_v30 = vld [vmem:[%s6632_s2 + $0x23c] ss:$40 sps:$4 sm:$0xff]   ;;  %v4677_v32 = vld [vmem:[%s6632_s2 + $0x238] ss:$40 sps:$4 sm:$0xff]   ;;  %v4680_v34 = vld [vmem:[%s6632_s2 + $0x28c] ss:$40 sps:$4 sm:$0xff]  }
  0x11   : > { %1591 = vmatprep.subr.bf16.mxu0 %v4648_v13  ;;  %1673 = vmatprep.subr.bf16.mxu1 %v4650_v14  ;;  %v4682_v35 = vld [vmem:[%s6632_s2 + $0x280] ss:$40 sps:$4 sm:$0xff]   ;;  %s6659_s30 = smov (!%p473_p3, %s4312_s30), 1  ;;  %v4684_v37 = vld [vmem:[%s6632_s2 + $0x2d4] ss:$40 sps:$4 sm:$0xff]   ;;  %vm1581_vm1 = vcmask 261120  }
  0x12   : > { %v4683_v36 = vld [vmem:[%s6632_s2 + $0x288] ss:$40 sps:$4 sm:$0xff]   ;;  %v4686_v38 = vld [vmem:[%s6632_s2 + $0x2dc] ss:$40 sps:$4 sm:$0xff]   ;;  %s4604_s23 = smul.u32 12, %s6659_s30  ;;  %vm2095_vm2 = vcmask 130048  }
  0x13   : > { %v4688_v39 = vld [vmem:[%s6632_s2 + $0x2d0] ss:$40 sps:$4 sm:$0xff]   ;;  %v4690_v41 = vld [vmem:[%s6632_s2 + $0x324] ss:$40 sps:$4 sm:$0xff]   ;;  %s4605_s28 = smul.u32 40, %s6659_s30  ;;  %vm2014_vm3 = vcmask 306176  }
  0x14   : > { %1592 = vmatpush1.bf16.msra.mxu0 %v4652_v15  ;;  %1674 = vmatpush1.bf16.msra.mxu1 %v4653_v16  ;;  %v4689_v40 = vld [vmem:[%s6632_s2 + $0x2d8] ss:$40 sps:$4 sm:$0xff]   ;;  %v4692_v42 = vld [vmem:[%s6632_s2 + $0x32c] ss:$40 sps:$4 sm:$0xff]   ;;  %v4695_v44 = vld [vmem:[%s6632_s2 + $0x328] ss:$40 sps:$4 sm:$0xff]   ;;  %s5168_s24 = scalar_lea.vmem %s6630_s0, %s4604_s23 }
  0x15   : > { %1593 = vmatprep.subr.bf16.mxu0 %v4654_v17  ;;  %1675 = vmatprep.subr.bf16.mxu1 %v4656_v18  ;;  %v4694_v43 = vld [vmem:[%s6632_s2 + $0x320] ss:$40 sps:$4 sm:$0xff]   ;;  %v4696_v45 = vld [vmem:[%s6632_s2 + $0x374] ss:$40 sps:$4 sm:$0xff]   ;;  %s482_s16 = scalar_lea.vmem %s6631_s1, %s4605_s28  ;;  %v4700_v47 = vld [vmem:[%s6632_s2 + $0x370] ss:$40 sps:$4 sm:$0xff]  }
  0x16   : > { %v4698_v46 = vld [vmem:[%s6632_s2 + $0x37c] ss:$40 sps:$4 sm:$0xff]   ;;  %v4701_v48 = vld [vmem:[%s6632_s2 + $0x378] ss:$40 sps:$4 sm:$0xff]   ;;  %v2017_v52 = vld [vmem:[%s482_s16 + $0x8] sm:$0xff]  ;;  %s4928_s28 = smov 127  }
  0x17   : > { %v5186_v49 = vld [vmem:[%s5168_s24] sm:$0xff]  ;;  %v2018_v53 = vld [vmem:[%s482_s16 + $0x10] sm:$0xff]  ;;  %v2019_v54 = vld [vmem:[%s482_s16 + $0x18] sm:$0xff]  ;;  %v4510_v58 = vcombine.low %v2017_v52, %v2017_v52  ;;  %v4511_v61 = vcombine.high %v2017_v52, %v2017_v52  ;;  %s4929_s22 = smov 126   ;;  %s4930_s25 = smov 94   ;;  %vm2443_vm4 = vcmask 1039360  }
  0x18   : > { %1594 = vmatpush1.bf16.msra.mxu0 %v4658_v19  ;;  %1676 = vmatpush1.bf16.msra.mxu1 %v4659_v20  ;;  %v5190_v50 = vcombine.high %v5186_v49, %v5186_v49  ;;  %v2016_v51 = vld [vmem:[%s482_s16] sm:$0xff]  ;;  %v4704_v60 = vld [vmem:[%s6632_s2 + $0x3cc] ss:$40 sps:$4 sm:$0xff]   ;;  %v4512_v62 = vcombine.low %v2018_v53, %v2018_v53  ;;  %v4513_v63 = vcombine.high %v2018_v53, %v2018_v53  ;;  %v4707_v6 = vld [vmem:[%s6632_s2 + $0x3c8] ss:$40 sps:$4 sm:$0xff]   ;;  %s4931_s26 = smov 93  }
  0x19   : > { %1595 = vmatprep.subr.bf16.mxu0 %v4660_v21  ;;  %1677 = vmatprep.subr.bf16.mxu1 %v4662_v22  ;;  %v2020_v55 = vld [vmem:[%s482_s16 + $0x20] sm:$0xff]  ;;  %v4508_v56 = vcombine.low %v2016_v51, %v2016_v51  ;;  %v4509_v57 = vcombine.high %v2016_v51, %v2016_v51  ;;  %v4514_v0 = vcombine.low %v2019_v54, %v2019_v54  ;;  %v4708_v7 = vld [vmem:[%s6632_s2 + $0x414] ss:$40 sps:$4 sm:$0xff]   ;;  %v4712_v9 = vld [vmem:[%s6632_s2 + $0x410] ss:$40 sps:$4 sm:$0xff]   ;;  %s4932_s27 = smov 60  }
  0x1a   : > { %v4702_v59 = vld [vmem:[%s6632_s2 + $0x3c4] ss:$40 sps:$4 sm:$0xff]   ;;  %1617 = vmatprep.mubr.bf16.mxu0 %v5190_v50  ;;  %v4515_v1 = vcombine.high %v2019_v54, %v2019_v54  ;;  %v4516_v2 = vcombine.low %v2020_v55, %v2020_v55  ;;  %v4517_v3 = vcombine.high %v2020_v55, %v2020_v55  ;;  %2058 = vst [vmem:[#allocation2 + $0x10] sm:$0xf0] %v4510_v58  ;;  %2059 = vst [vmem:[#allocation2 + $0x18] sm:$0xf0] %v4511_v61 }
  0x1b   : > { %2056 = vst [vmem:[#allocation2] sm:$0xf0] %v4508_v56  ;;  %2057 = vst [vmem:[#allocation2 + $0x8] sm:$0xf0] %v4509_v57  ;;  %1699 = vmatprep.mubr.bf16.mxu1 %v5190_v50  ;;  %v4706_v5 = vld [vmem:[%s6632_s2 + $0x3c0] ss:$40 sps:$4 sm:$0xff]   ;;  %v5251_v21 = vcombine.low %v5186_v49, %v5186_v49 }
  0x1c   : > { %1596 = vmatpush1.bf16.msra.mxu0 %v4664_v23  ;;  %1678 = vmatpush1.bf16.msra.mxu1 %v4665_v24  ;;  %2060 = vst [vmem:[#allocation2 + $0x20] sm:$0xf0] %v4512_v62  ;;  %2061 = vst [vmem:[#allocation2 + $0x28] sm:$0xf0] %v4513_v63  ;;  %v4710_v8 = vld [vmem:[%s6632_s2 + $0x41c] ss:$40 sps:$4 sm:$0xff]  }
  0x1d   : > { %1597 = vmatprep.subr.bf16.mxu0 %v4666_v25  ;;  %1679 = vmatprep.subr.bf16.mxu1 %v4668_v26  ;;  %2062 = vst [vmem:[#allocation2 + $0x30] sm:$0xf0] %v4514_v0  ;;  %2063 = vst [vmem:[#allocation2 + $0x38] sm:$0xf0] %v4515_v1  ;;  %v4713_v10 = vld [vmem:[%s6632_s2 + $0x418] ss:$40 sps:$4 sm:$0xff]  }
  0x1e   : > { %2064 = vst [vmem:[#allocation2 + $0x40] sm:$0xf0] %v4516_v2  ;;  %2066 = vst.msk [vmem:[#allocation2 + $0x48] sm:$0xf0] %vm2065_vm0, %v4517_v3  ;;  %v4714_v11 = vld [vmem:[%s6632_s2 + $0x464] ss:$40 sps:$4 sm:$0xff]  }
  0x1f   : > { %v4716_v12 = vld [vmem:[%s6632_s2 + $0x46c] ss:$40 sps:$4 sm:$0xff]   ;;  %v4718_v13 = vld [vmem:[%s6632_s2 + $0x460] ss:$40 sps:$4 sm:$0xff]   ;;  %v4722_v16 = vld [vmem:[%s6632_s2 + $0x4bc] ss:$40 sps:$4 sm:$0xff]  }
  0x20   : > { %1598 = vmatpush1.bf16.msra.mxu0 %v4670_v27  ;;  %1680 = vmatpush1.bf16.msra.mxu1 %v4671_v28  ;;  %v4719_v14 = vld [vmem:[%s6632_s2 + $0x468] ss:$40 sps:$4 sm:$0xff]   ;;  %v4720_v15 = vld [vmem:[%s6632_s2 + $0x4b4] ss:$40 sps:$4 sm:$0xff]   ;;  %v4725_v18 = vld [vmem:[%s6632_s2 + $0x4b8] ss:$40 sps:$4 sm:$0xff]  }
  0x21   : > { %1599 = vmatprep.subr.bf16.mxu0 %v4672_v29  ;;  %1681 = vmatprep.subr.bf16.mxu1 %v4674_v30  ;;  %v4724_v17 = vld [vmem:[%s6632_s2 + $0x4b0] ss:$40 sps:$4 sm:$0xff]   ;;  %v4739_v19 = vld [vmem:[%s6632_s2 + $0x504] ss:$40 sps:$4 sm:$0xff]   ;;  %v4737_v22 = vld [vmem:[%s6632_s2 + $0x500] ss:$40 sps:$4 sm:$0xff]  }
  0x22   : > { %v4742_v20 = vld [vmem:[%s6632_s2 + $0x50c] ss:$40 sps:$4 sm:$0xff]   ;;  %v4740_v23 = vld [vmem:[%s6632_s2 + $0x508] ss:$40 sps:$4 sm:$0xff]   ;;  %v4748_v25 = vld [vmem:[%s6632_s2 + $0x55c] ss:$40 sps:$4 sm:$0xff]  }
  0x23   : > { %v4745_v24 = vld [vmem:[%s6632_s2 + $0x554] ss:$40 sps:$4 sm:$0xff]   ;;  %v4743_v26 = vld [vmem:[%s6632_s2 + $0x550] ss:$40 sps:$4 sm:$0xff]   ;;  %v4782_v49 = vld [vmem:[%s6632_s2 + $0x1a4] ss:$40 sps:$4 sm:$0xff]  }
  0x24   : > { %1600 = vmatpush1.bf16.msra.mxu0 %v4676_v31  ;;  %1682 = vmatpush1.bf16.msra.mxu1 %v4677_v32  ;;  %v4746_v27 = vld [vmem:[%s6632_s2 + $0x558] ss:$40 sps:$4 sm:$0xff]   ;;  %v4751_v28 = vld [vmem:[%s6632_s2 + $0x14] ss:$40 sps:$4 sm:$0xff]   ;;  %v5288_v32 = vld [vmem:[%s5168_s24 + $0x8] ss:$0 sps:$4 sm:$0xff]  }
  0x25   : > { %1601 = vmatprep.subr.bf16.mxu0 %v4678_v33  ;;  %1683 = vmatprep.subr.bf16.mxu1 %v4680_v34  ;;  %v4754_v29 = vld [vmem:[%s6632_s2 + $0x1c] ss:$40 sps:$4 sm:$0xff]   ;;  %v4749_v30 = vld [vmem:[%s6632_s2 + $0x10] ss:$40 sps:$4 sm:$0xff]   ;;  %v4761_v34 = vld [vmem:[%s6632_s2 + $0x6c] ss:$40 sps:$4 sm:$0xff]  }
  0x26   : > { %v4752_v31 = vld [vmem:[%s6632_s2 + $0x18] ss:$40 sps:$4 sm:$0xff]   ;;  %v4758_v33 = vld [vmem:[%s6632_s2 + $0x64] ss:$40 sps:$4 sm:$0xff]   ;;  %v4783_v53 = vld [vmem:[%s6632_s2 + $0x1a8] ss:$40 sps:$4 sm:$0xff]  }
  0x27   : > { %v4785_v51 = vld [vmem:[%s6632_s2 + $0x1ac] ss:$40 sps:$4 sm:$0xff]   ;;  %v4780_v52 = vld [vmem:[%s6632_s2 + $0x1a0] ss:$40 sps:$4 sm:$0xff]   ;;  %v4791_v55 = vld [vmem:[%s6632_s2 + $0x1fc] ss:$40 sps:$4 sm:$0xff]  }
  0x28   : > { %1602 = vmatpush1.bf16.msra.mxu0 %v4682_v35  ;;  %1684 = vmatpush1.bf16.msra.mxu1 %v4683_v36  ;;  %v4756_v35 = vld [vmem:[%s6632_s2 + $0x60] ss:$40 sps:$4 sm:$0xff]   ;;  %v4788_v54 = vld [vmem:[%s6632_s2 + $0x1f4] ss:$40 sps:$4 sm:$0xff]   ;;  %v4786_v56 = vld [vmem:[%s6632_s2 + $0x1f0] ss:$40 sps:$4 sm:$0xff]  }
  0x29   : > { %1603 = vmatprep.subr.bf16.mxu0 %v4684_v37  ;;  %1685 = vmatprep.subr.bf16.mxu1 %v4686_v38  ;;  %v4759_v36 = vld [vmem:[%s6632_s2 + $0x68] ss:$40 sps:$4 sm:$0xff]   ;;  %v4764_v37 = vld [vmem:[%s6632_s2 + $0xb4] ss:$40 sps:$4 sm:$0xff]   ;;  %v4789_v57 = vld [vmem:[%s6632_s2 + $0x1f8] ss:$40 sps:$4 sm:$0xff]  }
  0x2a   : > { %v4767_v38 = vld [vmem:[%s6632_s2 + $0xbc] ss:$40 sps:$4 sm:$0xff]   ;;  %v4795_v61 = vld [vmem:[%s6632_s2 + $0x248] ss:$40 sps:$4 sm:$0xff]   ;;  %v4801_v1 = vld [vmem:[%s6632_s2 + $0x298] ss:$40 sps:$4 sm:$0xff]  }
  0x2b   : > { %v4794_v58 = vld [vmem:[%s6632_s2 + $0x244] ss:$40 sps:$4 sm:$0xff]   ;;  %v4800_v62 = vld [vmem:[%s6632_s2 + $0x294] ss:$40 sps:$4 sm:$0xff]   ;;  %v4798_v0 = vld [vmem:[%s6632_s2 + $0x290] ss:$40 sps:$4 sm:$0xff]  }
  0x2c   : > { %1604 = vmatpush1.bf16.msra.mxu0 %v4688_v39  ;;  %1686 = vmatpush1.bf16.msra.mxu1 %v4689_v40  ;;  %v4762_v39 = vld [vmem:[%s6632_s2 + $0xb0] ss:$40 sps:$4 sm:$0xff]   ;;  %v4803_v63 = vld [vmem:[%s6632_s2 + $0x29c] ss:$40 sps:$4 sm:$0xff]   ;;  %v4809_v3 = vld [vmem:[%s6632_s2 + $0x2ec] ss:$40 sps:$4 sm:$0xff]  }
  0x2d   : > { %1605 = vmatprep.subr.bf16.mxu0 %v4690_v41  ;;  %1687 = vmatprep.subr.bf16.mxu1 %v4692_v42  ;;  %v4765_v40 = vld [vmem:[%s6632_s2 + $0xb8] ss:$40 sps:$4 sm:$0xff]   ;;  %v4770_v41 = vld [vmem:[%s6632_s2 + $0x104] ss:$40 sps:$4 sm:$0xff]   ;;  %s4933_s15 = smov 92   ;;  %s4934_s16 = smov 59  }
  0x2e   : > { %v4773_v42 = vld [vmem:[%s6632_s2 + $0x10c] ss:$40 sps:$4 sm:$0xff]   ;;  %s6645_s17 = smov 58   ;;  %vm2497_vm5 = vcmask 1031168   ;;  %vm2551_vm6 = vcmask 769024   ;;  %vm2605_vm7 = vcmask 760832  }
  0x2f   : > { %v4806_v2 = vld [vmem:[%s6632_s2 + $0x2e4] ss:$40 sps:$4 sm:$0xff]   ;;  %vm2659_vm8 = vcmask 752640   ;;  %vm2716_vm9 = vcmask 490496   ;;  %vm2774_vm10 = vcmask 482304   ;;  %vm6647_vm11 = vcmask 474112  }
  0x30   : > { %1606 = vmatpush1.bf16.msra.mxu0 %v4694_v43  ;;  %1688 = vmatpush1.bf16.msra.mxu1 %v4695_v44  ;;  %v4768_v43 = vld [vmem:[%s6632_s2 + $0x100] ss:$40 sps:$4 sm:$0xff]   ;;  %vm2972_vm12 = vcmask 279552   ;;  %s4937_s24 = smov 35   ;;  %vm3050_vm13 = vcmask 1041688   ;;  %vm3051_vm14 = vcmask 1043458  }
  0x31   : > { %1607 = vmatprep.subr.bf16.mxu0 %v4696_v45  ;;  %1689 = vmatprep.subr.bf16.mxu1 %v4698_v46  ;;  %v4771_v44 = vld [vmem:[%s6632_s2 + $0x108] ss:$40 sps:$4 sm:$0xff]   ;;  %v4776_v45 = vld [vmem:[%s6632_s2 + $0x154] ss:$40 sps:$4 sm:$0xff]   ;;  %2973 = vst.msk [vmem:[#allocation3] sm:$0x3] %vm2972_vm12, %v4927_v4  ;;  %vm3052_vm15 = vmor %vm3051_vm14, %vm3050_vm13 }
  0x32   : > { %v4779_v46 = vld [vmem:[%s6632_s2 + $0x15c] ss:$40 sps:$4 sm:$0xff]   ;;  %vm3053_vm0 = vcmask 1045508   ;;  %vm3131_vm13 = vcmask 31744   ;;  %vm3061_vm14 = vcmask 1042200   ;;  %s6648_s20 = smov 58  }
  0x34   : > { %1608 = vmatpush1.bf16.msra.mxu0 %v4700_v47  ;;  %1690 = vmatpush1.bf16.msra.mxu1 %v4701_v48  ;;  %v4774_v47 = vld [vmem:[%s6632_s2 + $0x150] ss:$40 sps:$4 sm:$0xff]  }
  0x35   : > { %1609 = vmatprep.subr.bf16.mxu0 %v4702_v59  ;;  %1691 = vmatprep.subr.bf16.mxu1 %v4704_v60  ;;  %v4777_v48 = vld [vmem:[%s6632_s2 + $0x158] ss:$40 sps:$4 sm:$0xff]   ;;  %v4797_v59 = vld [vmem:[%s6632_s2 + $0x24c] ss:$40 sps:$4 sm:$0xff]  }
  0x36   : > { %v4792_v60 = vld [vmem:[%s6632_s2 + $0x240] ss:$40 sps:$4 sm:$0xff]  }
  0x38   : > { %1610 = vmatpush1.bf16.msra.mxu0 %v4706_v5  ;;  %1692 = vmatpush1.bf16.msra.mxu1 %v4707_v6  ;;  %v4804_v5 = vld [vmem:[%s6632_s2 + $0x2e0] ss:$40 sps:$4 sm:$0xff]  }
  0x39   : > { %1611 = vmatprep.subr.bf16.mxu0 %v4708_v7  ;;  %1693 = vmatprep.subr.bf16.mxu1 %v4710_v8  ;;  %v4807_v6 = vld [vmem:[%s6632_s2 + $0x2e8] ss:$40 sps:$4 sm:$0xff]   ;;  %v4812_v7 = vld [vmem:[%s6632_s2 + $0x334] ss:$40 sps:$4 sm:$0xff]  }
  0x3a   : > { %v4815_v8 = vld [vmem:[%s6632_s2 + $0x33c] ss:$40 sps:$4 sm:$0xff]  }
  0x3c   : > { %1612 = vmatpush1.bf16.msra.mxu0 %v4712_v9  ;;  %1694 = vmatpush1.bf16.msra.mxu1 %v4713_v10  ;;  %v4810_v9 = vld [vmem:[%s6632_s2 + $0x330] ss:$40 sps:$4 sm:$0xff]  }
  0x3d   : > { %1613 = vmatprep.subr.bf16.mxu0 %v4714_v11  ;;  %1695 = vmatprep.subr.bf16.mxu1 %v4716_v12  ;;  %v4813_v10 = vld [vmem:[%s6632_s2 + $0x338] ss:$40 sps:$4 sm:$0xff]   ;;  %v4818_v11 = vld [vmem:[%s6632_s2 + $0x384] ss:$40 sps:$4 sm:$0xff]  }
  0x3e   : > { %v4821_v12 = vld [vmem:[%s6632_s2 + $0x38c] ss:$40 sps:$4 sm:$0xff]  }
  0x40   : > { %1614 = vmatpush1.bf16.msra.mxu0 %v4718_v13  ;;  %1696 = vmatpush1.bf16.msra.mxu1 %v4719_v14  ;;  %v4816_v13 = vld [vmem:[%s6632_s2 + $0x380] ss:$40 sps:$4 sm:$0xff]  }
  0x41   : > { %1615 = vmatprep.subr.bf16.mxu0 %v4720_v15  ;;  %1697 = vmatprep.subr.bf16.mxu1 %v4722_v16  ;;  %v4819_v14 = vld [vmem:[%s6632_s2 + $0x388] ss:$40 sps:$4 sm:$0xff]   ;;  %v4824_v15 = vld [vmem:[%s6632_s2 + $0x3d4] ss:$40 sps:$4 sm:$0xff]  }
  0x42   : > { %v4827_v16 = vld [vmem:[%s6632_s2 + $0x3dc] ss:$40 sps:$4 sm:$0xff]  }
  0x44   : > { %1616 = vmatpush1.bf16.msra.mxu0 %v4724_v17  ;;  %1698 = vmatpush1.bf16.msra.mxu1 %v4725_v18  ;;  %v4822_v17 = vld [vmem:[%s6632_s2 + $0x3d0] ss:$40 sps:$4 sm:$0xff]  }
  0x45   : > { %1626 = vmatprep.subr.bf16.mxu0 %v4739_v19  ;;  %1708 = vmatprep.subr.bf16.mxu1 %v4742_v20  ;;  %v4825_v18 = vld [vmem:[%s6632_s2 + $0x3d8] ss:$40 sps:$4 sm:$0xff]   ;;  %v4830_v19 = vld [vmem:[%s6632_s2 + $0x424] ss:$40 sps:$4 sm:$0xff]  }
  0x46   : > { %v4833_v20 = vld [vmem:[%s6632_s2 + $0x42c] ss:$40 sps:$4 sm:$0xff]  }
  0x47   : > { %1618 = vmatmul.mubr.bf16.vlgmr.msra.gmra.mrb[0].mxu0 %v5251_v21  ;;  %1700 = vmatmul.mubr.bf16.vlgmr.msra.gmra.mrb[0].mxu1 %v5251_v21 }
  0x48   : > { %1627 = vmatpush1.bf16.msra.mxu0 %v4737_v22  ;;  %1709 = vmatpush1.bf16.msra.mxu1 %v4740_v23  ;;  %v4828_v22 = vld [vmem:[%s6632_s2 + $0x420] ss:$40 sps:$4 sm:$0xff]  }
  0x49   : > { %1628 = vmatprep.subr.bf16.mxu0 %v4745_v24  ;;  %1710 = vmatprep.subr.bf16.mxu1 %v4748_v25  ;;  %v4831_v23 = vld [vmem:[%s6632_s2 + $0x428] ss:$40 sps:$4 sm:$0xff]   ;;  %v4836_v24 = vld [vmem:[%s6632_s2 + $0x474] ss:$40 sps:$4 sm:$0xff]  }
  0x4a   : > { %1658 = vmatprep.mubr.bf16.mxu0 %v4927_v4  ;;  %1740 = vmatprep.mubr.bf16.mxu1 %v4927_v4  ;;  %v4839_v25 = vld [vmem:[%s6632_s2 + $0x47c] ss:$40 sps:$4 sm:$0xff]  }
  0x4c   : > { %1629 = vmatpush1.bf16.msra.mxu0 %v4743_v26  ;;  %1711 = vmatpush1.bf16.msra.mxu1 %v4746_v27  ;;  %v4834_v26 = vld [vmem:[%s6632_s2 + $0x470] ss:$40 sps:$4 sm:$0xff]  }
  0x4d   : > { %1749 = vmatprep.subr.bf16.mxu0 %v4751_v28  ;;  %1831 = vmatprep.subr.bf16.mxu1 %v4754_v29  ;;  %v4837_v27 = vld [vmem:[%s6632_s2 + $0x478] ss:$40 sps:$4 sm:$0xff]   ;;  %v4842_v28 = vld [vmem:[%s6632_s2 + $0x4c4] ss:$40 sps:$4 sm:$0xff]  }
  0x4e   : > { %v4845_v29 = vld [vmem:[%s6632_s2 + $0x4cc] ss:$40 sps:$4 sm:$0xff]  }
  0x53   : > { %4503 = vmatmul.mubr.msk.bf16.vlgmr.msra.gmra.mrb[0].mxu0 %vm1581_vm1, %v5288_v32  ;;  %4504 = vmatmul.mubr.msk.bf16.vlgmr.msra.gmra.mrb[0].mxu1 %vm1581_vm1, %v5288_v32 }
  0x54   : > { %1750 = vmatpush1.bf16.msra.mxu0 %v4749_v30  ;;  %1832 = vmatpush1.bf16.msra.mxu1 %v4752_v31  ;;  %v4840_v30 = vld [vmem:[%s6632_s2 + $0x4c0] ss:$40 sps:$4 sm:$0xff]  }
  0x55   : > { %1751 = vmatprep.subr.bf16.mxu0 %v4758_v33  ;;  %1833 = vmatprep.subr.bf16.mxu1 %v4761_v34  ;;  %v4843_v31 = vld [vmem:[%s6632_s2 + $0x4c8] ss:$40 sps:$4 sm:$0xff]   ;;  %v4848_v33 = vld [vmem:[%s6632_s2 + $0x514] ss:$40 sps:$4 sm:$0xff]  }
  0x56   : > { %1781 = vmatprep.mubr.bf16.mxu0 %v5190_v50  ;;  %1863 = vmatprep.mubr.bf16.mxu1 %v5190_v50  ;;  %v4851_v34 = vld [vmem:[%s6632_s2 + $0x51c] ss:$40 sps:$4 sm:$0xff]  }
  0x58   : > { %1752 = vmatpush1.bf16.msra.mxu0 %v4756_v35  ;;  %1834 = vmatpush1.bf16.msra.mxu1 %v4759_v36  ;;  %v4846_v35 = vld [vmem:[%s6632_s2 + $0x510] ss:$40 sps:$4 sm:$0xff]  }
  0x59   : > { %1753 = vmatprep.subr.bf16.mxu0 %v4764_v37  ;;  %1835 = vmatprep.subr.bf16.mxu1 %v4767_v38  ;;  %v4849_v36 = vld [vmem:[%s6632_s2 + $0x518] ss:$40 sps:$4 sm:$0xff]   ;;  %v4854_v37 = vld [vmem:[%s6632_s2 + $0x564] ss:$40 sps:$4 sm:$0xff]  }
  0x5a   : > { %v4857_v38 = vld [vmem:[%s6632_s2 + $0x56c] ss:$40 sps:$4 sm:$0xff]  }
  0x5c   : > { %1754 = vmatpush1.bf16.msra.mxu0 %v4762_v39  ;;  %1836 = vmatpush1.bf16.msra.mxu1 %v4765_v40  ;;  %v4852_v39 = vld [vmem:[%s6632_s2 + $0x560] ss:$40 sps:$4 sm:$0xff]  }
  0x5d   : > { %1755 = vmatprep.subr.bf16.mxu0 %v4770_v41  ;;  %1837 = vmatprep.subr.bf16.mxu1 %v4773_v42  ;;  %v4855_v40 = vld [vmem:[%s6632_s2 + $0x568] ss:$40 sps:$4 sm:$0xff]   ;;  %v4860_v41 = vld [vmem:[%s6632_s2 + $0x24] ss:$40 sps:$4 sm:$0xff]  }
  0x5e   : > { %v4858_v42 = vld [vmem:[%s6632_s2 + $0x20] ss:$40 sps:$4 sm:$0xff]  }
  0x60   : > { %1756 = vmatpush1.bf16.msra.mxu0 %v4768_v43  ;;  %1838 = vmatpush1.bf16.msra.mxu1 %v4771_v44  ;;  %v4863_v43 = vld [vmem:[%s6632_s2 + $0x74] ss:$40 sps:$4 sm:$0xff]   ;;  %v4861_v44 = vld [vmem:[%s6632_s2 + $0x70] ss:$40 sps:$4 sm:$0xff]  }
  0x61   : > { %1757 = vmatprep.subr.bf16.mxu0 %v4776_v45  ;;  %1839 = vmatprep.subr.bf16.mxu1 %v4779_v46  ;;  %v4866_v45 = vld [vmem:[%s6632_s2 + $0xc4] ss:$40 sps:$4 sm:$0xff]   ;;  %v4864_v46 = vld [vmem:[%s6632_s2 + $0xc0] ss:$40 sps:$4 sm:$0xff]  }
  0x64   : > { %1758 = vmatpush1.bf16.msra.mxu0 %v4774_v47  ;;  %1840 = vmatpush1.bf16.msra.mxu1 %v4777_v48  ;;  %v4869_v47 = vld [vmem:[%s6632_s2 + $0x114] ss:$40 sps:$4 sm:$0xff]   ;;  %v4872_v48 = vld [vmem:[%s6632_s2 + $0x164] ss:$40 sps:$4 sm:$0xff]  }
  0x65   : > { %1759 = vmatprep.subr.bf16.mxu0 %v4782_v49  ;;  %1841 = vmatprep.subr.bf16.mxu1 %v4785_v51  ;;  %v4870_v49 = vld [vmem:[%s6632_s2 + $0x160] ss:$40 sps:$4 sm:$0xff]   ;;  %v4875_v51 = vld [vmem:[%s6632_s2 + $0x1b4] ss:$40 sps:$4 sm:$0xff]  }
  0x68   : > { %1760 = vmatpush1.bf16.msra.mxu0 %v4780_v52  ;;  %1842 = vmatpush1.bf16.msra.mxu1 %v4783_v53  ;;  %v4873_v52 = vld [vmem:[%s6632_s2 + $0x1b0] ss:$40 sps:$4 sm:$0xff]   ;;  %v4878_v53 = vld [vmem:[%s6632_s2 + $0x204] ss:$40 sps:$4 sm:$0xff]  }
  0x69   : > { %1761 = vmatprep.subr.bf16.mxu0 %v4788_v54  ;;  %1843 = vmatprep.subr.bf16.mxu1 %v4791_v55  ;;  %v4876_v54 = vld [vmem:[%s6632_s2 + $0x200] ss:$40 sps:$4 sm:$0xff]   ;;  %v4881_v55 = vld [vmem:[%s6632_s2 + $0x254] ss:$40 sps:$4 sm:$0xff]  }
  0x6c   : > { %1762 = vmatpush1.bf16.msra.mxu0 %v4786_v56  ;;  %1844 = vmatpush1.bf16.msra.mxu1 %v4789_v57  ;;  %v4879_v56 = vld [vmem:[%s6632_s2 + $0x250] ss:$40 sps:$4 sm:$0xff]   ;;  %v4884_v57 = vld [vmem:[%s6632_s2 + $0x2a4] ss:$40 sps:$4 sm:$0xff]  }
  0x6d   : > { %1763 = vmatprep.subr.bf16.mxu0 %v4794_v58  ;;  %1845 = vmatprep.subr.bf16.mxu1 %v4797_v59  ;;  %v4882_v58 = vld [vmem:[%s6632_s2 + $0x2a0] ss:$40 sps:$4 sm:$0xff]   ;;  %v4887_v59 = vld [vmem:[%s6632_s2 + $0x2f4] ss:$40 sps:$4 sm:$0xff]  }
  0x70   : > { %1764 = vmatpush1.bf16.msra.mxu0 %v4792_v60  ;;  %1846 = vmatpush1.bf16.msra.mxu1 %v4795_v61  ;;  %v4885_v60 = vld [vmem:[%s6632_s2 + $0x2f0] ss:$40 sps:$4 sm:$0xff]   ;;  %v4890_v61 = vld [vmem:[%s6632_s2 + $0x344] ss:$40 sps:$4 sm:$0xff]  }
  0x71   : > { %1765 = vmatprep.subr.bf16.mxu0 %v4800_v62  ;;  %1847 = vmatprep.subr.bf16.mxu1 %v4803_v63  ;;  %v4888_v62 = vld [vmem:[%s6632_s2 + $0x340] ss:$40 sps:$4 sm:$0xff]   ;;  %v4893_v63 = vld [vmem:[%s6632_s2 + $0x394] ss:$40 sps:$4 sm:$0xff]  }
  0x74   : > { %1766 = vmatpush1.bf16.msra.mxu0 %v4798_v0  ;;  %1848 = vmatpush1.bf16.msra.mxu1 %v4801_v1  ;;  %v4891_v0 = vld [vmem:[%s6632_s2 + $0x390] ss:$40 sps:$4 sm:$0xff]   ;;  %v4896_v1 = vld [vmem:[%s6632_s2 + $0x3e4] ss:$40 sps:$4 sm:$0xff]  }
  0x75   : > { %1767 = vmatprep.subr.bf16.mxu0 %v4806_v2  ;;  %1849 = vmatprep.subr.bf16.mxu1 %v4809_v3  ;;  %v4894_v2 = vld [vmem:[%s6632_s2 + $0x3e0] ss:$40 sps:$4 sm:$0xff]   ;;  %v4899_v3 = vld [vmem:[%s6632_s2 + $0x434] ss:$40 sps:$4 sm:$0xff]  }
  0x78   : > { %1768 = vmatpush1.bf16.msra.mxu0 %v4804_v5  ;;  %1850 = vmatpush1.bf16.msra.mxu1 %v4807_v6  ;;  %v4897_v5 = vld [vmem:[%s6632_s2 + $0x430] ss:$40 sps:$4 sm:$0xff]   ;;  %v4902_v6 = vld [vmem:[%s6632_s2 + $0x484] ss:$40 sps:$4 sm:$0xff]  }
  0x79   : > { %1769 = vmatprep.subr.bf16.mxu0 %v4812_v7  ;;  %1851 = vmatprep.subr.bf16.mxu1 %v4815_v8  ;;  %v4900_v7 = vld [vmem:[%s6632_s2 + $0x480] ss:$40 sps:$4 sm:$0xff]   ;;  %v4905_v8 = vld [vmem:[%s6632_s2 + $0x4d4] ss:$40 sps:$4 sm:$0xff]  }
  0x7c   : > { %1770 = vmatpush1.bf16.msra.mxu0 %v4810_v9  ;;  %1852 = vmatpush1.bf16.msra.mxu1 %v4813_v10  ;;  %v4903_v9 = vld [vmem:[%s6632_s2 + $0x4d0] ss:$40 sps:$4 sm:$0xff]   ;;  %v4908_v10 = vld [vmem:[%s6632_s2 + $0x524] ss:$40 sps:$4 sm:$0xff]  }
  0x7d   : > { %1771 = vmatprep.subr.bf16.mxu0 %v4818_v11  ;;  %1853 = vmatprep.subr.bf16.mxu1 %v4821_v12  ;;  %v4906_v11 = vld [vmem:[%s6632_s2 + $0x520] ss:$40 sps:$4 sm:$0xff]   ;;  %v4911_v12 = vld [vmem:[%s6632_s2 + $0x574] ss:$40 sps:$4 sm:$0xff]  }
  0x80   : > { %1772 = vmatpush1.bf16.msra.mxu0 %v4816_v13  ;;  %1854 = vmatpush1.bf16.msra.mxu1 %v4819_v14  ;;  %v4909_v13 = vld [vmem:[%s6632_s2 + $0x570] ss:$40 sps:$4 sm:$0xff]  }
  0x81   : > { %1773 = vmatprep.subr.bf16.mxu0 %v4824_v15  ;;  %1855 = vmatprep.subr.bf16.mxu1 %v4827_v16 }
  0x84   : > { %1774 = vmatpush1.bf16.msra.mxu0 %v4822_v17  ;;  %1856 = vmatpush1.bf16.msra.mxu1 %v4825_v18 }
  0x85   : > { %1775 = vmatprep.subr.bf16.mxu0 %v4830_v19  ;;  %1857 = vmatprep.subr.bf16.mxu1 %v4833_v20 }
  0x88   : > { %1776 = vmatpush1.bf16.msra.mxu0 %v4828_v22  ;;  %1858 = vmatpush1.bf16.msra.mxu1 %v4831_v23 }
  0x89   : > { %1777 = vmatprep.subr.bf16.mxu0 %v4836_v24  ;;  %1859 = vmatprep.subr.bf16.mxu1 %v4839_v25 }
  0x8c   : > { %1778 = vmatpush1.bf16.msra.mxu0 %v4834_v26  ;;  %1860 = vmatpush1.bf16.msra.mxu1 %v4837_v27  ;;  %v5626_v27 = vld [vmem:[%s6634_s4] sm:$0xff]  }
  0x8d   : > { %1779 = vmatprep.subr.bf16.mxu0 %v4842_v28  ;;  %1861 = vmatprep.subr.bf16.mxu1 %v4845_v29 }
  0x90   : > { %1780 = vmatpush1.bf16.msra.mxu0 %v4840_v30  ;;  %1862 = vmatpush1.bf16.msra.mxu1 %v4843_v31  ;;  %v5634_v30 = vld [vmem:[%s6634_s4 + $0x8] sm:$0xff]   ;;  %v5642_v31 = vld [vmem:[%s6634_s4 + $0x10] ss:$0 sps:$4 sm:$0x33]  }
  0x91   : > { %1790 = vmatprep.subr.bf16.mxu0 %v4848_v33  ;;  %1872 = vmatprep.subr.bf16.mxu1 %v4851_v34  ;;  %v2860_v33 = vld [vmem:[%s6635_s5] sm:$0xf] }
  0x92   : > { %v2899_v34 = vld [vmem:[%s6637_s7] sm:$0xf]  ;;  %2863 = vperm.xlu0 %4628, %v2860_v33  }
  0x93   : > { %1782 = vmatmul.mubr.bf16.vlgmr.msra.gmra.mrb[4].mxu0 %v5251_v21  ;;  %1864 = vmatmul.mubr.bf16.vlgmr.msra.gmra.mrb[4].mxu1 %v5251_v21 }
  0x94   : > { %1791 = vmatpush1.bf16.msra.mxu0 %v4846_v35  ;;  %1873 = vmatpush1.bf16.msra.mxu1 %v4849_v36  ;;  %v2884_v35 = vld [vmem:[%s6636_s6] sm:$0xf] }
  0x95   : > { %1792 = vmatprep.subr.bf16.mxu0 %v4854_v37  ;;  %1874 = vmatprep.subr.bf16.mxu1 %v4857_v38 }
  0x96   : > { %1822 = vmatprep.mubr.bf16.mxu0 %v4927_v4  ;;  %1904 = vmatprep.mubr.bf16.mxu1 %v4927_v4 }
  0x97   : > { %2902 = vperm.xlu1 %4629, %v2899_v34   ;;  %2887 = vperm.xlu0 %4628, %v2884_v35  }
  0x98   : > { %1793 = vmatpush1.bf16.msra.mxu0 %v4852_v39  ;;  %1875 = vmatpush1.bf16.msra.mxu1 %v4855_v40 }
  0x99   : > { %1913 = vmatprep.subr.bf16.mxu0 %v4860_v41 }
  0x9f   : > { %4505 = vmatmul.mubr.msk.bf16.vlgmr.msra.gmra.mrb[4].mxu0 %vm1581_vm1, %v5288_v32  ;;  %4506 = vmatmul.mubr.msk.bf16.vlgmr.msra.gmra.mrb[4].mxu1 %vm1581_vm1, %v5288_v32 }
  0xa0   : > { %1914 = vmatpush1.bf16.msra.mxu0 %v4858_v42  ;;  %1945 = vmatprep.mubr.bf16.mxu0 %v5190_v50  ;;  %v4867_v50 = vld [vmem:[%s6632_s2 + $0x110] ss:$40 sps:$4 sm:$0xff]  }
  0xa1   : > { %1915 = vmatprep.subr.bf16.mxu0 %v4863_v43  ;;  %2137 = vmatprep.mubr.bf16.mxu1 %v4927_v4 }
  0xa4   : > { %1916 = vmatpush1.bf16.msra.mxu0 %v4861_v44 }
  0xa5   : > { %1917 = vmatprep.subr.bf16.mxu0 %v4866_v45 }
  0xa8   : > { %1918 = vmatpush1.bf16.msra.mxu0 %v4864_v46 }
  0xa9   : > { %1919 = vmatprep.subr.bf16.mxu0 %v4869_v47 }
  0xac   : > { %1920 = vmatpush1.bf16.msra.mxu0 %v4867_v50 }
  0xad   : > { %1921 = vmatprep.subr.bf16.mxu0 %v4872_v48 }
  0xb0   : > { %1922 = vmatpush1.bf16.msra.mxu0 %v4870_v49 }
  0xb1   : > { %1923 = vmatprep.subr.bf16.mxu0 %v4875_v51 }
  0xb4   : > { %1924 = vmatpush1.bf16.msra.mxu0 %v4873_v52 }
  0xb5   : > { %1925 = vmatprep.subr.bf16.mxu0 %v4878_v53 }
  0xb8   : > { %1926 = vmatpush1.bf16.msra.mxu0 %v4876_v54 }
  0xb9   : > { %1927 = vmatprep.subr.bf16.mxu0 %v4881_v55 }
  0xbc   : > { %1928 = vmatpush1.bf16.msra.mxu0 %v4879_v56 }
  0xbd   : > { %1929 = vmatprep.subr.bf16.mxu0 %v4884_v57 }
  0xc0   : > { %1930 = vmatpush1.bf16.msra.mxu0 %v4882_v58 }
  0xc1   : > { %1931 = vmatprep.subr.bf16.mxu0 %v4887_v59 }
  0xc4   : > { %1932 = vmatpush1.bf16.msra.mxu0 %v4885_v60 }
  0xc5   : > { %1933 = vmatprep.subr.bf16.mxu0 %v4890_v61 }
  0xc8   : > { %1934 = vmatpush1.bf16.msra.mxu0 %v4888_v62 }
  0xc9   : > { %1935 = vmatprep.subr.bf16.mxu0 %v4893_v63 }
  0xcc   : > { %1936 = vmatpush1.bf16.msra.mxu0 %v4891_v0 }
  0xcd   : > { %1937 = vmatprep.subr.bf16.mxu0 %v4896_v1 }
  0xd0   : > { %1938 = vmatpush1.bf16.msra.mxu0 %v4894_v2 }
  0xd1   : > { %1939 = vmatprep.subr.bf16.mxu0 %v4899_v3 }
  0xd4   : > { %1940 = vmatpush1.bf16.msra.mxu0 %v4897_v5 }
  0xd5   : > { %1941 = vmatprep.subr.bf16.mxu0 %v4902_v6 }
  0xd8   : > { %1942 = vmatpush1.bf16.msra.mxu0 %v4900_v7 }
  0xd9   : > { %1943 = vmatprep.subr.bf16.mxu0 %v4905_v8 }
  0xdc   : > { %1944 = vmatpush1.bf16.msra.mxu0 %v4903_v9 }
  0xdd   : > { %1954 = vmatprep.subr.bf16.mxu0 %v4908_v10 }
  0xdf   : > { %1946 = vmatmul.mubr.bf16.vlgmr.msra.gmra.mrb[8].mxu0 %v5251_v21 }
  0xe0   : > { %1955 = vmatpush1.bf16.msra.mxu0 %v4906_v11  ;;  %1986 = vmatprep.mubr.bf16.mxu0 %v4927_v4 }
  0xe1   : > { %1956 = vmatprep.subr.bf16.mxu0 %v4911_v12 }
  0xe4   : > { %1957 = vmatpush1.bf16.msra.mxu0 %v4909_v13 }
  0xeb   : > { %4507 = vmatmul.mubr.msk.bf16.vlgmr.msra.gmra.mrb[8].mxu0 %vm1581_vm1, %v5288_v32  ;;  %vm3054_vm1 = vmor %vm3053_vm0, %vm3052_vm15  ;;  %vm3062_vm15 = vcmask 306178   ;;  %vm3059_vm0 = vcmask 803840  }
  0xec   : > { %2320 = vmatprep.mubr.bf16.mxu0 %v4927_v4 }
 0x126   : > { %v1660_v14 = vpop.f32.mrb[0].mxu0  ;;  %v1742_v15 = vpop.f32.mrb[0].mxu1 }
 0x127   : > { %v1995_v16 = vpack.c.bf16 %v1660_v14, %v1660_v14  ;;  %v1997_v17 = vpack.c.bf16 %v1742_v15, %v1742_v15  ;;  %v1662_v18 = vpop.f32.mrb[1].mxu0  ;;  %v1744_v21 = vpop.f32.mrb[1].mxu1 }
 0x128   : > { %v1996_v19 = vpack.c.bf16 %v1662_v18, %v1662_v18  ;;  %v1998_v20 = vpack.c.bf16 %v1744_v21, %v1744_v21  ;;  %v1664_v22 = vpop.f32.mrb[2].mxu0  ;;  %v1746_v23 = vpop.f32.mrb[2].mxu1 }
 0x129   : > { %2005 = vst [vmem:[#allocation2] sm:$0xf] %v1995_v16  ;;  %2007 = vst [vmem:[#allocation2 + $0x10] sm:$0xf] %v1997_v17  ;;  %v1665_v24 = vpop.f32.mrb[3].mxu0  ;;  %v1747_v25 = vpop.f32.mrb[3].mxu1 }
 0x12a   : > { %2006 = vst [vmem:[#allocation2 + $0x8] sm:$0xf] %v1996_v19  ;;  %2008 = vst [vmem:[#allocation2 + $0x18] sm:$0xf] %v1998_v20 }
 0x130   : > { %v2072_v32 = vld [vmem:[#allocation2] sm:$0xff]  ;;  %v2074_v29 = vld [vmem:[#allocation2 + $0x10] sm:$0xff] }
 0x131   : > { %v2073_v26 = vld [vmem:[#allocation2 + $0x8] sm:$0xff]  ;;  %v2075_v28 = vld [vmem:[#allocation2 + $0x18] sm:$0xff] }
 0x132   : > { %2105 = vmatprep.subr.bf16.mxu1 %v2073_v26 }
 0x133   : > { %2106 = vmatpush1.bf16.msra.mxu1 %v2072_v32 }
 0x134   : > { %2166 = vmatprep.subr.bf16.mxu1 %v2075_v28 }
 0x136   : > { %4521 = vmatmul.mubr.msk.bf16.vlgmr.msra.gmra.mrb[8].mxu1 %vm2095_vm2, %v5626_v27 }
 0x137   : > { %2167 = vmatpush1.bf16.msra.mxu1 %v2074_v29  ;;  %2147 = vmatprep.mubr.bf16.mxu1 %v4927_v4 }
 0x13e   : > { %4522 = vmatmul.mubr.msk.bf16.gmra.mrb[12].mxu1 %vm2095_vm2, %v5634_v30 }
 0x13f   : > { %2157 = vmatprep.mubr.bf16.mxu1 %v4927_v4 }
 0x146   : > { %4523 = vmatmul.mubr.msk.bf16.gmra.mrb[16].mxu1 %vm2095_vm2, %v5642_v31 }
 0x147   : > { %2198 = vmatprep.mubr.bf16.mxu1 %v4927_v4 }
 0x14e   : > { %4524 = vmatmul.mubr.msk.bf16.vlgmr.msra.gmra.mrb[20].mxu1 %vm2095_vm2, %v5626_v27 }
 0x14f   : > { %2208 = vmatprep.mubr.bf16.mxu1 %v4927_v4 }
 0x156   : > { %4525 = vmatmul.mubr.msk.bf16.gmra.mrb[24].mxu1 %vm2095_vm2, %v5634_v30 }
 0x157   : > { %2218 = vmatprep.mubr.bf16.mxu1 %v4927_v4 }
 0x15e   : > { %4526 = vmatmul.mubr.msk.bf16.gmra.mrb[28].mxu1 %vm2095_vm2, %v5642_v31 }
 0x15f   : > { %2259 = vmatprep.mubr.bf16.mxu1 %v4927_v4 }
 0x172   : > { %v1824_v36 = vpop.f32.mrb[4].mxu0  ;;  %v1906_v37 = vpop.f32.mrb[4].mxu1 }
 0x173   : > { %v1999_v38 = vpack.c.bf16 %v1824_v36, %v1824_v36  ;;  %v2001_v39 = vpack.c.bf16 %v1906_v37, %v1906_v37  ;;  %v1826_v40 = vpop.f32.mrb[5].mxu0  ;;  %v1908_v41 = vpop.f32.mrb[5].mxu1 }
 0x174   : > { %v2000_v42 = vpack.c.bf16 %v1826_v40, %v1826_v40  ;;  %v2002_v43 = vpack.c.bf16 %v1908_v41, %v1908_v41  ;;  %v1828_v44 = vpop.f32.mrb[6].mxu0  ;;  %v1910_v45 = vpop.f32.mrb[6].mxu1 }
 0x175   : > { %2009 = vst [vmem:[#allocation2 + $0x20] sm:$0xf] %v1999_v38  ;;  %2011 = vst [vmem:[#allocation2 + $0x30] sm:$0xf] %v2001_v39  ;;  %v1829_v46 = vpop.f32.mrb[7].mxu0  ;;  %v1911_v47 = vpop.f32.mrb[7].mxu1 }
 0x176   : > { %2010 = vst [vmem:[#allocation2 + $0x28] sm:$0xf] %v2000_v42  ;;  %2012 = vst [vmem:[#allocation2 + $0x38] sm:$0xf] %v2002_v43 }
 0x17c   : > { %v2076_v49 = vld [vmem:[#allocation2 + $0x20] sm:$0xff]  ;;  %v2078_v51 = vld [vmem:[#allocation2 + $0x30] sm:$0xff] }
 0x17d   : > { %v2077_v50 = vld [vmem:[#allocation2 + $0x28] sm:$0xff]  ;;  %v2079_v48 = vld [vmem:[#allocation2 + $0x38] sm:$0xff] }
 0x17e   : > { %2227 = vmatprep.subr.bf16.mxu1 %v2077_v50  ;;  %2288 = vmatprep.subr.bf16.mxu0 %v2079_v48 }
 0x17f   : > { %2228 = vmatpush1.bf16.msra.mxu1 %v2076_v49  ;;  %2289 = vmatpush1.bf16.msra.mxu0 %v2078_v51 }
 0x182   : > { %4527 = vmatmul.mubr.msk.bf16.vlgmr.msra.gmra.mrb[32].mxu1 %vm2095_vm2, %v5626_v27  ;;  %4530 = vmatmul.mubr.msk.bf16.vlgmr.msra.gmra.mrb[12].mxu0 %vm2095_vm2, %v5626_v27 }
 0x183   : > { %2269 = vmatprep.mubr.bf16.mxu1 %v4927_v4  ;;  %2330 = vmatprep.mubr.bf16.mxu0 %v4927_v4 }
 0x18a   : > { %4528 = vmatmul.mubr.msk.bf16.gmra.mrb[36].mxu1 %vm2095_vm2, %v5634_v30  ;;  %4531 = vmatmul.mubr.msk.bf16.gmra.mrb[16].mxu0 %vm2095_vm2, %v5634_v30 }
 0x18b   : > { %2279 = vmatprep.mubr.bf16.mxu1 %v4927_v4  ;;  %2340 = vmatprep.mubr.bf16.mxu0 %v4927_v4 }
 0x192   : > { %4529 = vmatmul.mubr.msk.bf16.gmra.mrb[40].mxu1 %vm2095_vm2, %v5642_v31  ;;  %4532 = vmatmul.mubr.msk.bf16.gmra.mrb[20].mxu0 %vm2095_vm2, %v5642_v31 }
 0x193   : > { %2381 = vmatprep.mubr.bf16.mxu1 %v4927_v4  ;;  %3204 = vmatprep.mubr.bf16.mxu0 %v4927_v4 }
 0x1be   : > { %v1988_v52 = vpop.f32.mrb[8].mxu0 }
 0x1bf   : > { %v2003_v53 = vpack.c.bf16 %v1988_v52, %v1988_v52  ;;  %v1990_v54 = vpop.f32.mrb[9].mxu0 }
 0x1c0   : > { %v2004_v55 = vpack.c.bf16 %v1990_v54, %v1990_v54  ;;  %v1992_v56 = vpop.f32.mrb[10].mxu0 }
 0x1c1   : > { %2013 = vst [vmem:[#allocation2 + $0x40] sm:$0xf] %v2003_v53  ;;  %v1993_v57 = vpop.f32.mrb[11].mxu0 }
 0x1c2   : > { %2015 = vst.msk [vmem:[#allocation2 + $0x48] sm:$0xf] %vm2014_vm3, %v2004_v55  ;;  %vm3041_vm3 = vcmask 285696  }
 0x1c8   : > { %v2080_v58 = vld [vmem:[#allocation2 + $0x40] sm:$0xff] }
 0x1c9   : > { %v2081_v59 = vld [vmem:[#allocation2 + $0x48] sm:$0xff] }
 0x1ca   : > { %2349 = vmatprep.subr.bf16.mxu1 %v2081_v59 }
 0x1cb   : > { %2350 = vmatpush1.bf16.msra.mxu1 %v2080_v58 }
 0x1ce   : > { %4533 = vmatmul.mubr.msk.bf16.vlgmr.msra.gmra.mrb[44].mxu1 %vm2095_vm2, %v5626_v27 }
 0x1cf   : > { %2389 = vmatprep.mubr.bf16.mxu1 %v4927_v4 }
 0x1d6   : > { %4534 = vmatmul.mubr.msk.bf16.gmra.mrb[48].mxu1 %vm2095_vm2, %v5634_v30 }
 0x1d7   : > { %2398 = vmatprep.mubr.bf16.mxu1 %v4927_v4 }
 0x1de   : > { %4535 = vmatmul.mubr.msk.bf16.gmra.mrb[52].mxu1 %vm2095_vm2, %v5642_v31  ;;  %vm3055_vm2 = vcmask 1047558  }
 0x1df   : > { %3265 = vmatprep.mubr.bf16.mxu1 %v4927_v4  ;;  %vm3056_vm12 = vmor %vm3055_vm2, %vm3054_vm1  ;;  %vm6649_vm2 = vcmask 474112  }
 0x1e0   : > { %vm3063_vm1 = vmor %vm3062_vm15, %vm3061_vm14 }
 0x1e1   : > { %vm6652_vm14 = vmmov %vm6649_vm2 }
 0x209   : > { %v5692_v60 = vpop.f32.mrb[8].mxu1 }
 0x20a   : > { %v2416_v61 = vrot.slane %v5692_v60, 4  ;;  %v5695_v62 = vpop.f32.mrb[9].mxu1 }
 0x20b   : > { %v2143_v63 = vpop.f32.mrb[10].mxu1  ;;  %v2417_v0 = vrot.slane %v5695_v62, 4 }
 0x20c   : > { %2425 = vrot.lane.b32.xlu0 %v2416_v61, %s4928_s28  ;;  %2479 = vrot.lane.b32.xlu1 %v2143_v63, %s4929_s22  ;;  %v2145_v1 = vpop.f32.mrb[11].mxu1  ;;  %v2524_v7 = vrot.slane %v2143_v63, 4 }
 0x20d   : > { %v2525_v2 = vrot.slane %v2145_v1, 4 }
 0x210   : > { %2427 = vrot.lane.b32.xlu0 %v2417_v0, %s4928_s28  ;;  %2535 = vrot.lane.b32.xlu1 %v2525_v2, %s4930_s25 }
 0x211   : > { %v2149_v3 = vpop.f32.mrb[12].mxu1 }
 0x212   : > { %v2151_v5 = vpop.f32.mrb[13].mxu1  ;;  %v2632_v13 = vrot.slane %v2149_v3, 4 }
 0x213   : > { %v2153_v6 = vpop.f32.mrb[14].mxu1  ;;  %v2633_v9 = vrot.slane %v2151_v5, 4 }
 0x214   : > { %2481 = vrot.lane.b32.xlu0 %v2145_v1, %s4929_s22  ;;  %2587 = vrot.lane.b32.xlu1 %v2149_v3, %s4931_s26  ;;  %v2155_v8 = vpop.f32.mrb[15].mxu1  ;;  %v2744_v14 = vrot.slane %v2153_v6, 4 }
 0x215   : > { %v2745_v16 = vrot.slane %v2155_v8, 4 }
 0x218   : > { %2533 = vrot.lane.b32.xlu0 %v2524_v7, %s4930_s25  ;;  %2696 = vrot.lane.b32.xlu1 %v2153_v6, %s4932_s27 }
 0x219   : > { %v2159_v10 = vpop.f32.mrb[16].mxu1 }
 0x21a   : > { %v2161_v11 = vpop.f32.mrb[17].mxu1 }
 0x21b   : > { %v2163_v12 = vpop.f32.mrb[18].mxu1 }
 0x21c   : > { %2589 = vrot.lane.b32.xlu0 %v2151_v5, %s4931_s26  ;;  %2643 = vrot.lane.b32.xlu1 %v2633_v9, %s4933_s15  ;;  %v2164_v15 = vpop.f32.mrb[19].mxu1  ;;  %v5766_v9 = vpop.permute.xlu0 %2863 }
 0x220   : > { %2641 = vrot.lane.b32.xlu0 %v2632_v13, %s4933_s15  ;;  %2754 = vrot.lane.b32.xlu1 %v2744_v14, %s4934_s16 }
 0x221   : > { %v5710_v17 = vpop.f32.mrb[20].mxu1 }
 0x222   : > { %v5712_v18 = vpop.f32.mrb[21].mxu1  ;;  %v2418_v20 = vrot.slane %v5710_v17, 4 }
 0x223   : > { %v2204_v21 = vpop.f32.mrb[22].mxu1  ;;  %v2419_v32 = vrot.slane %v5712_v18, 4 }
 0x224   : > { %2698 = vrot.lane.b32.xlu0 %v2155_v8, %s4932_s27  ;;  %2756 = vrot.lane.b32.xlu1 %v2745_v16, %s4934_s16  ;;  %v2206_v19 = vpop.f32.mrb[23].mxu1  ;;  %v2526_v25 = vrot.slane %v2204_v21, 4 }
 0x225   : > { %v2527_v30 = vrot.slane %v2206_v19, 4 }
 0x228   : > { %2812 = vrot.lane.b32.xlu1 %v2159_v10, %s6645_s17  ;;  %2814 = vrot.lane.b32.xlu0 %v2161_v11, %s6645_s17  ;;  %v5772_v10 = vpop.permute.xlu1 %2902  ;;  %v5774_v11 = vpop.permute.xlu0 %2887 }
 0x229   : > { %v2210_v22 = vpop.f32.mrb[24].mxu1 }
 0x22a   : > { %v2212_v23 = vpop.f32.mrb[25].mxu1  ;;  %v2634_v31 = vrot.slane %v2210_v22, 4 }
 0x22b   : > { %v2214_v24 = vpop.f32.mrb[26].mxu1  ;;  %v2635_v35 = vrot.slane %v2212_v23, 4 }
 0x22c   : > { %2429 = vrot.lane.b32.xlu1 %v2418_v20, %s4928_s28  ;;  %2485 = vrot.lane.b32.xlu0 %v2206_v19, %s4929_s22  ;;  %v2216_v26 = vpop.f32.mrb[27].mxu1  ;;  %v2746_v34 = vrot.slane %v2214_v24, 4 }
 0x22d   : > { %v2747_v36 = vrot.slane %v2216_v26, 4 }
 0x230   : > { %2483 = vrot.lane.b32.xlu1 %v2204_v21, %s4929_s22  ;;  %2537 = vrot.lane.b32.xlu0 %v2526_v25, %s4930_s25 }
 0x231   : > { %v2220_v27 = vpop.f32.mrb[28].mxu1 }
 0x232   : > { %v2222_v28 = vpop.f32.mrb[29].mxu1 }
 0x233   : > { %v2224_v29 = vpop.f32.mrb[30].mxu1 }
 0x234   : > { %2431 = vrot.lane.b32.xlu1 %v2419_v32, %s4928_s28  ;;  %2593 = vrot.lane.b32.xlu0 %v2212_v23, %s4931_s26  ;;  %v2225_v33 = vpop.f32.mrb[31].mxu1 }
 0x238   : > { %2539 = vrot.lane.b32.xlu1 %v2527_v30, %s4930_s25  ;;  %2645 = vrot.lane.b32.xlu0 %v2634_v31, %s4933_s15 }
 0x23c   : > { %2591 = vrot.lane.b32.xlu1 %v2210_v22, %s4931_s26  ;;  %2702 = vrot.lane.b32.xlu0 %v2216_v26, %s4932_s27 }
 0x240   : > { %2700 = vrot.lane.b32.xlu1 %v2214_v24, %s4932_s27  ;;  %2758 = vrot.lane.b32.xlu0 %v2746_v34, %s4934_s16 }
 0x244   : > { %2647 = vrot.lane.b32.xlu1 %v2635_v35, %s4933_s15  ;;  %2818 = vrot.lane.b32.xlu0 %v2222_v28, %s6645_s17 }
 0x248   : > { %2760 = vrot.lane.b32.xlu1 %v2747_v36, %s4934_s16 }
 0x24c   : > { %2816 = vrot.lane.b32.xlu1 %v2220_v27, %s6645_s17 }
 0x255   : > { %v5736_v37 = vpop.f32.mrb[32].mxu1  ;;  %v5738_v38 = vpop.f32.mrb[12].mxu0 }
 0x256   : > { %v2420_v39 = vrot.slane %v5736_v37, 4  ;;  %v5741_v40 = vpop.f32.mrb[33].mxu1  ;;  %v5743_v41 = vpop.f32.mrb[13].mxu0  ;;  %v2422_v45 = vrot.slane %v5738_v38, 4 }
 0x257   : > { %v2265_v42 = vpop.f32.mrb[34].mxu1  ;;  %v2326_v43 = vpop.f32.mrb[14].mxu0  ;;  %v2421_v47 = vrot.slane %v5741_v40, 4  ;;  %v2423_v50 = vrot.slane %v5743_v41, 4 }
 0x258   : > { %2433 = vrot.lane.b32.xlu0 %v2420_v39, %s4928_s28  ;;  %2487 = vrot.lane.b32.xlu1 %v2265_v42, %s4929_s22  ;;  %v2267_v44 = vpop.f32.mrb[35].mxu1  ;;  %v2328_v46 = vpop.f32.mrb[15].mxu0  ;;  %v2530_v57 = vrot.slane %v2326_v43, 4  ;;  %v2528_v5 = vrot.slane %v2265_v42, 4 }
 0x259   : > { %v2529_v6 = vrot.slane %v2267_v44, 4  ;;  %v2531_v8 = vrot.slane %v2328_v46, 4 }
 0x25c   : > { %2435 = vrot.lane.b32.xlu0 %v2421_v47, %s4928_s28  ;;  %2437 = vrot.lane.b32.xlu1 %v2422_v45, %s4928_s28 }
 0x25d   : > { %v2271_v48 = vpop.f32.mrb[36].mxu1  ;;  %v2332_v49 = vpop.f32.mrb[16].mxu0 }
 0x25e   : > { %v2273_v51 = vpop.f32.mrb[37].mxu1  ;;  %v2334_v52 = vpop.f32.mrb[17].mxu0  ;;  %v2638_v7 = vrot.slane %v2332_v49, 4  ;;  %v2636_v13 = vrot.slane %v2271_v48, 4 }
 0x25f   : > { %v2275_v53 = vpop.f32.mrb[38].mxu1  ;;  %v2336_v54 = vpop.f32.mrb[18].mxu0  ;;  %v2637_v16 = vrot.slane %v2273_v51, 4  ;;  %v2639_v24 = vrot.slane %v2334_v52, 4 }
 0x260   : > { %2439 = vrot.lane.b32.xlu0 %v2423_v50, %s4928_s28  ;;  %2491 = vrot.lane.b32.xlu1 %v2326_v43, %s4929_s22  ;;  %v2277_v55 = vpop.f32.mrb[39].mxu1  ;;  %v5754_v56 = vpop.f32.mrb[19].mxu0  ;;  %v2750_v12 = vrot.slane %v2336_v54, 4  ;;  %v2748_v20 = vrot.slane %v2275_v53, 4 }
 0x261   : > { %v2749_v30 = vrot.slane %v2277_v55, 4  ;;  %v2751_v34 = vrot.slane %v5754_v56, 4 }
 0x264   : > { %2489 = vrot.lane.b32.xlu0 %v2267_v44, %s4929_s22  ;;  %2545 = vrot.lane.b32.xlu1 %v2530_v57, %s4930_s25 }
 0x265   : > { %v2281_v58 = vpop.f32.mrb[40].mxu1  ;;  %v2342_v59 = vpop.f32.mrb[20].mxu0 }
 0x266   : > { %v2283_v61 = vpop.f32.mrb[41].mxu1  ;;  %v5758_v63 = vpop.f32.mrb[21].mxu0 }
 0x267   : > { %v2285_v0 = vpop.f32.mrb[42].mxu1  ;;  %v2346_v1 = vpop.f32.mrb[22].mxu0 }
 0x268   : > { %2595 = vrot.lane.b32.xlu1 %v2271_v48, %s4931_s26  ;;  %2493 = vrot.lane.b32.xlu0 %v2328_v46, %s4929_s22  ;;  %v2286_v2 = vpop.f32.mrb[43].mxu1  ;;  %v2347_v3 = vpop.f32.mrb[23].mxu0 }
 0x26c   : > { %2541 = vrot.lane.b32.xlu0 %v2528_v5, %s4930_s25  ;;  %2599 = vrot.lane.b32.xlu1 %v2332_v49, %s4931_s26 }
 0x270   : > { %2543 = vrot.lane.b32.xlu0 %v2529_v6, %s4930_s25  ;;  %2704 = vrot.lane.b32.xlu1 %v2275_v53, %s4932_s27 }
 0x274   : > { %2547 = vrot.lane.b32.xlu0 %v2531_v8, %s4930_s25  ;;  %2653 = vrot.lane.b32.xlu1 %v2638_v7, %s4933_s15 }
 0x278   : > { %2597 = vrot.lane.b32.xlu0 %v2273_v51, %s4931_s26  ;;  %2708 = vrot.lane.b32.xlu1 %v2336_v54, %s4932_s27 }
 0x27c   : > { %2601 = vrot.lane.b32.xlu0 %v2334_v52, %s4931_s26  ;;  %2766 = vrot.lane.b32.xlu1 %v2750_v12, %s4934_s16 }
 0x27e   : > { %v2426_v14 = vpop.permute.xlu0 %2425  ;;  %v2480_v15 = vpop.permute.xlu1 %2479 }
 0x280   : > { %2649 = vrot.lane.b32.xlu0 %v2636_v13, %s4933_s15  ;;  %2820 = vrot.lane.b32.xlu1 %v2281_v58, %s6645_s17 }
 0x282   : > { %v2428_v21 = vpop.permute.xlu0 %2427  ;;  %v5780_v19 = vpop.permute.xlu1 %2535 }
 0x283   : > { %v2444_v43 = vsel %vm2443_vm4, %v2426_v14, %v2428_v21 }
 0x284   : > { %2651 = vrot.lane.b32.xlu0 %v2637_v16, %s4933_s15  ;;  %2824 = vrot.lane.b32.xlu1 %v2342_v59, %s6645_s17  ;;  %v2461_v49 = vadd.f32 %v2444_v43, %v5692_v60 }
 0x286   : > { %v2482_v22 = vpop.permute.xlu0 %2481  ;;  %v2588_v23 = vpop.permute.xlu1 %2587 }
 0x287   : > { %v2498_v50 = vsel %vm2497_vm5, %v2480_v15, %v2482_v22 }
 0x288   : > { %2762 = vrot.lane.b32.xlu0 %v2748_v20, %s4934_s16  ;;  %v2515_v54 = vadd.f32 %v2498_v50, %v2461_v49 }
 0x28a   : > { %v2534_v25 = vpop.permute.xlu0 %2533  ;;  %v2697_v26 = vpop.permute.xlu1 %2696 }
 0x28b   : > { %v2552_v52 = vsel %vm2551_vm6, %v2534_v25, %v5780_v19 }
 0x28c   : > { %2655 = vrot.lane.b32.xlu0 %v2639_v24, %s4933_s15  ;;  %v2569_v57 = vadd.f32 %v2552_v52, %v2515_v54 }
 0x28e   : > { %v5786_v32 = vpop.permute.xlu0 %2589  ;;  %v5788_v27 = vpop.permute.xlu1 %2643 }
 0x290   : > { %2706 = vrot.lane.b32.xlu0 %v2277_v55, %s4932_s27 }
 0x292   : > { %v2642_v28 = vpop.permute.xlu0 %2641  ;;  %v2755_v29 = vpop.permute.xlu1 %2754 }
 0x294   : > { %2710 = vrot.lane.b32.xlu0 %v5754_v56, %s4932_s27  ;;  %v2606_v56 = vsel %vm2605_vm7, %v2588_v23, %v5786_v32 }
 0x295   : > { %v2623_v1 = vadd.f32 %v2606_v56, %v2569_v57 }
 0x296   : > { %v5793_v31 = vpop.permute.xlu0 %2698  ;;  %v5795_v33 = vpop.permute.xlu1 %2756 }
 0x297   : > { %v2717_v5 = vsel %vm2716_vm9, %v2697_v26, %v5793_v31 }
 0x298   : > { %2764 = vrot.lane.b32.xlu0 %v2749_v30, %s4934_s16 }
 0x29a   : > { %v5799_v35 = vpop.permute.xlu1 %2812  ;;  %v5801_v36 = vpop.permute.xlu0 %2814 }
 0x29c   : > { %2768 = vrot.lane.b32.xlu0 %v2751_v34, %s4934_s16 }
 0x29e   : > { %v5804_v39 = vpop.permute.xlu1 %2429  ;;  %v5806_v42 = vpop.permute.xlu0 %2485 }
 0x29f   : > { %v2445_v60 = vsel %vm2443_vm4, %v2428_v21, %v5804_v39 }
 0x2a0   : > { %2822 = vrot.lane.b32.xlu0 %v2283_v61, %s6645_s17  ;;  %v2660_v61 = vsel %vm2659_vm8, %v2642_v28, %v5788_v27  ;;  %v2462_v2 = vadd.f32 %v2445_v60, %v5695_v62  ;;  %v2775_v62 = vsel %vm2774_vm10, %v2755_v29, %v5795_v33  ;;  %v2833_v29 = vsel %vm6647_vm11, %v5799_v35, %v5801_v36 }
 0x2a1   : > { %v5810_v44 = vpop.f32.mrb[44].mxu1  ;;  %v2677_v7 = vadd.f32 %v2660_v61, %v2623_v1 }
 0x2a2   : > { %v2424_v45 = vrot.slane %v5810_v44, 4  ;;  %v5813_v46 = vpop.permute.xlu1 %2483  ;;  %v5815_v47 = vpop.permute.xlu0 %2537 }
 0x2a3   : > { %v2385_v48 = vpop.f32.mrb[45].mxu1  ;;  %v2735_v14 = vadd.f32 %v2717_v5, %v2677_v7  ;;  %v2553_v21 = vsel %vm2551_vm6, %v5780_v19, %v5815_v47 }
 0x2a4   : > { %2441 = vrot.lane.b32.xlu1 %v2424_v45, %s4928_s28  ;;  %2826 = vrot.lane.b32.xlu0 %v5758_v63, %s6645_s17  ;;  %v2386_v51 = vpop.f32.mrb[46].mxu1  ;;  %v2499_v63 = vsel %vm2497_vm5, %v2482_v22, %v5813_v46 }
 0x2a5   : > { %v2388_v53 = vpop.f32.mrb[47].mxu1  ;;  %v2532_v58 = vrot.slane %v2386_v51, 4  ;;  %v2516_v8 = vadd.f32 %v2499_v63, %v2462_v2  ;;  %v2793_v25 = vadd.f32 %v2775_v62, %v2735_v14 }
 0x2a6   : > { %v5824_v55 = vpop.permute.xlu1 %2431  ;;  %v5830_v59 = vpop.permute.xlu0 %2593 }
 0x2a7   : > { %v2570_v22 = vadd.f32 %v2553_v21, %v2516_v8  ;;  %v2851_v45 = vadd.f32 %v2833_v29, %v2793_v25 }
 0x2a8   : > { %2495 = vrot.lane.b32.xlu1 %v2386_v51, %s4929_s22  ;;  %v2918_v51 = vlaneseq }
 0x2a9   : > { %v2391_v0 = vpop.f32.mrb[48].mxu1  ;;  %v2866_v52 = vadd.f32 %v5766_v9, %v2851_v45 }
 0x2aa   : > { %v5838_v3 = vpop.permute.xlu1 %2539  ;;  %v2393_v6 = vpop.f32.mrb[49].mxu1  ;;  %v2640_v23 = vrot.slane %v2391_v0, 4  ;;  %v5884_v60 = vshrl.u32 %v2918_v51, 7 }
 0x2ab   : > { %v2394_v12 = vpop.f32.mrb[50].mxu1  ;;  %v5843_v15 = vpop.permute.xlu0 %2645  ;;  %v5896_v6 = vld [vmem:[%s6633_s3] sm:$0xff] }
 0x2ac   : > { %2549 = vrot.lane.b32.xlu1 %v2532_v58, %s4930_s25  ;;  %v2396_v13 = vpop.f32.mrb[51].mxu1  ;;  %v2661_v34 = vsel %vm2659_vm8, %v5788_v27, %v5843_v15  ;;  %v2752_v49 = vrot.slane %v2394_v12, 4 }
 0x2ad   : > { %2714 = vrot.lane.b32.xlu0 %v2396_v13, %s4932_s27  ;;  %v2753_v2 = vrot.slane %v2396_v13, 4 }
 0x2ae   : > { %v5845_v16 = vpop.permute.xlu1 %2591 }
 0x2af   : > { %v2607_v20 = vsel %vm2605_vm7, %v5786_v32, %v5845_v16  ;;  %v5862_v19 = vpop.permute.xlu0 %2702 }
 0x2b0   : > { %2603 = vrot.lane.b32.xlu1 %v2391_v0, %s4931_s26  ;;  %v2624_v26 = vadd.f32 %v2607_v20, %v2570_v22  ;;  %v2920_v0 = vsub.s32 0, %v5884_v60 }
 0x2b1   : > { %v2400_v24 = vpop.f32.mrb[52].mxu1 }
 0x2b2   : > { %v5857_v28 = vpop.permute.xlu1 %2700  ;;  %v2402_v30 = vpop.f32.mrb[53].mxu1  ;;  %v2678_v50 = vadd.f32 %v2661_v34, %v2624_v26  ;;  %v2921_v13 = vrot.slane %v5896_v6, %v2920_v0 }
 0x2b3   : > { %v2404_v32 = vpop.f32.mrb[54].mxu1  ;;  %2830 = vrot.lane.b32.xlu0 %v2402_v30, %s6645_s17  ;;  %v2718_v35 = vsel %vm2716_vm9, %v5793_v31, %v5857_v28  ;;  %v5876_v54 = vpop.permute.xlu0 %2758  ;;  %v2875_v31 = vmax.f32 %v2866_v52, 0.0  ;;  %v2500_v52 = vsel %vm2497_vm5, %v5813_v46, %v5806_v42 }
 0x2b4   : > { %2657 = vrot.lane.b32.xlu1 %v2640_v23, %s4933_s15  ;;  %v2405_v43 = vpop.f32.mrb[55].mxu1  ;;  %v2736_v53 = vadd.f32 %v2718_v35, %v2678_v50  ;;  %v2776_v27 = vsel %vm2774_vm10, %v5795_v33, %v5876_v54  ;;  %v2924_v33 = vsub.s32 1, %v5884_v60  ;;  %v2446_v50 = vsel %vm2443_vm4, %v5804_v39, %v5824_v55 }
 0x2b5   : > { %v2890_v1 = vmul.f32 %v5774_v11, %v2875_v31  ;;  %v2463_v35 = vadd.f32 %v2446_v50, %v5710_v17  ;;  %v2608_v17 = vsel %vm2605_vm7, %v5845_v16, %v5830_v59  ;;  %v2719_v16 = vsel %vm2716_vm9, %v5857_v28, %v5862_v19 }
 0x2b6   : > { %v5869_v48 = vpop.permute.xlu1 %2647  ;;  %v2794_v57 = vadd.f32 %v2776_v27, %v2736_v53  ;;  %v2925_v14 = vrot.slane %v5896_v6, %v2924_v33 }
 0x2b7   : > { %v2517_v53 = vadd.f32 %v2500_v52, %v2463_v35  ;;  %v2662_v46 = vsel %vm2659_vm8, %v5843_v15, %v5869_v48 }
 0x2b8   : > { %2712 = vrot.lane.b32.xlu1 %v2394_v12, %s4932_s27  ;;  %v5901_v12 = vpop.permute.xlu0 %2818 }
 0x2ba   : > { %v5878_v56 = vpop.permute.xlu1 %2760 }
 0x2bc   : > { %2770 = vrot.lane.b32.xlu1 %v2752_v49, %s4934_s16 }
 0x2be   : > { %v2817_v58 = vpop.permute.xlu1 %2816 }
 0x2bf   : > { %v2834_v61 = vsel %vm6647_vm11, %v5801_v36, %v2817_v58  ;;  %v2905_v36 = vadd.f32 %v5772_v10, %v2890_v1  ;;  %v2835_v28 = vsel %vm6647_vm11, %v2817_v58, %v5901_v12 }
 0x2c0   : > { %v2852_v63 = vadd.f32 %v2834_v61, %v2794_v57  ;;  %2828 = vrot.lane.b32.xlu1 %v2400_v24, %s6645_s17  ;;  %v2554_v57 = vsel %vm2551_vm6, %v5815_v47, %v5838_v3 }
 0x2c1   : > { %v5910_v22 = vmul.f32 %v2921_v13, %v2905_v36  ;;  %v2571_v39 = vadd.f32 %v2554_v57, %v2517_v53 }
 0x2c2   : > { %v2867_v5 = vadd.f32 %v5766_v9, %v2852_v63 }
 0x2c3   : > { %v2625_v0 = vadd.f32 %v2608_v17, %v2571_v39 }
 0x2c4   : > { %v2876_v7 = vmax.f32 %v2867_v5, 0.0  ;;  %2772 = vrot.lane.b32.xlu1 %v2753_v2, %s4934_s16 }
 0x2c5   : > { %v2679_v2 = vadd.f32 %v2662_v46, %v2625_v0 }
 0x2c6   : > { %v2891_v8 = vmul.f32 %v5774_v11, %v2876_v7 }
 0x2c8   : > { %v2906_v62 = vadd.f32 %v5772_v10, %v2891_v8 }
 0x2ca   : > { %v5906_v21 = vpop.permute.xlu0 %2433  ;;  %v5908_v20 = vpop.permute.xlu1 %2487  ;;  %v5912_v23 = vmul.f32 %v2925_v14, %v2906_v62 }
 0x2cb   : > { %v2447_v63 = vsel %vm2443_vm4, %v5824_v55, %v5906_v21  ;;  %v2501_v33 = vsel %vm2497_vm5, %v5806_v42, %v5908_v20  ;;  %v2737_v55 = vadd.f32 %v2719_v16, %v2679_v2  ;;  %v4936_v16 = vmov 1983009808  }
 0x2cc   : > { %v4537_v24 = vpack.c.bf16 %v5912_v23, %v5910_v22  ;;  %v2464_v47 = vadd.f32 %v2447_v63, %v5712_v18  ;;  %v2777_v18 = vsel %vm2774_vm10, %v5876_v54, %v5878_v56 }
 0x2cd   : > { %v2795_v14 = vadd.f32 %v2777_v18, %v2737_v55  ;;  %v2928_v55 = vsub.s32 2, %v5884_v60 }
 0x2ce   : > { %v5916_v25 = vpop.permute.xlu0 %2435  ;;  %v5918_v26 = vpop.permute.xlu1 %2437  ;;  %v2518_v7 = vadd.f32 %v2501_v33, %v2464_v47  ;;  %v2995_v33 = vunpack.c.l.s4 %v4936_v16 }
 0x2cf   : > { %v2853_v50 = vadd.f32 %v2835_v28, %v2795_v14 }
 0x2d0   : > { %v2996_v28 = vunpack.c.0.s8 %v2995_v33 }
 0x2d1   : > { %v2868_v54 = vadd.f32 %v5766_v9, %v2853_v50 }
 0x2d2   : > { %v5921_v29 = vpop.permute.xlu0 %2439  ;;  %v5923_v30 = vpop.permute.xlu1 %2491 }
 0x2d6   : > { %v5925_v32 = vpop.permute.xlu0 %2489  ;;  %v5927_v34 = vpop.permute.xlu1 %2545 }
 0x2da   : > { %v5929_v43 = vpop.permute.xlu1 %2595  ;;  %v5931_v45 = vpop.permute.xlu0 %2493 }
 0x2de   : > { %v5937_v49 = vpop.permute.xlu0 %2541  ;;  %v5939_v51 = vpop.permute.xlu1 %2599 }
 0x2df   : > { %v2555_v15 = vsel %vm2551_vm6, %v5838_v3, %v5937_v49  ;;  %v2609_v3 = vsel %vm2605_vm7, %v5830_v59, %v5929_v43 }
 0x2e0   : > { %v2572_v13 = vadd.f32 %v2555_v15, %v2518_v7  ;;  %v2932_v7 = vsub.s32 3, %v5884_v60 }
 0x2e2   : > { %v5944_v27 = vpop.permute.xlu0 %2543  ;;  %v5946_v31 = vpop.permute.xlu1 %2704  ;;  %v2626_v52 = vadd.f32 %v2609_v3, %v2572_v13  ;;  %v2448_v13 = vsel %vm2443_vm4, %v5906_v21, %v5916_v25  ;;  %v2933_v50 = vrot.slane %v5896_v6, %v2932_v7  ;;  %v2503_v21 = vsel %vm2497_vm5, %v5925_v32, %v5923_v30 }
 0x2e3   : > { %v2720_v58 = vsel %vm2716_vm9, %v5862_v19, %v5946_v31 }
 0x2e6   : > { %v5954_v61 = vpop.permute.xlu0 %2547  ;;  %v5962_v1 = vpop.permute.xlu1 %2653 }
 0x2ea   : > { %v2598_v5 = vpop.permute.xlu0 %2597  ;;  %v5974_v36 = vpop.permute.xlu1 %2708 }
 0x2ee   : > { %v5976_v8 = vpop.permute.xlu0 %2601  ;;  %v5988_v35 = vpop.permute.xlu1 %2766 }
 0x2f2   : > { %v2650_v42 = vpop.permute.xlu0 %2649  ;;  %v5994_v17 = vpop.permute.xlu1 %2820 }
 0x2f3   : > { %v2663_v62 = vsel %vm2659_vm8, %v5869_v48, %v2650_v42  ;;  %v2877_v48 = vmax.f32 %v2868_v54, 0.0  ;;  %v2836_v0 = vsel %vm6647_vm11, %v5901_v12, %v5994_v17  ;;  %v2449_v12 = vsel %vm2443_vm4, %v5916_v25, %v5918_v26 }
 0x2f4   : > { %v2680_v53 = vadd.f32 %v2663_v62, %v2626_v52  ;;  %v2929_v62 = vrot.slane %v5896_v6, %v2928_v55  ;;  %v2502_v52 = vsel %vm2497_vm5, %v5908_v20, %v5925_v32  ;;  %v2466_v25 = vadd.f32 %v2449_v12, %v5741_v40 }
 0x2f5   : > { %v2892_v19 = vmul.f32 %v5774_v11, %v2877_v48  ;;  %v2557_v20 = vsel %vm2551_vm6, %v5944_v27, %v5927_v34  ;;  %v2610_v40 = vsel %vm2605_vm7, %v5929_v43, %v2598_v5 }
 0x2f6   : > { %v2652_v57 = vpop.permute.xlu0 %2651  ;;  %v2738_v39 = vadd.f32 %v2720_v58, %v2680_v53  ;;  %v2465_v53 = vadd.f32 %v2448_v13, %v5736_v37  ;;  %v2520_v48 = vadd.f32 %v2503_v21, %v2466_v25 }
 0x2f7   : > { %v2907_v14 = vadd.f32 %v5772_v10, %v2892_v19  ;;  %v2664_v19 = vsel %vm2659_vm8, %v2650_v42, %v2652_v57 }
 0x2f8   : > { %v2519_v32 = vadd.f32 %v2502_v52, %v2465_v53  ;;  %v2574_v16 = vadd.f32 %v2557_v20, %v2520_v48  ;;  %v2450_v48 = vsel %vm2443_vm4, %v5918_v26, %v5921_v29  ;;  %v2558_v26 = vsel %vm2551_vm6, %v5927_v34, %v5954_v61 }
 0x2f9   : > { %v2965_v37 = vmul.f32 %v2929_v62, %v2907_v14 }
 0x2fa   : > { %v2763_v46 = vpop.permute.xlu0 %2762 }
 0x2fb   : > { %v2778_v59 = vsel %vm2774_vm10, %v5878_v56, %v2763_v46 }
 0x2fc   : > { %v2796_v63 = vadd.f32 %v2778_v59, %v2738_v39  ;;  %v2556_v39 = vsel %vm2551_vm6, %v5937_v49, %v5944_v27  ;;  %v6035_v59 = vsub.s32 %v2996_v28, %v5884_v60  ;;  %v2665_v27 = vsel %vm2659_vm8, %v2652_v57, %v5962_v1 }
 0x2fe   : > { %v2854_v2 = vadd.f32 %v2836_v0, %v2796_v63  ;;  %v6001_v47 = vpop.permute.xlu0 %2655  ;;  %v2611_v0 = vsel %vm2605_vm7, %v2598_v5, %v5939_v51  ;;  %v3000_v7 = vrot.slane %v4537_v24, %v6035_v59  ;;  %v2825_v24 = vpop.permute.xlu1 %2824 }
 0x2ff   : > { %v2628_v55 = vadd.f32 %v2611_v0, %v2574_v16  ;;  %v2467_v16 = vadd.f32 %v2450_v48, %v5738_v38 }
 0x300   : > { %v2869_v15 = vadd.f32 %v5766_v9, %v2854_v2  ;;  %v2573_v2 = vadd.f32 %v2556_v39, %v2519_v32  ;;  %v2940_v39 = vsub.s32 5, %v5884_v60 }
 0x301   : > { %v2682_v42 = vadd.f32 %v2665_v27, %v2628_v55 }
 0x302   : > { %v2878_v56 = vmax.f32 %v2869_v15, 0.0  ;;  %v2707_v18 = vpop.permute.xlu0 %2706  ;;  %v2627_v15 = vadd.f32 %v2610_v40, %v2573_v2  ;;  %v2941_v0 = vrot.slane %v5896_v6, %v2940_v39  ;;  %v2504_v2 = vsel %vm2497_vm5, %v5923_v30, %v5931_v45 }
 0x303   : > { %v2721_v5 = vsel %vm2716_vm9, %v5946_v31, %v2707_v18  ;;  %v2612_v30 = vsel %vm2605_vm7, %v5939_v51, %v5976_v8 }
 0x304   : > { %v2893_v3 = vmul.f32 %v5774_v11, %v2878_v56  ;;  %v2722_v56 = vsel %vm2716_vm9, %v2707_v18, %v5974_v36  ;;  %v2681_v13 = vadd.f32 %v2664_v19, %v2627_v15  ;;  %v2521_v19 = vadd.f32 %v2504_v2, %v2467_v16 }
 0x305   : > { %v2740_v23 = vadd.f32 %v2722_v56, %v2682_v42  ;;  %v2948_v16 = vsub.s32 7, %v5884_v60 }
 0x306   : > { %v6025_v54 = vpop.permute.xlu0 %2710  ;;  %v2908_v58 = vadd.f32 %v5772_v10, %v2893_v3  ;;  %v2739_v22 = vadd.f32 %v2721_v5, %v2681_v13 }
 0x307   : > { %v2723_v56 = vsel %vm2716_vm9, %v5974_v36, %v6025_v54 }
 0x308   : > { %v2966_v63 = vmul.f32 %v2933_v50, %v2908_v58  ;;  %v2936_v58 = vsub.s32 4, %v5884_v60 }
 0x30a   : > { %v2765_v49 = vpop.permute.xlu0 %2764  ;;  %v4538_v33 = vpack.c.bf16 %v2966_v63, %v2965_v37  ;;  %v2937_v40 = vrot.slane %v5896_v6, %v2936_v58 }
 0x30b   : > { %v2779_v28 = vsel %vm2774_vm10, %v2763_v46, %v2765_v49  ;;  %v2780_v14 = vsel %vm2774_vm10, %v2765_v49, %v5988_v35 }
 0x30c   : > { %v3007_v43 = vrot.slane %v4538_v33, %v6035_v59  ;;  %v2797_v31 = vadd.f32 %v2779_v28, %v2739_v22  ;;  %v2798_v3 = vadd.f32 %v2780_v14, %v2740_v23 }
 0x30e   : > { %v6053_v12 = vpop.permute.xlu0 %2768  ;;  %v3008_v57 = vcombine.low %v3000_v7, %v3007_v43  ;;  %v2575_v7 = vadd.f32 %v2558_v26, %v2521_v19  ;;  %v2666_v43 = vsel %vm2659_vm8, %v5962_v1, %v6001_v47 }
 0x30f   : > { %v2781_v51 = vsel %vm2774_vm10, %v5988_v35, %v6053_v12 }
 0x310   : > { %3033 = vrot.lane.b32.xlu1 %v3008_v57, %s4937_s24  ;;  %v2629_v5 = vadd.f32 %v2612_v30, %v2575_v7 }
 0x312   : > { %v2823_v62 = vpop.permute.xlu0 %2822  ;;  %v2683_v42 = vadd.f32 %v2666_v43, %v2629_v5  ;;  %v2949_v5 = vrot.slane %v5896_v6, %v2948_v16 }
 0x313   : > { %v2837_v18 = vsel %vm6647_vm11, %v5994_v17, %v2823_v62  ;;  %v2838_v50 = vsel %vm6647_vm11, %v2823_v62, %v2825_v24 }
 0x314   : > { %v2855_v52 = vadd.f32 %v2837_v18, %v2797_v31  ;;  %v2856_v21 = vadd.f32 %v2838_v50, %v2798_v3  ;;  %v2741_v14 = vadd.f32 %v2723_v56, %v2683_v42 }
 0x316   : > { %v2870_v46 = vadd.f32 %v5766_v9, %v2855_v52  ;;  %v2871_v53 = vadd.f32 %v5766_v9, %v2856_v21  ;;  %v2442_v25 = vpop.permute.xlu1 %2441  ;;  %v2827_v57 = vpop.permute.xlu0 %2826  ;;  %v2799_v31 = vadd.f32 %v2781_v51, %v2741_v14 }
 0x317   : > { %v2451_v13 = vsel %vm2443_vm4, %v5921_v29, %v2442_v25  ;;  %v2839_v23 = vsel %vm6647_vm11, %v2825_v24, %v2827_v57  ;;  %v2469_v50 = vadd.f32 %v2442_v25, %v5810_v44 }
 0x318   : > { %v2879_v20 = vmax.f32 %v2870_v46, 0.0  ;;  %v2880_v32 = vmax.f32 %v2871_v53, 0.0  ;;  %v2468_v1 = vadd.f32 %v2451_v13, %v5743_v41  ;;  %v2857_v62 = vadd.f32 %v2839_v23, %v2799_v31 }
 0x31a   : > { %v2894_v17 = vmul.f32 %v5774_v11, %v2879_v20  ;;  %v2895_v37 = vmul.f32 %v5774_v11, %v2880_v32  ;;  %v2496_v63 = vpop.permute.xlu1 %2495  ;;  %v2872_v52 = vadd.f32 %v5766_v9, %v2857_v62 }
 0x31b   : > { %v2505_v28 = vsel %vm2497_vm5, %v5931_v45, %v2496_v63 }
 0x31c   : > { %v2909_v49 = vadd.f32 %v5772_v10, %v2894_v17  ;;  %v2910_v33 = vadd.f32 %v5772_v10, %v2895_v37  ;;  %v2522_v29 = vadd.f32 %v2505_v28, %v2468_v1  ;;  %v2881_v20 = vmax.f32 %v2872_v52, 0.0  ;;  %v4536_v28 = vld [vmem:[%s6633_s3 + $0x8] ss:$0 sm:$0xff] }
 0x31d   : > { %v4917_v52 = vld [vmem:[%s6638_s8 + $0x8] sm:$0xff]  }
 0x31e   : > { %v2550_v27 = vpop.permute.xlu1 %2549  ;;  %v6082_v15 = vmul.f32 %v2937_v40, %v2909_v49  ;;  %v6084_v55 = vmul.f32 %v2941_v0, %v2910_v33  ;;  %v2896_v40 = vmul.f32 %v5774_v11, %v2881_v20 }
 0x31f   : > { %v2559_v36 = vsel %vm2551_vm6, %v5954_v61, %v2550_v27  ;;  %v2523_v61 = vadd.f32 %v2496_v63, %v2469_v50  ;;  %v2715_v39 = vpop.permute.xlu0 %2714  ;;  %v2944_v63 = vsub.s32 6, %v5884_v60 }
 0x320   : > { %v4539_v38 = vpack.c.bf16 %v6084_v55, %v6082_v15  ;;  %v2576_v18 = vadd.f32 %v2559_v36, %v2522_v29  ;;  %v2911_v30 = vadd.f32 %v5772_v10, %v2896_v40  ;;  %v3958_v15 = vld [vmem:[%s6641_s11] sm:$0xf] }
 0x321   : > { %v2577_v53 = vadd.f32 %v2550_v27, %v2523_v61  ;;  %v2945_v27 = vrot.slane %v5896_v6, %v2944_v63  ;;  %v4918_v61 = vld [vmem:[%s6638_s8 + $0x10] ss:$0 sps:$4 sm:$0x33]  }
 0x322   : > { %v2604_v34 = vpop.permute.xlu1 %2603  ;;  %v3017_v14 = vrot.slane %v4539_v38, %v6035_v59 }
 0x323   : > { %v2613_v3 = vsel %vm2605_vm7, %v5976_v8, %v2604_v34  ;;  %v2631_v32 = vadd.f32 %v2604_v34, %v2577_v53  ;;  %v2969_v13 = vmul.f32 %v2945_v27, %v2911_v30 }
 0x324   : > { %v2630_v41 = vadd.f32 %v2613_v3, %v2576_v18 }
 0x325   : > { %v2831_v37 = vpop.permute.xlu0 %2830 }
 0x326   : > { %v2658_v22 = vpop.permute.xlu1 %2657 }
 0x327   : > { %v2667_v45 = vsel %vm2659_vm8, %v6001_v47, %v2658_v22 }
 0x328   : > { %v2684_v21 = vadd.f32 %v2667_v45, %v2630_v41  ;;  %v4916_v41 = vld [vmem:[%s6638_s8] sm:$0xff]  }
 0x32a   : > { %v2713_v35 = vpop.permute.xlu1 %2712 }
 0x32b   : > { %v2724_v24 = vsel %vm2716_vm9, %v6025_v54, %v2713_v35  ;;  %v2725_v44 = vsel %vm2716_vm9, %v2713_v35, %v2715_v39  ;;  %v2685_v54 = vadd.f32 %v2658_v22, %v2631_v32 }
 0x32c   : > { %v2742_v58 = vadd.f32 %v2724_v24, %v2684_v21 }
 0x32d   : > { %v2743_v0 = vadd.f32 %v2725_v44, %v2685_v54 }
 0x32e   : > { %v2771_v46 = vpop.permute.xlu1 %2770 }
 0x32f   : > { %v2782_v8 = vsel %vm2774_vm10, %v6053_v12, %v2771_v46 }
 0x330   : > { %v2800_v47 = vadd.f32 %v2782_v8, %v2742_v58 }
 0x332   : > { %v2829_v48 = vpop.permute.xlu1 %2828 }
 0x333   : > { %v2840_v25 = vsel %vm6647_vm11, %v2827_v57, %v2829_v48  ;;  %v2841_v33 = vsel %vm6647_vm11, %v2829_v48, %v2831_v37  ;;  %vm3043_vm11 = vcmask 1041408  }
 0x334   : > { %v2858_v17 = vadd.f32 %v2840_v25, %v2800_v47 }
 0x336   : > { %v2873_v12 = vadd.f32 %v5766_v9, %v2858_v17  ;;  %v2773_v2 = vpop.permute.xlu1 %2772 }
 0x337   : > { %v2783_v49 = vsel %vm2774_vm10, %v2771_v46, %v2773_v2 }
 0x338   : > { %v2882_v26 = vmax.f32 %v2873_v12, 0.0  ;;  %v2801_v19 = vadd.f32 %v2783_v49, %v2743_v0 }
 0x33a   : > { %v2897_v7 = vmul.f32 %v5774_v11, %v2882_v26  ;;  %v2859_v43 = vadd.f32 %v2841_v33, %v2801_v19 }
 0x33c   : > { %v2912_v34 = vadd.f32 %v5772_v10, %v2897_v7  ;;  %v2874_v56 = vadd.f32 %v5766_v9, %v2859_v43 }
 0x33e   : > { %v2883_v60 = vmax.f32 %v2874_v56, 0.0  ;;  %v2970_v42 = vmul.f32 %v2949_v5, %v2912_v34 }
 0x340   : > { %v2898_v57 = vmul.f32 %v5774_v11, %v2883_v60  ;;  %v4540_v51 = vpack.c.bf16 %v2970_v42, %v2969_v13  ;;  %v3919_v11 = vld [vmem:[%s6639_s9] sm:$0xf] }
 0x342   : > { %v3024_v6 = vrot.slane %v4540_v51, %v6035_v59  ;;  %v2913_v1 = vadd.f32 %v5772_v10, %v2898_v57  ;;  %v3943_v10 = vld [vmem:[%s6640_s10] sm:$0xf] }
 0x344   : > { %v3025_v9 = vcombine.low %v3017_v14, %v3024_v6  ;;  %v2971_v22 = vmul.f32 %v4536_v28, %v2913_v1 }
 0x346   : > { %3035 = vrot.lane.b32.xlu0 %v3025_v9, %s4937_s24  ;;  %v2982_v23 = vpack.c.bf16 %v2971_v22, %v2971_v22 }
 0x348   : > { %v3032_v36 = vrot.slane %v2982_v23, %v6035_v59 }
 0x34a   : > { %3922 = vperm.xlu0 %4628, %v3919_v11   ;;  %3037 = vrot.lane.b32.xlu1 %v3032_v36, %s4937_s24 }
 0x34e   : > { %3961 = vperm.xlu0 %4628, %v3958_v15   ;;  %3946 = vperm.xlu1 %4629, %v3943_v10  }
 0x382   : > { %v3034_v55 = vpop.permute.xlu1 %3033 }
 0x383   : > { %v3039_v38 = vrot.slane %v3034_v55, 6 }
 0x385   : > { %v3042_v31 = vsel %vm3041_vm3, %v3039_v38, %v3034_v55 }
 0x386   : > { %3057 = vst.msk [vmem:[#allocation3] sm:$0xff] %vm3056_vm12, %v3042_v31  ;;  %vm6651_vm12 = vmmov %vm6649_vm2 }
 0x38d   : > { %v3070_v29 = vld [vmem:[#allocation3] sm:$0xff] }
 0x38e   : > { %v3096_v3 = vrot.slane %v3070_v29, %v6035_v59  ;;  %v3089_v62 = vcombine.high %v3070_v29, %v3070_v29 }
 0x390   : > { %v3104_v18 = vcombine.high %v3096_v3, %v3096_v3  ;;  %v3103_v35 = vrot.slane %v3089_v62, %v6035_v59  ;;  %v3143_v45 = vsel %vm3043_vm11, %v3096_v3, 0 }
 0x392   : > { %4545 = vmatprep.subr.msk.bf16.mxu0 %vm3043_vm11, %v3104_v18  ;;  %v3105_v50 = vcombine.high %v3103_v35, %v3103_v35  ;;  %v3149_v24 = vsel %vm3043_vm11, %v3103_v35, 0 }
 0x393   : > { %3173 = vmatpush1.bf16.msra.mxu0 %v3143_v45 }
 0x394   : > { %4549 = vmatprep.subr.msk.bf16.mxu1 %vm3043_vm11, %v3105_v50 }
 0x395   : > { %3234 = vmatpush1.bf16.msra.mxu1 %v3149_v24 }
 0x396   : > { %4546 = vmatmul.mubr.msk.bf16.vlgmr.msra.gmra.mrb[24].mxu0 %vm3131_vm13, %v4916_v41 }
 0x397   : > { %3214 = vmatprep.mubr.bf16.mxu0 %v4927_v4 }
 0x398   : > { %4550 = vmatmul.mubr.msk.bf16.vlgmr.msra.gmra.mrb[56].mxu1 %vm3131_vm13, %v4916_v41 }
 0x399   : > { %3275 = vmatprep.mubr.bf16.mxu1 %v4927_v4 }
 0x39e   : > { %4547 = vmatmul.mubr.msk.bf16.gmra.mrb[28].mxu0 %vm3131_vm13, %v4917_v52 }
 0x39f   : > { %3224 = vmatprep.mubr.bf16.mxu0 %v4927_v4 }
 0x3a0   : > { %4551 = vmatmul.mubr.msk.bf16.gmra.mrb[60].mxu1 %vm3131_vm13, %v4917_v52 }
 0x3a1   : > { %3285 = vmatprep.mubr.bf16.mxu1 %v4927_v4 }
 0x3a6   : > { %4548 = vmatmul.mubr.msk.bf16.gmra.mrb[32].mxu0 %vm3131_vm13, %v4918_v61 }
 0x3a7   : > { %3326 = vmatprep.mubr.bf16.mxu0 %v4927_v4 }
 0x3a8   : > { %4552 = vmatmul.mubr.msk.bf16.gmra.mrb[64].mxu1 %vm3131_vm13, %v4918_v61 }
 0x3a9   : > { %3387 = vmatprep.mubr.bf16.mxu1 %v4927_v4 }
 0x3b8   : > { %v3036_v21 = vpop.permute.xlu0 %3035 }
 0x3b9   : > { %v3040_v46 = vrot.slane %v3036_v21, 6 }
 0x3bb   : > { %v3044_v8 = vsel %vm3043_vm11, %v3039_v38, %v3040_v46 }
 0x3bc   : > { %v3045_v53 = vsel %vm3041_vm3, %v3044_v8, %v3036_v21  ;;  %v3038_v58 = vpop.permute.xlu1 %3037 }
 0x3bd   : > { %v3046_v39 = vsel %vm3041_vm3, %v3040_v46, %v3038_v58  ;;  %v3113_v20 = vrot.slane %v3045_v53, %v6035_v59  ;;  %v3106_v32 = vcombine.high %v3045_v53, %v3045_v53  ;;  %vm6650_vm3 = vmmov %vm6649_vm2 }
 0x3be   : > { %3060 = vst.msk [vmem:[#allocation3 + $0x10] sm:$0x3] %vm3059_vm0, %v3046_v39 }
 0x3bf   : > { %3064 = vst.msk [vmem:[#allocation3 + $0x10] sm:$0xf] %vm3063_vm1, %v4927_v4  ;;  %v3121_v47 = vcombine.high %v3113_v20, %v3113_v20  ;;  %v3120_v48 = vrot.slane %v3106_v32, %v6035_v59  ;;  %v3155_v44 = vsel %vm3043_vm11, %v3113_v20, 0 }
 0x3c1   : > { %4553 = vmatprep.subr.msk.bf16.mxu0 %vm3043_vm11, %v3121_v47  ;;  %v3122_v25 = vcombine.high %v3120_v48, %v3120_v48  ;;  %v3161_v54 = vsel %vm3043_vm11, %v3120_v48, 0 }
 0x3c2   : > { %3295 = vmatpush1.bf16.msra.mxu0 %v3155_v44 }
 0x3c3   : > { %4557 = vmatprep.subr.msk.bf16.mxu1 %vm3043_vm11, %v3122_v25 }
 0x3c4   : > { %3356 = vmatpush1.bf16.msra.mxu1 %v3161_v54 }
 0x3c5   : > { %4554 = vmatmul.mubr.msk.bf16.vlgmr.msra.gmra.mrb[36].mxu0 %vm3131_vm13, %v4916_v41 }
 0x3c6   : > { %3336 = vmatprep.mubr.bf16.mxu0 %v4927_v4  ;;  %v4544_v17 = vld.sshfl [vmem:[#allocation3 + $0x10] sm:$0x33 pattern:$0x76325410] }
 0x3c7   : > { %4558 = vmatmul.mubr.msk.bf16.vlgmr.msra.gmra.mrb[68].mxu1 %vm3131_vm13, %v4916_v41  ;;  %v3130_v37 = vcombine.high %v4544_v17, %v4544_v17  ;;  %v3167_v59 = vsel %vm3043_vm11, %v4544_v17, 0 }
 0x3c8   : > { %3397 = vmatprep.mubr.bf16.mxu1 %v4927_v4 }
 0x3c9   : > { %4561 = vmatprep.subr.msk.bf16.mxu0 %vm3043_vm11, %v3130_v37 }
 0x3ca   : > { %3417 = vmatpush1.bf16.msra.mxu0 %v3167_v59 }
 0x3cd   : > { %4555 = vmatmul.mubr.msk.bf16.gmra.mrb[40].mxu0 %vm3131_vm13, %v4917_v52 }
 0x3ce   : > { %3346 = vmatprep.mubr.bf16.mxu0 %v4927_v4 }
 0x3cf   : > { %4559 = vmatmul.mubr.msk.bf16.gmra.mrb[72].mxu1 %vm3131_vm13, %v4917_v52 }
 0x3d0   : > { %3407 = vmatprep.mubr.bf16.mxu1 %v4927_v4 }
 0x3d5   : > { %4556 = vmatmul.mubr.msk.bf16.gmra.mrb[44].mxu0 %vm3131_vm13, %v4918_v61 }
 0x3d6   : > { %3448 = vmatprep.mubr.bf16.mxu0 %v4927_v4 }
 0x3d7   : > { %4560 = vmatmul.mubr.msk.bf16.gmra.mrb[76].mxu1 %vm3131_vm13, %v4918_v61 }
 0x3d8   : > { %4051 = vmatprep.mubr.bf16.mxu1 %v4927_v4 }
 0x3dd   : > { %4562 = vmatmul.mubr.msk.bf16.vlgmr.msra.gmra.mrb[48].mxu0 %vm3131_vm13, %v4916_v41 }
 0x3de   : > { %3456 = vmatprep.mubr.bf16.mxu0 %v4927_v4 }
 0x3e5   : > { %4563 = vmatmul.mubr.msk.bf16.gmra.mrb[52].mxu0 %vm3131_vm13, %v4917_v52 }
 0x3e6   : > { %3465 = vmatprep.mubr.bf16.mxu0 %v4927_v4 }
 0x3ed   : > { %4564 = vmatmul.mubr.msk.bf16.gmra.mrb[56].mxu0 %vm3131_vm13, %v4918_v61 }
 0x3ee   : > { %4174 = vmatprep.mubr.bf16.mxu0 %v4927_v4 }
 0x469   : > { %v6212_v63 = vpop.f32.mrb[24].mxu0 }
 0x46a   : > { %v3483_v40 = vrot.slane %v6212_v63, 4  ;;  %v6215_v0 = vpop.f32.mrb[25].mxu0 }
 0x46b   : > { %v3210_v12 = vpop.f32.mrb[26].mxu0  ;;  %v6217_v2 = vpop.f32.mrb[56].mxu1  ;;  %v3484_v26 = vrot.slane %v6215_v0, 4 }
 0x46c   : > { %3492 = vrot.lane.b32.xlu0 %v3483_v40, %s4928_s28  ;;  %3545 = vrot.lane.b32.xlu1 %v3210_v12, %s4929_s22  ;;  %v3212_v16 = vpop.f32.mrb[27].mxu0  ;;  %v6221_v49 = vpop.f32.mrb[57].mxu1  ;;  %v3485_v27 = vrot.slane %v6217_v2, 4  ;;  %v3589_v13 = vrot.slane %v3210_v12, 4 }
 0x46d   : > { %v3271_v33 = vpop.f32.mrb[58].mxu1  ;;  %v3590_v42 = vrot.slane %v3212_v16, 4  ;;  %v3486_v28 = vrot.slane %v6221_v49, 4 }
 0x46e   : > { %v3273_v19 = vpop.f32.mrb[59].mxu1  ;;  %v3591_v11 = vrot.slane %v3271_v33, 4 }
 0x46f   : > { %v3592_v36 = vrot.slane %v3273_v19, 4 }
 0x470   : > { %3494 = vrot.lane.b32.xlu1 %v3484_v26, %s4928_s28  ;;  %3547 = vrot.lane.b32.xlu0 %v3212_v16, %s4929_s22 }
 0x471   : > { %v3216_v30 = vpop.f32.mrb[28].mxu0 }
 0x472   : > { %v3218_v7 = vpop.f32.mrb[29].mxu0  ;;  %v3695_v10 = vrot.slane %v3216_v30, 4 }
 0x473   : > { %v3220_v43 = vpop.f32.mrb[30].mxu0  ;;  %v3277_v5 = vpop.f32.mrb[60].mxu1  ;;  %v3696_v55 = vrot.slane %v3218_v7, 4 }
 0x474   : > { %3549 = vrot.lane.b32.xlu1 %v3271_v33, %s4929_s22  ;;  %3496 = vrot.lane.b32.xlu0 %v3485_v27, %s4928_s28  ;;  %v3222_v34 = vpop.f32.mrb[31].mxu0  ;;  %v3279_v56 = vpop.f32.mrb[61].mxu1  ;;  %v3697_v38 = vrot.slane %v3277_v5, 4  ;;  %v3805_v31 = vrot.slane %v3220_v43, 4 }
 0x475   : > { %v3281_v60 = vpop.f32.mrb[62].mxu1  ;;  %v3806_v29 = vrot.slane %v3222_v34, 4  ;;  %v3698_v18 = vrot.slane %v3279_v56, 4 }
 0x476   : > { %v3283_v57 = vpop.f32.mrb[63].mxu1  ;;  %v3807_v61 = vrot.slane %v3281_v60, 4 }
 0x477   : > { %v3808_v8 = vrot.slane %v3283_v57, 4 }
 0x478   : > { %3598 = vrot.lane.b32.xlu0 %v3589_v13, %s4930_s25  ;;  %3600 = vrot.lane.b32.xlu1 %v3590_v42, %s4930_s25 }
 0x479   : > { %v3226_v51 = vpop.f32.mrb[32].mxu0 }
 0x47a   : > { %v3228_v14 = vpop.f32.mrb[33].mxu0 }
 0x47b   : > { %v3230_v6 = vpop.f32.mrb[34].mxu0  ;;  %v3287_v1 = vpop.f32.mrb[64].mxu1 }
 0x47c   : > { %3498 = vrot.lane.b32.xlu0 %v3486_v28, %s4928_s28  ;;  %3551 = vrot.lane.b32.xlu1 %v3273_v19, %s4929_s22  ;;  %v3231_v9 = vpop.f32.mrb[35].mxu0  ;;  %v3289_v22 = vpop.f32.mrb[65].mxu1 }
 0x47d   : > { %v3291_v23 = vpop.f32.mrb[66].mxu1 }
 0x47e   : > { %v3292_v15 = vpop.f32.mrb[67].mxu1 }
 0x47f   : > { %v6322_v15 = vpop.permute.xlu1 %3946 }
 0x480   : > { %3602 = vrot.lane.b32.xlu0 %v3591_v11, %s4930_s25  ;;  %3604 = vrot.lane.b32.xlu1 %v3592_v36, %s4930_s25  ;;  %v6315_v11 = vpop.permute.xlu0 %3922 }
 0x484   : > { %3651 = vrot.lane.b32.xlu1 %v3216_v30, %s4931_s26  ;;  %3653 = vrot.lane.b32.xlu0 %v3218_v7, %s4931_s26 }
 0x488   : > { %3655 = vrot.lane.b32.xlu1 %v3277_v5, %s4931_s26  ;;  %3704 = vrot.lane.b32.xlu0 %v3695_v10, %s4933_s15  ;;  %v6324_v10 = vpop.permute.xlu0 %3961 }
 0x48c   : > { %3758 = vrot.lane.b32.xlu1 %v3220_v43, %s4932_s27  ;;  %3760 = vrot.lane.b32.xlu0 %v3222_v34, %s4932_s27 }
 0x490   : > { %3706 = vrot.lane.b32.xlu1 %v3696_v55, %s4933_s15  ;;  %3657 = vrot.lane.b32.xlu0 %v3279_v56, %s4931_s26 }
 0x494   : > { %3762 = vrot.lane.b32.xlu1 %v3281_v60, %s4932_s27  ;;  %3708 = vrot.lane.b32.xlu0 %v3697_v38, %s4933_s15 }
 0x498   : > { %3815 = vrot.lane.b32.xlu1 %v3805_v31, %s4934_s16  ;;  %3817 = vrot.lane.b32.xlu0 %v3806_v29, %s4934_s16  ;;  %v6248_v3 = vpop.f32.mrb[36].mxu0 }
 0x499   : > { %v6250_v62 = vpop.f32.mrb[37].mxu0  ;;  %v3487_v16 = vrot.slane %v6248_v3, 4 }
 0x49a   : > { %v3332_v35 = vpop.f32.mrb[38].mxu0  ;;  %v6252_v45 = vpop.f32.mrb[68].mxu1  ;;  %v3488_v25 = vrot.slane %v6250_v62, 4 }
 0x49b   : > { %v3334_v50 = vpop.f32.mrb[39].mxu0  ;;  %v6254_v41 = vpop.f32.mrb[69].mxu1  ;;  %v3593_v33 = vrot.slane %v3332_v35, 4  ;;  %v3489_v7 = vrot.slane %v6252_v45, 4 }
 0x49c   : > { %3764 = vrot.lane.b32.xlu1 %v3283_v57, %s4932_s27  ;;  %3710 = vrot.lane.b32.xlu0 %v3698_v18, %s4933_s15  ;;  %v3393_v24 = vpop.f32.mrb[70].mxu1  ;;  %v3594_v56 = vrot.slane %v3334_v50, 4  ;;  %v3490_v42 = vrot.slane %v6254_v41, 4 }
 0x49d   : > { %v3395_v52 = vpop.f32.mrb[71].mxu1  ;;  %v3595_v43 = vrot.slane %v3393_v24, 4 }
 0x4a0   : > { %3819 = vrot.lane.b32.xlu1 %v3807_v61, %s4934_s16  ;;  %3872 = vrot.lane.b32.xlu0 %v3226_v51, %s6648_s20  ;;  %v6260_v21 = vpop.f32.mrb[40].mxu0 }
 0x4a1   : > { %v6262_v46 = vpop.f32.mrb[41].mxu0  ;;  %v3699_v23 = vrot.slane %v6260_v21, 4 }
 0x4a2   : > { %v3342_v53 = vpop.f32.mrb[42].mxu0  ;;  %v3399_v58 = vpop.f32.mrb[72].mxu1  ;;  %v3700_v36 = vrot.slane %v6262_v46, 4 }
 0x4a3   : > { %v6264_v39 = vpop.f32.mrb[43].mxu0  ;;  %v6266_v20 = vpop.f32.mrb[73].mxu1  ;;  %v3809_v28 = vrot.slane %v3342_v53, 4  ;;  %v3701_v9 = vrot.slane %v3399_v58, 4 }
 0x4a4   : > { %3821 = vrot.lane.b32.xlu1 %v3808_v8, %s4934_s16  ;;  %3876 = vrot.lane.b32.xlu0 %v3287_v1, %s6648_s20  ;;  %v3403_v32 = vpop.f32.mrb[74].mxu1  ;;  %v3596_v1 = vrot.slane %v3395_v52, 4  ;;  %v3810_v29 = vrot.slane %v6264_v39, 4 }
 0x4a5   : > { %v6270_v47 = vpop.f32.mrb[75].mxu1 }
 0x4a8   : > { %3874 = vrot.lane.b32.xlu1 %v3228_v14, %s6648_s20  ;;  %3553 = vrot.lane.b32.xlu0 %v3332_v35, %s4929_s22  ;;  %v3348_v48 = vpop.f32.mrb[44].mxu0 }
 0x4a9   : > { %v6274_v44 = vpop.f32.mrb[45].mxu0 }
 0x4aa   : > { %v3352_v54 = vpop.f32.mrb[46].mxu0  ;;  %v3409_v17 = vpop.f32.mrb[76].mxu1 }
 0x4ab   : > { %v3353_v37 = vpop.f32.mrb[47].mxu0  ;;  %v3411_v59 = vpop.f32.mrb[77].mxu1 }
 0x4ac   : > { %3878 = vrot.lane.b32.xlu1 %v3289_v22, %s6648_s20  ;;  %3502 = vrot.lane.b32.xlu0 %v3488_v25, %s4928_s28  ;;  %v3413_v40 = vpop.f32.mrb[78].mxu1  ;;  %v3811_v22 = vrot.slane %v3403_v32, 4 }
 0x4ad   : > { %v3414_v12 = vpop.f32.mrb[79].mxu1 }
 0x4b0   : > { %3500 = vrot.lane.b32.xlu1 %v3487_v16, %s4928_s28  ;;  %3606 = vrot.lane.b32.xlu0 %v3593_v33, %s4930_s25  ;;  %v6282_v26 = vpop.f32.mrb[48].mxu0 }
 0x4b1   : > { %v3452_v19 = vpop.f32.mrb[49].mxu0  ;;  %v3491_v55 = vrot.slane %v6282_v26, 4 }
 0x4b2   : > { %v3453_v27 = vpop.f32.mrb[50].mxu0 }
 0x4b3   : > { %v3455_v30 = vpop.f32.mrb[51].mxu0 }
 0x4b4   : > { %3557 = vrot.lane.b32.xlu0 %v3393_v24, %s4929_s22  ;;  %3555 = vrot.lane.b32.xlu1 %v3334_v50, %s4929_s22  ;;  %v3702_v50 = vrot.slane %v6266_v20, 4  ;;  %v3597_v24 = vrot.slane %v3453_v27, 4 }
 0x4b8   : > { %3610 = vrot.lane.b32.xlu0 %v3595_v43, %s4930_s25  ;;  %3504 = vrot.lane.b32.xlu1 %v3489_v7, %s4928_s28  ;;  %v6289_v5 = vpop.f32.mrb[52].mxu0 }
 0x4b9   : > { %v3460_v34 = vpop.f32.mrb[53].mxu0  ;;  %v3703_v8 = vrot.slane %v6289_v5, 4 }
 0x4ba   : > { %v6291_v60 = vpop.f32.mrb[54].mxu0 }
 0x4bb   : > { %v6293_v13 = vpop.f32.mrb[55].mxu0 }
 0x4bc   : > { %3608 = vrot.lane.b32.xlu1 %v3594_v56, %s4930_s25  ;;  %3766 = vrot.lane.b32.xlu0 %v3342_v53, %s4932_s27  ;;  %v3812_v53 = vrot.slane %v6270_v47, 4  ;;  %v3814_v12 = vrot.slane %v6293_v13, 4 }
 0x4c0   : > { %3506 = vrot.lane.b32.xlu1 %v3490_v42, %s4928_s28  ;;  %3663 = vrot.lane.b32.xlu0 %v3399_v58, %s4931_s26  ;;  %v6300_v57 = vpop.f32.mrb[56].mxu0 }
 0x4c1   : > { %v6302_v51 = vpop.f32.mrb[57].mxu0 }
 0x4c2   : > { %v3471_v14 = vpop.f32.mrb[58].mxu0 }
 0x4c3   : > { %v3472_v6 = vpop.f32.mrb[59].mxu0 }
 0x4c4   : > { %3559 = vrot.lane.b32.xlu1 %v3395_v52, %s4929_s22  ;;  %3823 = vrot.lane.b32.xlu0 %v3809_v28, %s4934_s16 }
 0x4c8   : > { %3612 = vrot.lane.b32.xlu1 %v3596_v1, %s4930_s25  ;;  %3716 = vrot.lane.b32.xlu0 %v3701_v9, %s4933_s15 }
 0x4cc   : > { %3659 = vrot.lane.b32.xlu1 %v6260_v21, %s4931_s26  ;;  %3770 = vrot.lane.b32.xlu0 %v3403_v32, %s4932_s27 }
 0x4d0   : > { %3661 = vrot.lane.b32.xlu1 %v6262_v46, %s4931_s26  ;;  %3827 = vrot.lane.b32.xlu0 %v3811_v22, %s4934_s16 }
 0x4d4   : > { %3712 = vrot.lane.b32.xlu1 %v3699_v23, %s4933_s15  ;;  %3880 = vrot.lane.b32.xlu0 %v3348_v48, %s6648_s20 }
 0x4d8   : > { %3714 = vrot.lane.b32.xlu1 %v3700_v36, %s4933_s15  ;;  %3884 = vrot.lane.b32.xlu0 %v3409_v17, %s6648_s20 }
 0x4dc   : > { %3768 = vrot.lane.b32.xlu1 %v6264_v39, %s4932_s27  ;;  %3886 = vrot.lane.b32.xlu0 %v3411_v59, %s6648_s20 }
 0x4de   : > { %v3493_v38 = vpop.permute.xlu0 %3492  ;;  %v3546_v31 = vpop.permute.xlu1 %3545 }
 0x4e0   : > { %3665 = vrot.lane.b32.xlu1 %v6266_v20, %s4931_s26  ;;  %3508 = vrot.lane.b32.xlu0 %v3491_v55, %s4928_s28 }
 0x4e2   : > { %v3495_v18 = vpop.permute.xlu1 %3494  ;;  %v3548_v35 = vpop.permute.xlu0 %3547 }
 0x4e4   : > { %3825 = vrot.lane.b32.xlu1 %v3810_v29, %s4934_s16  ;;  %3561 = vrot.lane.b32.xlu0 %v3453_v27, %s4929_s22 }
 0x4e6   : > { %v3550_v52 = vpop.permute.xlu1 %3549  ;;  %v3497_v61 = vpop.permute.xlu0 %3496 }
 0x4e7   : > { %v3564_v6 = vsel %vm2497_vm5, %v3548_v35, %v3550_v52 }
 0x4e8   : > { %3718 = vrot.lane.b32.xlu1 %v3702_v50, %s4933_s15  ;;  %3614 = vrot.lane.b32.xlu0 %v3597_v24, %s4930_s25 }
 0x4ea   : > { %v3599_v21 = vpop.permute.xlu0 %3598  ;;  %v3601_v46 = vpop.permute.xlu1 %3600 }
 0x4eb   : > { %v3616_v1 = vsel %vm2551_vm6, %v3599_v21, %v3601_v46 }
 0x4ec   : > { %3772 = vrot.lane.b32.xlu1 %v6270_v47, %s4932_s27  ;;  %3667 = vrot.lane.b32.xlu0 %v6289_v5, %s4931_s26 }
 0x4ee   : > { %v6345_v58 = vpop.permute.xlu0 %3498  ;;  %v6347_v39 = vpop.permute.xlu1 %3551 }
 0x4ef   : > { %v3512_v20 = vsel %vm2443_vm4, %v3497_v61, %v6345_v58  ;;  %v3565_v32 = vsel %vm2497_vm5, %v3550_v52, %v6347_v39 }
 0x4f0   : > { %v3529_v48 = vadd.f32 %v3512_v20, %v6217_v2  ;;  %3829 = vrot.lane.b32.xlu1 %v3812_v53, %s4934_s16  ;;  %3720 = vrot.lane.b32.xlu0 %v3703_v8, %s4933_s15  ;;  %v3813_v2 = vrot.slane %v6291_v60, 4 }
 0x4f2   : > { %v3582_v25 = vadd.f32 %v3565_v32, %v3529_v48  ;;  %v3603_v54 = vpop.permute.xlu0 %3602  ;;  %v6356_v17 = vpop.permute.xlu1 %3604 }
 0x4f3   : > { %v3618_v47 = vsel %vm2551_vm6, %v3603_v54, %v6356_v17  ;;  %v3617_v9 = vsel %vm2551_vm6, %v3601_v46, %v3603_v54 }
 0x4f4   : > { %v3635_v37 = vadd.f32 %v3618_v47, %v3582_v25  ;;  %3882 = vrot.lane.b32.xlu1 %v6274_v44, %s6648_s20  ;;  %3774 = vrot.lane.b32.xlu0 %v6291_v60, %s4932_s27  ;;  %v3983_v44 = vld [vmem:[%s6643_s13] sm:$0xf]  ;;  %v3510_v60 = vsel %vm2443_vm4, %v3493_v38, %v3495_v18 }
 0x4f5   : > { %v3527_v42 = vadd.f32 %v3510_v60, %v6212_v63 }
 0x4f6   : > { %v3652_v59 = vpop.permute.xlu1 %3651  ;;  %v3654_v40 = vpop.permute.xlu0 %3653 }
 0x4f7   : > { %v3669_v63 = vsel %vm2605_vm7, %v3652_v59, %v3654_v40 }
 0x4f8   : > { %3831 = vrot.lane.b32.xlu0 %v3813_v2, %s4934_s16  ;;  %3776 = vrot.lane.b32.xlu1 %v6293_v13, %s4932_s27  ;;  %v3511_v13 = vsel %vm2443_vm4, %v3495_v18, %v3497_v61  ;;  %s4606_s27 = smul.u32 36, %s6659_s30 }
 0x4fa   : > { %v3656_v16 = vpop.permute.xlu1 %3655  ;;  %v3705_v33 = vpop.permute.xlu0 %3704  ;;  %s6620_s17 = scalar_lea.vmem %s6644_s14, %s4606_s27 }
 0x4fc   : > { %3833 = vrot.lane.b32.xlu0 %v3814_v12, %s4934_s16  ;;  %3888 = vrot.lane.b32.xlu1 %v6300_v57, %s6648_s20  ;;  %v3528_v57 = vadd.f32 %v3511_v13, %v6215_v0  ;;  %v3670_v0 = vsel %vm2605_vm7, %v3654_v40, %v3656_v16 }
 0x4fe   : > { %v3759_v19 = vpop.permute.xlu1 %3758  ;;  %v3761_v27 = vpop.permute.xlu0 %3760  ;;  %v3581_v23 = vadd.f32 %v3564_v6, %v3528_v57 }
 0x4ff   : > { %v3778_v25 = vsel %vm2716_vm9, %v3759_v19, %v3761_v27 }
 0x500   : > { %3986 = vperm.xlu0 %4628, %v3983_v44   ;;  %3890 = vrot.lane.b32.xlu1 %v6302_v51, %s6648_s20  ;;  %v3563_v51 = vsel %vm2497_vm5, %v3546_v31, %v3548_v35  ;;  %v3634_v29 = vadd.f32 %v3617_v9, %v3581_v23 }
 0x501   : > { %v3580_v22 = vadd.f32 %v3563_v51, %v3527_v42 }
 0x502   : > { %v3707_v30 = vpop.permute.xlu1 %3706  ;;  %v6377_v7 = vpop.permute.xlu0 %3657  ;;  %v3687_v61 = vadd.f32 %v3670_v0, %v3634_v29 }
 0x503   : > { %v3671_v43 = vsel %vm2605_vm7, %v3656_v16, %v6377_v7  ;;  %v3633_v31 = vadd.f32 %v3616_v1, %v3580_v22  ;;  %v3722_v35 = vsel %vm2659_vm8, %v3705_v33, %v3707_v30 }
 0x504   : > { %v3688_v5 = vadd.f32 %v3671_v43, %v3635_v37 }
 0x505   : > { %v3686_v52 = vadd.f32 %v3669_v63, %v3633_v31 }
 0x506   : > { %v3763_v34 = vpop.permute.xlu1 %3762  ;;  %v3709_v56 = vpop.permute.xlu0 %3708 }
 0x507   : > { %v3723_v50 = vsel %vm2659_vm8, %v3707_v30, %v3709_v56  ;;  %v3739_v53 = vadd.f32 %v3722_v35, %v3686_v52  ;;  %v3779_v54 = vsel %vm2716_vm9, %v3761_v27, %v3763_v34  ;;  %v6446_v35 = vld [vmem:[%s6642_s12] sm:$0x3] }
 0x508   : > { %v3740_v20 = vadd.f32 %v3723_v50, %v3687_v61 }
 0x509   : > { %v3796_v2 = vadd.f32 %v3778_v25, %v3739_v53 }
 0x50a   : > { %v3816_v28 = vpop.permute.xlu1 %3815  ;;  %v3818_v14 = vpop.permute.xlu0 %3817  ;;  %v3797_v59 = vadd.f32 %v3779_v54, %v3740_v20 }
 0x50b   : > { %v3835_v47 = vsel %vm2774_vm10, %v3816_v28, %v3818_v14 }
 0x50c   : > { %v3853_v40 = vadd.f32 %v3835_v47, %v3796_v2 }
 0x50e   : > { %v6389_v36 = vpop.permute.xlu1 %3764  ;;  %v6391_v55 = vpop.permute.xlu0 %3710 }
 0x50f   : > { %v3724_v38 = vsel %vm2659_vm8, %v3709_v56, %v6391_v55  ;;  %v3780_v24 = vsel %vm2716_vm9, %v3763_v34, %v6389_v36 }
 0x510   : > { %v3741_v18 = vadd.f32 %v3724_v38, %v3688_v5 }
 0x512   : > { %v3820_v21 = vpop.permute.xlu1 %3819  ;;  %v3873_v46 = vpop.permute.xlu0 %3872  ;;  %v6401_v8 = vadd.f32 %v3780_v24, %v3741_v18 }
 0x513   : > { %v3836_v37 = vsel %vm2774_vm10, %v3818_v14, %v3820_v21 }
 0x514   : > { %v3854_v12 = vadd.f32 %v3836_v37, %v3797_v59 }
 0x516   : > { %v6403_v32 = vpop.permute.xlu1 %3821  ;;  %v3877_v48 = vpop.permute.xlu0 %3876 }
 0x517   : > { %v3837_v25 = vsel %vm2774_vm10, %v3820_v21, %v6403_v32 }
 0x518   : > { %v3855_v59 = vadd.f32 %v3837_v25, %v6401_v8 }
 0x51a   : > { %v3875_v16 = vpop.permute.xlu1 %3874  ;;  %v6409_v33 = vpop.permute.xlu0 %3553 }
 0x51b   : > { %v3892_v44 = vsel %vm6649_vm2, %v3873_v46, %v3875_v16  ;;  %v3893_v30 = vsel %vm6650_vm3, %v3875_v16, %v3877_v48  ;;  %v3566_v9 = vsel %vm2497_vm5, %v6347_v39, %v6409_v33 }
 0x51c   : > { %v3910_v43 = vadd.f32 %v3892_v44, %v3853_v40  ;;  %v3911_v5 = vadd.f32 %v3893_v30, %v3854_v12 }
 0x51e   : > { %v3925_v19 = vadd.f32 %v6315_v11, %v3910_v43  ;;  %v3926_v27 = vadd.f32 %v6315_v11, %v3911_v5  ;;  %v3879_v34 = vpop.permute.xlu1 %3878  ;;  %v6415_v56 = vpop.permute.xlu0 %3502 }
 0x51f   : > { %v3894_v37 = vsel %vm6651_vm12, %v3877_v48, %v3879_v34 }
 0x520   : > { %v3934_v60 = vmax.f32 %v3925_v19, 0.0  ;;  %v3935_v13 = vmax.f32 %v3926_v27, 0.0  ;;  %v3912_v12 = vadd.f32 %v3894_v37, %v3855_v59 }
 0x522   : > { %v3949_v42 = vmul.f32 %v6322_v15, %v3934_v60  ;;  %v3950_v57 = vmul.f32 %v6322_v15, %v3935_v13  ;;  %v6419_v28 = vpop.permute.xlu1 %3500  ;;  %v6421_v14 = vpop.permute.xlu0 %3606  ;;  %v3927_v30 = vadd.f32 %v6315_v11, %v3912_v12 }
 0x523   : > { %v3513_v51 = vsel %vm2443_vm4, %v6345_v58, %v6419_v28  ;;  %v3619_v58 = vsel %vm2551_vm6, %v6356_v17, %v6421_v14 }
 0x524   : > { %v3530_v6 = vadd.f32 %v3513_v51, %v6221_v49  ;;  %v3965_v1 = vadd.f32 %v6324_v10, %v3950_v57  ;;  %v3964_v22 = vadd.f32 %v6324_v10, %v3949_v42  ;;  %v3936_v48 = vmax.f32 %v3927_v30, 0.0 }
 0x526   : > { %v3583_v23 = vadd.f32 %v3566_v9, %v3530_v6  ;;  %v6432_v63 = vpop.permute.xlu0 %3557  ;;  %v6434_v0 = vpop.permute.xlu1 %3555  ;;  %v3975_v38 = vpack.c.bf16 %v3965_v1, %v3965_v1  ;;  %v3974_v31 = vpack.c.bf16 %v3964_v22, %v3964_v22 }
 0x528   : > { %v3636_v49 = vadd.f32 %v3619_v58, %v3583_v23  ;;  %4565 = vmatprep.subr.msk.bf16.mxu1 %vm3043_vm11, %v3975_v38  ;;  %v3993_v29 = vsel %vm3043_vm11, %v3974_v31, 0 }
 0x529   : > { %4020 = vmatpush1.bf16.msra.mxu1 %v3993_v29 }
 0x52a   : > { %v6441_v39 = vpop.permute.xlu0 %3610  ;;  %v3505_v18 = vpop.permute.xlu1 %3504 }
 0x52c   : > { %4566 = vmatmul.mubr.msk.bf16.vlgmr.msra.gmra.mrb[80].mxu1 %vm3131_vm13, %v6446_v35 }
 0x52d   : > { %4092 = vmatprep.mubr.bf16.mxu1 %v4927_v4 }
 0x52e   : > { %v6450_v50 = vpop.permute.xlu1 %3608  ;;  %v6452_v17 = vpop.permute.xlu0 %3766 }
 0x532   : > { %v6455_v24 = vpop.permute.xlu1 %3506  ;;  %v6457_v52 = vpop.permute.xlu0 %3663 }
 0x533   : > { %v3516_v58 = vsel %vm2443_vm4, %v3505_v18, %v6455_v24 }
 0x536   : > { %v6459_v61 = vpop.permute.xlu1 %3559  ;;  %v6461_v46 = vpop.permute.xlu0 %3823 }
 0x537   : > { %v3838_v13 = vsel %vm2774_vm10, %v6403_v32, %v6461_v46  ;;  %v3515_v32 = vsel %vm2443_vm4, %v6415_v56, %v3505_v18  ;;  %v3569_v59 = vsel %vm2497_vm5, %v6432_v63, %v6459_v61  ;;  %v3568_v18 = vsel %vm2497_vm5, %v6434_v0, %v6432_v63 }
 0x538   : > { %v3532_v31 = vadd.f32 %v3515_v32, %v6250_v62  ;;  %v3567_v62 = vsel %vm2497_vm5, %v6409_v33, %v6434_v0  ;;  %v3620_v33 = vsel %vm2551_vm6, %v6421_v14, %v6450_v50  ;;  %v3621_v63 = vsel %vm2551_vm6, %v6450_v50, %v6441_v39 }
 0x53a   : > { %v6463_v53 = vpop.permute.xlu1 %3612  ;;  %v6465_v20 = vpop.permute.xlu0 %3716 }
 0x53b   : > { %v3622_v30 = vsel %vm2551_vm6, %v6441_v39, %v6463_v53 }
 0x53e   : > { %v3660_v54 = vpop.permute.xlu1 %3659  ;;  %v6469_v47 = vpop.permute.xlu0 %3770 }
 0x53f   : > { %v3672_v2 = vsel %vm2605_vm7, %v6377_v7, %v3660_v54  ;;  %v3781_v7 = vsel %vm2716_vm9, %v6389_v36, %v6452_v17 }
 0x540   : > { %v3689_v40 = vadd.f32 %v3672_v2, %v3636_v49  ;;  %v3514_v2 = vsel %vm2443_vm4, %v6419_v28, %v6415_v56  ;;  %v3585_v28 = vadd.f32 %v3568_v18, %v3532_v31 }
 0x541   : > { %v3531_v56 = vadd.f32 %v3514_v2, %v6248_v3 }
 0x542   : > { %v3662_v16 = vpop.permute.xlu1 %3661  ;;  %v6475_v44 = vpop.permute.xlu0 %3827 }
 0x543   : > { %v3584_v0 = vadd.f32 %v3567_v62, %v3531_v56 }
 0x545   : > { %v3637_v14 = vadd.f32 %v3620_v33, %v3584_v0 }
 0x546   : > { %v3713_v43 = vpop.permute.xlu1 %3712  ;;  %v6478_v5 = vpop.permute.xlu0 %3880 }
 0x547   : > { %v3725_v21 = vsel %vm2659_vm8, %v6391_v55, %v3713_v43  ;;  %v3895_v57 = vsel %vm6652_vm14, %v3879_v34, %v6478_v5  ;;  %v3951_v55 = vmul.f32 %v6322_v15, %v3936_v48 }
 0x548   : > { %v3742_v19 = vadd.f32 %v3725_v21, %v3689_v40  ;;  %v3533_v40 = vadd.f32 %v3516_v58, %v6252_v45 }
 0x549   : > { %v3966_v38 = vadd.f32 %v6324_v10, %v3951_v55 }
 0x54a   : > { %v3799_v8 = vadd.f32 %v3781_v7, %v3742_v19  ;;  %v3715_v27 = vpop.permute.xlu1 %3714  ;;  %v6485_v60 = vpop.permute.xlu0 %3884  ;;  %v3586_v21 = vadd.f32 %v3569_v59, %v3533_v40 }
 0x54b   : > { %v3976_v37 = vpack.c.bf16 %v3966_v38, %v3966_v38 }
 0x54c   : > { %v3856_v42 = vadd.f32 %v3838_v13, %v3799_v8  ;;  %v3639_v48 = vadd.f32 %v3622_v30, %v3586_v21  ;;  %v3673_v8 = vsel %vm2605_vm7, %v3660_v54, %v3662_v16  ;;  %v3674_v13 = vsel %vm2605_vm7, %v3662_v16, %v6457_v52 }
 0x54d   : > { %v3999_v7 = vsel %vm3043_vm11, %v3976_v37, 0  ;;  %v3726_v54 = vsel %vm2659_vm8, %v3713_v43, %v3715_v27 }
 0x54e   : > { %v3913_v51 = vadd.f32 %v3895_v57, %v3856_v42  ;;  %v3769_v6 = vpop.permute.xlu1 %3768  ;;  %v6493_v1 = vpop.permute.xlu0 %3886  ;;  %v3638_v57 = vadd.f32 %v3621_v63, %v3585_v28 }
 0x54f   : > { %v3782_v32 = vsel %vm2716_vm9, %v6452_v17, %v3769_v6  ;;  %v3783_v43 = vsel %vm2716_vm9, %v3769_v6, %v6469_v47 }
 0x550   : > { %v3928_v36 = vadd.f32 %v6315_v11, %v3913_v51 }
 0x552   : > { %v3937_v9 = vmax.f32 %v3928_v36, 0.0  ;;  %v6496_v22 = vpop.permute.xlu1 %3665  ;;  %v6498_v23 = vpop.permute.xlu0 %3508  ;;  %v3690_v36 = vadd.f32 %v3673_v8, %v3637_v14 }
 0x553   : > { %v3675_v3 = vsel %vm2605_vm7, %v6457_v52, %v6496_v22  ;;  %v3517_v39 = vsel %vm2443_vm4, %v6455_v24, %v6498_v23  ;;  %v3727_v52 = vsel %vm2659_vm8, %v3715_v27, %v6465_v20  ;;  %vm6653_vm4 = vmmov %vm6649_vm2 }
 0x554   : > { %v3952_v34 = vmul.f32 %v6322_v15, %v3937_v9  ;;  %v3692_v55 = vadd.f32 %v3675_v3, %v3639_v48  ;;  %v3691_v9 = vadd.f32 %v3674_v13, %v3638_v57  ;;  %v3743_v27 = vadd.f32 %v3726_v54, %v3690_v36 }
 0x556   : > { %v3826_v49 = vpop.permute.xlu1 %3825  ;;  %v6507_v29 = vpop.permute.xlu0 %3561  ;;  %v3967_v25 = vadd.f32 %v6324_v10, %v3952_v34  ;;  %v3744_v34 = vadd.f32 %v3727_v52, %v3691_v9  ;;  %v3800_v6 = vadd.f32 %v3782_v32, %v3743_v27 }
 0x557   : > { %v3570_v24 = vsel %vm2497_vm5, %v6459_v61, %v6507_v29  ;;  %v3839_v61 = vsel %vm2774_vm10, %v6461_v46, %v3826_v49  ;;  %v3840_v37 = vsel %vm2774_vm10, %v3826_v49, %v6475_v44  ;;  %v3535_v46 = vadd.f32 %v6498_v23, %v6282_v26  ;;  %vm6654_vm5 = vmmov %vm6649_vm2 }
 0x558   : > { %v3977_v12 = vpack.c.bf16 %v3967_v25, %v3967_v25 }
 0x559   : > { %v3588_v56 = vadd.f32 %v6507_v29, %v3535_v46 }
 0x55a   : > { %v3719_v19 = vpop.permute.xlu1 %3718  ;;  %4567 = vmatprep.subr.msk.bf16.mxu1 %vm3043_vm11, %v3977_v12  ;;  %v3615_v45 = vpop.permute.xlu0 %3614  ;;  %v3857_v12 = vadd.f32 %v3839_v61, %v3800_v6 }
 0x55b   : > { %4061 = vmatpush1.bf16.msra.mxu1 %v3999_v7  ;;  %v3728_v42 = vsel %vm2659_vm8, %v6465_v20, %v3719_v19  ;;  %v3534_v20 = vadd.f32 %v3517_v39, %v6254_v41  ;;  %v3801_v41 = vadd.f32 %v3783_v43, %v3744_v34  ;;  %v3641_v63 = vadd.f32 %v3615_v45, %v3588_v56 }
 0x55c   : > { %v3745_v38 = vadd.f32 %v3728_v42, %v3692_v55 }
 0x55d   : > { %v3587_v17 = vadd.f32 %v3570_v24, %v3534_v20  ;;  %v3858_v49 = vadd.f32 %v3840_v37, %v3801_v41 }
 0x55e   : > { %v3773_v50 = vpop.permute.xlu1 %3772  ;;  %4568 = vmatmul.mubr.msk.bf16.vlgmr.msra.gmra.mrb[84].mxu1 %vm3131_vm13, %v6446_v35  ;;  %v3668_v51 = vpop.permute.xlu0 %3667 }
 0x55f   : > { %v3784_v16 = vsel %vm2716_vm9, %v6469_v47, %v3773_v50  ;;  %4133 = vmatprep.mubr.bf16.mxu1 %v4927_v4  ;;  %v3623_v4 = vsel %vm2551_vm6, %v6463_v53, %v3615_v45  ;;  %v3676_v2 = vsel %vm2605_vm7, %v6496_v22, %v3668_v51  ;;  %v3898_v53 = vsel %vm6653_vm4, %v6485_v60, %v6493_v1  ;;  %vm6655_vm6 = vmmov %vm6649_vm2 }
 0x560   : > { %v3802_v58 = vadd.f32 %v3784_v16, %v3745_v38  ;;  %v3640_v40 = vadd.f32 %v3623_v4, %v3587_v17  ;;  %v3694_v8 = vadd.f32 %v3668_v51, %v3641_v63  ;;  %vm6656_vm7 = vmmov %vm6649_vm2 }
 0x562   : > { %v3830_v31 = vpop.permute.xlu1 %3829  ;;  %v3721_v25 = vpop.permute.xlu0 %3720  ;;  %v3693_v28 = vadd.f32 %v3676_v2, %v3640_v40 }
 0x563   : > { %v3841_v47 = vsel %vm2774_vm10, %v6475_v44, %v3830_v31  ;;  %v3729_v18 = vsel %vm2659_vm8, %v3719_v19, %v3721_v25  ;;  %v3747_v55 = vadd.f32 %v3721_v25, %v3694_v8  ;;  %vm6657_vm8 = vmmov %vm6649_vm2 }
 0x564   : > { %v3859_v59 = vadd.f32 %v3841_v47, %v3802_v58  ;;  %v3746_v3 = vadd.f32 %v3729_v18, %v3693_v28  ;;  %v4938_v47 = vmov 0.0  }
 0x566   : > { %v3916_v62 = vadd.f32 %v3898_v53, %v3859_v59  ;;  %v3883_v44 = vpop.permute.xlu1 %3882  ;;  %v3775_v30 = vpop.permute.xlu0 %3774 }
 0x567   : > { %v3896_v22 = vsel %vm6654_vm5, %v6478_v5, %v3883_v44  ;;  %v3897_v21 = vsel %vm6655_vm6, %v3883_v44, %v6485_v60  ;;  %v3785_v33 = vsel %vm2716_vm9, %v3773_v50, %v3775_v30 }
 0x568   : > { %v3931_v7 = vadd.f32 %v6315_v11, %v3916_v62  ;;  %v3914_v26 = vadd.f32 %v3896_v22, %v3857_v12  ;;  %v3915_v23 = vadd.f32 %v3897_v21, %v3858_v49  ;;  %v3803_v13 = vadd.f32 %v3785_v33, %v3746_v3 }
 0x56a   : > { %v3929_v19 = vadd.f32 %v6315_v11, %v3914_v26  ;;  %v3930_v0 = vadd.f32 %v6315_v11, %v3915_v23  ;;  %v3832_v29 = vpop.permute.xlu0 %3831  ;;  %v3777_v48 = vpop.permute.xlu1 %3776  ;;  %v3940_v42 = vmax.f32 %v3931_v7, 0.0 }
 0x56b   : > { %v3842_v5 = vsel %vm2774_vm10, %v3830_v31, %v3832_v29  ;;  %v3786_v57 = vsel %vm2716_vm9, %v3775_v30, %v3777_v48  ;;  %vm4939_vm9 = vmmov 0  }
 0x56c   : > { %v3938_v60 = vmax.f32 %v3929_v19, 0.0  ;;  %v3939_v14 = vmax.f32 %v3930_v0, 0.0  ;;  %v3860_v50 = vadd.f32 %v3842_v5, %v3803_v13  ;;  %v3804_v16 = vadd.f32 %v3786_v57, %v3747_v55 }
 0x56d   : > { %v3955_v32 = vmul.f32 %v6322_v15, %v3940_v42 }
 0x56e   : > { %v3953_v39 = vmul.f32 %v6322_v15, %v3938_v60  ;;  %v3954_v45 = vmul.f32 %v6322_v15, %v3939_v14  ;;  %v3834_v54 = vpop.permute.xlu0 %3833  ;;  %v3889_v52 = vpop.permute.xlu1 %3888 }
 0x56f   : > { %v3843_v36 = vsel %vm2774_vm10, %v3832_v29, %v3834_v54  ;;  %v3899_v51 = vsel %vm6656_vm7, %v6493_v1, %v3889_v52  ;;  %v3970_v61 = vadd.f32 %v6324_v10, %v3955_v32  ;;  %vm4243_vm10 = vcmask 519168  }
 0x570   : > { %v3917_v9 = vadd.f32 %v3899_v51, %v3860_v50  ;;  %v3969_v24 = vadd.f32 %v6324_v10, %v3954_v45  ;;  %v3968_v38 = vadd.f32 %v6324_v10, %v3953_v39  ;;  %v3861_v43 = vadd.f32 %v3843_v36, %v3804_v16 }
 0x571   : > { %v3980_v2 = vpack.c.bf16 %v3970_v61, %v3970_v61 }
 0x572   : > { %v3932_v20 = vadd.f32 %v6315_v11, %v3917_v9  ;;  %v3891_v27 = vpop.permute.xlu1 %3890  ;;  %v3979_v34 = vpack.c.bf16 %v3969_v24, %v3969_v24  ;;  %v3978_v4 = vpack.c.bf16 %v3968_v38, %v3968_v38 }
 0x573   : > { %v3900_v58 = vsel %vm6657_vm8, %v3889_v52, %v3891_v27  ;;  %v4011_v46 = vsel %vm3043_vm11, %v3980_v2, 0 }
 0x574   : > { %v3941_v31 = vmax.f32 %v3932_v20, 0.0  ;;  %v3918_v25 = vadd.f32 %v3900_v58, %v3861_v43  ;;  %4569 = vmatprep.subr.msk.bf16.mxu1 %vm3043_vm11, %v3979_v34  ;;  %v4005_v1 = vsel %vm3043_vm11, %v3978_v4, 0 }
 0x575   : > { %4102 = vmatpush1.bf16.msra.mxu1 %v4005_v1 }
 0x576   : > { %v3956_v37 = vmul.f32 %v6322_v15, %v3941_v31  ;;  %v3933_v17 = vadd.f32 %v6315_v11, %v3918_v25  ;;  %4578 = vmatprep.subr.bf16.mxu1 %v4938_v47 }
 0x578   : > { %v3942_v6 = vmax.f32 %v3933_v17, 0.0  ;;  %4570 = vmatmul.mubr.msk.bf16.vlgmr.msra.gmra.mrb[88].mxu1 %vm3131_vm13, %v6446_v35  ;;  %v3971_v41 = vadd.f32 %v6324_v10, %v3956_v37 }
 0x579   : > { %4580 = vmatprep.mubr.msk.bf16.mxu1 %vm4939_vm9, %v4938_v47 }
 0x57a   : > { %v3957_v59 = vmul.f32 %v6322_v15, %v3942_v6  ;;  %v3981_v53 = vpack.c.bf16 %v3971_v41, %v3971_v41 }
 0x57c   : > { %4571 = vmatprep.subr.msk.bf16.mxu0 %vm3043_vm11, %v3981_v53  ;;  %v3972_v11 = vadd.f32 %v6324_v10, %v3957_v59 }
 0x57d   : > { %4143 = vmatpush1.bf16.msra.mxu0 %v4011_v46 }
 0x57e   : > { %v3982_v40 = vpack.c.bf16 %v3972_v11, %v3972_v11 }
 0x57f   : > { %v3987_v15 = vpop.permute.xlu0 %3986 }
 0x580   : > { %4572 = vmatmul.mubr.msk.bf16.vlgmr.msra.gmra.mrb[60].mxu0 %vm3131_vm13, %v6446_v35  ;;  %v4017_v12 = vsel %vm3043_vm11, %v3982_v40, 0 }
 0x581   : > { %4579 = vmatpush3.bf16.msra.mxu1 %v4017_v12 }
 0x584   : > { %4581 = vmatmul.mubr.msk.bf16.vlgmr.msra.gmra.mrb[92].mxu1 %vm3131_vm13, %v6446_v35 }
 0x5ff   : > { %v4053_v49 = vpop.f32.mrb[80].mxu1 }
 0x600   : > { %v4054_v62 = vadd.f32 %v4053_v49, %v3987_v15  ;;  %v4055_v18 = vpop.f32.mrb[81].mxu1 }
 0x601   : > { %v4056_v44 = vadd.f32 %v4055_v18, %v3987_v15  ;;  %v4057_v30 = vpop.f32.mrb[82].mxu1 }
 0x602   : > { %v4058_v10 = vpop.f32.mrb[83].mxu1 }
 0x603   : > { %v4231_v56 = vcombine.low %v4054_v62, %v4056_v44 }
 0x605   : > { %4239 = vst [vmem:[%s6620_s17] sm:$0xff] %v4231_v56 }
 0x631   : > { %v4094_v28 = vpop.f32.mrb[84].mxu1 }
 0x632   : > { %v4095_v35 = vadd.f32 %v4094_v28, %v3987_v15  ;;  %v4096_v22 = vpop.f32.mrb[85].mxu1 }
 0x633   : > { %v4097_v21 = vadd.f32 %v4096_v22, %v3987_v15  ;;  %v4098_v7 = vpop.f32.mrb[86].mxu1 }
 0x634   : > { %v4099_v26 = vpop.f32.mrb[87].mxu1 }
 0x635   : > { %v4232_v23 = vcombine.low %v4095_v35, %v4097_v21 }
 0x637   : > { %4240 = vst [vmem:[%s6620_s17 + $0x8] sm:$0xff] %v4232_v23 }
 0x64b   : > { %v4135_v33 = vpop.f32.mrb[88].mxu1 }
 0x64c   : > { %v4136_v63 = vadd.f32 %v4135_v33, %v3987_v15  ;;  %v4137_v3 = vpop.f32.mrb[89].mxu1 }
 0x64d   : > { %v4138_v19 = vadd.f32 %v4137_v3, %v3987_v15  ;;  %v4139_v0 = vpop.f32.mrb[90].mxu1 }
 0x64e   : > { %v4140_v29 = vpop.f32.mrb[91].mxu1 }
 0x64f   : > { %v4233_v48 = vcombine.low %v4136_v63, %v4138_v19 }
 0x651   : > { %4241 = vst [vmem:[%s6620_s17 + $0x10] sm:$0xff] %v4233_v48 }
 0x653   : > { %v4176_v8 = vpop.f32.mrb[60].mxu0 }
 0x654   : > { %v4177_v13 = vadd.f32 %v4176_v8, %v3987_v15  ;;  %v4178_v5 = vpop.f32.mrb[61].mxu0 }
 0x655   : > { %v4179_v42 = vadd.f32 %v4178_v5, %v3987_v15  ;;  %v4180_v60 = vpop.f32.mrb[62].mxu0 }
 0x656   : > { %v4181_v14 = vpop.f32.mrb[63].mxu0 }
 0x657   : > { %v4234_v57 = vcombine.low %v4177_v13, %v4179_v42  ;;  %v4217_v55 = vpop.f32.mrb[92].mxu1 }
 0x658   : > { %v4218_v39 = vadd.f32 %v4217_v55, %v3987_v15  ;;  %v4582_v45 = vpop.f32.mrb[93].mxu1 }
 0x659   : > { %4242 = vst [vmem:[%s6620_s17 + $0x18] sm:$0xff] %v4234_v57  ;;  %v4220_v50 = vpop.f32.mrb[94].mxu1 }
 0x65a   : > { %4244 = vst.msk [vmem:[%s6620_s17 + $0x20] sm:$0xf] %vm4243_vm10, %v4218_v39  ;;  %v4583_v54 = vpop.f32.mrb[95].mxu1 }
 0x65b PF: > { %s24_s29 = sadd.s32 1, %s4925_s29  }
 0x65c   : > { %p21_p4 = scmp.ge.s32.totalorder %s24_s29, 4  }
 0x65e   :  { %23 = sbr.rel (!%p21_p4) target bundleno = 1 (0x1), region = 109 }

</bundles_post_ra>
